<compile_context>
chip_gen: v7x
topology: tpu7x:2x2x1
jax: 0.10.0
libtpu: 0.0.40
codegen_flags: <defaults>
</compile_context>

<pallas_src>
import functools

import jax
import jax.numpy as jnp
from jax import lax
from jax.experimental import pallas as pl
from jax.experimental.pallas import tpu as pltpu

EMB = 192
HEADS = 4
DIM_HEAD = EMB // HEADS                              # 48
FF_MULT = 4
FF_DIM = EMB * FF_MULT                               # 768
CONV_EXP = 2
INNER = EMB * CONV_EXP                               # 384
KERNEL_SIZE = 32
PAD_L = KERNEL_SIZE // 2                             # 16
PAD_R = KERNEL_SIZE // 2 - (KERNEL_SIZE + 1) % 2     # 15
N_ENCODERS = 4
MAX_POS_EMB = 512
LN_EPS = 1e-5
BN_EPS = 1e-5
SELU_LAMBDA = 1.0507009873554805
SELU_ALPHA = 1.6732632423543772

ROW_TILE = 512                      # row tile for the M-parallel fused kernels
ATTN_CONV_VMEM = 32 * 1024 * 1024   # explicit scoped-VMEM limit (safe on v5e)


def _row_tile(m):
    return m if m <= ROW_TILE else ROW_TILE


def _params(n_axes=1, vmem_limit=None):
    return pltpu.CompilerParams(dimension_semantics=("parallel",) * n_axes,
                                vmem_limit_bytes=vmem_limit)


def _ln(x, g, b):
    mean = jnp.mean(x, axis=-1, keepdims=True)
    var = jnp.mean(jnp.square(x - mean), axis=-1, keepdims=True)
    return (x - mean) * lax.rsqrt(var + LN_EPS) * g + b


def _bf16(x):
    return x.astype(jnp.bfloat16)


def _sigmoid(x):
    # numerically-stable logistic: the exp argument is always <= 0.
    z = jnp.exp(-jnp.abs(x))
    return jnp.where(x >= 0, 1.0 / (1.0 + z), z / (1.0 + z))


# --------------------------------------------------------------------------
# Pallas kernels
# --------------------------------------------------------------------------

def _linear_kernel(x_ref, w_ref, b_ref, o_ref, *, activation):
    acc = jnp.dot(_bf16(x_ref[...]), w_ref[...],
                  preferred_element_type=jnp.float32) + b_ref[...]
    if activation == "selu":
        neg = SELU_ALPHA * (jnp.exp(jnp.minimum(acc, 0.0)) - 1.0)
        acc = SELU_LAMBDA * jnp.where(acc > 0, acc, neg)
    o_ref[...] = acc


def linear(x, w, b, activation="none"):
    m, k = x.shape
    n = w.shape[1]
    tm = _row_tile(m)
    return pl.pallas_call(
        functools.partial(_linear_kernel, activation=activation),
        out_shape=jax.ShapeDtypeStruct((m, n), jnp.float32),
        grid=(pl.cdiv(m, tm),),
        in_specs=[pl.BlockSpec((tm, k), lambda i: (i, 0)),
                  pl.BlockSpec((k, n), lambda i: (0, 0)),
                  pl.BlockSpec((1, n), lambda i: (0, 0))],
        out_specs=pl.BlockSpec((tm, n), lambda i: (i, 0)),
        compiler_params=_params(),
    )(x, w, b)


def _ff_kernel(x_ref, g_ref, b_ref, w1_ref, b1_ref, w2_ref, b2_ref, *rest,
               post_ln):
    # LN -> W1 -> swish -> W2 -> x + 0.5*h  (optionally followed by post-LN)
    if post_ln:
        pg_ref, pb_ref, o_ref = rest
    else:
        (o_ref,) = rest
    x = x_ref[...]
    h = _ln(x, g_ref[...], b_ref[...])
    h = jnp.dot(_bf16(h), w1_ref[...],
                preferred_element_type=jnp.float32) + b1_ref[...]
    h = h * _sigmoid(h)                                   # swish
    h = jnp.dot(_bf16(h), w2_ref[...],
                preferred_element_type=jnp.float32) + b2_ref[...]
    y = x + 0.5 * h
    if post_ln:
        y = _ln(y, pg_ref[...], pb_ref[...])
    o_ref[...] = y


def feed_forward(x, ln_g, ln_b, w1, b1, w2, b2, post=None):
    m, d = x.shape
    f = w1.shape[1]
    tm = _row_tile(m)
    in_specs = [pl.BlockSpec((tm, d), lambda i: (i, 0)),
                pl.BlockSpec((1, d), lambda i: (0, 0)),
                pl.BlockSpec((1, d), lambda i: (0, 0)),
                pl.BlockSpec((d, f), lambda i: (0, 0)),
                pl.BlockSpec((1, f), lambda i: (0, 0)),
                pl.BlockSpec((f, d), lambda i: (0, 0)),
                pl.BlockSpec((1, d), lambda i: (0, 0))]
    args = [x, ln_g, ln_b, w1, b1, w2, b2]
    if post is not None:
        in_specs += [pl.BlockSpec((1, d), lambda i: (0, 0)),
                     pl.BlockSpec((1, d), lambda i: (0, 0))]
        args += [post[0], post[1]]
    return pl.pallas_call(
        functools.partial(_ff_kernel, post_ln=post is not None),
        out_shape=jax.ShapeDtypeStruct((m, d), jnp.float32),
        grid=(pl.cdiv(m, tm),),
        in_specs=in_specs,
        out_specs=pl.BlockSpec((tm, d), lambda i: (i, 0)),
        compiler_params=_params(),
    )(*args)


def _attn_kernel(x_ref, g_ref, b_ref, wq_ref, wk_ref, wv_ref, win_ref,
                 wo_ref, bo_ref, o_ref, *, scale):
    # Fully fused attention module for one batch element:
    #   LN -> q/k/v (head-major weight slices, no activation lane slices)
    #   -> qk^T + Shaw rel-pos (q @ window^T, in-kernel skew) -> softmax
    #   -> p @ v -> concat heads -> ONE 192-contraction output matmul
    #   -> + residual.
    x = x_ref[0]                                           # [n, EMB] f32
    n = x.shape[0]
    h = _bf16(_ln(x, g_ref[...], b_ref[...]))              # [n, EMB] bf16
    win = win_ref[...]                                     # [2n-1, dh] bf16

    heads_out = []
    for hd in range(HEADS):
        qh = jnp.dot(h, wq_ref[hd], preferred_element_type=jnp.float32)
        kh = jnp.dot(h, wk_ref[hd], preferred_element_type=jnp.float32)
        vh = jnp.dot(h, wv_ref[hd], preferred_element_type=jnp.float32)
        qb = _bf16(qh)

        dots = lax.dot_general(qb, _bf16(kh), (((1,), (1,)), ((), ())),
                               preferred_element_type=jnp.float32)   # [n, n]

        # Shaw relative positions: rel[i, r] = q[i] . window'[r] with the
        # window ordered so that r=0 <-> distance +(n-1).  The relative shift
        # pos[i, j] = rel[i, (n-1)-i+j] is done with static per-row slices
        # (n is a trace-time constant); the [n, n, dh] tensor and the
        # [b, h, n, 2n-1] pos tensor are never materialized.
        rel = lax.dot_general(qb, win, (((1,), (1,)), ((), ())),
                              preferred_element_type=jnp.float32)    # [n, 2n-1]
        pos = jnp.concatenate(
            [rel[i:i + 1, (n - 1) - i:(2 * n - 1) - i] for i in range(n)],
            axis=0)                                                   # [n, n]

        logits = (dots + pos) * scale
        logits = logits - jnp.max(logits, axis=-1, keepdims=True)
        p = jnp.exp(logits)
        p = p / jnp.sum(p, axis=-1, keepdims=True)
        heads_out.append(jnp.dot(_bf16(p), _bf16(vh),
                                 preferred_element_type=jnp.float32))  # [n, dh]

    o_all = _bf16(jnp.concatenate(heads_out, axis=1))      # [n, EMB]
    out = jnp.dot(o_all, wo_ref[...],
                  preferred_element_type=jnp.float32) + bo_ref[...]
    o_ref[0] = x + out                                     # residual


def attention_module(x, ln_g, ln_b, wq, wk, wv, window, wo, bo):
    b, n, d = x.shape
    length = window.shape[0]
    return pl.pallas_call(
        functools.partial(_attn_kernel, scale=DIM_HEAD ** -0.5),
        out_shape=jax.ShapeDtypeStruct((b, n, d), jnp.float32),
        grid=(b,),
        in_specs=[pl.BlockSpec((1, n, d), lambda i: (i, 0, 0)),
                  pl.BlockSpec((1, d), lambda i: (0, 0)),
                  pl.BlockSpec((1, d), lambda i: (0, 0)),
                  pl.BlockSpec((HEADS, d, DIM_HEAD), lambda i: (0, 0, 0)),
                  pl.BlockSpec((HEADS, d, DIM_HEAD), lambda i: (0, 0, 0)),
                  pl.BlockSpec((HEADS, d, DIM_HEAD), lambda i: (0, 0, 0)),
                  pl.BlockSpec((length, DIM_HEAD), lambda i: (0, 0)),
                  pl.BlockSpec((d, d), lambda i: (0, 0)),
                  pl.BlockSpec((1, d), lambda i: (0, 0))],
        out_specs=pl.BlockSpec((1, n, d), lambda i: (i, 0, 0)),
        compiler_params=_params(vmem_limit=ATTN_CONV_VMEM),
    )(x, ln_g, ln_b, wq, wk, wv, window, wo, bo)


def _conv_module_kernel(x_ref, g_ref, b_ref, w1_ref, b1_ref, dww_ref, dws_ref,
                        dwt_ref, w2_ref, b2_ref, o_ref, pad_ref):
    # LN -> pointwise(2*INNER) -> GLU -> depthwise conv (+folded bias/BN)
    # -> swish -> pointwise(EMB) -> + residual.  One batch element per step.
    x = x_ref[0]                                           # [n, EMB]
    n = x.shape[0]
    h = _ln(x, g_ref[...], b_ref[...])
    h = jnp.dot(_bf16(h), w1_ref[...],
                preferred_element_type=jnp.float32) + b1_ref[...]
    h = h[:, :INNER] * _sigmoid(h[:, INNER:])              # GLU -> [n, INNER]

    # "same" padding (16, 15) built in VMEM scratch; only the pad rows are
    # zeroed (the body rows are overwritten every step).
    pad_ref[:PAD_L, :] = jnp.zeros((PAD_L, INNER), jnp.float32)
    pad_ref[PAD_L + n:, :] = jnp.zeros((KERNEL_SIZE - PAD_L, INNER),
                                       jnp.float32)
    pad_ref[PAD_L:PAD_L + n, :] = h

    w_all = dww_ref[...]                                   # [32, INNER], once
    acc = jnp.zeros((n, INNER), jnp.float32)
    for kk in range(KERNEL_SIZE):                          # depthwise conv
        acc = acc + pad_ref[kk:kk + n, :] * w_all[kk:kk + 1, :]
    acc = acc * dws_ref[...] + dwt_ref[...]                # conv bias + BN folded
    acc = acc * _sigmoid(acc)                              # swish
    out = jnp.dot(_bf16(acc), w2_ref[...],
                  preferred_element_type=jnp.float32) + b2_ref[...]
    o_ref[0] = x + out                                     # residual


def conv_module(x, p):
    b, n, d = x.shape
    return pl.pallas_call(
        _conv_module_kernel,
        out_shape=jax.ShapeDtypeStruct((b, n, d), jnp.float32),
        grid=(b,),
        in_specs=[pl.BlockSpec((1, n, d), lambda i: (i, 0, 0)),
                  pl.BlockSpec((1, d), lambda i: (0, 0)),
                  pl.BlockSpec((1, d), lambda i: (0, 0)),
                  pl.BlockSpec((d, 2 * INNER), lambda i: (0, 0)),
                  pl.BlockSpec((1, 2 * INNER), lambda i: (0, 0)),
                  pl.BlockSpec((KERNEL_SIZE, INNER), lambda i: (0, 0)),
                  pl.BlockSpec((1, INNER), lambda i: (0, 0)),
                  pl.BlockSpec((1, INNER), lambda i: (0, 0)),
                  pl.BlockSpec((INNER, d), lambda i: (0, 0)),
                  pl.BlockSpec((1, d), lambda i: (0, 0))],
        out_specs=pl.BlockSpec((1, n, d), lambda i: (i, 0, 0)),
        scratch_shapes=[pltpu.VMEM((n + KERNEL_SIZE, INNER), jnp.float32)],
        compiler_params=_params(vmem_limit=ATTN_CONV_VMEM),
    )(x, p["conv_ln_g"], p["conv_ln_b"], p["pw1_w"], p["pw1_b"],
      p["dw_w"], p["dw_scale"], p["dw_shift"], p["pw2_w"], p["pw2_b"])


# --------------------------------------------------------------------------
# Model forward (thin JAX glue around the fused Pallas kernels)
# --------------------------------------------------------------------------

def _shaw_window(emb_table, n):
    # Window ordered so that row r corresponds to relative distance (n-1)-r.
    if n - 1 <= MAX_POS_EMB:
        w = emb_table[MAX_POS_EMB - (n - 1):MAX_POS_EMB + n]   # static slice
        w = jnp.flip(w, axis=0)
    else:
        # clipped-distance gather fallback for very long sequences
        idx = jnp.clip((n - 1) - jnp.arange(2 * n - 1),
                       -MAX_POS_EMB, MAX_POS_EMB) + MAX_POS_EMB
        w = emb_table[idx]
    return w.astype(jnp.bfloat16)


def conformer_block(x, p, window):
    b, n, d = x.shape
    m = b * n

    # ff1: x + 0.5 * PreNorm(FeedForward)       (fully fused)
    x2 = feed_forward(x.reshape(m, d), p["ff1_ln_g"], p["ff1_ln_b"],
                      p["ff1_w1"], p["ff1_b1"], p["ff1_w2"], p["ff1_b2"])

    # attention: x + PreNorm(Attention), one fused kernel (LN + qkv + rel-pos
    # + softmax + output projection + residual)
    x3 = attention_module(x2.reshape(b, n, d), p["attn_ln_g"], p["attn_ln_b"],
                          p["wq_h"], p["wk_h"], p["wv_h"], window,
                          p["to_out_w"], p["to_out_b"])

    # conv module: x + (LN -> pw -> GLU -> dwconv -> BN -> swish -> pw)
    x3 = conv_module(x3, p)

    # ff2: x + 0.5 * PreNorm(FeedForward), fused with the trailing post-LN
    x2 = feed_forward(x3.reshape(m, d), p["ff2_ln_g"], p["ff2_ln_b"],
                      p["ff2_w1"], p["ff2_b1"], p["ff2_w2"], p["ff2_b2"],
                      post=(p["post_ln_g"], p["post_ln_b"]))
    return x2.reshape(b, n, d)


def conformer_forward(feats, params):
    # TODO(synk): WavLM checkpoint loading + WavLM.extract_features omitted;
    #             `feats` is the extracted [B, T, 1024] feature tensor.
    b, t, f_in = feats.shape

    # LL projection with first_bn (inference BatchNorm2d) folded in, + SELU.
    # Input cast to bf16 (the matmul already runs in bf16) to halve the DMA.
    x = linear(feats.reshape(b * t, f_in).astype(jnp.bfloat16),
               params["LL_w"], params["LL_b"], activation="selu")
    x = x.reshape(b, t, EMB)

    cls = jnp.broadcast_to(params["class_token"][None], (b, 1, EMB))
    x = jnp.concatenate([cls, x], axis=1)                    # [b, t+1, EMB]
    n = t + 1

    for p in params["blocks"]:
        window = _shaw_window(p["rel_pos_emb"], n)            # [2n-1, dh] bf16
        x = conformer_block(x, p, window)

    emb = x[:, 0, :]
    return linear(emb, params["fc5_w"], params["fc5_b"])


# --------------------------------------------------------------------------
# Deterministic synthetic parameter init (BN folding done at prep time)
# --------------------------------------------------------------------------

def _head_major(w):
    # [EMB, EMB] column-split per head -> [HEADS, EMB, DIM_HEAD]
    return jnp.transpose(w.reshape(EMB, HEADS, DIM_HEAD),
                         (1, 0, 2)).astype(jnp.bfloat16)


def init_params(key):
    kit = iter(jax.random.split(key, 96))

    def nrm(shape, scale=0.02):
        return scale * jax.random.normal(next(kit), shape, jnp.float32)

    def bvec(shape):
        return 0.01 * jax.random.normal(next(kit), shape, jnp.float32)

    params = {}

    # LL (1024 -> 192); first_bn = BatchNorm2d(1) inference (mean=0, var=1)
    # folded into the weights (order LL -> BN -> SELU, matching the module).
    ll_w = nrm((1024, EMB))
    ll_b = bvec((1, EMB))
    bn_g = 1.0 + 0.1 * jax.random.normal(next(kit), (), jnp.float32)
    bn_b = 0.1 * jax.random.normal(next(kit), (), jnp.float32)
    a = bn_g / jnp.sqrt(1.0 + BN_EPS)
    params["LL_w"] = (ll_w * a).astype(jnp.bfloat16)
    params["LL_b"] = ll_b * a + bn_b

    params["class_token"] = jax.random.uniform(next(kit), (1, EMB), jnp.float32)
    params["fc5_w"] = nrm((EMB, 2)).astype(jnp.bfloat16)
    params["fc5_b"] = bvec((1, 2))

    # One ConformerBlock's parameters; _get_clones() deep-copies the same
    # freshly-initialised block, so all 4 encoder blocks share identical values.
    blk = {}
    blk["ff1_ln_g"] = jnp.ones((1, EMB), jnp.float32)
    blk["ff1_ln_b"] = jnp.zeros((1, EMB), jnp.float32)
    blk["ff1_w1"] = nrm((EMB, FF_DIM)).astype(jnp.bfloat16)
    blk["ff1_b1"] = bvec((1, FF_DIM))
    blk["ff1_w2"] = nrm((FF_DIM, EMB)).astype(jnp.bfloat16)
    blk["ff1_b2"] = bvec((1, EMB))

    blk["attn_ln_g"] = jnp.ones((1, EMB), jnp.float32)
    blk["attn_ln_b"] = jnp.zeros((1, EMB), jnp.float32)
    w_q = nrm((EMB, EMB))
    w_kv = nrm((EMB, 2 * EMB))
    blk["wq_h"] = _head_major(w_q)
    blk["wk_h"] = _head_major(w_kv[:, :EMB])
    blk["wv_h"] = _head_major(w_kv[:, EMB:])
    blk["to_out_w"] = nrm((EMB, EMB)).astype(jnp.bfloat16)
    blk["to_out_b"] = bvec((1, EMB))
    blk["rel_pos_emb"] = nrm((2 * MAX_POS_EMB + 1, DIM_HEAD))

    blk["conv_ln_g"] = jnp.ones((1, EMB), jnp.float32)
    blk["conv_ln_b"] = jnp.zeros((1, EMB), jnp.float32)
    blk["pw1_w"] = nrm((EMB, 2 * INNER)).astype(jnp.bfloat16)
    blk["pw1_b"] = bvec((1, 2 * INNER))
    blk["dw_w"] = nrm((KERNEL_SIZE, INNER))
    dw_b = bvec((1, INNER))
    bn1_g = 1.0 + 0.1 * jax.random.normal(next(kit), (1, INNER), jnp.float32)
    bn1_b = 0.1 * jax.random.normal(next(kit), (1, INNER), jnp.float32)
    s = bn1_g / jnp.sqrt(1.0 + BN_EPS)      # BatchNorm1d inference, mean=0 var=1
    blk["dw_scale"] = s
    blk["dw_shift"] = dw_b * s + bn1_b      # conv bias folded through the BN
    blk["pw2_w"] = nrm((INNER, EMB)).astype(jnp.bfloat16)
    blk["pw2_b"] = bvec((1, EMB))

    blk["ff2_ln_g"] = jnp.ones((1, EMB), jnp.float32)
    blk["ff2_ln_b"] = jnp.zeros((1, EMB), jnp.float32)
    blk["ff2_w1"] = nrm((EMB, FF_DIM)).astype(jnp.bfloat16)
    blk["ff2_b1"] = bvec((1, FF_DIM))
    blk["ff2_w2"] = nrm((FF_DIM, EMB)).astype(jnp.bfloat16)
    blk["ff2_b2"] = bvec((1, EMB))

    blk["post_ln_g"] = jnp.ones((1, EMB), jnp.float32)
    blk["post_ln_b"] = jnp.zeros((1, EMB), jnp.float32)

    params["blocks"] = [blk] * N_ENCODERS
    return params


if __name__ == "__main__":
    key = jax.random.PRNGKey(0)
    pkey, xkey = jax.random.split(key)
    params = init_params(pkey)

    B, T = 2, 8
    feats = jax.random.normal(xkey, (B, T, 1024), jnp.float32)  # WavLM features stand-in

    out = jax.jit(conformer_forward)(feats, params)
    out = jax.block_until_ready(out)

    assert out.shape == (B, 2), out.shape
    assert bool(jnp.all(jnp.isfinite(out)))
    print("KERNEL_OK")
</pallas_src>

<mosaic_0001>
module attributes {stable_mosaic.version = 11 : i64} {
  func.func @_linear_kernel(%arg0: i32, %arg1: memref<16x1024xbf16, #tpu.memory_space<vmem>>, %arg2: memref<1024x192xbf16, #tpu.memory_space<vmem>>, %arg3: memref<1x192xf32, #tpu.memory_space<vmem>>, %arg4: memref<16x192xf32, #tpu.memory_space<vmem>>) attributes {dimension_semantics = [#tpu.dimension_semantics<parallel>], iteration_bounds = array<i64: 1>, scalar_prefetch = 0 : i64, scratch_operands = 0 : i64, tpu.core_type = #tpu.core_type<tc>, window_params = [{transform_indices = @transform_0, window_bounds = array<i64: 16, 1024>}, {pipeline_mode = #tpu.pipeline_mode<synchronous>, transform_indices = @transform_1, window_bounds = array<i64: 1024, 192>}, {pipeline_mode = #tpu.pipeline_mode<synchronous>, transform_indices = @transform_2, window_bounds = array<i64: 1, 192>}, {transform_indices = @transform_3, window_bounds = array<i64: 16, 192>}]} {
    %c0 = arith.constant 0 : index
    %c0_0 = arith.constant 0 : index
    %0 = vector.load %arg1[%c0, %c0_0] : memref<16x1024xbf16, #tpu.memory_space<vmem>>, vector<16x1024xbf16>
    %c0_1 = arith.constant 0 : index
    %c0_2 = arith.constant 0 : index
    %1 = vector.load %arg2[%c0_1, %c0_2] : memref<1024x192xbf16, #tpu.memory_space<vmem>>, vector<1024x192xbf16>
    %cst = arith.constant dense<0.000000e+00> : vector<16x192xf32>
    %2 = tpu.matmul %0, %1, %cst {dimension_numbers = #tpu.dot_dimension_numbers<[1], [0], [0], [1], [0, 0, 1, 1], [], []>} : vector<16x1024xbf16>, vector<1024x192xbf16>, vector<16x192xf32> -> vector<16x192xf32>
    %c0_3 = arith.constant 0 : index
    %c0_4 = arith.constant 0 : index
    %3 = vector.load %arg3[%c0_3, %c0_4] : memref<1x192xf32, #tpu.memory_space<vmem>>, vector<1x192xf32>
    %4 = vector.broadcast %3 : vector<1x192xf32> to vector<16x192xf32>
    %5 = arith.addf %2, %4 : vector<16x192xf32>
    %cst_5 = arith.constant 0.000000e+00 : f32
    %6 = vector.broadcast %cst_5 : f32 to vector<16x192xf32>
    %7 = arith.minimumf %5, %6 : vector<16x192xf32>
    %8 = math.exp %7 : vector<16x192xf32>
    %cst_6 = arith.constant 1.000000e+00 : f32
    %9 = vector.broadcast %cst_6 : f32 to vector<16x192xf32>
    %10 = arith.subf %8, %9 : vector<16x192xf32>
    %cst_7 = arith.constant 1.67326319 : f32
    %11 = vector.broadcast %cst_7 : f32 to vector<16x192xf32>
    %12 = arith.mulf %11, %10 : vector<16x192xf32>
    %cst_8 = arith.constant 0.000000e+00 : f32
    %13 = vector.broadcast %cst_8 : f32 to vector<16x192xf32>
    %14 = arith.cmpf ogt, %5, %13 : vector<16x192xf32>
    %15 = arith.select %14, %5, %12 : vector<16x192xi1>, vector<16x192xf32>
    %cst_9 = arith.constant 1.05070102 : f32
    %16 = vector.broadcast %cst_9 : f32 to vector<16x192xf32>
    %17 = arith.mulf %16, %15 : vector<16x192xf32>
    %c0_10 = arith.constant 0 : index
    %c0_11 = arith.constant 0 : index
    %18 = vector.load %arg4[%c0_10, %c0_11] : memref<16x192xf32, #tpu.memory_space<vmem>>, vector<16x192xf32>
    tpu.vector_store %arg4[%c0_10, %c0_11], %17 {strides = array<i32>} : memref<16x192xf32, #tpu.memory_space<vmem>>, vector<16x192xf32>,
    return
  }
  func.func @transform_0(%arg0: i32) -> (i32, i32) {
    %c0_i32 = arith.constant 0 : i32
    %c0_i32_0 = arith.constant 0 : i32
    return %arg0, %c0_i32 : i32, i32
  }
  func.func @transform_1(%arg0: i32) -> (i32, i32) {
    %c0_i32 = arith.constant 0 : i32
    %c0_i32_0 = arith.constant 0 : i32
    %c0_i32_1 = arith.constant 0 : i32
    return %c0_i32, %c0_i32_0 : i32, i32
  }
  func.func @transform_2(%arg0: i32) -> (i32, i32) {
    %c0_i32 = arith.constant 0 : i32
    %c0_i32_0 = arith.constant 0 : i32
    %c0_i32_1 = arith.constant 0 : i32
    return %c0_i32, %c0_i32_0 : i32, i32
  }
  func.func @transform_3(%arg0: i32) -> (i32, i32) {
    %c0_i32 = arith.constant 0 : i32
    %c0_i32_0 = arith.constant 0 : i32
    return %arg0, %c0_i32 : i32, i32
  }
}

module attributes {stable_mosaic.version = 11 : i64} {
  func.func @_ff_kernel(%arg0: i32, %arg1: memref<18x192xf32, #tpu.memory_space<vmem>>, %arg2: memref<1x192xf32, #tpu.memory_space<vmem>>, %arg3: memref<1x192xf32, #tpu.memory_space<vmem>>, %arg4: memref<192x768xbf16, #tpu.memory_space<vmem>>, %arg5: memref<1x768xf32, #tpu.memory_space<vmem>>, %arg6: memref<768x192xbf16, #tpu.memory_space<vmem>>, %arg7: memref<1x192xf32, #tpu.memory_space<vmem>>, %arg8: memref<18x192xf32, #tpu.memory_space<vmem>>) attributes {dimension_semantics = [#tpu.dimension_semantics<parallel>], iteration_bounds = array<i64: 1>, scalar_prefetch = 0 : i64, scratch_operands = 0 : i64, tpu.core_type = #tpu.core_type<tc>, window_params = [{transform_indices = @transform_0, window_bounds = array<i64: 18, 192>}, {pipeline_mode = #tpu.pipeline_mode<synchronous>, transform_indices = @transform_1, window_bounds = array<i64: 1, 192>}, {pipeline_mode = #tpu.pipeline_mode<synchronous>, transform_indices = @transform_2, window_bounds = array<i64: 1, 192>}, {pipeline_mode = #tpu.pipeline_mode<synchronous>, transform_indices = @transform_3, window_bounds = array<i64: 192, 768>}, {pipeline_mode = #tpu.pipeline_mode<synchronous>, transform_indices = @transform_4, window_bounds = array<i64: 1, 768>}, {pipeline_mode = #tpu.pipeline_mode<synchronous>, transform_indices = @transform_5, window_bounds = array<i64: 768, 192>}, {pipeline_mode = #tpu.pipeline_mode<synchronous>, transform_indices = @transform_6, window_bounds = array<i64: 1, 192>}, {transform_indices = @transform_7, window_bounds = array<i64: 18, 192>}]} {
    %c0 = arith.constant 0 : index
    %c0_0 = arith.constant 0 : index
    %0 = vector.load %arg1[%c0, %c0_0] : memref<18x192xf32, #tpu.memory_space<vmem>>, vector<18x192xf32>
    %c0_1 = arith.constant 0 : index
    %c0_2 = arith.constant 0 : index
    %1 = vector.load %arg2[%c0_1, %c0_2] : memref<1x192xf32, #tpu.memory_space<vmem>>, vector<1x192xf32>
    %c0_3 = arith.constant 0 : index
    %c0_4 = arith.constant 0 : index
    %2 = vector.load %arg3[%c0_3, %c0_4] : memref<1x192xf32, #tpu.memory_space<vmem>>, vector<1x192xf32>
    %cst = arith.constant dense<0.000000e+00> : vector<18xf32>
    %3 = vector.multi_reduction <add>, %0, %cst [1] : vector<18x192xf32> to vector<18xf32>
    %4 = vector.shape_cast %3 : vector<18xf32> to vector<18x1xf32>
    %cst_5 = arith.constant 1.920000e+02 : f32
    %5 = vector.broadcast %cst_5 : f32 to vector<18x1xf32>
    %6 = arith.divf %4, %5 : vector<18x1xf32>
    %7 = vector.broadcast %6 : vector<18x1xf32> to vector<18x192xf32>
    %8 = arith.subf %0, %7 : vector<18x192xf32>
    %9 = arith.mulf %8, %8 : vector<18x192xf32>
    %cst_6 = arith.constant dense<0.000000e+00> : vector<18xf32>
    %10 = vector.multi_reduction <add>, %9, %cst_6 [1] : vector<18x192xf32> to vector<18xf32>
    %11 = vector.shape_cast %10 : vector<18xf32> to vector<18x1xf32>
    %cst_7 = arith.constant 1.920000e+02 : f32
    %12 = vector.broadcast %cst_7 : f32 to vector<18x1xf32>
    %13 = arith.divf %11, %12 : vector<18x1xf32>
    %14 = vector.broadcast %6 : vector<18x1xf32> to vector<18x192xf32>
    %15 = arith.subf %0, %14 : vector<18x192xf32>
    %cst_8 = arith.constant 9.99999974E-6 : f32
    %16 = vector.broadcast %cst_8 : f32 to vector<18x1xf32>
    %17 = arith.addf %13, %16 : vector<18x1xf32>
    %18 = math.rsqrt %17 : vector<18x1xf32>
    %19 = vector.broadcast %18 : vector<18x1xf32> to vector<18x192xf32>
    %20 = arith.mulf %15, %19 : vector<18x192xf32>
    %21 = vector.broadcast %1 : vector<1x192xf32> to vector<18x192xf32>
    %22 = arith.mulf %20, %21 : vector<18x192xf32>
    %23 = vector.broadcast %2 : vector<1x192xf32> to vector<18x192xf32>
    %24 = arith.addf %22, %23 : vector<18x192xf32>
    %25 = arith.truncf %24 : vector<18x192xf32> to vector<18x192xbf16>
    %c0_9 = arith.constant 0 : index
    %c0_10 = arith.constant 0 : index
    %26 = vector.load %arg4[%c0_9, %c0_10] : memref<192x768xbf16, #tpu.memory_space<vmem>>, vector<192x768xbf16>
    %cst_11 = arith.constant dense<0.000000e+00> : vector<18x768xf32>
    %27 = tpu.matmul %25, %26, %cst_11 {dimension_numbers = #tpu.dot_dimension_numbers<[1], [0], [0], [1], [0, 0, 1, 1], [], []>} : vector<18x192xbf16>, vector<192x768xbf16>, vector<18x768xf32> -> vector<18x768xf32>
    %c0_12 = arith.constant 0 : index
    %c0_13 = arith.constant 0 : index
    %28 = vector.load %arg5[%c0_12, %c0_13] : memref<1x768xf32, #tpu.memory_space<vmem>>, vector<1x768xf32>
    %29 = vector.broadcast %28 : vector<1x768xf32> to vector<18x768xf32>
    %30 = arith.addf %27, %29 : vector<18x768xf32>
    %31 = math.absf %30 : vector<18x768xf32>
    %cst_14 = arith.constant 0.000000e+00 : f32
    %32 = vector.broadcast %cst_14 : f32 to vector<18x768xf32>
    %33 = arith.subf %32, %31 : vector<18x768xf32>
    %34 = math.exp %33 : vector<18x768xf32>
    %cst_15 = arith.constant 0.000000e+00 : f32
    %35 = vector.broadcast %cst_15 : f32 to vector<18x768xf32>
    %36 = arith.cmpf oge, %30, %35 : vector<18x768xf32>
    %cst_16 = arith.constant 1.000000e+00 : f32
    %37 = vector.broadcast %cst_16 : f32 to vector<18x768xf32>
    %38 = arith.addf %37, %34 : vector<18x768xf32>
    %cst_17 = arith.constant 1.000000e+00 : f32
    %39 = vector.broadcast %cst_17 : f32 to vector<18x768xf32>
    %40 = arith.divf %39, %38 : vector<18x768xf32>
    %cst_18 = arith.constant 1.000000e+00 : f32
    %41 = vector.broadcast %cst_18 : f32 to vector<18x768xf32>
    %42 = arith.addf %41, %34 : vector<18x768xf32>
    %43 = arith.divf %34, %42 : vector<18x768xf32>
    %44 = arith.select %36, %40, %43 : vector<18x768xi1>, vector<18x768xf32>
    %45 = arith.mulf %30, %44 : vector<18x768xf32>
    %46 = arith.truncf %45 : vector<18x768xf32> to vector<18x768xbf16>
    %c0_19 = arith.constant 0 : index
    %c0_20 = arith.constant 0 : index
    %47 = vector.load %arg6[%c0_19, %c0_20] : memref<768x192xbf16, #tpu.memory_space<vmem>>, vector<768x192xbf16>
    %cst_21 = arith.constant dense<0.000000e+00> : vector<18x192xf32>
    %48 = tpu.matmul %46, %47, %cst_21 {dimension_numbers = #tpu.dot_dimension_numbers<[1], [0], [0], [1], [0, 0, 1, 1], [], []>} : vector<18x768xbf16>, vector<768x192xbf16>, vector<18x192xf32> -> vector<18x192xf32>
    %c0_22 = arith.constant 0 : index
    %c0_23 = arith.constant 0 : index
    %49 = vector.load %arg7[%c0_22, %c0_23] : memref<1x192xf32, #tpu.memory_space<vmem>>, vector<1x192xf32>
    %50 = vector.broadcast %49 : vector<1x192xf32> to vector<18x192xf32>
    %51 = arith.addf %48, %50 : vector<18x192xf32>
    %cst_24 = arith.constant 5.000000e-01 : f32
    %52 = vector.broadcast %cst_24 : f32 to vector<18x192xf32>
    %53 = arith.mulf %52, %51 : vector<18x192xf32>
    %54 = arith.addf %0, %53 : vector<18x192xf32>
    %c0_25 = arith.constant 0 : index
    %c0_26 = arith.constant 0 : index
    %55 = vector.load %arg8[%c0_25, %c0_26] : memref<18x192xf32, #tpu.memory_space<vmem>>, vector<18x192xf32>
    tpu.vector_store %arg8[%c0_25, %c0_26], %54 {strides = array<i32>} : memref<18x192xf32, #tpu.memory_space<vmem>>, vector<18x192xf32>,
    return
  }
  func.func @transform_0(%arg0: i32) -> (i32, i32) {
    %c0_i32 = arith.constant 0 : i32
    %c0_i32_0 = arith.constant 0 : i32
    return %arg0, %c0_i32 : i32, i32
  }
  func.func @transform_1(%arg0: i32) -> (i32, i32) {
    %c0_i32 = arith.constant 0 : i32
    %c0_i32_0 = arith.constant 0 : i32
    %c0_i32_1 = arith.constant 0 : i32
    return %c0_i32, %c0_i32_0 : i32, i32
  }
  func.func @transform_2(%arg0: i32) -> (i32, i32) {
    %c0_i32 = arith.constant 0 : i32
    %c0_i32_0 = arith.constant 0 : i32
    %c0_i32_1 = arith.constant 0 : i32
    return %c0_i32, %c0_i32_0 : i32, i32
  }
  func.func @transform_3(%arg0: i32) -> (i32, i32) {
    %c0_i32 = arith.constant 0 : i32
    %c0_i32_0 = arith.constant 0 : i32
    %c0_i32_1 = arith.constant 0 : i32
    return %c0_i32, %c0_i32_0 : i32, i32
  }
  func.func @transform_4(%arg0: i32) -> (i32, i32) {
    %c0_i32 = arith.constant 0 : i32
    %c0_i32_0 = arith.constant 0 : i32
    %c0_i32_1 = arith.constant 0 : i32
    return %c0_i32, %c0_i32_0 : i32, i32
  }
  func.func @transform_5(%arg0: i32) -> (i32, i32) {
    %c0_i32 = arith.constant 0 : i32
    %c0_i32_0 = arith.constant 0 : i32
    %c0_i32_1 = arith.constant 0 : i32
    return %c0_i32, %c0_i32_0 : i32, i32
  }
  func.func @transform_6(%arg0: i32) -> (i32, i32) {
    %c0_i32 = arith.constant 0 : i32
    %c0_i32_0 = arith.constant 0 : i32
    %c0_i32_1 = arith.constant 0 : i32
    return %c0_i32, %c0_i32_0 : i32, i32
  }
  func.func @transform_7(%arg0: i32) -> (i32, i32) {
    %c0_i32 = arith.constant 0 : i32
    %c0_i32_0 = arith.constant 0 : i32
    return %arg0, %c0_i32 : i32, i32
  }
}

module attributes {stable_mosaic.version = 11 : i64} {
  func.func @_ff_kernel(%arg0: i32, %arg1: memref<18x192xf32, #tpu.memory_space<vmem>>, %arg2: memref<1x192xf32, #tpu.memory_space<vmem>>, %arg3: memref<1x192xf32, #tpu.memory_space<vmem>>, %arg4: memref<192x768xbf16, #tpu.memory_space<vmem>>, %arg5: memref<1x768xf32, #tpu.memory_space<vmem>>, %arg6: memref<768x192xbf16, #tpu.memory_space<vmem>>, %arg7: memref<1x192xf32, #tpu.memory_space<vmem>>, %arg8: memref<1x192xf32, #tpu.memory_space<vmem>>, %arg9: memref<1x192xf32, #tpu.memory_space<vmem>>, %arg10: memref<18x192xf32, #tpu.memory_space<vmem>>) attributes {dimension_semantics = [#tpu.dimension_semantics<parallel>], iteration_bounds = array<i64: 1>, scalar_prefetch = 0 : i64, scratch_operands = 0 : i64, tpu.core_type = #tpu.core_type<tc>, window_params = [{transform_indices = @transform_0, window_bounds = array<i64: 18, 192>}, {pipeline_mode = #tpu.pipeline_mode<synchronous>, transform_indices = @transform_1, window_bounds = array<i64: 1, 192>}, {pipeline_mode = #tpu.pipeline_mode<synchronous>, transform_indices = @transform_2, window_bounds = array<i64: 1, 192>}, {pipeline_mode = #tpu.pipeline_mode<synchronous>, transform_indices = @transform_3, window_bounds = array<i64: 192, 768>}, {pipeline_mode = #tpu.pipeline_mode<synchronous>, transform_indices = @transform_4, window_bounds = array<i64: 1, 768>}, {pipeline_mode = #tpu.pipeline_mode<synchronous>, transform_indices = @transform_5, window_bounds = array<i64: 768, 192>}, {pipeline_mode = #tpu.pipeline_mode<synchronous>, transform_indices = @transform_6, window_bounds = array<i64: 1, 192>}, {pipeline_mode = #tpu.pipeline_mode<synchronous>, transform_indices = @transform_7, window_bounds = array<i64: 1, 192>}, {pipeline_mode = #tpu.pipeline_mode<synchronous>, transform_indices = @transform_8, window_bounds = array<i64: 1, 192>}, {transform_indices = @transform_9, window_bounds = array<i64: 18, 192>}]} {
    %c0 = arith.constant 0 : index
    %c0_0 = arith.constant 0 : index
    %0 = vector.load %arg1[%c0, %c0_0] : memref<18x192xf32, #tpu.memory_space<vmem>>, vector<18x192xf32>
    %c0_1 = arith.constant 0 : index
    %c0_2 = arith.constant 0 : index
    %1 = vector.load %arg2[%c0_1, %c0_2] : memref<1x192xf32, #tpu.memory_space<vmem>>, vector<1x192xf32>
    %c0_3 = arith.constant 0 : index
    %c0_4 = arith.constant 0 : index
    %2 = vector.load %arg3[%c0_3, %c0_4] : memref<1x192xf32, #tpu.memory_space<vmem>>, vector<1x192xf32>
    %cst = arith.constant dense<0.000000e+00> : vector<18xf32>
    %3 = vector.multi_reduction <add>, %0, %cst [1] : vector<18x192xf32> to vector<18xf32>
    %4 = vector.shape_cast %3 : vector<18xf32> to vector<18x1xf32>
    %cst_5 = arith.constant 1.920000e+02 : f32
    %5 = vector.broadcast %cst_5 : f32 to vector<18x1xf32>
    %6 = arith.divf %4, %5 : vector<18x1xf32>
    %7 = vector.broadcast %6 : vector<18x1xf32> to vector<18x192xf32>
    %8 = arith.subf %0, %7 : vector<18x192xf32>
    %9 = arith.mulf %8, %8 : vector<18x192xf32>
    %cst_6 = arith.constant dense<0.000000e+00> : vector<18xf32>
    %10 = vector.multi_reduction <add>, %9, %cst_6 [1] : vector<18x192xf32> to vector<18xf32>
    %11 = vector.shape_cast %10 : vector<18xf32> to vector<18x1xf32>
    %cst_7 = arith.constant 1.920000e+02 : f32
    %12 = vector.broadcast %cst_7 : f32 to vector<18x1xf32>
    %13 = arith.divf %11, %12 : vector<18x1xf32>
    %14 = vector.broadcast %6 : vector<18x1xf32> to vector<18x192xf32>
    %15 = arith.subf %0, %14 : vector<18x192xf32>
    %cst_8 = arith.constant 9.99999974E-6 : f32
    %16 = vector.broadcast %cst_8 : f32 to vector<18x1xf32>
    %17 = arith.addf %13, %16 : vector<18x1xf32>
    %18 = math.rsqrt %17 : vector<18x1xf32>
    %19 = vector.broadcast %18 : vector<18x1xf32> to vector<18x192xf32>
    %20 = arith.mulf %15, %19 : vector<18x192xf32>
    %21 = vector.broadcast %1 : vector<1x192xf32> to vector<18x192xf32>
    %22 = arith.mulf %20, %21 : vector<18x192xf32>
    %23 = vector.broadcast %2 : vector<1x192xf32> to vector<18x192xf32>
    %24 = arith.addf %22, %23 : vector<18x192xf32>
    %25 = arith.truncf %24 : vector<18x192xf32> to vector<18x192xbf16>
    %c0_9 = arith.constant 0 : index
    %c0_10 = arith.constant 0 : index
    %26 = vector.load %arg4[%c0_9, %c0_10] : memref<192x768xbf16, #tpu.memory_space<vmem>>, vector<192x768xbf16>
    %cst_11 = arith.constant dense<0.000000e+00> : vector<18x768xf32>
    %27 = tpu.matmul %25, %26, %cst_11 {dimension_numbers = #tpu.dot_dimension_numbers<[1], [0], [0], [1], [0, 0, 1, 1], [], []>} : vector<18x192xbf16>, vector<192x768xbf16>, vector<18x768xf32> -> vector<18x768xf32>
    %c0_12 = arith.constant 0 : index
    %c0_13 = arith.constant 0 : index
    %28 = vector.load %arg5[%c0_12, %c0_13] : memref<1x768xf32, #tpu.memory_space<vmem>>, vector<1x768xf32>
    %29 = vector.broadcast %28 : vector<1x768xf32> to vector<18x768xf32>
    %30 = arith.addf %27, %29 : vector<18x768xf32>
    %31 = math.absf %30 : vector<18x768xf32>
    %cst_14 = arith.constant 0.000000e+00 : f32
    %32 = vector.broadcast %cst_14 : f32 to vector<18x768xf32>
    %33 = arith.subf %32, %31 : vector<18x768xf32>
    %34 = math.exp %33 : vector<18x768xf32>
    %cst_15 = arith.constant 0.000000e+00 : f32
    %35 = vector.broadcast %cst_15 : f32 to vector<18x768xf32>
    %36 = arith.cmpf oge, %30, %35 : vector<18x768xf32>
    %cst_16 = arith.constant 1.000000e+00 : f32
    %37 = vector.broadcast %cst_16 : f32 to vector<18x768xf32>
    %38 = arith.addf %37, %34 : vector<18x768xf32>
    %cst_17 = arith.constant 1.000000e+00 : f32
    %39 = vector.broadcast %cst_17 : f32 to vector<18x768xf32>
    %40 = arith.divf %39, %38 : vector<18x768xf32>
    %cst_18 = arith.constant 1.000000e+00 : f32
    %41 = vector.broadcast %cst_18 : f32 to vector<18x768xf32>
    %42 = arith.addf %41, %34 : vector<18x768xf32>
    %43 = arith.divf %34, %42 : vector<18x768xf32>
    %44 = arith.select %36, %40, %43 : vector<18x768xi1>, vector<18x768xf32>
    %45 = arith.mulf %30, %44 : vector<18x768xf32>
    %46 = arith.truncf %45 : vector<18x768xf32> to vector<18x768xbf16>
    %c0_19 = arith.constant 0 : index
    %c0_20 = arith.constant 0 : index
    %47 = vector.load %arg6[%c0_19, %c0_20] : memref<768x192xbf16, #tpu.memory_space<vmem>>, vector<768x192xbf16>
    %cst_21 = arith.constant dense<0.000000e+00> : vector<18x192xf32>
    %48 = tpu.matmul %46, %47, %cst_21 {dimension_numbers = #tpu.dot_dimension_numbers<[1], [0], [0], [1], [0, 0, 1, 1], [], []>} : vector<18x768xbf16>, vector<768x192xbf16>, vector<18x192xf32> -> vector<18x192xf32>
    %c0_22 = arith.constant 0 : index
    %c0_23 = arith.constant 0 : index
    %49 = vector.load %arg7[%c0_22, %c0_23] : memref<1x192xf32, #tpu.memory_space<vmem>>, vector<1x192xf32>
    %50 = vector.broadcast %49 : vector<1x192xf32> to vector<18x192xf32>
    %51 = arith.addf %48, %50 : vector<18x192xf32>
    %cst_24 = arith.constant 5.000000e-01 : f32
    %52 = vector.broadcast %cst_24 : f32 to vector<18x192xf32>
    %53 = arith.mulf %52, %51 : vector<18x192xf32>
    %54 = arith.addf %0, %53 : vector<18x192xf32>
    %c0_25 = arith.constant 0 : index
    %c0_26 = arith.constant 0 : index
    %55 = vector.load %arg8[%c0_25, %c0_26] : memref<1x192xf32, #tpu.memory_space<vmem>>, vector<1x192xf32>
    %c0_27 = arith.constant 0 : index
    %c0_28 = arith.constant 0 : index
    %56 = vector.load %arg9[%c0_27, %c0_28] : memref<1x192xf32, #tpu.memory_space<vmem>>, vector<1x192xf32>
    %cst_29 = arith.constant dense<0.000000e+00> : vector<18xf32>
    %57 = vector.multi_reduction <add>, %54, %cst_29 [1] : vector<18x192xf32> to vector<18xf32>
    %58 = vector.shape_cast %57 : vector<18xf32> to vector<18x1xf32>
    %cst_30 = arith.constant 1.920000e+02 : f32
    %59 = vector.broadcast %cst_30 : f32 to vector<18x1xf32>
    %60 = arith.divf %58, %59 : vector<18x1xf32>
    %61 = vector.broadcast %60 : vector<18x1xf32> to vector<18x192xf32>
    %62 = arith.subf %54, %61 : vector<18x192xf32>
    %63 = arith.mulf %62, %62 : vector<18x192xf32>
    %cst_31 = arith.constant dense<0.000000e+00> : vector<18xf32>
    %64 = vector.multi_reduction <add>, %63, %cst_31 [1] : vector<18x192xf32> to vector<18xf32>
    %65 = vector.shape_cast %64 : vector<18xf32> to vector<18x1xf32>
    %cst_32 = arith.constant 1.920000e+02 : f32
    %66 = vector.broadcast %cst_32 : f32 to vector<18x1xf32>
    %67 = arith.divf %65, %66 : vector<18x1xf32>
    %68 = vector.broadcast %60 : vector<18x1xf32> to vector<18x192xf32>
    %69 = arith.subf %54, %68 : vector<18x192xf32>
    %cst_33 = arith.constant 9.99999974E-6 : f32
    %70 = vector.broadcast %cst_33 : f32 to vector<18x1xf32>
    %71 = arith.addf %67, %70 : vector<18x1xf32>
    %72 = math.rsqrt %71 : vector<18x1xf32>
    %73 = vector.broadcast %72 : vector<18x1xf32> to vector<18x192xf32>
    %74 = arith.mulf %69, %73 : vector<18x192xf32>
    %75 = vector.broadcast %55 : vector<1x192xf32> to vector<18x192xf32>
    %76 = arith.mulf %74, %75 : vector<18x192xf32>
    %77 = vector.broadcast %56 : vector<1x192xf32> to vector<18x192xf32>
    %78 = arith.addf %76, %77 : vector<18x192xf32>
    %c0_34 = arith.constant 0 : index
    %c0_35 = arith.constant 0 : index
    %79 = vector.load %arg10[%c0_34, %c0_35] : memref<18x192xf32, #tpu.memory_space<vmem>>, vector<18x192xf32>
    tpu.vector_store %arg10[%c0_34, %c0_35], %78 {strides = array<i32>} : memref<18x192xf32, #tpu.memory_space<vmem>>, vector<18x192xf32>,
    return
  }
  func.func @transform_0(%arg0: i32) -> (i32, i32) {
    %c0_i32 = arith.constant 0 : i32
    %c0_i32_0 = arith.constant 0 : i32
    return %arg0, %c0_i32 : i32, i32
  }
  func.func @transform_1(%arg0: i32) -> (i32, i32) {
    %c0_i32 = arith.constant 0 : i32
    %c0_i32_0 = arith.constant 0 : i32
    %c0_i32_1 = arith.constant 0 : i32
    return %c0_i32, %c0_i32_0 : i32, i32
  }
  func.func @transform_2(%arg0: i32) -> (i32, i32) {
    %c0_i32 = arith.constant 0 : i32
    %c0_i32_0 = arith.constant 0 : i32
    %c0_i32_1 = arith.constant 0 : i32
    return %c0_i32, %c0_i32_0 : i32, i32
  }
  func.func @transform_3(%arg0: i32) -> (i32, i32) {
    %c0_i32 = arith.constant 0 : i32
    %c0_i32_0 = arith.constant 0 : i32
    %c0_i32_1 = arith.constant 0 : i32
    return %c0_i32, %c0_i32_0 : i32, i32
  }
  func.func @transform_4(%arg0: i32) -> (i32, i32) {
    %c0_i32 = arith.constant 0 : i32
    %c0_i32_0 = arith.constant 0 : i32
    %c0_i32_1 = arith.constant 0 : i32
    return %c0_i32, %c0_i32_0 : i32, i32
  }
  func.func @transform_5(%arg0: i32) -> (i32, i32) {
    %c0_i32 = arith.constant 0 : i32
    %c0_i32_0 = arith.constant 0 : i32
    %c0_i32_1 = arith.constant 0 : i32
    return %c0_i32, %c0_i32_0 : i32, i32
  }
  func.func @transform_6(%arg0: i32) -> (i32, i32) {
    %c0_i32 = arith.constant 0 : i32
    %c0_i32_0 = arith.constant 0 : i32
    %c0_i32_1 = arith.constant 0 : i32
    return %c0_i32, %c0_i32_0 : i32, i32
  }
  func.func @transform_7(%arg0: i32) -> (i32, i32) {
    %c0_i32 = arith.constant 0 : i32
    %c0_i32_0 = arith.constant 0 : i32
    %c0_i32_1 = arith.constant 0 : i32
    return %c0_i32, %c0_i32_0 : i32, i32
  }
  func.func @transform_8(%arg0: i32) -> (i32, i32) {
    %c0_i32 = arith.constant 0 : i32
    %c0_i32_0 = arith.constant 0 : i32
    %c0_i32_1 = arith.constant 0 : i32
    return %c0_i32, %c0_i32_0 : i32, i32
  }
  func.func @transform_9(%arg0: i32) -> (i32, i32) {
    %c0_i32 = arith.constant 0 : i32
    %c0_i32_0 = arith.constant 0 : i32
    return %arg0, %c0_i32 : i32, i32
  }
}

module attributes {stable_mosaic.version = 11 : i64} {
  func.func @_conv_module_kernel(%arg0: i32, %arg1: memref<1x9x192xf32, #tpu.memory_space<vmem>>, %arg2: memref<1x192xf32, #tpu.memory_space<vmem>>, %arg3: memref<1x192xf32, #tpu.memory_space<vmem>>, %arg4: memref<192x768xbf16, #tpu.memory_space<vmem>>, %arg5: memref<1x768xf32, #tpu.memory_space<vmem>>, %arg6: memref<32x384xf32, #tpu.memory_space<vmem>>, %arg7: memref<1x384xf32, #tpu.memory_space<vmem>>, %arg8: memref<1x384xf32, #tpu.memory_space<vmem>>, %arg9: memref<384x192xbf16, #tpu.memory_space<vmem>>, %arg10: memref<1x192xf32, #tpu.memory_space<vmem>>, %arg11: memref<1x9x192xf32, #tpu.memory_space<vmem>>, %arg12: memref<41x384xf32, #tpu.memory_space<vmem>>) attributes {dimension_semantics = [#tpu.dimension_semantics<parallel>], iteration_bounds = array<i64: 2>, scalar_prefetch = 0 : i64, scratch_operands = 1 : i64, tpu.core_type = #tpu.core_type<tc>, window_params = [{transform_indices = @transform_0, window_bounds = array<i64: 1, 9, 192>}, {pipeline_mode = #tpu.pipeline_mode<synchronous>, transform_indices = @transform_1, window_bounds = array<i64: 1, 192>}, {pipeline_mode = #tpu.pipeline_mode<synchronous>, transform_indices = @transform_2, window_bounds = array<i64: 1, 192>}, {pipeline_mode = #tpu.pipeline_mode<synchronous>, transform_indices = @transform_3, window_bounds = array<i64: 192, 768>}, {pipeline_mode = #tpu.pipeline_mode<synchronous>, transform_indices = @transform_4, window_bounds = array<i64: 1, 768>}, {pipeline_mode = #tpu.pipeline_mode<synchronous>, transform_indices = @transform_5, window_bounds = array<i64: 32, 384>}, {pipeline_mode = #tpu.pipeline_mode<synchronous>, transform_indices = @transform_6, window_bounds = array<i64: 1, 384>}, {pipeline_mode = #tpu.pipeline_mode<synchronous>, transform_indices = @transform_7, window_bounds = array<i64: 1, 384>}, {pipeline_mode = #tpu.pipeline_mode<synchronous>, transform_indices = @transform_8, window_bounds = array<i64: 384, 192>}, {pipeline_mode = #tpu.pipeline_mode<synchronous>, transform_indices = @transform_9, window_bounds = array<i64: 1, 192>}, {transform_indices = @transform_10, window_bounds = array<i64: 1, 9, 192>}]} {
    %c0 = arith.constant 0 : index
    %c0_0 = arith.constant 0 : index
    %c0_1 = arith.constant 0 : index
    %0 = vector.load %arg1[%c0, %c0_0, %c0_1] : memref<1x9x192xf32, #tpu.memory_space<vmem>>, vector<1x9x192xf32>
    %1 = vector.shape_cast %0 : vector<1x9x192xf32> to vector<9x192xf32>
    %c0_2 = arith.constant 0 : index
    %c0_3 = arith.constant 0 : index
    %2 = vector.load %arg2[%c0_2, %c0_3] : memref<1x192xf32, #tpu.memory_space<vmem>>, vector<1x192xf32>
    %c0_4 = arith.constant 0 : index
    %c0_5 = arith.constant 0 : index
    %3 = vector.load %arg3[%c0_4, %c0_5] : memref<1x192xf32, #tpu.memory_space<vmem>>, vector<1x192xf32>
    %cst = arith.constant dense<0.000000e+00> : vector<9xf32>
    %4 = vector.multi_reduction <add>, %1, %cst [1] : vector<9x192xf32> to vector<9xf32>
    %5 = vector.shape_cast %4 : vector<9xf32> to vector<9x1xf32>
    %cst_6 = arith.constant 1.920000e+02 : f32
    %6 = vector.broadcast %cst_6 : f32 to vector<9x1xf32>
    %7 = arith.divf %5, %6 : vector<9x1xf32>
    %8 = vector.broadcast %7 : vector<9x1xf32> to vector<9x192xf32>
    %9 = arith.subf %1, %8 : vector<9x192xf32>
    %10 = arith.mulf %9, %9 : vector<9x192xf32>
    %cst_7 = arith.constant dense<0.000000e+00> : vector<9xf32>
    %11 = vector.multi_reduction <add>, %10, %cst_7 [1] : vector<9x192xf32> to vector<9xf32>
    %12 = vector.shape_cast %11 : vector<9xf32> to vector<9x1xf32>
    %cst_8 = arith.constant 1.920000e+02 : f32
    %13 = vector.broadcast %cst_8 : f32 to vector<9x1xf32>
    %14 = arith.divf %12, %13 : vector<9x1xf32>
    %15 = vector.broadcast %7 : vector<9x1xf32> to vector<9x192xf32>
    %16 = arith.subf %1, %15 : vector<9x192xf32>
    %cst_9 = arith.constant 9.99999974E-6 : f32
    %17 = vector.broadcast %cst_9 : f32 to vector<9x1xf32>
    %18 = arith.addf %14, %17 : vector<9x1xf32>
    %19 = math.rsqrt %18 : vector<9x1xf32>
    %20 = vector.broadcast %19 : vector<9x1xf32> to vector<9x192xf32>
    %21 = arith.mulf %16, %20 : vector<9x192xf32>
    %22 = vector.broadcast %2 : vector<1x192xf32> to vector<9x192xf32>
    %23 = arith.mulf %21, %22 : vector<9x192xf32>
    %24 = vector.broadcast %3 : vector<1x192xf32> to vector<9x192xf32>
    %25 = arith.addf %23, %24 : vector<9x192xf32>
    %26 = arith.truncf %25 : vector<9x192xf32> to vector<9x192xbf16>
    %c0_10 = arith.constant 0 : index
    %c0_11 = arith.constant 0 : index
    %27 = vector.load %arg4[%c0_10, %c0_11] : memref<192x768xbf16, #tpu.memory_space<vmem>>, vector<192x768xbf16>
    %cst_12 = arith.constant dense<0.000000e+00> : vector<9x768xf32>
    %28 = tpu.matmul %26, %27, %cst_12 {dimension_numbers = #tpu.dot_dimension_numbers<[1], [0], [0], [1], [0, 0, 1, 1], [], []>} : vector<9x192xbf16>, vector<192x768xbf16>, vector<9x768xf32> -> vector<9x768xf32>
    %c0_13 = arith.constant 0 : index
    %c0_14 = arith.constant 0 : index
    %29 = vector.load %arg5[%c0_13, %c0_14] : memref<1x768xf32, #tpu.memory_space<vmem>>, vector<1x768xf32>
    %30 = vector.broadcast %29 : vector<1x768xf32> to vector<9x768xf32>
    %31 = arith.addf %28, %30 : vector<9x768xf32>
    %32 = vector.extract_strided_slice %31 {offsets = [0, 0], sizes = [9, 384], strides = [1, 1]} : vector<9x768xf32> to vector<9x384xf32>
    %33 = vector.extract_strided_slice %31 {offsets = [0, 384], sizes = [9, 384], strides = [1, 1]} : vector<9x768xf32> to vector<9x384xf32>
    %34 = math.absf %33 : vector<9x384xf32>
    %cst_15 = arith.constant 0.000000e+00 : f32
    %35 = vector.broadcast %cst_15 : f32 to vector<9x384xf32>
    %36 = arith.subf %35, %34 : vector<9x384xf32>
    %37 = math.exp %36 : vector<9x384xf32>
    %cst_16 = arith.constant 0.000000e+00 : f32
    %38 = vector.broadcast %cst_16 : f32 to vector<9x384xf32>
    %39 = arith.cmpf oge, %33, %38 : vector<9x384xf32>
    %cst_17 = arith.constant 1.000000e+00 : f32
    %40 = vector.broadcast %cst_17 : f32 to vector<9x384xf32>
    %41 = arith.addf %40, %37 : vector<9x384xf32>
    %cst_18 = arith.constant 1.000000e+00 : f32
    %42 = vector.broadcast %cst_18 : f32 to vector<9x384xf32>
    %43 = arith.divf %42, %41 : vector<9x384xf32>
    %cst_19 = arith.constant 1.000000e+00 : f32
    %44 = vector.broadcast %cst_19 : f32 to vector<9x384xf32>
    %45 = arith.addf %44, %37 : vector<9x384xf32>
    %46 = arith.divf %37, %45 : vector<9x384xf32>
    %47 = arith.select %39, %43, %46 : vector<9x384xi1>, vector<9x384xf32>
    %48 = arith.mulf %32, %47 : vector<9x384xf32>
    %cst_20 = arith.constant 0.000000e+00 : f32
    %49 = vector.broadcast %cst_20 : f32 to vector<16x384xf32>
    %c0_21 = arith.constant 0 : index
    %c0_22 = arith.constant 0 : index
    %50 = vector.load %arg12[%c0_21, %c0_22] : memref<41x384xf32, #tpu.memory_space<vmem>>, vector<16x384xf32>
    tpu.vector_store %arg12[%c0_21, %c0_22], %49 {strides = array<i32>} : memref<41x384xf32, #tpu.memory_space<vmem>>, vector<16x384xf32>,
    %cst_23 = arith.constant 0.000000e+00 : f32
    %51 = vector.broadcast %cst_23 : f32 to vector<16x384xf32>
    %c25 = arith.constant 25 : index
    %c0_24 = arith.constant 0 : index
    %52 = vector.load %arg12[%c25, %c0_24] : memref<41x384xf32, #tpu.memory_space<vmem>>, vector<16x384xf32>
    tpu.vector_store %arg12[%c25, %c0_24], %51 {strides = array<i32>} : memref<41x384xf32, #tpu.memory_space<vmem>>, vector<16x384xf32>,
    %c16 = arith.constant 16 : index
    %c0_25 = arith.constant 0 : index
    %53 = vector.load %arg12[%c16, %c0_25] : memref<41x384xf32, #tpu.memory_space<vmem>>, vector<9x384xf32>
    tpu.vector_store %arg12[%c16, %c0_25], %48 {strides = array<i32>} : memref<41x384xf32, #tpu.memory_space<vmem>>, vector<9x384xf32>,
    %c0_26 = arith.constant 0 : index
    %c0_27 = arith.constant 0 : index
    %54 = vector.load %arg6[%c0_26, %c0_27] : memref<32x384xf32, #tpu.memory_space<vmem>>, vector<32x384xf32>
    %cst_28 = arith.constant 0.000000e+00 : f32
    %55 = vector.broadcast %cst_28 : f32 to vector<9x384xf32>
    %c0_29 = arith.constant 0 : index
    %c0_30 = arith.constant 0 : index
    %56 = vector.load %arg12[%c0_29, %c0_30] : memref<41x384xf32, #tpu.memory_space<vmem>>, vector<9x384xf32>
    %57 = vector.extract_strided_slice %54 {offsets = [0, 0], sizes = [1, 384], strides = [1, 1]} : vector<32x384xf32> to vector<1x384xf32>
    %58 = vector.broadcast %57 : vector<1x384xf32> to vector<9x384xf32>
    %59 = arith.mulf %56, %58 : vector<9x384xf32>
    %60 = arith.addf %55, %59 : vector<9x384xf32>
    %c1 = arith.constant 1 : index
    %c0_31 = arith.constant 0 : index
    %61 = vector.load %arg12[%c1, %c0_31] : memref<41x384xf32, #tpu.memory_space<vmem>>, vector<9x384xf32>
    %62 = vector.extract_strided_slice %54 {offsets = [1, 0], sizes = [1, 384], strides = [1, 1]} : vector<32x384xf32> to vector<1x384xf32>
    %63 = vector.broadcast %62 : vector<1x384xf32> to vector<9x384xf32>
    %64 = arith.mulf %61, %63 : vector<9x384xf32>
    %65 = arith.addf %60, %64 : vector<9x384xf32>
    %c2 = arith.constant 2 : index
    %c0_32 = arith.constant 0 : index
    %66 = vector.load %arg12[%c2, %c0_32] : memref<41x384xf32, #tpu.memory_space<vmem>>, vector<9x384xf32>
    %67 = vector.extract_strided_slice %54 {offsets = [2, 0], sizes = [1, 384], strides = [1, 1]} : vector<32x384xf32> to vector<1x384xf32>
    %68 = vector.broadcast %67 : vector<1x384xf32> to vector<9x384xf32>
    %69 = arith.mulf %66, %68 : vector<9x384xf32>
    %70 = arith.addf %65, %69 : vector<9x384xf32>
    %c3 = arith.constant 3 : index
    %c0_33 = arith.constant 0 : index
    %71 = vector.load %arg12[%c3, %c0_33] : memref<41x384xf32, #tpu.memory_space<vmem>>, vector<9x384xf32>
    %72 = vector.extract_strided_slice %54 {offsets = [3, 0], sizes = [1, 384], strides = [1, 1]} : vector<32x384xf32> to vector<1x384xf32>
    %73 = vector.broadcast %72 : vector<1x384xf32> to vector<9x384xf32>
    %74 = arith.mulf %71, %73 : vector<9x384xf32>
    %75 = arith.addf %70, %74 : vector<9x384xf32>
    %c4 = arith.constant 4 : index
    %c0_34 = arith.constant 0 : index
    %76 = vector.load %arg12[%c4, %c0_34] : memref<41x384xf32, #tpu.memory_space<vmem>>, vector<9x384xf32>
    %77 = vector.extract_strided_slice %54 {offsets = [4, 0], sizes = [1, 384], strides = [1, 1]} : vector<32x384xf32> to vector<1x384xf32>
    %78 = vector.broadcast %77 : vector<1x384xf32> to vector<9x384xf32>
    %79 = arith.mulf %76, %78 : vector<9x384xf32>
    %80 = arith.addf %75, %79 : vector<9x384xf32>
    %c5 = arith.constant 5 : index
    %c0_35 = arith.constant 0 : index
    %81 = vector.load %arg12[%c5, %c0_35] : memref<41x384xf32, #tpu.memory_space<vmem>>, vector<9x384xf32>
    %82 = vector.extract_strided_slice %54 {offsets = [5, 0], sizes = [1, 384], strides = [1, 1]} : vector<32x384xf32> to vector<1x384xf32>
    %83 = vector.broadcast %82 : vector<1x384xf32> to vector<9x384xf32>
    %84 = arith.mulf %81, %83 : vector<9x384xf32>
    %85 = arith.addf %80, %84 : vector<9x384xf32>
    %c6 = arith.constant 6 : index
    %c0_36 = arith.constant 0 : index
    %86 = vector.load %arg12[%c6, %c0_36] : memref<41x384xf32, #tpu.memory_space<vmem>>, vector<9x384xf32>
    %87 = vector.extract_strided_slice %54 {offsets = [6, 0], sizes = [1, 384], strides = [1, 1]} : vector<32x384xf32> to vector<1x384xf32>
    %88 = vector.broadcast %87 : vector<1x384xf32> to vector<9x384xf32>
    %89 = arith.mulf %86, %88 : vector<9x384xf32>
    %90 = arith.addf %85, %89 : vector<9x384xf32>
    %c7 = arith.constant 7 : index
    %c0_37 = arith.constant 0 : index
    %91 = vector.load %arg12[%c7, %c0_37] : memref<41x384xf32, #tpu.memory_space<vmem>>, vector<9x384xf32>
    %92 = vector.extract_strided_slice %54 {offsets = [7, 0], sizes = [1, 384], strides = [1, 1]} : vector<32x384xf32> to vector<1x384xf32>
    %93 = vector.broadcast %92 : vector<1x384xf32> to vector<9x384xf32>
    %94 = arith.mulf %91, %93 : vector<9x384xf32>
    %95 = arith.addf %90, %94 : vector<9x384xf32>
    %c8 = arith.constant 8 : index
    %c0_38 = arith.constant 0 : index
    %96 = vector.load %arg12[%c8, %c0_38] : memref<41x384xf32, #tpu.memory_space<vmem>>, vector<9x384xf32>
    %97 = vector.extract_strided_slice %54 {offsets = [8, 0], sizes = [1, 384], strides = [1, 1]} : vector<32x384xf32> to vector<1x384xf32>
    %98 = vector.broadcast %97 : vector<1x384xf32> to vector<9x384xf32>
    %99 = arith.mulf %96, %98 : vector<9x384xf32>
    %100 = arith.addf %95, %99 : vector<9x384xf32>
    %c9 = arith.constant 9 : index
    %c0_39 = arith.constant 0 : index
    %101 = vector.load %arg12[%c9, %c0_39] : memref<41x384xf32, #tpu.memory_space<vmem>>, vector<9x384xf32>
    %102 = vector.extract_strided_slice %54 {offsets = [9, 0], sizes = [1, 384], strides = [1, 1]} : vector<32x384xf32> to vector<1x384xf32>
    %103 = vector.broadcast %102 : vector<1x384xf32> to vector<9x384xf32>
    %104 = arith.mulf %101, %103 : vector<9x384xf32>
    %105 = arith.addf %100, %104 : vector<9x384xf32>
    %c10 = arith.constant 10 : index
    %c0_40 = arith.constant 0 : index
    %106 = vector.load %arg12[%c10, %c0_40] : memref<41x384xf32, #tpu.memory_space<vmem>>, vector<9x384xf32>
    %107 = vector.extract_strided_slice %54 {offsets = [10, 0], sizes = [1, 384], strides = [1, 1]} : vector<32x384xf32> to vector<1x384xf32>
    %108 = vector.broadcast %107 : vector<1x384xf32> to vector<9x384xf32>
    %109 = arith.mulf %106, %108 : vector<9x384xf32>
    %110 = arith.addf %105, %109 : vector<9x384xf32>
    %c11 = arith.constant 11 : index
    %c0_41 = arith.constant 0 : index
    %111 = vector.load %arg12[%c11, %c0_41] : memref<41x384xf32, #tpu.memory_space<vmem>>, vector<9x384xf32>
    %112 = vector.extract_strided_slice %54 {offsets = [11, 0], sizes = [1, 384], strides = [1, 1]} : vector<32x384xf32> to vector<1x384xf32>
    %113 = vector.broadcast %112 : vector<1x384xf32> to vector<9x384xf32>
    %114 = arith.mulf %111, %113 : vector<9x384xf32>
    %115 = arith.addf %110, %114 : vector<9x384xf32>
    %c12 = arith.constant 12 : index
    %c0_42 = arith.constant 0 : index
    %116 = vector.load %arg12[%c12, %c0_42] : memref<41x384xf32, #tpu.memory_space<vmem>>, vector<9x384xf32>
    %117 = vector.extract_strided_slice %54 {offsets = [12, 0], sizes = [1, 384], strides = [1, 1]} : vector<32x384xf32> to vector<1x384xf32>
    %118 = vector.broadcast %117 : vector<1x384xf32> to vector<9x384xf32>
    %119 = arith.mulf %116, %118 : vector<9x384xf32>
    %120 = arith.addf %115, %119 : vector<9x384xf32>
    %c13 = arith.constant 13 : index
    %c0_43 = arith.constant 0 : index
    %121 = vector.load %arg12[%c13, %c0_43] : memref<41x384xf32, #tpu.memory_space<vmem>>, vector<9x384xf32>
    %122 = vector.extract_strided_slice %54 {offsets = [13, 0], sizes = [1, 384], strides = [1, 1]} : vector<32x384xf32> to vector<1x384xf32>
    %123 = vector.broadcast %122 : vector<1x384xf32> to vector<9x384xf32>
    %124 = arith.mulf %121, %123 : vector<9x384xf32>
    %125 = arith.addf %120, %124 : vector<9x384xf32>
    %c14 = arith.constant 14 : index
    %c0_44 = arith.constant 0 : index
    %126 = vector.load %arg12[%c14, %c0_44] : memref<41x384xf32, #tpu.memory_space<vmem>>, vector<9x384xf32>
    %127 = vector.extract_strided_slice %54 {offsets = [14, 0], sizes = [1, 384], strides = [1, 1]} : vector<32x384xf32> to vector<1x384xf32>
    %128 = vector.broadcast %127 : vector<1x384xf32> to vector<9x384xf32>
    %129 = arith.mulf %126, %128 : vector<9x384xf32>
    %130 = arith.addf %125, %129 : vector<9x384xf32>
    %c15 = arith.constant 15 : index
    %c0_45 = arith.constant 0 : index
    %131 = vector.load %arg12[%c15, %c0_45] : memref<41x384xf32, #tpu.memory_space<vmem>>, vector<9x384xf32>
    %132 = vector.extract_strided_slice %54 {offsets = [15, 0], sizes = [1, 384], strides = [1, 1]} : vector<32x384xf32> to vector<1x384xf32>
    %133 = vector.broadcast %132 : vector<1x384xf32> to vector<9x384xf32>
    %134 = arith.mulf %131, %133 : vector<9x384xf32>
    %135 = arith.addf %130, %134 : vector<9x384xf32>
    %c16_46 = arith.constant 16 : index
    %c0_47 = arith.constant 0 : index
    %136 = vector.load %arg12[%c16_46, %c0_47] : memref<41x384xf32, #tpu.memory_space<vmem>>, vector<9x384xf32>
    %137 = vector.extract_strided_slice %54 {offsets = [16, 0], sizes = [1, 384], strides = [1, 1]} : vector<32x384xf32> to vector<1x384xf32>
    %138 = vector.broadcast %137 : vector<1x384xf32> to vector<9x384xf32>
    %139 = arith.mulf %136, %138 : vector<9x384xf32>
    %140 = arith.addf %135, %139 : vector<9x384xf32>
    %c17 = arith.constant 17 : index
    %c0_48 = arith.constant 0 : index
    %141 = vector.load %arg12[%c17, %c0_48] : memref<41x384xf32, #tpu.memory_space<vmem>>, vector<9x384xf32>
    %142 = vector.extract_strided_slice %54 {offsets = [17, 0], sizes = [1, 384], strides = [1, 1]} : vector<32x384xf32> to vector<1x384xf32>
    %143 = vector.broadcast %142 : vector<1x384xf32> to vector<9x384xf32>
    %144 = arith.mulf %141, %143 : vector<9x384xf32>
    %145 = arith.addf %140, %144 : vector<9x384xf32>
    %c18 = arith.constant 18 : index
    %c0_49 = arith.constant 0 : index
    %146 = vector.load %arg12[%c18, %c0_49] : memref<41x384xf32, #tpu.memory_space<vmem>>, vector<9x384xf32>
    %147 = vector.extract_strided_slice %54 {offsets = [18, 0], sizes = [1, 384], strides = [1, 1]} : vector<32x384xf32> to vector<1x384xf32>
    %148 = vector.broadcast %147 : vector<1x384xf32> to vector<9x384xf32>
    %149 = arith.mulf %146, %148 : vector<9x384xf32>
    %150 = arith.addf %145, %149 : vector<9x384xf32>
    %c19 = arith.constant 19 : index
    %c0_50 = arith.constant 0 : index
    %151 = vector.load %arg12[%c19, %c0_50] : memref<41x384xf32, #tpu.memory_space<vmem>>, vector<9x384xf32>
    %152 = vector.extract_strided_slice %54 {offsets = [19, 0], sizes = [1, 384], strides = [1, 1]} : vector<32x384xf32> to vector<1x384xf32>
    %153 = vector.broadcast %152 : vector<1x384xf32> to vector<9x384xf32>
    %154 = arith.mulf %151, %153 : vector<9x384xf32>
    %155 = arith.addf %150, %154 : vector<9x384xf32>
    %c20 = arith.constant 20 : index
    %c0_51 = arith.constant 0 : index
    %156 = vector.load %arg12[%c20, %c0_51] : memref<41x384xf32, #tpu.memory_space<vmem>>, vector<9x384xf32>
    %157 = vector.extract_strided_slice %54 {offsets = [20, 0], sizes = [1, 384], strides = [1, 1]} : vector<32x384xf32> to vector<1x384xf32>
    %158 = vector.broadcast %157 : vector<1x384xf32> to vector<9x384xf32>
    %159 = arith.mulf %156, %158 : vector<9x384xf32>
    %160 = arith.addf %155, %159 : vector<9x384xf32>
    %c21 = arith.constant 21 : index
    %c0_52 = arith.constant 0 : index
    %161 = vector.load %arg12[%c21, %c0_52] : memref<41x384xf32, #tpu.memory_space<vmem>>, vector<9x384xf32>
    %162 = vector.extract_strided_slice %54 {offsets = [21, 0], sizes = [1, 384], strides = [1, 1]} : vector<32x384xf32> to vector<1x384xf32>
    %163 = vector.broadcast %162 : vector<1x384xf32> to vector<9x384xf32>
    %164 = arith.mulf %161, %163 : vector<9x384xf32>
    %165 = arith.addf %160, %164 : vector<9x384xf32>
    %c22 = arith.constant 22 : index
    %c0_53 = arith.constant 0 : index
    %166 = vector.load %arg12[%c22, %c0_53] : memref<41x384xf32, #tpu.memory_space<vmem>>, vector<9x384xf32>
    %167 = vector.extract_strided_slice %54 {offsets = [22, 0], sizes = [1, 384], strides = [1, 1]} : vector<32x384xf32> to vector<1x384xf32>
    %168 = vector.broadcast %167 : vector<1x384xf32> to vector<9x384xf32>
    %169 = arith.mulf %166, %168 : vector<9x384xf32>
    %170 = arith.addf %165, %169 : vector<9x384xf32>
    %c23 = arith.constant 23 : index
    %c0_54 = arith.constant 0 : index
    %171 = vector.load %arg12[%c23, %c0_54] : memref<41x384xf32, #tpu.memory_space<vmem>>, vector<9x384xf32>
    %172 = vector.extract_strided_slice %54 {offsets = [23, 0], sizes = [1, 384], strides = [1, 1]} : vector<32x384xf32> to vector<1x384xf32>
    %173 = vector.broadcast %172 : vector<1x384xf32> to vector<9x384xf32>
    %174 = arith.mulf %171, %173 : vector<9x384xf32>
    %175 = arith.addf %170, %174 : vector<9x384xf32>
    %c24 = arith.constant 24 : index
    %c0_55 = arith.constant 0 : index
    %176 = vector.load %arg12[%c24, %c0_55] : memref<41x384xf32, #tpu.memory_space<vmem>>, vector<9x384xf32>
    %177 = vector.extract_strided_slice %54 {offsets = [24, 0], sizes = [1, 384], strides = [1, 1]} : vector<32x384xf32> to vector<1x384xf32>
    %178 = vector.broadcast %177 : vector<1x384xf32> to vector<9x384xf32>
    %179 = arith.mulf %176, %178 : vector<9x384xf32>
    %180 = arith.addf %175, %179 : vector<9x384xf32>
    %c25_56 = arith.constant 25 : index
    %c0_57 = arith.constant 0 : index
    %181 = vector.load %arg12[%c25_56, %c0_57] : memref<41x384xf32, #tpu.memory_space<vmem>>, vector<9x384xf32>
    %182 = vector.extract_strided_slice %54 {offsets = [25, 0], sizes = [1, 384], strides = [1, 1]} : vector<32x384xf32> to vector<1x384xf32>
    %183 = vector.broadcast %182 : vector<1x384xf32> to vector<9x384xf32>
    %184 = arith.mulf %181, %183 : vector<9x384xf32>
    %185 = arith.addf %180, %184 : vector<9x384xf32>
    %c26 = arith.constant 26 : index
    %c0_58 = arith.constant 0 : index
    %186 = vector.load %arg12[%c26, %c0_58] : memref<41x384xf32, #tpu.memory_space<vmem>>, vector<9x384xf32>
    %187 = vector.extract_strided_slice %54 {offsets = [26, 0], sizes = [1, 384], strides = [1, 1]} : vector<32x384xf32> to vector<1x384xf32>
    %188 = vector.broadcast %187 : vector<1x384xf32> to vector<9x384xf32>
    %189 = arith.mulf %186, %188 : vector<9x384xf32>
    %190 = arith.addf %185, %189 : vector<9x384xf32>
    %c27 = arith.constant 27 : index
    %c0_59 = arith.constant 0 : index
    %191 = vector.load %arg12[%c27, %c0_59] : memref<41x384xf32, #tpu.memory_space<vmem>>, vector<9x384xf32>
    %192 = vector.extract_strided_slice %54 {offsets = [27, 0], sizes = [1, 384], strides = [1, 1]} : vector<32x384xf32> to vector<1x384xf32>
    %193 = vector.broadcast %192 : vector<1x384xf32> to vector<9x384xf32>
    %194 = arith.mulf %191, %193 : vector<9x384xf32>
    %195 = arith.addf %190, %194 : vector<9x384xf32>
    %c28 = arith.constant 28 : index
    %c0_60 = arith.constant 0 : index
    %196 = vector.load %arg12[%c28, %c0_60] : memref<41x384xf32, #tpu.memory_space<vmem>>, vector<9x384xf32>
    %197 = vector.extract_strided_slice %54 {offsets = [28, 0], sizes = [1, 384], strides = [1, 1]} : vector<32x384xf32> to vector<1x384xf32>
    %198 = vector.broadcast %197 : vector<1x384xf32> to vector<9x384xf32>
    %199 = arith.mulf %196, %198 : vector<9x384xf32>
    %200 = arith.addf %195, %199 : vector<9x384xf32>
    %c29 = arith.constant 29 : index
    %c0_61 = arith.constant 0 : index
    %201 = vector.load %arg12[%c29, %c0_61] : memref<41x384xf32, #tpu.memory_space<vmem>>, vector<9x384xf32>
    %202 = vector.extract_strided_slice %54 {offsets = [29, 0], sizes = [1, 384], strides = [1, 1]} : vector<32x384xf32> to vector<1x384xf32>
    %203 = vector.broadcast %202 : vector<1x384xf32> to vector<9x384xf32>
    %204 = arith.mulf %201, %203 : vector<9x384xf32>
    %205 = arith.addf %200, %204 : vector<9x384xf32>
    %c30 = arith.constant 30 : index
    %c0_62 = arith.constant 0 : index
    %206 = vector.load %arg12[%c30, %c0_62] : memref<41x384xf32, #tpu.memory_space<vmem>>, vector<9x384xf32>
    %207 = vector.extract_strided_slice %54 {offsets = [30, 0], sizes = [1, 384], strides = [1, 1]} : vector<32x384xf32> to vector<1x384xf32>
    %208 = vector.broadcast %207 : vector<1x384xf32> to vector<9x384xf32>
    %209 = arith.mulf %206, %208 : vector<9x384xf32>
    %210 = arith.addf %205, %209 : vector<9x384xf32>
    %c31 = arith.constant 31 : index
    %c0_63 = arith.constant 0 : index
    %211 = vector.load %arg12[%c31, %c0_63] : memref<41x384xf32, #tpu.memory_space<vmem>>, vector<9x384xf32>
    %212 = vector.extract_strided_slice %54 {offsets = [31, 0], sizes = [1, 384], strides = [1, 1]} : vector<32x384xf32> to vector<1x384xf32>
    %213 = vector.broadcast %212 : vector<1x384xf32> to vector<9x384xf32>
    %214 = arith.mulf %211, %213 : vector<9x384xf32>
    %215 = arith.addf %210, %214 : vector<9x384xf32>
    %c0_64 = arith.constant 0 : index
    %c0_65 = arith.constant 0 : index
    %216 = vector.load %arg7[%c0_64, %c0_65] : memref<1x384xf32, #tpu.memory_space<vmem>>, vector<1x384xf32>
    %217 = vector.broadcast %216 : vector<1x384xf32> to vector<9x384xf32>
    %218 = arith.mulf %215, %217 : vector<9x384xf32>
    %c0_66 = arith.constant 0 : index
    %c0_67 = arith.constant 0 : index
    %219 = vector.load %arg8[%c0_66, %c0_67] : memref<1x384xf32, #tpu.memory_space<vmem>>, vector<1x384xf32>
    %220 = vector.broadcast %219 : vector<1x384xf32> to vector<9x384xf32>
    %221 = arith.addf %218, %220 : vector<9x384xf32>
    %222 = math.absf %221 : vector<9x384xf32>
    %cst_68 = arith.constant 0.000000e+00 : f32
    %223 = vector.broadcast %cst_68 : f32 to vector<9x384xf32>
    %224 = arith.subf %223, %222 : vector<9x384xf32>
    %225 = math.exp %224 : vector<9x384xf32>
    %cst_69 = arith.constant 0.000000e+00 : f32
    %226 = vector.broadcast %cst_69 : f32 to vector<9x384xf32>
    %227 = arith.cmpf oge, %221, %226 : vector<9x384xf32>
    %cst_70 = arith.constant 1.000000e+00 : f32
    %228 = vector.broadcast %cst_70 : f32 to vector<9x384xf32>
    %229 = arith.addf %228, %225 : vector<9x384xf32>
    %cst_71 = arith.constant 1.000000e+00 : f32
    %230 = vector.broadcast %cst_71 : f32 to vector<9x384xf32>
    %231 = arith.divf %230, %229 : vector<9x384xf32>
    %cst_72 = arith.constant 1.000000e+00 : f32
    %232 = vector.broadcast %cst_72 : f32 to vector<9x384xf32>
    %233 = arith.addf %232, %225 : vector<9x384xf32>
    %234 = arith.divf %225, %233 : vector<9x384xf32>
    %235 = arith.select %227, %231, %234 : vector<9x384xi1>, vector<9x384xf32>
    %236 = arith.mulf %221, %235 : vector<9x384xf32>
    %237 = arith.truncf %236 : vector<9x384xf32> to vector<9x384xbf16>
    %c0_73 = arith.constant 0 : index
    %c0_74 = arith.constant 0 : index
    %238 = vector.load %arg9[%c0_73, %c0_74] : memref<384x192xbf16, #tpu.memory_space<vmem>>, vector<384x192xbf16>
    %cst_75 = arith.constant dense<0.000000e+00> : vector<9x192xf32>
    %239 = tpu.matmul %237, %238, %cst_75 {dimension_numbers = #tpu.dot_dimension_numbers<[1], [0], [0], [1], [0, 0, 1, 1], [], []>} : vector<9x384xbf16>, vector<384x192xbf16>, vector<9x192xf32> -> vector<9x192xf32>
    %c0_76 = arith.constant 0 : index
    %c0_77 = arith.constant 0 : index
    %240 = vector.load %arg10[%c0_76, %c0_77] : memref<1x192xf32, #tpu.memory_space<vmem>>, vector<1x192xf32>
    %241 = vector.broadcast %240 : vector<1x192xf32> to vector<9x192xf32>
    %242 = arith.addf %239, %241 : vector<9x192xf32>
    %243 = arith.addf %1, %242 : vector<9x192xf32>
    %c0_78 = arith.constant 0 : index
    %c0_79 = arith.constant 0 : index
    %c0_80 = arith.constant 0 : index
    %244 = vector.load %arg11[%c0_78, %c0_79, %c0_80] : memref<1x9x192xf32, #tpu.memory_space<vmem>>, vector<1x9x192xf32>
    %245 = vector.shape_cast %244 : vector<1x9x192xf32> to vector<9x192xf32>
    %246 = vector.shape_cast %243 : vector<9x192xf32> to vector<1x9x192xf32>
    tpu.vector_store %arg11[%c0_78, %c0_79, %c0_80], %246 {strides = array<i32>} : memref<1x9x192xf32, #tpu.memory_space<vmem>>, vector<1x9x192xf32>,
    return
  }
  func.func @transform_0(%arg0: i32) -> (i32, i32, i32) {
    %c0_i32 = arith.constant 0 : i32
    %c0_i32_0 = arith.constant 0 : i32
    %c0_i32_1 = arith.constant 0 : i32
    return %arg0, %c0_i32, %c0_i32_0 : i32, i32, i32
  }
  func.func @transform_1(%arg0: i32) -> (i32, i32) {
    %c0_i32 = arith.constant 0 : i32
    %c0_i32_0 = arith.constant 0 : i32
    %c0_i32_1 = arith.constant 0 : i32
    return %c0_i32, %c0_i32_0 : i32, i32
  }
  func.func @transform_2(%arg0: i32) -> (i32, i32) {
    %c0_i32 = arith.constant 0 : i32
    %c0_i32_0 = arith.constant 0 : i32
    %c0_i32_1 = arith.constant 0 : i32
    return %c0_i32, %c0_i32_0 : i32, i32
  }
  func.func @transform_3(%arg0: i32) -> (i32, i32) {
    %c0_i32 = arith.constant 0 : i32
    %c0_i32_0 = arith.constant 0 : i32
    %c0_i32_1 = arith.constant 0 : i32
    return %c0_i32, %c0_i32_0 : i32, i32
  }
  func.func @transform_4(%arg0: i32) -> (i32, i32) {
    %c0_i32 = arith.constant 0 : i32
    %c0_i32_0 = arith.constant 0 : i32
    %c0_i32_1 = arith.constant 0 : i32
    return %c0_i32, %c0_i32_0 : i32, i32
  }
  func.func @transform_5(%arg0: i32) -> (i32, i32) {
    %c0_i32 = arith.constant 0 : i32
    %c0_i32_0 = arith.constant 0 : i32
    %c0_i32_1 = arith.constant 0 : i32
    return %c0_i32, %c0_i32_0 : i32, i32
  }
  func.func @transform_6(%arg0: i32) -> (i32, i32) {
    %c0_i32 = arith.constant 0 : i32
    %c0_i32_0 = arith.constant 0 : i32
    %c0_i32_1 = arith.constant 0 : i32
    return %c0_i32, %c0_i32_0 : i32, i32
  }
  func.func @transform_7(%arg0: i32) -> (i32, i32) {
    %c0_i32 = arith.constant 0 : i32
    %c0_i32_0 = arith.constant 0 : i32
    %c0_i32_1 = arith.constant 0 : i32
    return %c0_i32, %c0_i32_0 : i32, i32
  }
  func.func @transform_8(%arg0: i32) -> (i32, i32) {
    %c0_i32 = arith.constant 0 : i32
    %c0_i32_0 = arith.constant 0 : i32
    %c0_i32_1 = arith.constant 0 : i32
    return %c0_i32, %c0_i32_0 : i32, i32
  }
  func.func @transform_9(%arg0: i32) -> (i32, i32) {
    %c0_i32 = arith.constant 0 : i32
    %c0_i32_0 = arith.constant 0 : i32
    %c0_i32_1 = arith.constant 0 : i32
    return %c0_i32, %c0_i32_0 : i32, i32
  }
  func.func @transform_10(%arg0: i32) -> (i32, i32, i32) {
    %c0_i32 = arith.constant 0 : i32
    %c0_i32_0 = arith.constant 0 : i32
    %c0_i32_1 = arith.constant 0 : i32
    return %arg0, %c0_i32, %c0_i32_0 : i32, i32, i32
  }
}

module attributes {stable_mosaic.version = 11 : i64} {
  func.func @_attn_kernel(%arg0: i32, %arg1: memref<1x9x192xf32, #tpu.memory_space<vmem>>, %arg2: memref<1x192xf32, #tpu.memory_space<vmem>>, %arg3: memref<1x192xf32, #tpu.memory_space<vmem>>, %arg4: memref<4x192x48xbf16, #tpu.memory_space<vmem>>, %arg5: memref<4x192x48xbf16, #tpu.memory_space<vmem>>, %arg6: memref<4x192x48xbf16, #tpu.memory_space<vmem>>, %arg7: memref<17x48xbf16, #tpu.memory_space<vmem>>, %arg8: memref<192x192xbf16, #tpu.memory_space<vmem>>, %arg9: memref<1x192xf32, #tpu.memory_space<vmem>>, %arg10: memref<1x9x192xf32, #tpu.memory_space<vmem>>) attributes {dimension_semantics = [#tpu.dimension_semantics<parallel>], iteration_bounds = array<i64: 2>, scalar_prefetch = 0 : i64, scratch_operands = 0 : i64, tpu.core_type = #tpu.core_type<tc>, window_params = [{transform_indices = @transform_0, window_bounds = array<i64: 1, 9, 192>}, {pipeline_mode = #tpu.pipeline_mode<synchronous>, transform_indices = @transform_1, window_bounds = array<i64: 1, 192>}, {pipeline_mode = #tpu.pipeline_mode<synchronous>, transform_indices = @transform_2, window_bounds = array<i64: 1, 192>}, {pipeline_mode = #tpu.pipeline_mode<synchronous>, transform_indices = @transform_3, window_bounds = array<i64: 4, 192, 48>}, {pipeline_mode = #tpu.pipeline_mode<synchronous>, transform_indices = @transform_4, window_bounds = array<i64: 4, 192, 48>}, {pipeline_mode = #tpu.pipeline_mode<synchronous>, transform_indices = @transform_5, window_bounds = array<i64: 4, 192, 48>}, {pipeline_mode = #tpu.pipeline_mode<synchronous>, transform_indices = @transform_6, window_bounds = array<i64: 17, 48>}, {pipeline_mode = #tpu.pipeline_mode<synchronous>, transform_indices = @transform_7, window_bounds = array<i64: 192, 192>}, {pipeline_mode = #tpu.pipeline_mode<synchronous>, transform_indices = @transform_8, window_bounds = array<i64: 1, 192>}, {transform_indices = @transform_9, window_bounds = array<i64: 1, 9, 192>}]} {
    %c0 = arith.constant 0 : index
    %c0_0 = arith.constant 0 : index
    %c0_1 = arith.constant 0 : index
    %0 = vector.load %arg1[%c0, %c0_0, %c0_1] : memref<1x9x192xf32, #tpu.memory_space<vmem>>, vector<1x9x192xf32>
    %1 = vector.shape_cast %0 : vector<1x9x192xf32> to vector<9x192xf32>
    %c0_2 = arith.constant 0 : index
    %c0_3 = arith.constant 0 : index
    %2 = vector.load %arg2[%c0_2, %c0_3] : memref<1x192xf32, #tpu.memory_space<vmem>>, vector<1x192xf32>
    %c0_4 = arith.constant 0 : index
    %c0_5 = arith.constant 0 : index
    %3 = vector.load %arg3[%c0_4, %c0_5] : memref<1x192xf32, #tpu.memory_space<vmem>>, vector<1x192xf32>
    %cst = arith.constant dense<0.000000e+00> : vector<9xf32>
    %4 = vector.multi_reduction <add>, %1, %cst [1] : vector<9x192xf32> to vector<9xf32>
    %5 = vector.shape_cast %4 : vector<9xf32> to vector<9x1xf32>
    %cst_6 = arith.constant 1.920000e+02 : f32
    %6 = vector.broadcast %cst_6 : f32 to vector<9x1xf32>
    %7 = arith.divf %5, %6 : vector<9x1xf32>
    %8 = vector.broadcast %7 : vector<9x1xf32> to vector<9x192xf32>
    %9 = arith.subf %1, %8 : vector<9x192xf32>
    %10 = arith.mulf %9, %9 : vector<9x192xf32>
    %cst_7 = arith.constant dense<0.000000e+00> : vector<9xf32>
    %11 = vector.multi_reduction <add>, %10, %cst_7 [1] : vector<9x192xf32> to vector<9xf32>
    %12 = vector.shape_cast %11 : vector<9xf32> to vector<9x1xf32>
    %cst_8 = arith.constant 1.920000e+02 : f32
    %13 = vector.broadcast %cst_8 : f32 to vector<9x1xf32>
    %14 = arith.divf %12, %13 : vector<9x1xf32>
    %15 = vector.broadcast %7 : vector<9x1xf32> to vector<9x192xf32>
    %16 = arith.subf %1, %15 : vector<9x192xf32>
    %cst_9 = arith.constant 9.99999974E-6 : f32
    %17 = vector.broadcast %cst_9 : f32 to vector<9x1xf32>
    %18 = arith.addf %14, %17 : vector<9x1xf32>
    %19 = math.rsqrt %18 : vector<9x1xf32>
    %20 = vector.broadcast %19 : vector<9x1xf32> to vector<9x192xf32>
    %21 = arith.mulf %16, %20 : vector<9x192xf32>
    %22 = vector.broadcast %2 : vector<1x192xf32> to vector<9x192xf32>
    %23 = arith.mulf %21, %22 : vector<9x192xf32>
    %24 = vector.broadcast %3 : vector<1x192xf32> to vector<9x192xf32>
    %25 = arith.addf %23, %24 : vector<9x192xf32>
    %26 = arith.truncf %25 : vector<9x192xf32> to vector<9x192xbf16>
    %c0_10 = arith.constant 0 : index
    %c0_11 = arith.constant 0 : index
    %27 = vector.load %arg7[%c0_10, %c0_11] : memref<17x48xbf16, #tpu.memory_space<vmem>>, vector<17x48xbf16>
    %c0_12 = arith.constant 0 : index
    %c0_13 = arith.constant 0 : index
    %c0_14 = arith.constant 0 : index
    %28 = vector.load %arg4[%c0_12, %c0_13, %c0_14] : memref<4x192x48xbf16, #tpu.memory_space<vmem>>, vector<1x192x48xbf16>
    %29 = vector.shape_cast %28 : vector<1x192x48xbf16> to vector<192x48xbf16>
    %cst_15 = arith.constant dense<0.000000e+00> : vector<9x48xf32>
    %30 = tpu.matmul %26, %29, %cst_15 {dimension_numbers = #tpu.dot_dimension_numbers<[1], [0], [0], [1], [0, 0, 1, 1], [], []>} : vector<9x192xbf16>, vector<192x48xbf16>, vector<9x48xf32> -> vector<9x48xf32>
    %c0_16 = arith.constant 0 : index
    %c0_17 = arith.constant 0 : index
    %c0_18 = arith.constant 0 : index
    %31 = vector.load %arg5[%c0_16, %c0_17, %c0_18] : memref<4x192x48xbf16, #tpu.memory_space<vmem>>, vector<1x192x48xbf16>
    %32 = vector.shape_cast %31 : vector<1x192x48xbf16> to vector<192x48xbf16>
    %cst_19 = arith.constant dense<0.000000e+00> : vector<9x48xf32>
    %33 = tpu.matmul %26, %32, %cst_19 {dimension_numbers = #tpu.dot_dimension_numbers<[1], [0], [0], [1], [0, 0, 1, 1], [], []>} : vector<9x192xbf16>, vector<192x48xbf16>, vector<9x48xf32> -> vector<9x48xf32>
    %c0_20 = arith.constant 0 : index
    %c0_21 = arith.constant 0 : index
    %c0_22 = arith.constant 0 : index
    %34 = vector.load %arg6[%c0_20, %c0_21, %c0_22] : memref<4x192x48xbf16, #tpu.memory_space<vmem>>, vector<1x192x48xbf16>
    %35 = vector.shape_cast %34 : vector<1x192x48xbf16> to vector<192x48xbf16>
    %cst_23 = arith.constant dense<0.000000e+00> : vector<9x48xf32>
    %36 = tpu.matmul %26, %35, %cst_23 {dimension_numbers = #tpu.dot_dimension_numbers<[1], [0], [0], [1], [0, 0, 1, 1], [], []>} : vector<9x192xbf16>, vector<192x48xbf16>, vector<9x48xf32> -> vector<9x48xf32>
    %37 = arith.truncf %30 : vector<9x48xf32> to vector<9x48xbf16>
    %38 = arith.truncf %33 : vector<9x48xf32> to vector<9x48xbf16>
    %cst_24 = arith.constant dense<0.000000e+00> : vector<9x9xf32>
    %39 = tpu.matmul %37, %38, %cst_24 {dimension_numbers = #tpu.dot_dimension_numbers<[1], [1], [0], [0], [0, 0, 1, 0], [], []>} : vector<9x48xbf16>, vector<9x48xbf16>, vector<9x9xf32> -> vector<9x9xf32>
    %cst_25 = arith.constant dense<0.000000e+00> : vector<9x17xf32>
    %40 = tpu.matmul %37, %27, %cst_25 {dimension_numbers = #tpu.dot_dimension_numbers<[1], [1], [0], [0], [0, 0, 1, 0], [], []>} : vector<9x48xbf16>, vector<17x48xbf16>, vector<9x17xf32> -> vector<9x17xf32>
    %41 = vector.extract_strided_slice %40 {offsets = [0, 8], sizes = [1, 9], strides = [1, 1]} : vector<9x17xf32> to vector<1x9xf32>
    %42 = vector.extract_strided_slice %40 {offsets = [1, 7], sizes = [1, 9], strides = [1, 1]} : vector<9x17xf32> to vector<1x9xf32>
    %43 = vector.extract_strided_slice %40 {offsets = [2, 6], sizes = [1, 9], strides = [1, 1]} : vector<9x17xf32> to vector<1x9xf32>
    %44 = vector.extract_strided_slice %40 {offsets = [3, 5], sizes = [1, 9], strides = [1, 1]} : vector<9x17xf32> to vector<1x9xf32>
    %45 = vector.extract_strided_slice %40 {offsets = [4, 4], sizes = [1, 9], strides = [1, 1]} : vector<9x17xf32> to vector<1x9xf32>
    %46 = vector.extract_strided_slice %40 {offsets = [5, 3], sizes = [1, 9], strides = [1, 1]} : vector<9x17xf32> to vector<1x9xf32>
    %47 = vector.extract_strided_slice %40 {offsets = [6, 2], sizes = [1, 9], strides = [1, 1]} : vector<9x17xf32> to vector<1x9xf32>
    %48 = vector.extract_strided_slice %40 {offsets = [7, 1], sizes = [1, 9], strides = [1, 1]} : vector<9x17xf32> to vector<1x9xf32>
    %49 = vector.extract_strided_slice %40 {offsets = [8, 0], sizes = [1, 9], strides = [1, 1]} : vector<9x17xf32> to vector<1x9xf32>
    %50 = tpu.concatenate %41, %42, %43, %44, %45, %46, %47, %48, %49 in 0 : vector<1x9xf32>, vector<1x9xf32>, vector<1x9xf32>, vector<1x9xf32>, vector<1x9xf32>, vector<1x9xf32>, vector<1x9xf32>, vector<1x9xf32>, vector<1x9xf32> -> vector<9x9xf32>
    %51 = arith.addf %39, %50 : vector<9x9xf32>
    %cst_26 = arith.constant 0.144337565 : f32
    %52 = vector.broadcast %cst_26 : f32 to vector<9x9xf32>
    %53 = arith.mulf %51, %52 : vector<9x9xf32>
    %cst_27 = arith.constant dense<0xFF800000> : vector<9xf32>
    %54 = vector.multi_reduction <maximumf>, %53, %cst_27 [1] : vector<9x9xf32> to vector<9xf32>
    %55 = vector.shape_cast %54 : vector<9xf32> to vector<9x1xf32>
    %56 = vector.broadcast %55 : vector<9x1xf32> to vector<9x9xf32>
    %57 = arith.subf %53, %56 : vector<9x9xf32>
    %58 = math.exp %57 : vector<9x9xf32>
    %cst_28 = arith.constant dense<0.000000e+00> : vector<9xf32>
    %59 = vector.multi_reduction <add>, %58, %cst_28 [1] : vector<9x9xf32> to vector<9xf32>
    %60 = vector.shape_cast %59 : vector<9xf32> to vector<9x1xf32>
    %61 = vector.broadcast %60 : vector<9x1xf32> to vector<9x9xf32>
    %62 = arith.divf %58, %61 : vector<9x9xf32>
    %63 = arith.truncf %62 : vector<9x9xf32> to vector<9x9xbf16>
    %64 = arith.truncf %36 : vector<9x48xf32> to vector<9x48xbf16>
    %cst_29 = arith.constant dense<0.000000e+00> : vector<9x48xf32>
    %65 = tpu.matmul %63, %64, %cst_29 {dimension_numbers = #tpu.dot_dimension_numbers<[1], [0], [0], [1], [0, 0, 1, 1], [], []>} : vector<9x9xbf16>, vector<9x48xbf16>, vector<9x48xf32> -> vector<9x48xf32>
    %c1 = arith.constant 1 : index
    %c0_30 = arith.constant 0 : index
    %c0_31 = arith.constant 0 : index
    %66 = vector.load %arg4[%c1, %c0_30, %c0_31] : memref<4x192x48xbf16, #tpu.memory_space<vmem>>, vector<1x192x48xbf16>
    %67 = vector.shape_cast %66 : vector<1x192x48xbf16> to vector<192x48xbf16>
    %cst_32 = arith.constant dense<0.000000e+00> : vector<9x48xf32>
    %68 = tpu.matmul %26, %67, %cst_32 {dimension_numbers = #tpu.dot_dimension_numbers<[1], [0], [0], [1], [0, 0, 1, 1], [], []>} : vector<9x192xbf16>, vector<192x48xbf16>, vector<9x48xf32> -> vector<9x48xf32>
    %c1_33 = arith.constant 1 : index
    %c0_34 = arith.constant 0 : index
    %c0_35 = arith.constant 0 : index
    %69 = vector.load %arg5[%c1_33, %c0_34, %c0_35] : memref<4x192x48xbf16, #tpu.memory_space<vmem>>, vector<1x192x48xbf16>
    %70 = vector.shape_cast %69 : vector<1x192x48xbf16> to vector<192x48xbf16>
    %cst_36 = arith.constant dense<0.000000e+00> : vector<9x48xf32>
    %71 = tpu.matmul %26, %70, %cst_36 {dimension_numbers = #tpu.dot_dimension_numbers<[1], [0], [0], [1], [0, 0, 1, 1], [], []>} : vector<9x192xbf16>, vector<192x48xbf16>, vector<9x48xf32> -> vector<9x48xf32>
    %c1_37 = arith.constant 1 : index
    %c0_38 = arith.constant 0 : index
    %c0_39 = arith.constant 0 : index
    %72 = vector.load %arg6[%c1_37, %c0_38, %c0_39] : memref<4x192x48xbf16, #tpu.memory_space<vmem>>, vector<1x192x48xbf16>
    %73 = vector.shape_cast %72 : vector<1x192x48xbf16> to vector<192x48xbf16>
    %cst_40 = arith.constant dense<0.000000e+00> : vector<9x48xf32>
    %74 = tpu.matmul %26, %73, %cst_40 {dimension_numbers = #tpu.dot_dimension_numbers<[1], [0], [0], [1], [0, 0, 1, 1], [], []>} : vector<9x192xbf16>, vector<192x48xbf16>, vector<9x48xf32> -> vector<9x48xf32>
    %75 = arith.truncf %68 : vector<9x48xf32> to vector<9x48xbf16>
    %76 = arith.truncf %71 : vector<9x48xf32> to vector<9x48xbf16>
    %cst_41 = arith.constant dense<0.000000e+00> : vector<9x9xf32>
    %77 = tpu.matmul %75, %76, %cst_41 {dimension_numbers = #tpu.dot_dimension_numbers<[1], [1], [0], [0], [0, 0, 1, 0], [], []>} : vector<9x48xbf16>, vector<9x48xbf16>, vector<9x9xf32> -> vector<9x9xf32>
    %cst_42 = arith.constant dense<0.000000e+00> : vector<9x17xf32>
    %78 = tpu.matmul %75, %27, %cst_42 {dimension_numbers = #tpu.dot_dimension_numbers<[1], [1], [0], [0], [0, 0, 1, 0], [], []>} : vector<9x48xbf16>, vector<17x48xbf16>, vector<9x17xf32> -> vector<9x17xf32>
    %79 = vector.extract_strided_slice %78 {offsets = [0, 8], sizes = [1, 9], strides = [1, 1]} : vector<9x17xf32> to vector<1x9xf32>
    %80 = vector.extract_strided_slice %78 {offsets = [1, 7], sizes = [1, 9], strides = [1, 1]} : vector<9x17xf32> to vector<1x9xf32>
    %81 = vector.extract_strided_slice %78 {offsets = [2, 6], sizes = [1, 9], strides = [1, 1]} : vector<9x17xf32> to vector<1x9xf32>
    %82 = vector.extract_strided_slice %78 {offsets = [3, 5], sizes = [1, 9], strides = [1, 1]} : vector<9x17xf32> to vector<1x9xf32>
    %83 = vector.extract_strided_slice %78 {offsets = [4, 4], sizes = [1, 9], strides = [1, 1]} : vector<9x17xf32> to vector<1x9xf32>
    %84 = vector.extract_strided_slice %78 {offsets = [5, 3], sizes = [1, 9], strides = [1, 1]} : vector<9x17xf32> to vector<1x9xf32>
    %85 = vector.extract_strided_slice %78 {offsets = [6, 2], sizes = [1, 9], strides = [1, 1]} : vector<9x17xf32> to vector<1x9xf32>
    %86 = vector.extract_strided_slice %78 {offsets = [7, 1], sizes = [1, 9], strides = [1, 1]} : vector<9x17xf32> to vector<1x9xf32>
    %87 = vector.extract_strided_slice %78 {offsets = [8, 0], sizes = [1, 9], strides = [1, 1]} : vector<9x17xf32> to vector<1x9xf32>
    %88 = tpu.concatenate %79, %80, %81, %82, %83, %84, %85, %86, %87 in 0 : vector<1x9xf32>, vector<1x9xf32>, vector<1x9xf32>, vector<1x9xf32>, vector<1x9xf32>, vector<1x9xf32>, vector<1x9xf32>, vector<1x9xf32>, vector<1x9xf32> -> vector<9x9xf32>
    %89 = arith.addf %77, %88 : vector<9x9xf32>
    %cst_43 = arith.constant 0.144337565 : f32
    %90 = vector.broadcast %cst_43 : f32 to vector<9x9xf32>
    %91 = arith.mulf %89, %90 : vector<9x9xf32>
    %cst_44 = arith.constant dense<0xFF800000> : vector<9xf32>
    %92 = vector.multi_reduction <maximumf>, %91, %cst_44 [1] : vector<9x9xf32> to vector<9xf32>
    %93 = vector.shape_cast %92 : vector<9xf32> to vector<9x1xf32>
    %94 = vector.broadcast %93 : vector<9x1xf32> to vector<9x9xf32>
    %95 = arith.subf %91, %94 : vector<9x9xf32>
    %96 = math.exp %95 : vector<9x9xf32>
    %cst_45 = arith.constant dense<0.000000e+00> : vector<9xf32>
    %97 = vector.multi_reduction <add>, %96, %cst_45 [1] : vector<9x9xf32> to vector<9xf32>
    %98 = vector.shape_cast %97 : vector<9xf32> to vector<9x1xf32>
    %99 = vector.broadcast %98 : vector<9x1xf32> to vector<9x9xf32>
    %100 = arith.divf %96, %99 : vector<9x9xf32>
    %101 = arith.truncf %100 : vector<9x9xf32> to vector<9x9xbf16>
    %102 = arith.truncf %74 : vector<9x48xf32> to vector<9x48xbf16>
    %cst_46 = arith.constant dense<0.000000e+00> : vector<9x48xf32>
    %103 = tpu.matmul %101, %102, %cst_46 {dimension_numbers = #tpu.dot_dimension_numbers<[1], [0], [0], [1], [0, 0, 1, 1], [], []>} : vector<9x9xbf16>, vector<9x48xbf16>, vector<9x48xf32> -> vector<9x48xf32>
    %c2 = arith.constant 2 : index
    %c0_47 = arith.constant 0 : index
    %c0_48 = arith.constant 0 : index
    %104 = vector.load %arg4[%c2, %c0_47, %c0_48] : memref<4x192x48xbf16, #tpu.memory_space<vmem>>, vector<1x192x48xbf16>
    %105 = vector.shape_cast %104 : vector<1x192x48xbf16> to vector<192x48xbf16>
    %cst_49 = arith.constant dense<0.000000e+00> : vector<9x48xf32>
    %106 = tpu.matmul %26, %105, %cst_49 {dimension_numbers = #tpu.dot_dimension_numbers<[1], [0], [0], [1], [0, 0, 1, 1], [], []>} : vector<9x192xbf16>, vector<192x48xbf16>, vector<9x48xf32> -> vector<9x48xf32>
    %c2_50 = arith.constant 2 : index
    %c0_51 = arith.constant 0 : index
    %c0_52 = arith.constant 0 : index
    %107 = vector.load %arg5[%c2_50, %c0_51, %c0_52] : memref<4x192x48xbf16, #tpu.memory_space<vmem>>, vector<1x192x48xbf16>
    %108 = vector.shape_cast %107 : vector<1x192x48xbf16> to vector<192x48xbf16>
    %cst_53 = arith.constant dense<0.000000e+00> : vector<9x48xf32>
    %109 = tpu.matmul %26, %108, %cst_53 {dimension_numbers = #tpu.dot_dimension_numbers<[1], [0], [0], [1], [0, 0, 1, 1], [], []>} : vector<9x192xbf16>, vector<192x48xbf16>, vector<9x48xf32> -> vector<9x48xf32>
    %c2_54 = arith.constant 2 : index
    %c0_55 = arith.constant 0 : index
    %c0_56 = arith.constant 0 : index
    %110 = vector.load %arg6[%c2_54, %c0_55, %c0_56] : memref<4x192x48xbf16, #tpu.memory_space<vmem>>, vector<1x192x48xbf16>
    %111 = vector.shape_cast %110 : vector<1x192x48xbf16> to vector<192x48xbf16>
    %cst_57 = arith.constant dense<0.000000e+00> : vector<9x48xf32>
    %112 = tpu.matmul %26, %111, %cst_57 {dimension_numbers = #tpu.dot_dimension_numbers<[1], [0], [0], [1], [0, 0, 1, 1], [], []>} : vector<9x192xbf16>, vector<192x48xbf16>, vector<9x48xf32> -> vector<9x48xf32>
    %113 = arith.truncf %106 : vector<9x48xf32> to vector<9x48xbf16>
    %114 = arith.truncf %109 : vector<9x48xf32> to vector<9x48xbf16>
    %cst_58 = arith.constant dense<0.000000e+00> : vector<9x9xf32>
    %115 = tpu.matmul %113, %114, %cst_58 {dimension_numbers = #tpu.dot_dimension_numbers<[1], [1], [0], [0], [0, 0, 1, 0], [], []>} : vector<9x48xbf16>, vector<9x48xbf16>, vector<9x9xf32> -> vector<9x9xf32>
    %cst_59 = arith.constant dense<0.000000e+00> : vector<9x17xf32>
    %116 = tpu.matmul %113, %27, %cst_59 {dimension_numbers = #tpu.dot_dimension_numbers<[1], [1], [0], [0], [0, 0, 1, 0], [], []>} : vector<9x48xbf16>, vector<17x48xbf16>, vector<9x17xf32> -> vector<9x17xf32>
    %117 = vector.extract_strided_slice %116 {offsets = [0, 8], sizes = [1, 9], strides = [1, 1]} : vector<9x17xf32> to vector<1x9xf32>
    %118 = vector.extract_strided_slice %116 {offsets = [1, 7], sizes = [1, 9], strides = [1, 1]} : vector<9x17xf32> to vector<1x9xf32>
    %119 = vector.extract_strided_slice %116 {offsets = [2, 6], sizes = [1, 9], strides = [1, 1]} : vector<9x17xf32> to vector<1x9xf32>
    %120 = vector.extract_strided_slice %116 {offsets = [3, 5], sizes = [1, 9], strides = [1, 1]} : vector<9x17xf32> to vector<1x9xf32>
    %121 = vector.extract_strided_slice %116 {offsets = [4, 4], sizes = [1, 9], strides = [1, 1]} : vector<9x17xf32> to vector<1x9xf32>
    %122 = vector.extract_strided_slice %116 {offsets = [5, 3], sizes = [1, 9], strides = [1, 1]} : vector<9x17xf32> to vector<1x9xf32>
    %123 = vector.extract_strided_slice %116 {offsets = [6, 2], sizes = [1, 9], strides = [1, 1]} : vector<9x17xf32> to vector<1x9xf32>
    %124 = vector.extract_strided_slice %116 {offsets = [7, 1], sizes = [1, 9], strides = [1, 1]} : vector<9x17xf32> to vector<1x9xf32>
    %125 = vector.extract_strided_slice %116 {offsets = [8, 0], sizes = [1, 9], strides = [1, 1]} : vector<9x17xf32> to vector<1x9xf32>
    %126 = tpu.concatenate %117, %118, %119, %120, %121, %122, %123, %124, %125 in 0 : vector<1x9xf32>, vector<1x9xf32>, vector<1x9xf32>, vector<1x9xf32>, vector<1x9xf32>, vector<1x9xf32>, vector<1x9xf32>, vector<1x9xf32>, vector<1x9xf32> -> vector<9x9xf32>
    %127 = arith.addf %115, %126 : vector<9x9xf32>
    %cst_60 = arith.constant 0.144337565 : f32
    %128 = vector.broadcast %cst_60 : f32 to vector<9x9xf32>
    %129 = arith.mulf %127, %128 : vector<9x9xf32>
    %cst_61 = arith.constant dense<0xFF800000> : vector<9xf32>
    %130 = vector.multi_reduction <maximumf>, %129, %cst_61 [1] : vector<9x9xf32> to vector<9xf32>
    %131 = vector.shape_cast %130 : vector<9xf32> to vector<9x1xf32>
    %132 = vector.broadcast %131 : vector<9x1xf32> to vector<9x9xf32>
    %133 = arith.subf %129, %132 : vector<9x9xf32>
    %134 = math.exp %133 : vector<9x9xf32>
    %cst_62 = arith.constant dense<0.000000e+00> : vector<9xf32>
    %135 = vector.multi_reduction <add>, %134, %cst_62 [1] : vector<9x9xf32> to vector<9xf32>
    %136 = vector.shape_cast %135 : vector<9xf32> to vector<9x1xf32>
    %137 = vector.broadcast %136 : vector<9x1xf32> to vector<9x9xf32>
    %138 = arith.divf %134, %137 : vector<9x9xf32>
    %139 = arith.truncf %138 : vector<9x9xf32> to vector<9x9xbf16>
    %140 = arith.truncf %112 : vector<9x48xf32> to vector<9x48xbf16>
    %cst_63 = arith.constant dense<0.000000e+00> : vector<9x48xf32>
    %141 = tpu.matmul %139, %140, %cst_63 {dimension_numbers = #tpu.dot_dimension_numbers<[1], [0], [0], [1], [0, 0, 1, 1], [], []>} : vector<9x9xbf16>, vector<9x48xbf16>, vector<9x48xf32> -> vector<9x48xf32>
    %c3 = arith.constant 3 : index
    %c0_64 = arith.constant 0 : index
    %c0_65 = arith.constant 0 : index
    %142 = vector.load %arg4[%c3, %c0_64, %c0_65] : memref<4x192x48xbf16, #tpu.memory_space<vmem>>, vector<1x192x48xbf16>
    %143 = vector.shape_cast %142 : vector<1x192x48xbf16> to vector<192x48xbf16>
    %cst_66 = arith.constant dense<0.000000e+00> : vector<9x48xf32>
    %144 = tpu.matmul %26, %143, %cst_66 {dimension_numbers = #tpu.dot_dimension_numbers<[1], [0], [0], [1], [0, 0, 1, 1], [], []>} : vector<9x192xbf16>, vector<192x48xbf16>, vector<9x48xf32> -> vector<9x48xf32>
    %c3_67 = arith.constant 3 : index
    %c0_68 = arith.constant 0 : index
    %c0_69 = arith.constant 0 : index
    %145 = vector.load %arg5[%c3_67, %c0_68, %c0_69] : memref<4x192x48xbf16, #tpu.memory_space<vmem>>, vector<1x192x48xbf16>
    %146 = vector.shape_cast %145 : vector<1x192x48xbf16> to vector<192x48xbf16>
    %cst_70 = arith.constant dense<0.000000e+00> : vector<9x48xf32>
    %147 = tpu.matmul %26, %146, %cst_70 {dimension_numbers = #tpu.dot_dimension_numbers<[1], [0], [0], [1], [0, 0, 1, 1], [], []>} : vector<9x192xbf16>, vector<192x48xbf16>, vector<9x48xf32> -> vector<9x48xf32>
    %c3_71 = arith.constant 3 : index
    %c0_72 = arith.constant 0 : index
    %c0_73 = arith.constant 0 : index
    %148 = vector.load %arg6[%c3_71, %c0_72, %c0_73] : memref<4x192x48xbf16, #tpu.memory_space<vmem>>, vector<1x192x48xbf16>
    %149 = vector.shape_cast %148 : vector<1x192x48xbf16> to vector<192x48xbf16>
    %cst_74 = arith.constant dense<0.000000e+00> : vector<9x48xf32>
    %150 = tpu.matmul %26, %149, %cst_74 {dimension_numbers = #tpu.dot_dimension_numbers<[1], [0], [0], [1], [0, 0, 1, 1], [], []>} : vector<9x192xbf16>, vector<192x48xbf16>, vector<9x48xf32> -> vector<9x48xf32>
    %151 = arith.truncf %144 : vector<9x48xf32> to vector<9x48xbf16>
    %152 = arith.truncf %147 : vector<9x48xf32> to vector<9x48xbf16>
    %cst_75 = arith.constant dense<0.000000e+00> : vector<9x9xf32>
    %153 = tpu.matmul %151, %152, %cst_75 {dimension_numbers = #tpu.dot_dimension_numbers<[1], [1], [0], [0], [0, 0, 1, 0], [], []>} : vector<9x48xbf16>, vector<9x48xbf16>, vector<9x9xf32> -> vector<9x9xf32>
    %cst_76 = arith.constant dense<0.000000e+00> : vector<9x17xf32>
    %154 = tpu.matmul %151, %27, %cst_76 {dimension_numbers = #tpu.dot_dimension_numbers<[1], [1], [0], [0], [0, 0, 1, 0], [], []>} : vector<9x48xbf16>, vector<17x48xbf16>, vector<9x17xf32> -> vector<9x17xf32>
    %155 = vector.extract_strided_slice %154 {offsets = [0, 8], sizes = [1, 9], strides = [1, 1]} : vector<9x17xf32> to vector<1x9xf32>
    %156 = vector.extract_strided_slice %154 {offsets = [1, 7], sizes = [1, 9], strides = [1, 1]} : vector<9x17xf32> to vector<1x9xf32>
    %157 = vector.extract_strided_slice %154 {offsets = [2, 6], sizes = [1, 9], strides = [1, 1]} : vector<9x17xf32> to vector<1x9xf32>
    %158 = vector.extract_strided_slice %154 {offsets = [3, 5], sizes = [1, 9], strides = [1, 1]} : vector<9x17xf32> to vector<1x9xf32>
    %159 = vector.extract_strided_slice %154 {offsets = [4, 4], sizes = [1, 9], strides = [1, 1]} : vector<9x17xf32> to vector<1x9xf32>
    %160 = vector.extract_strided_slice %154 {offsets = [5, 3], sizes = [1, 9], strides = [1, 1]} : vector<9x17xf32> to vector<1x9xf32>
    %161 = vector.extract_strided_slice %154 {offsets = [6, 2], sizes = [1, 9], strides = [1, 1]} : vector<9x17xf32> to vector<1x9xf32>
    %162 = vector.extract_strided_slice %154 {offsets = [7, 1], sizes = [1, 9], strides = [1, 1]} : vector<9x17xf32> to vector<1x9xf32>
    %163 = vector.extract_strided_slice %154 {offsets = [8, 0], sizes = [1, 9], strides = [1, 1]} : vector<9x17xf32> to vector<1x9xf32>
    %164 = tpu.concatenate %155, %156, %157, %158, %159, %160, %161, %162, %163 in 0 : vector<1x9xf32>, vector<1x9xf32>, vector<1x9xf32>, vector<1x9xf32>, vector<1x9xf32>, vector<1x9xf32>, vector<1x9xf32>, vector<1x9xf32>, vector<1x9xf32> -> vector<9x9xf32>
    %165 = arith.addf %153, %164 : vector<9x9xf32>
    %cst_77 = arith.constant 0.144337565 : f32
    %166 = vector.broadcast %cst_77 : f32 to vector<9x9xf32>
    %167 = arith.mulf %165, %166 : vector<9x9xf32>
    %cst_78 = arith.constant dense<0xFF800000> : vector<9xf32>
    %168 = vector.multi_reduction <maximumf>, %167, %cst_78 [1] : vector<9x9xf32> to vector<9xf32>
    %169 = vector.shape_cast %168 : vector<9xf32> to vector<9x1xf32>
    %170 = vector.broadcast %169 : vector<9x1xf32> to vector<9x9xf32>
    %171 = arith.subf %167, %170 : vector<9x9xf32>
    %172 = math.exp %171 : vector<9x9xf32>
    %cst_79 = arith.constant dense<0.000000e+00> : vector<9xf32>
    %173 = vector.multi_reduction <add>, %172, %cst_79 [1] : vector<9x9xf32> to vector<9xf32>
    %174 = vector.shape_cast %173 : vector<9xf32> to vector<9x1xf32>
    %175 = vector.broadcast %174 : vector<9x1xf32> to vector<9x9xf32>
    %176 = arith.divf %172, %175 : vector<9x9xf32>
    %177 = arith.truncf %176 : vector<9x9xf32> to vector<9x9xbf16>
    %178 = arith.truncf %150 : vector<9x48xf32> to vector<9x48xbf16>
    %cst_80 = arith.constant dense<0.000000e+00> : vector<9x48xf32>
    %179 = tpu.matmul %177, %178, %cst_80 {dimension_numbers = #tpu.dot_dimension_numbers<[1], [0], [0], [1], [0, 0, 1, 1], [], []>} : vector<9x9xbf16>, vector<9x48xbf16>, vector<9x48xf32> -> vector<9x48xf32>
    %180 = tpu.concatenate %65, %103, %141, %179 in 1 : vector<9x48xf32>, vector<9x48xf32>, vector<9x48xf32>, vector<9x48xf32> -> vector<9x192xf32>
    %181 = arith.truncf %180 : vector<9x192xf32> to vector<9x192xbf16>
    %c0_81 = arith.constant 0 : index
    %c0_82 = arith.constant 0 : index
    %182 = vector.load %arg8[%c0_81, %c0_82] : memref<192x192xbf16, #tpu.memory_space<vmem>>, vector<192x192xbf16>
    %cst_83 = arith.constant dense<0.000000e+00> : vector<9x192xf32>
    %183 = tpu.matmul %181, %182, %cst_83 {dimension_numbers = #tpu.dot_dimension_numbers<[1], [0], [0], [1], [0, 0, 1, 1], [], []>} : vector<9x192xbf16>, vector<192x192xbf16>, vector<9x192xf32> -> vector<9x192xf32>
    %c0_84 = arith.constant 0 : index
    %c0_85 = arith.constant 0 : index
    %184 = vector.load %arg9[%c0_84, %c0_85] : memref<1x192xf32, #tpu.memory_space<vmem>>, vector<1x192xf32>
    %185 = vector.broadcast %184 : vector<1x192xf32> to vector<9x192xf32>
    %186 = arith.addf %183, %185 : vector<9x192xf32>
    %187 = arith.addf %1, %186 : vector<9x192xf32>
    %c0_86 = arith.constant 0 : index
    %c0_87 = arith.constant 0 : index
    %c0_88 = arith.constant 0 : index
    %188 = vector.load %arg10[%c0_86, %c0_87, %c0_88] : memref<1x9x192xf32, #tpu.memory_space<vmem>>, vector<1x9x192xf32>
    %189 = vector.shape_cast %188 : vector<1x9x192xf32> to vector<9x192xf32>
    %190 = vector.shape_cast %187 : vector<9x192xf32> to vector<1x9x192xf32>
    tpu.vector_store %arg10[%c0_86, %c0_87, %c0_88], %190 {strides = array<i32>} : memref<1x9x192xf32, #tpu.memory_space<vmem>>, vector<1x9x192xf32>,
    return
  }
  func.func @transform_0(%arg0: i32) -> (i32, i32, i32) {
    %c0_i32 = arith.constant 0 : i32
    %c0_i32_0 = arith.constant 0 : i32
    %c0_i32_1 = arith.constant 0 : i32
    return %arg0, %c0_i32, %c0_i32_0 : i32, i32, i32
  }
  func.func @transform_1(%arg0: i32) -> (i32, i32) {
    %c0_i32 = arith.constant 0 : i32
    %c0_i32_0 = arith.constant 0 : i32
    %c0_i32_1 = arith.constant 0 : i32
    return %c0_i32, %c0_i32_0 : i32, i32
  }
  func.func @transform_2(%arg0: i32) -> (i32, i32) {
    %c0_i32 = arith.constant 0 : i32
    %c0_i32_0 = arith.constant 0 : i32
    %c0_i32_1 = arith.constant 0 : i32
    return %c0_i32, %c0_i32_0 : i32, i32
  }
  func.func @transform_3(%arg0: i32) -> (i32, i32, i32) {
    %c0_i32 = arith.constant 0 : i32
    %c0_i32_0 = arith.constant 0 : i32
    %c0_i32_1 = arith.constant 0 : i32
    %c0_i32_2 = arith.constant 0 : i32
    return %c0_i32, %c0_i32_0, %c0_i32_1 : i32, i32, i32
  }
  func.func @transform_4(%arg0: i32) -> (i32, i32, i32) {
    %c0_i32 = arith.constant 0 : i32
    %c0_i32_0 = arith.constant 0 : i32
    %c0_i32_1 = arith.constant 0 : i32
    %c0_i32_2 = arith.constant 0 : i32
    return %c0_i32, %c0_i32_0, %c0_i32_1 : i32, i32, i32
  }
  func.func @transform_5(%arg0: i32) -> (i32, i32, i32) {
    %c0_i32 = arith.constant 0 : i32
    %c0_i32_0 = arith.constant 0 : i32
    %c0_i32_1 = arith.constant 0 : i32
    %c0_i32_2 = arith.constant 0 : i32
    return %c0_i32, %c0_i32_0, %c0_i32_1 : i32, i32, i32
  }
  func.func @transform_6(%arg0: i32) -> (i32, i32) {
    %c0_i32 = arith.constant 0 : i32
    %c0_i32_0 = arith.constant 0 : i32
    %c0_i32_1 = arith.constant 0 : i32
    return %c0_i32, %c0_i32_0 : i32, i32
  }
  func.func @transform_7(%arg0: i32) -> (i32, i32) {
    %c0_i32 = arith.constant 0 : i32
    %c0_i32_0 = arith.constant 0 : i32
    %c0_i32_1 = arith.constant 0 : i32
    return %c0_i32, %c0_i32_0 : i32, i32
  }
  func.func @transform_8(%arg0: i32) -> (i32, i32) {
    %c0_i32 = arith.constant 0 : i32
    %c0_i32_0 = arith.constant 0 : i32
    %c0_i32_1 = arith.constant 0 : i32
    return %c0_i32, %c0_i32_0 : i32, i32
  }
  func.func @transform_9(%arg0: i32) -> (i32, i32, i32) {
    %c0_i32 = arith.constant 0 : i32
    %c0_i32_0 = arith.constant 0 : i32
    %c0_i32_1 = arith.constant 0 : i32
    return %arg0, %c0_i32, %c0_i32_0 : i32, i32, i32
  }
}

module attributes {stable_mosaic.version = 11 : i64} {
  func.func @_linear_kernel(%arg0: i32, %arg1: memref<2x192xf32, #tpu.memory_space<vmem>>, %arg2: memref<192x2xbf16, #tpu.memory_space<vmem>>, %arg3: memref<1x2xf32, #tpu.memory_space<vmem>>, %arg4: memref<2x2xf32, #tpu.memory_space<vmem>>) attributes {dimension_semantics = [#tpu.dimension_semantics<parallel>], iteration_bounds = array<i64: 1>, scalar_prefetch = 0 : i64, scratch_operands = 0 : i64, tpu.core_type = #tpu.core_type<tc>, window_params = [{transform_indices = @transform_0, window_bounds = array<i64: 2, 192>}, {pipeline_mode = #tpu.pipeline_mode<synchronous>, transform_indices = @transform_1, window_bounds = array<i64: 192, 2>}, {pipeline_mode = #tpu.pipeline_mode<synchronous>, transform_indices = @transform_2, window_bounds = array<i64: 1, 2>}, {transform_indices = @transform_3, window_bounds = array<i64: 2, 2>}]} {
    %c0 = arith.constant 0 : index
    %c0_0 = arith.constant 0 : index
    %0 = vector.load %arg1[%c0, %c0_0] : memref<2x192xf32, #tpu.memory_space<vmem>>, vector<2x192xf32>
    %1 = arith.truncf %0 : vector<2x192xf32> to vector<2x192xbf16>
    %c0_1 = arith.constant 0 : index
    %c0_2 = arith.constant 0 : index
    %2 = vector.load %arg2[%c0_1, %c0_2] : memref<192x2xbf16, #tpu.memory_space<vmem>>, vector<192x2xbf16>
    %cst = arith.constant dense<0.000000e+00> : vector<2x2xf32>
    %3 = tpu.matmul %1, %2, %cst {dimension_numbers = #tpu.dot_dimension_numbers<[1], [0], [0], [1], [0, 0, 1, 1], [], []>} : vector<2x192xbf16>, vector<192x2xbf16>, vector<2x2xf32> -> vector<2x2xf32>
    %c0_3 = arith.constant 0 : index
    %c0_4 = arith.constant 0 : index
    %4 = vector.load %arg3[%c0_3, %c0_4] : memref<1x2xf32, #tpu.memory_space<vmem>>, vector<1x2xf32>
    %5 = vector.broadcast %4 : vector<1x2xf32> to vector<2x2xf32>
    %6 = arith.addf %3, %5 : vector<2x2xf32>
    %c0_5 = arith.constant 0 : index
    %c0_6 = arith.constant 0 : index
    %7 = vector.load %arg4[%c0_5, %c0_6] : memref<2x2xf32, #tpu.memory_space<vmem>>, vector<2x2xf32>
    tpu.vector_store %arg4[%c0_5, %c0_6], %6 {strides = array<i32>} : memref<2x2xf32, #tpu.memory_space<vmem>>, vector<2x2xf32>,
    return
  }
  func.func @transform_0(%arg0: i32) -> (i32, i32) {
    %c0_i32 = arith.constant 0 : i32
    %c0_i32_0 = arith.constant 0 : i32
    return %arg0, %c0_i32 : i32, i32
  }
  func.func @transform_1(%arg0: i32) -> (i32, i32) {
    %c0_i32 = arith.constant 0 : i32
    %c0_i32_0 = arith.constant 0 : i32
    %c0_i32_1 = arith.constant 0 : i32
    return %c0_i32, %c0_i32_0 : i32, i32
  }
  func.func @transform_2(%arg0: i32) -> (i32, i32) {
    %c0_i32 = arith.constant 0 : i32
    %c0_i32_0 = arith.constant 0 : i32
    %c0_i32_1 = arith.constant 0 : i32
    return %c0_i32, %c0_i32_0 : i32, i32
  }
  func.func @transform_3(%arg0: i32) -> (i32, i32) {
    %c0_i32 = arith.constant 0 : i32
    %c0_i32_0 = arith.constant 0 : i32
    return %arg0, %c0_i32 : i32, i32
  }
}

</mosaic_0001>

<bundles_post_ra>
// kernel: conformer_forward.18
= control target key start
LH: loop header
LB: loop body
LE: loop exit
PB: predicated region body
PF: predicated region fallthrough
CT: control target
= control target key end

     0   :  { %vm1047_vm2 = vcmask 523264   ;;  %s1870_s1 = inlined_call_operand.vmem [shape: bf16[1024,192], index: 1, kind: input, shape index: {}]   ;;  %s1871_s0 = inlined_call_operand.vmem [shape: bf16[16,1024], index: 0, kind: input, shape index: {}]   ;;  %s1872_s2 = inlined_call_operand.vmem [shape: f32[1,192], index: 2, kind: input, shape index: {}]   ;;  %s1873_s3 = inlined_call_operand.vmem [shape: f32[16,192], index: 3, kind: output, shape index: {}]  }
   0x1   :  { %v1211_v0 = vld [vmem:[%s1870_s1 + $0x4] ss:$8 sps:$4 sm:$0xff]   ;;  %v1215_v2 = vld [vmem:[%s1870_s1] ss:$8 sps:$4 sm:$0xff]   ;;  %v1217_v4 = vld [vmem:[%s1870_s1 + $0x14] ss:$8 sps:$4 sm:$0xff]  }
   0x2   :  { %v1213_v1 = vld [vmem:[%s1870_s1 + $0x204] ss:$8 sps:$4 sm:$0xff]   ;;  %842 = vmatprep.subr.bf16.mxu1 %v1211_v0  ;;  %v1216_v3 = vld [vmem:[%s1870_s1 + $0x200] ss:$8 sps:$4 sm:$0xff]   ;;  %v1219_v5 = vld [vmem:[%s1870_s1 + $0x214] ss:$8 sps:$4 sm:$0xff]  }
   0x3   :  { %928 = vmatprep.subr.bf16.mxu0 %v1213_v1  ;;  %843 = vmatpush1.bf16.msra.mxu1 %v1215_v2  ;;  %v1221_v6 = vld [vmem:[%s1870_s1 + $0x10] ss:$8 sps:$4 sm:$0xff]   ;;  %v1223_v8 = vld [vmem:[%s1870_s1 + $0x24] ss:$8 sps:$4 sm:$0xff]   ;;  %v1227_v10 = vld [vmem:[%s1870_s1 + $0x20] ss:$8 sps:$4 sm:$0xff]  }
   0x4   :  { %929 = vmatpush1.bf16.msra.mxu0 %v1216_v3  ;;  %844 = vmatprep.subr.bf16.mxu1 %v1217_v4  ;;  %v1222_v7 = vld [vmem:[%s1870_s1 + $0x210] ss:$8 sps:$4 sm:$0xff]   ;;  %v1225_v9 = vld [vmem:[%s1870_s1 + $0x224] ss:$8 sps:$4 sm:$0xff]   ;;  %v1228_v11 = vld [vmem:[%s1870_s1 + $0x220] ss:$8 sps:$4 sm:$0xff]  }
   0x5   :  { %930 = vmatprep.subr.bf16.mxu0 %v1219_v5  ;;  %v1229_v12 = vld [vmem:[%s1870_s1 + $0x34] ss:$8 sps:$4 sm:$0xff]   ;;  %v1233_v14 = vld [vmem:[%s1870_s1 + $0x30] ss:$8 sps:$4 sm:$0xff]   ;;  %v1235_v16 = vld [vmem:[%s1870_s1 + $0x44] ss:$8 sps:$4 sm:$0xff]  }
   0x6   :  { %v1231_v13 = vld [vmem:[%s1870_s1 + $0x234] ss:$8 sps:$4 sm:$0xff]   ;;  %v1234_v15 = vld [vmem:[%s1870_s1 + $0x230] ss:$8 sps:$4 sm:$0xff]   ;;  %v1237_v17 = vld [vmem:[%s1870_s1 + $0x244] ss:$8 sps:$4 sm:$0xff]  }
   0x7   :  { %845 = vmatpush1.bf16.msra.mxu1 %v1221_v6  ;;  %v1239_v18 = vld [vmem:[%s1870_s1 + $0x40] ss:$8 sps:$4 sm:$0xff]   ;;  %v1241_v20 = vld [vmem:[%s1870_s1 + $0x54] ss:$8 sps:$4 sm:$0xff]   ;;  %v1245_v22 = vld [vmem:[%s1870_s1 + $0x50] ss:$8 sps:$4 sm:$0xff]  }
   0x8   :  { %931 = vmatpush1.bf16.msra.mxu0 %v1222_v7  ;;  %846 = vmatprep.subr.bf16.mxu1 %v1223_v8  ;;  %v1240_v19 = vld [vmem:[%s1870_s1 + $0x240] ss:$8 sps:$4 sm:$0xff]   ;;  %v1243_v21 = vld [vmem:[%s1870_s1 + $0x254] ss:$8 sps:$4 sm:$0xff]   ;;  %v1246_v23 = vld [vmem:[%s1870_s1 + $0x250] ss:$8 sps:$4 sm:$0xff]  }
   0x9   :  { %932 = vmatprep.subr.bf16.mxu0 %v1225_v9  ;;  %v1247_v24 = vld [vmem:[%s1870_s1 + $0x64] ss:$8 sps:$4 sm:$0xff]   ;;  %v1251_v26 = vld [vmem:[%s1870_s1 + $0x60] ss:$8 sps:$4 sm:$0xff]   ;;  %v1253_v28 = vld [vmem:[%s1870_s1 + $0x74] ss:$8 sps:$4 sm:$0xff]  }
   0xa   :  { %v1249_v25 = vld [vmem:[%s1870_s1 + $0x264] ss:$8 sps:$4 sm:$0xff]   ;;  %v1252_v27 = vld [vmem:[%s1870_s1 + $0x260] ss:$8 sps:$4 sm:$0xff]   ;;  %v1255_v29 = vld [vmem:[%s1870_s1 + $0x274] ss:$8 sps:$4 sm:$0xff]  }
   0xb   :  { %847 = vmatpush1.bf16.msra.mxu1 %v1227_v10  ;;  %v1257_v30 = vld [vmem:[%s1870_s1 + $0x70] ss:$8 sps:$4 sm:$0xff]   ;;  %v1259_v32 = vld [vmem:[%s1870_s1 + $0x84] ss:$8 sps:$4 sm:$0xff]   ;;  %v1263_v34 = vld [vmem:[%s1870_s1 + $0x80] ss:$8 sps:$4 sm:$0xff]  }
   0xc   :  { %933 = vmatpush1.bf16.msra.mxu0 %v1228_v11  ;;  %848 = vmatprep.subr.bf16.mxu1 %v1229_v12  ;;  %v1258_v31 = vld [vmem:[%s1870_s1 + $0x270] ss:$8 sps:$4 sm:$0xff]   ;;  %v1261_v33 = vld [vmem:[%s1870_s1 + $0x284] ss:$8 sps:$4 sm:$0xff]   ;;  %v1264_v35 = vld [vmem:[%s1870_s1 + $0x280] ss:$8 sps:$4 sm:$0xff]  }
   0xd   :  { %934 = vmatprep.subr.bf16.mxu0 %v1231_v13  ;;  %v1265_v36 = vld [vmem:[%s1870_s1 + $0x94] ss:$8 sps:$4 sm:$0xff]   ;;  %v1269_v38 = vld [vmem:[%s1870_s1 + $0x90] ss:$8 sps:$4 sm:$0xff]   ;;  %v1271_v40 = vld [vmem:[%s1870_s1 + $0xa4] ss:$8 sps:$4 sm:$0xff]  }
   0xe   :  { %v1267_v37 = vld [vmem:[%s1870_s1 + $0x294] ss:$8 sps:$4 sm:$0xff]   ;;  %v1270_v39 = vld [vmem:[%s1870_s1 + $0x290] ss:$8 sps:$4 sm:$0xff]   ;;  %v1273_v41 = vld [vmem:[%s1870_s1 + $0x2a4] ss:$8 sps:$4 sm:$0xff]  }
   0xf   :  { %849 = vmatpush1.bf16.msra.mxu1 %v1233_v14  ;;  %v1275_v42 = vld [vmem:[%s1870_s1 + $0xa0] ss:$8 sps:$4 sm:$0xff]   ;;  %v1277_v44 = vld [vmem:[%s1870_s1 + $0xb4] ss:$8 sps:$4 sm:$0xff]   ;;  %v1281_v46 = vld [vmem:[%s1870_s1 + $0xb0] ss:$8 sps:$4 sm:$0xff]  }
  0x10   :  { %935 = vmatpush1.bf16.msra.mxu0 %v1234_v15  ;;  %850 = vmatprep.subr.bf16.mxu1 %v1235_v16  ;;  %v1276_v43 = vld [vmem:[%s1870_s1 + $0x2a0] ss:$8 sps:$4 sm:$0xff]   ;;  %v1279_v45 = vld [vmem:[%s1870_s1 + $0x2b4] ss:$8 sps:$4 sm:$0xff]   ;;  %v1282_v47 = vld [vmem:[%s1870_s1 + $0x2b0] ss:$8 sps:$4 sm:$0xff]  }
  0x11   :  { %936 = vmatprep.subr.bf16.mxu0 %v1237_v17  ;;  %v14_v48 = vld [vmem:[%s1871_s0] sm:$0xff]  ;;  %v16_v53 = vld [vmem:[%s1871_s0 + $0x10] sm:$0xff] }
  0x12   :  { %v18_v49 = vld [vmem:[%s1871_s0 + $0x20] sm:$0xff]  ;;  %v20_v54 = vld [vmem:[%s1871_s0 + $0x30] sm:$0xff] }
  0x13   :  { %851 = vmatpush1.bf16.msra.mxu1 %v1239_v18  ;;  %v1283_v50 = vld [vmem:[%s1870_s1 + $0xc4] ss:$8 sps:$4 sm:$0xff]   ;;  %v1056_v52 = vcombine.high %v14_v48, %v18_v49  ;;  %v1060_v55 = vcombine.high %v16_v53, %v20_v54  ;;  %v1287_v56 = vld [vmem:[%s1870_s1 + $0xc0] ss:$8 sps:$4 sm:$0xff]   ;;  %v1289_v58 = vld [vmem:[%s1870_s1 + $0xd4] ss:$8 sps:$4 sm:$0xff]   ;;  %v1055_v8 = vcombine.low %v14_v48, %v18_v49  ;;  %v1059_v10 = vcombine.low %v16_v53, %v20_v54 }
  0x14   :  { %937 = vmatpush1.bf16.msra.mxu0 %v1240_v19  ;;  %852 = vmatprep.subr.bf16.mxu1 %v1241_v20  ;;  %v1285_v51 = vld [vmem:[%s1870_s1 + $0x2c4] ss:$8 sps:$4 sm:$0xff]   ;;  %v1288_v57 = vld [vmem:[%s1870_s1 + $0x2c0] ss:$8 sps:$4 sm:$0xff]   ;;  %v1291_v59 = vld [vmem:[%s1870_s1 + $0x2d4] ss:$8 sps:$4 sm:$0xff]  }
  0x15   :  { %938 = vmatprep.subr.bf16.mxu0 %v1243_v21  ;;  %874 = vmatprep.mubr.bf16.mxu1 %v1056_v52  ;;  %v1293_v60 = vld [vmem:[%s1870_s1 + $0xd0] ss:$8 sps:$4 sm:$0xff]   ;;  %v1295_v62 = vld [vmem:[%s1870_s1 + $0xe4] ss:$8 sps:$4 sm:$0xff]   ;;  %v1299_v0 = vld [vmem:[%s1870_s1 + $0xe0] ss:$8 sps:$4 sm:$0xff]  }
  0x16   :  { %960 = vmatprep.mubr.bf16.mxu0 %v1060_v55  ;;  %v1294_v61 = vld [vmem:[%s1870_s1 + $0x2d0] ss:$8 sps:$4 sm:$0xff]   ;;  %v1297_v63 = vld [vmem:[%s1870_s1 + $0x2e4] ss:$8 sps:$4 sm:$0xff]   ;;  %v1300_v1 = vld [vmem:[%s1870_s1 + $0x2e0] ss:$8 sps:$4 sm:$0xff]  }
  0x17   :  { %853 = vmatpush1.bf16.msra.mxu1 %v1245_v22  ;;  %v1301_v2 = vld [vmem:[%s1870_s1 + $0xf4] ss:$8 sps:$4 sm:$0xff]   ;;  %v1305_v4 = vld [vmem:[%s1870_s1 + $0xf0] ss:$8 sps:$4 sm:$0xff]   ;;  %v1309_v6 = vld [vmem:[%s1870_s1 + $0x104] ss:$8 sps:$4 sm:$0xff]  }
  0x18   :  { %939 = vmatpush1.bf16.msra.mxu0 %v1246_v23  ;;  %854 = vmatprep.subr.bf16.mxu1 %v1247_v24  ;;  %v1303_v3 = vld [vmem:[%s1870_s1 + $0x2f4] ss:$8 sps:$4 sm:$0xff]   ;;  %v1306_v5 = vld [vmem:[%s1870_s1 + $0x2f0] ss:$8 sps:$4 sm:$0xff]   ;;  %v1312_v7 = vld [vmem:[%s1870_s1 + $0x304] ss:$8 sps:$4 sm:$0xff]  }
  0x19   :  { %940 = vmatprep.subr.bf16.mxu0 %v1249_v25  ;;  %v1307_v9 = vld [vmem:[%s1870_s1 + $0x100] ss:$8 sps:$4 sm:$0xff]   ;;  %v1315_v12 = vld [vmem:[%s1870_s1 + $0x114] ss:$8 sps:$4 sm:$0xff]   ;;  %v1313_v14 = vld [vmem:[%s1870_s1 + $0x110] ss:$8 sps:$4 sm:$0xff]  }
  0x1a   :  { %v1310_v11 = vld [vmem:[%s1870_s1 + $0x300] ss:$8 sps:$4 sm:$0xff]   ;;  %v1318_v13 = vld [vmem:[%s1870_s1 + $0x314] ss:$8 sps:$4 sm:$0xff]   ;;  %v1316_v15 = vld [vmem:[%s1870_s1 + $0x310] ss:$8 sps:$4 sm:$0xff]  }
  0x1b   :  { %855 = vmatpush1.bf16.msra.mxu1 %v1251_v26  ;;  %v1321_v16 = vld [vmem:[%s1870_s1 + $0x124] ss:$8 sps:$4 sm:$0xff]   ;;  %v1319_v18 = vld [vmem:[%s1870_s1 + $0x120] ss:$8 sps:$4 sm:$0xff]   ;;  %v1327_v20 = vld [vmem:[%s1870_s1 + $0x134] ss:$8 sps:$4 sm:$0xff]  }
  0x1c   :  { %941 = vmatpush1.bf16.msra.mxu0 %v1252_v27  ;;  %856 = vmatprep.subr.bf16.mxu1 %v1253_v28  ;;  %v1324_v17 = vld [vmem:[%s1870_s1 + $0x324] ss:$8 sps:$4 sm:$0xff]   ;;  %v1322_v19 = vld [vmem:[%s1870_s1 + $0x320] ss:$8 sps:$4 sm:$0xff]   ;;  %v1330_v21 = vld [vmem:[%s1870_s1 + $0x334] ss:$8 sps:$4 sm:$0xff]  }
  0x1d   :  { %942 = vmatprep.subr.bf16.mxu0 %v1255_v29  ;;  %v1325_v22 = vld [vmem:[%s1870_s1 + $0x130] ss:$8 sps:$4 sm:$0xff]   ;;  %v1333_v24 = vld [vmem:[%s1870_s1 + $0x144] ss:$8 sps:$4 sm:$0xff]   ;;  %v1331_v26 = vld [vmem:[%s1870_s1 + $0x140] ss:$8 sps:$4 sm:$0xff]  }
  0x1e   :  { %v1328_v23 = vld [vmem:[%s1870_s1 + $0x330] ss:$8 sps:$4 sm:$0xff]   ;;  %v1336_v25 = vld [vmem:[%s1870_s1 + $0x344] ss:$8 sps:$4 sm:$0xff]   ;;  %v1334_v27 = vld [vmem:[%s1870_s1 + $0x340] ss:$8 sps:$4 sm:$0xff]  }
  0x1f   :  { %857 = vmatpush1.bf16.msra.mxu1 %v1257_v30  ;;  %v1339_v28 = vld [vmem:[%s1870_s1 + $0x154] ss:$8 sps:$4 sm:$0xff]   ;;  %v1337_v30 = vld [vmem:[%s1870_s1 + $0x150] ss:$8 sps:$4 sm:$0xff]   ;;  %v1355_v48 = vld [vmem:[%s1870_s1 + $0x180] ss:$8 sps:$4 sm:$0xff]  }
  0x20   :  { %943 = vmatpush1.bf16.msra.mxu0 %v1258_v31  ;;  %858 = vmatprep.subr.bf16.mxu1 %v1259_v32  ;;  %v1342_v29 = vld [vmem:[%s1870_s1 + $0x354] ss:$8 sps:$4 sm:$0xff]   ;;  %v1340_v31 = vld [vmem:[%s1870_s1 + $0x350] ss:$8 sps:$4 sm:$0xff]   ;;  %v1345_v32 = vld [vmem:[%s1870_s1 + $0x164] ss:$8 sps:$4 sm:$0xff]  }
  0x21   :  { %944 = vmatprep.subr.bf16.mxu0 %v1261_v33  ;;  %v1348_v33 = vld [vmem:[%s1870_s1 + $0x364] ss:$8 sps:$4 sm:$0xff]   ;;  %v1358_v49 = vld [vmem:[%s1870_s1 + $0x380] ss:$8 sps:$4 sm:$0xff]   ;;  %v1361_v52 = vld [vmem:[%s1870_s1 + $0x190] ss:$8 sps:$4 sm:$0xff]  }
  0x22   :  { %v1364_v53 = vld [vmem:[%s1870_s1 + $0x390] ss:$8 sps:$4 sm:$0xff]   ;;  %v1369_v54 = vld [vmem:[%s1870_s1 + $0x1a4] ss:$8 sps:$4 sm:$0xff]  }
  0x23   :  { %859 = vmatpush1.bf16.msra.mxu1 %v1263_v34  ;;  %v1716_v34 = vld [vmem:[%s1871_s0 + $0x8] sm:$0xff] }
  0x24   :  { %945 = vmatpush1.bf16.msra.mxu0 %v1264_v35  ;;  %860 = vmatprep.subr.bf16.mxu1 %v1265_v36  ;;  %v1721_v35 = vld [vmem:[%s1871_s0 + $0x28] sm:$0xff]  ;;  %v1726_v36 = vld [vmem:[%s1871_s0 + $0x18] sm:$0xff] }
  0x25   :  { %946 = vmatprep.subr.bf16.mxu0 %v1267_v37  ;;  %v1731_v37 = vld [vmem:[%s1871_s0 + $0x38] sm:$0xff]  ;;  %v1372_v55 = vld [vmem:[%s1870_s1 + $0x3a4] ss:$8 sps:$4 sm:$0xff]  }
  0x27   :  { %861 = vmatpush1.bf16.msra.mxu1 %v1269_v38  ;;  %v1343_v38 = vld [vmem:[%s1870_s1 + $0x160] ss:$8 sps:$4 sm:$0xff]  }
  0x28   :  { %947 = vmatpush1.bf16.msra.mxu0 %v1270_v39  ;;  %862 = vmatprep.subr.bf16.mxu1 %v1271_v40  ;;  %v1346_v39 = vld [vmem:[%s1870_s1 + $0x360] ss:$8 sps:$4 sm:$0xff]   ;;  %v1058_v40 = vcombine.high %v1716_v34, %v1721_v35 }
  0x29   :  { %948 = vmatprep.subr.bf16.mxu0 %v1273_v41  ;;  %v1351_v41 = vld [vmem:[%s1870_s1 + $0x174] ss:$8 sps:$4 sm:$0xff]  }
  0x2b   :  { %863 = vmatpush1.bf16.msra.mxu1 %v1275_v42  ;;  %v1354_v42 = vld [vmem:[%s1870_s1 + $0x374] ss:$8 sps:$4 sm:$0xff]  }
  0x2c   :  { %949 = vmatpush1.bf16.msra.mxu0 %v1276_v43  ;;  %864 = vmatprep.subr.bf16.mxu1 %v1277_v44  ;;  %v1062_v43 = vcombine.high %v1726_v36, %v1731_v37  ;;  %v1349_v44 = vld [vmem:[%s1870_s1 + $0x170] ss:$8 sps:$4 sm:$0xff]  }
  0x2d   :  { %950 = vmatprep.subr.bf16.mxu0 %v1279_v45  ;;  %v1352_v45 = vld [vmem:[%s1870_s1 + $0x370] ss:$8 sps:$4 sm:$0xff]  }
  0x2f   :  { %865 = vmatpush1.bf16.msra.mxu1 %v1281_v46  ;;  %v1357_v46 = vld [vmem:[%s1870_s1 + $0x184] ss:$8 sps:$4 sm:$0xff]  }
  0x30   :  { %951 = vmatpush1.bf16.msra.mxu0 %v1282_v47  ;;  %866 = vmatprep.subr.bf16.mxu1 %v1283_v50  ;;  %v1360_v47 = vld [vmem:[%s1870_s1 + $0x384] ss:$8 sps:$4 sm:$0xff]   ;;  %v1363_v50 = vld [vmem:[%s1870_s1 + $0x194] ss:$8 sps:$4 sm:$0xff]  }
  0x31   :  { %952 = vmatprep.subr.bf16.mxu0 %v1285_v51  ;;  %v1366_v51 = vld [vmem:[%s1870_s1 + $0x394] ss:$8 sps:$4 sm:$0xff]  }
  0x33   :  { %867 = vmatpush1.bf16.msra.mxu1 %v1287_v56  ;;  %v1367_v56 = vld [vmem:[%s1870_s1 + $0x1a0] ss:$8 sps:$4 sm:$0xff]  }
  0x34   :  { %953 = vmatpush1.bf16.msra.mxu0 %v1288_v57  ;;  %868 = vmatprep.subr.bf16.mxu1 %v1289_v58  ;;  %v1370_v57 = vld [vmem:[%s1870_s1 + $0x3a0] ss:$8 sps:$4 sm:$0xff]   ;;  %v1375_v58 = vld [vmem:[%s1870_s1 + $0x1b4] ss:$8 sps:$4 sm:$0xff]  }
  0x35   :  { %954 = vmatprep.subr.bf16.mxu0 %v1291_v59  ;;  %v1378_v59 = vld [vmem:[%s1870_s1 + $0x3b4] ss:$8 sps:$4 sm:$0xff]  }
  0x37   :  { %869 = vmatpush1.bf16.msra.mxu1 %v1293_v60  ;;  %v1373_v60 = vld [vmem:[%s1870_s1 + $0x1b0] ss:$8 sps:$4 sm:$0xff]  }
  0x38   :  { %955 = vmatpush1.bf16.msra.mxu0 %v1294_v61  ;;  %870 = vmatprep.subr.bf16.mxu1 %v1295_v62  ;;  %v1376_v61 = vld [vmem:[%s1870_s1 + $0x3b0] ss:$8 sps:$4 sm:$0xff]   ;;  %v1381_v62 = vld [vmem:[%s1870_s1 + $0x1c4] ss:$8 sps:$4 sm:$0xff]  }
  0x39   :  { %956 = vmatprep.subr.bf16.mxu0 %v1297_v63  ;;  %v1384_v63 = vld [vmem:[%s1870_s1 + $0x3c4] ss:$8 sps:$4 sm:$0xff]  }
  0x3b   :  { %871 = vmatpush1.bf16.msra.mxu1 %v1299_v0  ;;  %v1379_v0 = vld [vmem:[%s1870_s1 + $0x1c0] ss:$8 sps:$4 sm:$0xff]  }
  0x3c   :  { %957 = vmatpush1.bf16.msra.mxu0 %v1300_v1  ;;  %872 = vmatprep.subr.bf16.mxu1 %v1301_v2  ;;  %v1382_v1 = vld [vmem:[%s1870_s1 + $0x3c0] ss:$8 sps:$4 sm:$0xff]   ;;  %v1387_v2 = vld [vmem:[%s1870_s1 + $0x1d4] ss:$8 sps:$4 sm:$0xff]  }
  0x3d   :  { %958 = vmatprep.subr.bf16.mxu0 %v1303_v3  ;;  %v1390_v3 = vld [vmem:[%s1870_s1 + $0x3d4] ss:$8 sps:$4 sm:$0xff]  }
  0x3f   :  { %873 = vmatpush1.bf16.msra.mxu1 %v1305_v4  ;;  %v1385_v4 = vld [vmem:[%s1870_s1 + $0x1d0] ss:$8 sps:$4 sm:$0xff]  }
  0x40   :  { %959 = vmatpush1.bf16.msra.mxu0 %v1306_v5  ;;  %885 = vmatprep.subr.bf16.mxu1 %v1309_v6  ;;  %v1388_v5 = vld [vmem:[%s1870_s1 + $0x3d0] ss:$8 sps:$4 sm:$0xff]   ;;  %v1393_v6 = vld [vmem:[%s1870_s1 + $0x1e4] ss:$8 sps:$4 sm:$0xff]  }
  0x41   :  { %971 = vmatprep.subr.bf16.mxu0 %v1312_v7  ;;  %v1396_v7 = vld [vmem:[%s1870_s1 + $0x3e4] ss:$8 sps:$4 sm:$0xff]  }
  0x42   :  { %875 = vmatmul.mubr.bf16.vlgmr.msra.gmra.mrb[0].mxu1 %v1055_v8  ;;  %v1391_v8 = vld [vmem:[%s1870_s1 + $0x1e0] ss:$8 sps:$4 sm:$0xff]  }
  0x43   :  { %961 = vmatmul.mubr.bf16.vlgmr.msra.gmra.mrb[0].mxu0 %v1059_v10  ;;  %886 = vmatpush1.bf16.msra.mxu1 %v1307_v9  ;;  %v1394_v9 = vld [vmem:[%s1870_s1 + $0x3e0] ss:$8 sps:$4 sm:$0xff]   ;;  %v1399_v10 = vld [vmem:[%s1870_s1 + $0x1f4] ss:$8 sps:$4 sm:$0xff]  }
  0x44   :  { %972 = vmatpush1.bf16.msra.mxu0 %v1310_v11  ;;  %887 = vmatprep.subr.bf16.mxu1 %v1315_v12  ;;  %v1402_v11 = vld [vmem:[%s1870_s1 + $0x3f4] ss:$8 sps:$4 sm:$0xff]   ;;  %v1397_v12 = vld [vmem:[%s1870_s1 + $0x1f0] ss:$8 sps:$4 sm:$0xff]  }
  0x45   :  { %973 = vmatprep.subr.bf16.mxu0 %v1318_v13  ;;  %917 = vmatprep.mubr.bf16.mxu1 %v1058_v40  ;;  %v1400_v13 = vld [vmem:[%s1870_s1 + $0x3f0] ss:$8 sps:$4 sm:$0xff]  }
  0x46   :  { %1003 = vmatprep.mubr.bf16.mxu0 %v1062_v43 }
  0x47   :  { %888 = vmatpush1.bf16.msra.mxu1 %v1313_v14  ;;  %v1057_v14 = vcombine.low %v1716_v34, %v1721_v35 }
  0x48   :  { %974 = vmatpush1.bf16.msra.mxu0 %v1316_v15  ;;  %889 = vmatprep.subr.bf16.mxu1 %v1321_v16  ;;  %v1061_v15 = vcombine.low %v1726_v36, %v1731_v37  ;;  %v152_v16 = vlaneseq }
  0x49   :  { %975 = vmatprep.subr.bf16.mxu0 %v1324_v17 }
  0x4a   :  { %v153_v17 = vshrl.u32 %v152_v16, 7 }
  0x4b   :  { %890 = vmatpush1.bf16.msra.mxu1 %v1319_v18 }
  0x4c   :  { %976 = vmatpush1.bf16.msra.mxu0 %v1322_v19  ;;  %891 = vmatprep.subr.bf16.mxu1 %v1327_v20  ;;  %v154_v18 = vsub.s32 0, %v153_v17  ;;  %v150_v19 = vld [vmem:[%s1872_s2] sm:$0x3]  ;;  %v158_v20 = vsub.s32 1, %v153_v17 }
  0x4d   :  { %977 = vmatprep.subr.bf16.mxu0 %v1330_v21 }
  0x4e   :  { %v155_v21 = vrot.slane %v150_v19, %v154_v18 }
  0x4f   :  { %892 = vmatpush1.bf16.msra.mxu1 %v1325_v22  ;;  %v159_v22 = vrot.slane %v150_v19, %v158_v20 }
  0x50   :  { %978 = vmatpush1.bf16.msra.mxu0 %v1328_v23  ;;  %893 = vmatprep.subr.bf16.mxu1 %v1333_v24 }
  0x51   :  { %979 = vmatprep.subr.bf16.mxu0 %v1336_v25 }
  0x53   :  { %894 = vmatpush1.bf16.msra.mxu1 %v1331_v26 }
  0x54   :  { %980 = vmatpush1.bf16.msra.mxu0 %v1334_v27  ;;  %895 = vmatprep.subr.bf16.mxu1 %v1339_v28 }
  0x55   :  { %981 = vmatprep.subr.bf16.mxu0 %v1342_v29 }
  0x57   :  { %896 = vmatpush1.bf16.msra.mxu1 %v1337_v30 }
  0x58   :  { %982 = vmatpush1.bf16.msra.mxu0 %v1340_v31  ;;  %897 = vmatprep.subr.bf16.mxu1 %v1345_v32 }
  0x59   :  { %983 = vmatprep.subr.bf16.mxu0 %v1348_v33 }
  0x5b   :  { %898 = vmatpush1.bf16.msra.mxu1 %v1343_v38 }
  0x5c   :  { %984 = vmatpush1.bf16.msra.mxu0 %v1346_v39  ;;  %899 = vmatprep.subr.bf16.mxu1 %v1351_v41 }
  0x5d   :  { %985 = vmatprep.subr.bf16.mxu0 %v1354_v42 }
  0x5f   :  { %900 = vmatpush1.bf16.msra.mxu1 %v1349_v44 }
  0x60   :  { %986 = vmatpush1.bf16.msra.mxu0 %v1352_v45  ;;  %901 = vmatprep.subr.bf16.mxu1 %v1357_v46 }
  0x61   :  { %987 = vmatprep.subr.bf16.mxu0 %v1360_v47 }
  0x63   :  { %902 = vmatpush1.bf16.msra.mxu1 %v1355_v48 }
  0x64   :  { %988 = vmatpush1.bf16.msra.mxu0 %v1358_v49  ;;  %903 = vmatprep.subr.bf16.mxu1 %v1363_v50 }
  0x65   :  { %989 = vmatprep.subr.bf16.mxu0 %v1366_v51 }
  0x67   :  { %904 = vmatpush1.bf16.msra.mxu1 %v1361_v52 }
  0x68   :  { %990 = vmatpush1.bf16.msra.mxu0 %v1364_v53  ;;  %905 = vmatprep.subr.bf16.mxu1 %v1369_v54 }
  0x69   :  { %991 = vmatprep.subr.bf16.mxu0 %v1372_v55 }
  0x6b   :  { %906 = vmatpush1.bf16.msra.mxu1 %v1367_v56 }
  0x6c   :  { %992 = vmatpush1.bf16.msra.mxu0 %v1370_v57  ;;  %907 = vmatprep.subr.bf16.mxu1 %v1375_v58 }
  0x6d   :  { %993 = vmatprep.subr.bf16.mxu0 %v1378_v59 }
  0x6f   :  { %908 = vmatpush1.bf16.msra.mxu1 %v1373_v60 }
  0x70   :  { %994 = vmatpush1.bf16.msra.mxu0 %v1376_v61  ;;  %909 = vmatprep.subr.bf16.mxu1 %v1381_v62 }
  0x71   :  { %995 = vmatprep.subr.bf16.mxu0 %v1384_v63 }
  0x73   :  { %910 = vmatpush1.bf16.msra.mxu1 %v1379_v0 }
  0x74   :  { %996 = vmatpush1.bf16.msra.mxu0 %v1382_v1  ;;  %911 = vmatprep.subr.bf16.mxu1 %v1387_v2 }
  0x75   :  { %997 = vmatprep.subr.bf16.mxu0 %v1390_v3 }
  0x77   :  { %912 = vmatpush1.bf16.msra.mxu1 %v1385_v4 }
  0x78   :  { %998 = vmatpush1.bf16.msra.mxu0 %v1388_v5  ;;  %913 = vmatprep.subr.bf16.mxu1 %v1393_v6 }
  0x79   :  { %999 = vmatprep.subr.bf16.mxu0 %v1396_v7 }
  0x7b   :  { %914 = vmatpush1.bf16.msra.mxu1 %v1391_v8 }
  0x7c   :  { %1000 = vmatpush1.bf16.msra.mxu0 %v1394_v9  ;;  %915 = vmatprep.subr.bf16.mxu1 %v1399_v10 }
  0x7d   :  { %1001 = vmatprep.subr.bf16.mxu0 %v1402_v11 }
  0x7f   :  { %916 = vmatpush1.bf16.msra.mxu1 %v1397_v12 }
  0x80   :  { %1002 = vmatpush1.bf16.msra.mxu0 %v1400_v13 }
  0x82   :  { %918 = vmatmul.mubr.bf16.vlgmr.msra.gmra.mrb[0].mxu1 %v1057_v14 }
  0x83   :  { %1004 = vmatmul.mubr.bf16.vlgmr.msra.gmra.mrb[0].mxu0 %v1061_v15 }
 0x155   :  { %v919_v23 = vpop.f32.mrb[0].mxu1 }
 0x156   :  { %v1005_v24 = vpop.f32.mrb[0].mxu0  ;;  %v1195_v25 = vadd.f32 %v919_v23, %v155_v21  ;;  %v921_v26 = vpop.f32.mrb[1].mxu1 }
 0x157   :  { %v1007_v27 = vpop.f32.mrb[1].mxu0  ;;  %v1197_v28 = vadd.f32 %v921_v26, %v159_v22  ;;  %v923_v29 = vpop.f32.mrb[2].mxu1 }
 0x158   :  { %v1009_v30 = vpop.f32.mrb[2].mxu0  ;;  %v1196_v31 = vadd.f32 %v1195_v25, %v1005_v24  ;;  %v1199_v32 = vadd.f32 %v923_v29, %v155_v21  ;;  %v925_v33 = vpop.f32.mrb[3].mxu1 }
 0x159   :  { %v1011_v34 = vpop.f32.mrb[3].mxu0  ;;  %v1198_v35 = vadd.f32 %v1197_v28, %v1007_v27  ;;  %v1201_v36 = vadd.f32 %v925_v33, %v159_v22 }
 0x15a   :  { %v1014_v37 = vmin.f32 %v1196_v31, 0.0  ;;  %v1200_v38 = vadd.f32 %v1199_v32, %v1009_v30  ;;  %vm1034_vm0 = vcmp.gt.f32.partialorder %v1196_v31, 0.0 }
 0x15b   :  { %v1015_v39 = vmin.f32 %v1198_v35, 0.0  ;;  %v1202_v40 = vadd.f32 %v1201_v36, %v1011_v34  ;;  %vm1035_vm1 = vcmp.gt.f32.partialorder %v1198_v35, 0.0 }
 0x15c   :  { %v1018_v41 = vmul.f32 1.442695, %v1014_v37  ;;  %v1016_v42 = vmin.f32 %v1200_v38, 0.0  ;;  %vm1036_vm3 = vcmp.gt.f32.partialorder %v1200_v38, 0.0 }
 0x15d   :  { %v1020_v43 = vmul.f32 1.442695, %v1015_v39  ;;  %v1017_v44 = vmin.f32 %v1202_v40, 0.0  ;;  %vm1037_vm4 = vcmp.gt.f32.partialorder %v1202_v40, 0.0 }
 0x15e   :  { %1403 = vpow2.f32 %v1018_v41  ;;  %v1022_v45 = vmul.f32 1.442695, %v1016_v42 }
 0x15f   :  { %1405 = vpow2.f32 %v1020_v43  ;;  %v1024_v46 = vmul.f32 1.442695, %v1017_v44 }
 0x160   :  { %1407 = vpow2.f32 %v1022_v45 }
 0x161   :  { %1409 = vpow2.f32 %v1024_v46 }
 0x168   :  { %v1404_v47 = vpop.eup %1403 }
 0x169   :  { %v1406_v48 = vpop.eup %1405  ;;  %v1191_v49 = vadd.f32 -1.0, %v1404_v47 }
 0x16a   :  { %v1408_v50 = vpop.eup %1407  ;;  %v1192_v51 = vadd.f32 -1.0, %v1406_v48 }
 0x16b   :  { %v1410_v52 = vpop.eup %1409  ;;  %v1030_v53 = vmul.f32 1.6732632, %v1191_v49  ;;  %v1193_v54 = vadd.f32 -1.0, %v1408_v50 }
 0x16c   :  { %v1031_v55 = vmul.f32 1.6732632, %v1192_v51  ;;  %v1194_v56 = vadd.f32 -1.0, %v1410_v52 }
 0x16d   :  { %v1038_v57 = vsel %vm1034_vm0, %v1196_v31, %v1030_v53  ;;  %v1032_v58 = vmul.f32 1.6732632, %v1193_v54 }
 0x16e   :  { %v1042_v59 = vmul.f32 1.050701, %v1038_v57  ;;  %v1039_v60 = vsel %vm1035_vm1, %v1198_v35, %v1031_v55  ;;  %v1033_v61 = vmul.f32 1.6732632, %v1194_v56 }
 0x16f   :  { %v1043_v62 = vmul.f32 1.050701, %v1039_v60  ;;  %v1040_v63 = vsel %vm1036_vm3, %v1200_v38, %v1032_v58 }
 0x170   :  { %1046 = vst [vmem:[%s1873_s3] sm:$0xff] %v1042_v59  ;;  %v1044_v0 = vmul.f32 1.050701, %v1040_v63  ;;  %v1041_v1 = vsel %vm1037_vm4, %v1202_v40, %v1033_v61 }
 0x171   :  { %1048 = vst.msk [vmem:[%s1873_s3 + $0x8] sm:$0xff] %vm1047_vm2, %v1043_v62  ;;  %v1045_v2 = vmul.f32 1.050701, %v1041_v1 }
 0x172   :  { %1049 = vst [vmem:[%s1873_s3 + $0x10] sm:$0xff] %v1044_v0 }
 0x173   :  { %1050 = vst.msk [vmem:[%s1873_s3 + $0x18] sm:$0xff] %vm1047_vm2, %v1045_v2 }

// kernel: conformer_forward.19
= control target key start
LH: loop header
LB: loop body
LE: loop exit
PB: predicated region body
PF: predicated region fallthrough
CT: control target
= control target key end

     0   :  { %vm35_vm0 = vcmask 523264   ;;  %vm44_vm1 = vcmask 1041408   ;;  %vm46_vm2 = vcmask 517120   ;;  %s3101_s0 = inlined_call_operand.vmem [shape: f32[18,192], index: 0, kind: input, shape index: {}]   ;;  %s3102_s3 = inlined_call_operand.vmem [shape: bf16[192,768], index: 3, kind: input, shape index: {}]   ;;  %s3103_s5 = inlined_call_operand.vmem [shape: bf16[768,192], index: 5, kind: input, shape index: {}]   ;;  %s3104_s1 = inlined_call_operand.vmem [shape: f32[1,192], index: 1, kind: input, shape index: {}]   ;;  %s3105_s2 = inlined_call_operand.vmem [shape: f32[1,192], index: 2, kind: input, shape index: {}]   ;;  %s3106_s4 = inlined_call_operand.vmem [shape: f32[1,768], index: 4, kind: input, shape index: {}]   ;;  %s3107_s6 = inlined_call_operand.vmem [shape: f32[1,192], index: 6, kind: input, shape index: {}]   ;;  %s3108_s7 = inlined_call_operand.vmem [shape: f32[18,192], index: 7, kind: output, shape index: {}]  }
   0x1   :  { %v2302_v0 = vld [vmem:[%s3101_s0] sm:$0xff]  ;;  %v2307_v1 = vld [vmem:[%s3101_s0 + $0x8] sm:$0xff]  ;;  %v2324_v6 = vld [vmem:[%s3101_s0 + $0x10] sm:$0xff] }
   0x2   :  { %v2312_v2 = vld [vmem:[%s3101_s0 + $0x20] sm:$0x3]  ;;  %v36_v3 = vsel %vm35_vm0, %v2307_v1, 0.0  ;;  %v32_v4 = vld [vmem:[%s3101_s0 + $0x28] sm:$0x3]  ;;  %v2329_v7 = vld [vmem:[%s3101_s0 + $0x18] sm:$0xff] }
   0x3   :  { %v45_v5 = vsel %vm44_vm1, %v2312_v2, 0.0  ;;  %v37_v8 = vadd.f32 %v36_v3, %v2302_v0  ;;  %v47_v9 = vsel %vm46_vm2, %v32_v4, 0.0  ;;  %v40_v10 = vsel %vm35_vm0, %v2329_v7, 0.0  ;;  %v1923_v13 = vld [vmem:[%s3102_s3 + $0x4] ss:$24 sps:$4 sm:$0xff]  }
   0x4   :  { %v48_v11 = vadd.f32 %v47_v9, %v45_v5  ;;  %v41_v12 = vadd.f32 %v40_v10, %v2324_v6  ;;  %v1925_v14 = vld [vmem:[%s3102_s3] ss:$24 sps:$4 sm:$0xff]   ;;  %603 = vmatprep.subr.bf16.mxu0 %v1923_v13  ;;  %v1926_v15 = vld [vmem:[%s3102_s3 + $0xc] ss:$24 sps:$4 sm:$0xff]   ;;  %v1931_v18 = vld [vmem:[%s3102_s3 + $0x30] ss:$24 sps:$4 sm:$0xff]  }
   0x5   :  { %38 = vadd.xlane.f32.xlu0 %v37_v8  ;;  %v1928_v16 = vld [vmem:[%s3102_s3 + $0x8] ss:$24 sps:$4 sm:$0xff]   ;;  %604 = vmatpush1.bf16.msra.mxu0 %v1925_v14  ;;  %v1929_v17 = vld [vmem:[%s3102_s3 + $0x34] ss:$24 sps:$4 sm:$0xff]   ;;  %v1934_v20 = vld [vmem:[%s3102_s3 + $0x38] ss:$24 sps:$4 sm:$0xff]  }
   0x6   :  { %49 = vadd.xlane.f32.xlu1 %v48_v11  ;;  %654 = vmatprep.subr.bf16.mxu1 %v1926_v15  ;;  %v1932_v19 = vld [vmem:[%s3102_s3 + $0x3c] ss:$24 sps:$4 sm:$0xff]   ;;  %v1937_v22 = vld [vmem:[%s3102_s3 + $0x60] ss:$24 sps:$4 sm:$0xff]   ;;  %v1938_v23 = vld [vmem:[%s3102_s3 + $0x6c] ss:$24 sps:$4 sm:$0xff]  }
   0x7   :  { %655 = vmatpush1.bf16.msra.mxu1 %v1928_v16  ;;  %605 = vmatprep.subr.bf16.mxu0 %v1929_v17  ;;  %v1935_v21 = vld [vmem:[%s3102_s3 + $0x64] ss:$24 sps:$4 sm:$0xff]   ;;  %v1941_v24 = vld [vmem:[%s3102_s3 + $0x94] ss:$24 sps:$4 sm:$0xff]   ;;  %v1940_v25 = vld [vmem:[%s3102_s3 + $0x68] ss:$24 sps:$4 sm:$0xff]  }
   0x8   :  { %656 = vmatprep.subr.bf16.mxu1 %v1932_v19  ;;  %v1944_v26 = vld [vmem:[%s3102_s3 + $0x9c] ss:$24 sps:$4 sm:$0xff]   ;;  %v1943_v27 = vld [vmem:[%s3102_s3 + $0x90] ss:$24 sps:$4 sm:$0xff]   ;;  %v1949_v30 = vld [vmem:[%s3102_s3 + $0xc0] ss:$24 sps:$4 sm:$0xff]  }
   0x9   :  { %42 = vadd.xlane.f32.xlu0 %v41_v12  ;;  %606 = vmatpush1.bf16.msra.mxu0 %v1931_v18  ;;  %v1946_v28 = vld [vmem:[%s3102_s3 + $0x98] ss:$24 sps:$4 sm:$0xff]   ;;  %v1947_v29 = vld [vmem:[%s3102_s3 + $0xc4] ss:$24 sps:$4 sm:$0xff]   ;;  %v1953_v32 = vld [vmem:[%s3102_s3 + $0xf4] ss:$24 sps:$4 sm:$0xff]  }
   0xa   :  { %607 = vmatprep.subr.bf16.mxu0 %v1935_v21  ;;  %v1950_v31 = vld [vmem:[%s3102_s3 + $0xcc] ss:$24 sps:$4 sm:$0xff]   ;;  %v1952_v33 = vld [vmem:[%s3102_s3 + $0xc8] ss:$24 sps:$4 sm:$0xff]   ;;  %v1956_v60 = vld [vmem:[%s3102_s3 + $0xfc] ss:$24 sps:$4 sm:$0xff]  }
   0xb   :  { %657 = vmatpush1.bf16.msra.mxu1 %v1934_v20  ;;  %v1955_v59 = vld [vmem:[%s3102_s3 + $0xf0] ss:$24 sps:$4 sm:$0xff]   ;;  %v1959_v62 = vld [vmem:[%s3102_s3 + $0x124] ss:$24 sps:$4 sm:$0xff]   ;;  %v1961_v63 = vld [vmem:[%s3102_s3 + $0x120] ss:$24 sps:$4 sm:$0xff]  }
   0xc   :  { %658 = vmatprep.subr.bf16.mxu1 %v1938_v23  ;;  %v1958_v61 = vld [vmem:[%s3102_s3 + $0xf8] ss:$24 sps:$4 sm:$0xff]   ;;  %v1974_v8 = vld [vmem:[%s3102_s3 + $0x18c] ss:$24 sps:$4 sm:$0xff]   ;;  %v1976_v9 = vld [vmem:[%s3102_s3 + $0x188] ss:$24 sps:$4 sm:$0xff]  }
   0xd   :  { %608 = vmatpush1.bf16.msra.mxu0 %v1937_v22  ;;  %v1967_v3 = vld [vmem:[%s3102_s3 + $0x150] ss:$24 sps:$4 sm:$0xff]   ;;  %v1977_v10 = vld [vmem:[%s3102_s3 + $0x1b4] ss:$24 sps:$4 sm:$0xff]   ;;  %v1983_v14 = vld [vmem:[%s3102_s3 + $0x1e4] ss:$24 sps:$4 sm:$0xff]  }
   0xe   :  { %609 = vmatprep.subr.bf16.mxu0 %v1941_v24  ;;  %v1970_v5 = vld [vmem:[%s3102_s3 + $0x158] ss:$24 sps:$4 sm:$0xff]   ;;  %v1980_v12 = vld [vmem:[%s3102_s3 + $0x1bc] ss:$24 sps:$4 sm:$0xff]   ;;  %v1986_v16 = vld [vmem:[%s3102_s3 + $0x1ec] ss:$24 sps:$4 sm:$0xff]  }
   0xf   :  { %659 = vmatpush1.bf16.msra.mxu1 %v1940_v25  ;;  %v1979_v11 = vld [vmem:[%s3102_s3 + $0x1b0] ss:$24 sps:$4 sm:$0xff]   ;;  %v1985_v15 = vld [vmem:[%s3102_s3 + $0x1e0] ss:$24 sps:$4 sm:$0xff]   ;;  %v1989_v18 = vld [vmem:[%s3102_s3 + $0x214] ss:$24 sps:$4 sm:$0xff]  }
  0x10   :  { %660 = vmatprep.subr.bf16.mxu1 %v1944_v26  ;;  %v1982_v13 = vld [vmem:[%s3102_s3 + $0x1b8] ss:$24 sps:$4 sm:$0xff]   ;;  %v1988_v17 = vld [vmem:[%s3102_s3 + $0x1e8] ss:$24 sps:$4 sm:$0xff]   ;;  %v1992_v19 = vld [vmem:[%s3102_s3 + $0x21c] ss:$24 sps:$4 sm:$0xff]  }
  0x11   :  { %610 = vmatpush1.bf16.msra.mxu0 %v1943_v27  ;;  %v1991_v20 = vld [vmem:[%s3102_s3 + $0x210] ss:$24 sps:$4 sm:$0xff]   ;;  %v1997_v22 = vld [vmem:[%s3102_s3 + $0x14] ss:$24 sps:$4 sm:$0xff]  }
  0x12   :  { %611 = vmatprep.subr.bf16.mxu0 %v1947_v29  ;;  %v1994_v21 = vld [vmem:[%s3102_s3 + $0x218] ss:$24 sps:$4 sm:$0xff]   ;;  %v2033_v23 = vld [vmem:[%s3103_s5 + $0x104] ss:$8 sps:$4 sm:$0xff]   ;;  %v96_v29 = vlaneseq }
  0x13   :  { %661 = vmatpush1.bf16.msra.mxu1 %v1946_v28 }
  0x14   :  { %662 = vmatprep.subr.bf16.mxu1 %v1950_v31 }
  0x15   :  { %612 = vmatpush1.bf16.msra.mxu0 %v1949_v30 }
  0x16   :  { %613 = vmatprep.subr.bf16.mxu0 %v1953_v32 }
  0x17   :  { %663 = vmatpush1.bf16.msra.mxu1 %v1952_v33 }
  0x18   :  { %664 = vmatprep.subr.bf16.mxu1 %v1956_v60 }
  0x19   :  { %614 = vmatpush1.bf16.msra.mxu0 %v1955_v59 }
  0x1a   :  { %615 = vmatprep.subr.bf16.mxu0 %v1959_v62 }
  0x1b   :  { %665 = vmatpush1.bf16.msra.mxu1 %v1958_v61 }
  0x1d   :  { %616 = vmatpush1.bf16.msra.mxu0 %v1961_v63 }
  0x92   :  { %v39_v34 = vpop.xlane.xlu0 %38 }
  0x93   :  { %v52_v35 = vmul.f32 0.0052083335, %v39_v34  ;;  %v50_v36 = vpop.xlane.xlu1 %49  ;;  %v2519_v34 = vshrl.u32 %v96_v29, 7  ;;  %v2016_v29 = vld [vmem:[%s3102_s3 + $0x160] ss:$24 sps:$4 sm:$0xff]  }
  0x94   :  { %v54_v37 = vmul.f32 0.0052083335, %v50_v36  ;;  %v33_v36 = vld [vmem:[%s3104_s1] sm:$0x3] }
  0x95   :  { %v2400_v38 = vsub.f32 %v2302_v0, %v52_v35  ;;  %v2403_v39 = vsub.f32 %v2307_v1, %v52_v35  ;;  %v1962_v0 = vld [vmem:[%s3102_s3 + $0x12c] ss:$24 sps:$4 sm:$0xff]   ;;  %v1964_v1 = vld [vmem:[%s3102_s3 + $0x128] ss:$24 sps:$4 sm:$0xff]   ;;  %v2522_v35 = vsub.s32 1, %v2519_v34 }
  0x96   :  { %v2406_v40 = vsub.f32 %v2312_v2, %v54_v37  ;;  %v2408_v41 = vsub.f32 %v32_v4, %v54_v37  ;;  %v43_v42 = vpop.xlane.xlu0 %42  ;;  %666 = vmatprep.subr.bf16.mxu1 %v1962_v0  ;;  %v1965_v2 = vld [vmem:[%s3102_s3 + $0x154] ss:$24 sps:$4 sm:$0xff]   ;;  %v2528_v37 = vsub.s32 0, %v2519_v34 }
  0x97   :  { %v53_v43 = vmul.f32 0.0052083335, %v43_v42  ;;  %v61_v44 = vmul.f32 %v2400_v38, %v2400_v38  ;;  %v62_v45 = vmul.f32 %v2403_v39, %v2403_v39  ;;  %667 = vmatpush1.bf16.msra.mxu1 %v1964_v1  ;;  %v1968_v4 = vld [vmem:[%s3102_s3 + $0x15c] ss:$24 sps:$4 sm:$0xff]   ;;  %617 = vmatprep.subr.bf16.mxu0 %v1965_v2 }
  0x98   :  { %v65_v46 = vmul.f32 %v2406_v40, %v2406_v40  ;;  %v66_v47 = vmul.f32 %v2408_v41, %v2408_v41  ;;  %618 = vmatpush1.bf16.msra.mxu0 %v1967_v3  ;;  %668 = vmatprep.subr.bf16.mxu1 %v1968_v4  ;;  %v2031_v4 = vld [vmem:[%s3103_s5 + $0x100] ss:$8 sps:$4 sm:$0xff]  }
  0x99   :  { %v2419_v48 = vsub.f32 %v2324_v6, %v53_v43  ;;  %v2422_v49 = vsub.f32 %v2329_v7, %v53_v43  ;;  %v67_v50 = vsel %vm35_vm0, %v62_v45, 0.0  ;;  %v1971_v6 = vld [vmem:[%s3102_s3 + $0x184] ss:$24 sps:$4 sm:$0xff]   ;;  %v1973_v7 = vld [vmem:[%s3102_s3 + $0x180] ss:$24 sps:$4 sm:$0xff]  }
  0x9a   :  { %v68_v51 = vadd.f32 %v67_v50, %v61_v44  ;;  %v75_v52 = vsel %vm44_vm1, %v65_v46, 0.0  ;;  %v76_v53 = vsel %vm46_vm2, %v66_v47, 0.0  ;;  %619 = vmatprep.subr.bf16.mxu0 %v1971_v6  ;;  %v103_v44 = vrot.slane %v33_v36, %v2522_v35  ;;  %v34_v45 = vld [vmem:[%s3105_s2] sm:$0x3] }
  0x9b   :  { %v63_v54 = vmul.f32 %v2419_v48, %v2419_v48  ;;  %v64_v55 = vmul.f32 %v2422_v49, %v2422_v49  ;;  %v77_v56 = vadd.f32 %v76_v53, %v75_v52  ;;  %669 = vmatpush1.bf16.msra.mxu1 %v1970_v5  ;;  %v99_v47 = vrot.slane %v33_v36, %v2528_v37  ;;  %v2039_v5 = vld [vmem:[%s3103_s5 + $0x114] ss:$8 sps:$4 sm:$0xff]   ;;  %v1998_v6 = vld [vmem:[%s3102_s3 + $0x40] ss:$24 sps:$4 sm:$0xff]  }
  0x9c   :  { %69 = vadd.xlane.f32.xlu1 %v68_v51  ;;  %620 = vmatpush1.bf16.msra.mxu0 %v1973_v7  ;;  %v2003_v7 = vld [vmem:[%s3102_s3 + $0x74] ss:$24 sps:$4 sm:$0xff]  }
  0x9d   :  { %v71_v57 = vsel %vm35_vm0, %v64_v55, 0.0  ;;  %670 = vmatprep.subr.bf16.mxu1 %v1974_v8  ;;  %621 = vmatprep.subr.bf16.mxu0 %v1977_v10  ;;  %v2001_v10 = vld [vmem:[%s3102_s3 + $0x70] ss:$24 sps:$4 sm:$0xff]   ;;  %v2027_v36 = vld [vmem:[%s3102_s3 + $0x1f4] ss:$24 sps:$4 sm:$0xff]  }
  0x9e   :  { %v72_v58 = vadd.f32 %v71_v57, %v63_v54  ;;  %v120_v54 = vrot.slane %v34_v45, %v2522_v35  ;;  %v116_v57 = vrot.slane %v34_v45, %v2528_v37  ;;  %v2036_v45 = vld [vmem:[%s3103_s5 + $0x4] ss:$8 sps:$4 sm:$0xff]  }
  0x9f   :  { %671 = vmatpush1.bf16.msra.mxu1 %v1976_v9  ;;  %v2037_v9 = vld [vmem:[%s3103_s5 + $0x110] ss:$8 sps:$4 sm:$0xff]  }
  0xa0   :  { %78 = vadd.xlane.f32.xlu1 %v77_v56  ;;  %73 = vadd.xlane.f32.xlu0 %v72_v58 }
  0xa1   :  { %622 = vmatpush1.bf16.msra.mxu0 %v1979_v11  ;;  %672 = vmatprep.subr.bf16.mxu1 %v1980_v12  ;;  %v2006_v12 = vld [vmem:[%s3102_s3 + $0xa4] ss:$24 sps:$4 sm:$0xff]  }
  0xa2   :  { %623 = vmatprep.subr.bf16.mxu0 %v1983_v14  ;;  %v2043_v14 = vld [vmem:[%s3103_s5 + $0x120] ss:$8 sps:$4 sm:$0xff]  }
  0xa3   :  { %673 = vmatpush1.bf16.msra.mxu1 %v1982_v13  ;;  %v2045_v13 = vld [vmem:[%s3103_s5 + $0x124] ss:$8 sps:$4 sm:$0xff]  }
  0xa4   :  { %674 = vmatprep.subr.bf16.mxu1 %v1986_v16  ;;  %v2004_v16 = vld [vmem:[%s3102_s3 + $0xa0] ss:$24 sps:$4 sm:$0xff]  }
  0xa5   :  { %624 = vmatpush1.bf16.msra.mxu0 %v1985_v15  ;;  %v2051_v15 = vld [vmem:[%s3103_s5 + $0x134] ss:$8 sps:$4 sm:$0xff]  }
  0xa6   :  { %625 = vmatprep.subr.bf16.mxu0 %v1989_v18  ;;  %v2049_v18 = vld [vmem:[%s3103_s5 + $0x130] ss:$8 sps:$4 sm:$0xff]  }
  0xa7   :  { %675 = vmatpush1.bf16.msra.mxu1 %v1988_v17  ;;  %v2009_v17 = vld [vmem:[%s3102_s3 + $0xd4] ss:$24 sps:$4 sm:$0xff]  }
  0xa8   :  { %676 = vmatprep.subr.bf16.mxu1 %v1992_v19  ;;  %v2057_v19 = vld [vmem:[%s3103_s5 + $0x144] ss:$8 sps:$4 sm:$0xff]  }
  0xa9   :  { %626 = vmatpush1.bf16.msra.mxu0 %v1991_v20  ;;  %v2007_v20 = vld [vmem:[%s3102_s3 + $0xd0] ss:$24 sps:$4 sm:$0xff]  }
  0xaa   :  { %705 = vmatprep.subr.bf16.mxu0 %v1997_v22  ;;  %v2055_v22 = vld [vmem:[%s3103_s5 + $0x140] ss:$8 sps:$4 sm:$0xff]  }
  0xab   :  { %677 = vmatpush1.bf16.msra.mxu1 %v1994_v21  ;;  %v2012_v21 = vld [vmem:[%s3102_s3 + $0x104] ss:$24 sps:$4 sm:$0xff]  }
  0xac   :  { %1605 = vmatprep.subr.bf16.mxu1 %v2033_v23  ;;  %v2063_v23 = vld [vmem:[%s3103_s5 + $0x154] ss:$8 sps:$4 sm:$0xff]  }
 0x129   :  { %v70_v24 = vpop.xlane.xlu1 %69 }
 0x12a   :  { %v80_v25 = vmul.f32 0.0052083335, %v70_v24  ;;  %v2010_v24 = vld [vmem:[%s3102_s3 + $0x100] ss:$24 sps:$4 sm:$0xff]  }
 0x12c   :  { %v83_v26 = vadd.f32 1e-05, %v80_v25  ;;  %v2015_v25 = vld [vmem:[%s3102_s3 + $0x134] ss:$24 sps:$4 sm:$0xff]  }
 0x12d   :  { %v79_v27 = vpop.xlane.xlu1 %78  ;;  %v74_v28 = vpop.xlane.xlu0 %73 }
 0x12e   :  { %2175 = vrsqrt.f32 %v83_v26  ;;  %v82_v30 = vmul.f32 0.0052083335, %v79_v27  ;;  %v81_v31 = vmul.f32 0.0052083335, %v74_v28  ;;  %v2061_v26 = vld [vmem:[%s3103_s5 + $0x150] ss:$8 sps:$4 sm:$0xff]  }
 0x12f   :  { %v2013_v27 = vld [vmem:[%s3102_s3 + $0x130] ss:$24 sps:$4 sm:$0xff]   ;;  %v2018_v28 = vld [vmem:[%s3102_s3 + $0x164] ss:$24 sps:$4 sm:$0xff]  }
 0x130   :  { %v85_v32 = vadd.f32 1e-05, %v82_v30  ;;  %v84_v33 = vadd.f32 1e-05, %v81_v31  ;;  %v2021_v30 = vld [vmem:[%s3102_s3 + $0x194] ss:$24 sps:$4 sm:$0xff]  }
 0x131   :  { %v2019_v31 = vld [vmem:[%s3102_s3 + $0x190] ss:$24 sps:$4 sm:$0xff]  }
 0x132   :  { %2177 = vrsqrt.f32 %v85_v32  ;;  %v2024_v32 = vld [vmem:[%s3102_s3 + $0x1c4] ss:$24 sps:$4 sm:$0xff]  }
 0x133   :  { %2179 = vrsqrt.f32 %v84_v33  ;;  %v2022_v33 = vld [vmem:[%s3102_s3 + $0x1c0] ss:$24 sps:$4 sm:$0xff]  }
 0x138   :  { %v2176_v42 = vpop.eup %2175 }
 0x139   :  { %v90_v43 = vmul.f32 %v2176_v42, %v2403_v39  ;;  %v89_v46 = vmul.f32 %v2176_v42, %v2400_v38  ;;  %v2025_v42 = vld [vmem:[%s3102_s3 + $0x1f0] ss:$24 sps:$4 sm:$0xff]  }
 0x13b   :  { %v107_v53 = vmul.f32 %v103_v44, %v90_v43  ;;  %v106_v56 = vmul.f32 %v99_v47, %v89_v46  ;;  %v2030_v43 = vld [vmem:[%s3102_s3 + $0x224] ss:$24 sps:$4 sm:$0xff]   ;;  %v2034_v46 = vld [vmem:[%s3103_s5] ss:$8 sps:$4 sm:$0xff]  }
 0x13c   :  { %v2178_v50 = vpop.eup %2177 }
 0x13d   :  { %v2180_v51 = vpop.eup %2179  ;;  %v94_v52 = vmul.f32 %v2178_v50, %v2408_v41  ;;  %v124_v38 = vadd.f32 %v120_v54, %v107_v53  ;;  %v93_v61 = vmul.f32 %v2178_v50, %v2406_v40  ;;  %v123_v63 = vadd.f32 %v116_v57, %v106_v56  ;;  %v2040_v50 = vld [vmem:[%s3103_s5 + $0x10] ss:$8 sps:$4 sm:$0xff]   ;;  %v2054_v53 = vld [vmem:[%s3103_s5 + $0x34] ss:$8 sps:$4 sm:$0xff]  }
 0x13e   :  { %v92_v55 = vmul.f32 %v2180_v51, %v2422_v49  ;;  %v91_v39 = vmul.f32 %v2180_v51, %v2419_v48  ;;  %v1995_v49 = vld [vmem:[%s3102_s3 + $0x10] ss:$24 sps:$4 sm:$0xff]   ;;  %v2000_v48 = vld [vmem:[%s3102_s3 + $0x44] ss:$24 sps:$4 sm:$0xff]  }
 0x13f   :  { %v111_v58 = vmul.f32 %v103_v44, %v94_v52  ;;  %v110_v3 = vmul.f32 %v99_v47, %v93_v61  ;;  %v2048_v51 = vld [vmem:[%s3103_s5 + $0x24] ss:$8 sps:$4 sm:$0xff]   ;;  %v2046_v52 = vld [vmem:[%s3103_s5 + $0x20] ss:$8 sps:$4 sm:$0xff]   ;;  %v2066_v56 = vld [vmem:[%s3103_s5 + $0x54] ss:$8 sps:$4 sm:$0xff]  }
 0x140   :  { %v109_v59 = vmul.f32 %v103_v44, %v92_v55  ;;  %v108_v60 = vmul.f32 %v99_v47, %v91_v39  ;;  %v2028_v44 = vld [vmem:[%s3102_s3 + $0x220] ss:$24 sps:$4 sm:$0xff]   ;;  %v2042_v47 = vld [vmem:[%s3103_s5 + $0x14] ss:$8 sps:$4 sm:$0xff]   ;;  %v2060_v55 = vld [vmem:[%s3103_s5 + $0x44] ss:$8 sps:$4 sm:$0xff]  }
 0x141   :  { %v128_v41 = vadd.f32 %v120_v54, %v111_v58  ;;  %v127_v8 = vadd.f32 %v116_v57, %v110_v3  ;;  %v2058_v39 = vld [vmem:[%s3103_s5 + $0x40] ss:$8 sps:$4 sm:$0xff]   ;;  %v2069_v58 = vld [vmem:[%s3103_s5 + $0x164] ss:$8 sps:$4 sm:$0xff]   ;;  %v2075_v61 = vld [vmem:[%s3103_s5 + $0x174] ss:$8 sps:$4 sm:$0xff]  }
 0x142   :  { %v126_v62 = vadd.f32 %v120_v54, %v109_v59  ;;  %v125_v0 = vadd.f32 %v116_v57, %v108_v60  ;;  %v2052_v54 = vld [vmem:[%s3103_s5 + $0x30] ss:$8 sps:$4 sm:$0xff]   ;;  %v2067_v59 = vld [vmem:[%s3103_s5 + $0x160] ss:$8 sps:$4 sm:$0xff]   ;;  %v2072_v60 = vld [vmem:[%s3103_s5 + $0x64] ss:$8 sps:$4 sm:$0xff]  }
 0x143   :  { %v2553_v40 = vpack.c.bf16 %v128_v41, %v128_v41  ;;  %v2579_v11 = vpack.c.bf16 %v127_v8, %v127_v8  ;;  %v2064_v57 = vld [vmem:[%s3103_s5 + $0x50] ss:$8 sps:$4 sm:$0xff]   ;;  %v2081_v41 = vld [vmem:[%s3103_s5 + $0x184] ss:$8 sps:$4 sm:$0xff]   ;;  %v2094_v8 = vld [vmem:[%s3103_s5 + $0xa0] ss:$8 sps:$4 sm:$0xff]  }
 0x144   :  { %v130_v1 = vpack.c.bf16 %v126_v62, %v124_v38  ;;  %v2546_v2 = vpack.c.bf16 %v125_v0, %v123_v63  ;;  %v2070_v38 = vld [vmem:[%s3103_s5 + $0x60] ss:$8 sps:$4 sm:$0xff]   ;;  %v2073_v62 = vld [vmem:[%s3103_s5 + $0x170] ss:$8 sps:$4 sm:$0xff]   ;;  %v2078_v63 = vld [vmem:[%s3103_s5 + $0x74] ss:$8 sps:$4 sm:$0xff]  }
 0x145   :  { %v2076_v0 = vld [vmem:[%s3103_s5 + $0x70] ss:$8 sps:$4 sm:$0xff]  }
 0x146   :  { %1801 = vmatprep.mubr.msk.bf16.mxu0 %vm35_vm0, %v130_v1  ;;  %1803 = vmatprep.mubr.msk.bf16.mxu1 %vm35_vm0, %v130_v1  ;;  %v2085_v3 = vld [vmem:[%s3103_s5 + $0x190] ss:$8 sps:$4 sm:$0xff]  }
 0x147   :  { %636 = vmatmul.mubr.bf16.vlgmr.msra.gmra.mrb[0].mxu0 %v2546_v2  ;;  %687 = vmatmul.mubr.bf16.vlgmr.msra.gmra.mrb[0].mxu1 %v2546_v2 }
 0x148   :  { %706 = vmatpush1.bf16.msra.mxu0 %v1995_v49  ;;  %1802 = vmatprep.mubr.msk.bf16.mxu0 %vm35_vm0, %v2553_v40  ;;  %v2084_v49 = vld [vmem:[%s3103_s5 + $0x84] ss:$8 sps:$4 sm:$0xff]  }
 0x149   :  { %1804 = vmatprep.mubr.msk.bf16.mxu1 %vm35_vm0, %v2553_v40  ;;  %707 = vmatprep.subr.bf16.mxu0 %v2000_v48  ;;  %v2087_v48 = vld [vmem:[%s3103_s5 + $0x194] ss:$8 sps:$4 sm:$0xff]  }
 0x14a   :  { %1606 = vmatpush1.bf16.msra.mxu1 %v2031_v4  ;;  %v2088_v4 = vld [vmem:[%s3103_s5 + $0x90] ss:$8 sps:$4 sm:$0xff]  }
 0x14b   :  { %1607 = vmatprep.subr.bf16.mxu1 %v2039_v5  ;;  %v2093_v5 = vld [vmem:[%s3103_s5 + $0x1a4] ss:$8 sps:$4 sm:$0xff]  }
 0x14c   :  { %708 = vmatpush1.bf16.msra.mxu0 %v1998_v6  ;;  %v2091_v6 = vld [vmem:[%s3103_s5 + $0x1a0] ss:$8 sps:$4 sm:$0xff]  }
 0x14d   :  { %709 = vmatprep.subr.bf16.mxu0 %v2003_v7  ;;  %v2096_v7 = vld [vmem:[%s3103_s5 + $0xa4] ss:$8 sps:$4 sm:$0xff]  }
 0x14e   :  { %1608 = vmatpush1.bf16.msra.mxu1 %v2037_v9  ;;  %v2099_v9 = vld [vmem:[%s3103_s5 + $0x1b4] ss:$8 sps:$4 sm:$0xff]  }
 0x14f   :  { %646 = vmatmul.mubr.bf16.gmra.mrb[4].mxu0 %v2579_v11  ;;  %697 = vmatmul.mubr.bf16.gmra.mrb[4].mxu1 %v2579_v11 }
 0x150   :  { %710 = vmatpush1.bf16.msra.mxu0 %v2001_v10  ;;  %1805 = vmatprep.mubr.msk.bf16.mxu0 %vm35_vm0, %v130_v1  ;;  %v2079_v1 = vld [vmem:[%s3103_s5 + $0x180] ss:$8 sps:$4 sm:$0xff]   ;;  %v2097_v10 = vld [vmem:[%s3103_s5 + $0x1b0] ss:$8 sps:$4 sm:$0xff]  }
 0x151   :  { %711 = vmatprep.subr.bf16.mxu0 %v2006_v12  ;;  %1609 = vmatprep.subr.bf16.mxu1 %v2045_v13  ;;  %v2100_v12 = vld [vmem:[%s3103_s5 + $0xb0] ss:$8 sps:$4 sm:$0xff]   ;;  %v2105_v13 = vld [vmem:[%s3103_s5 + $0x1c4] ss:$8 sps:$4 sm:$0xff]  }
 0x152   :  { %1610 = vmatpush1.bf16.msra.mxu1 %v2043_v14  ;;  %v2103_v14 = vld [vmem:[%s3103_s5 + $0x1c0] ss:$8 sps:$4 sm:$0xff]  }
 0x153   :  { %1611 = vmatprep.subr.bf16.mxu1 %v2051_v15  ;;  %v2108_v15 = vld [vmem:[%s3103_s5 + $0xc4] ss:$8 sps:$4 sm:$0xff]  }
 0x154   :  { %712 = vmatpush1.bf16.msra.mxu0 %v2004_v16  ;;  %v2106_v16 = vld [vmem:[%s3103_s5 + $0xc0] ss:$8 sps:$4 sm:$0xff]  }
 0x155   :  { %713 = vmatprep.subr.bf16.mxu0 %v2009_v17  ;;  %v2111_v17 = vld [vmem:[%s3103_s5 + $0x1d4] ss:$8 sps:$4 sm:$0xff]  }
 0x156   :  { %1612 = vmatpush1.bf16.msra.mxu1 %v2049_v18  ;;  %v2109_v18 = vld [vmem:[%s3103_s5 + $0x1d0] ss:$8 sps:$4 sm:$0xff]  }
 0x157   :  { %1613 = vmatprep.subr.bf16.mxu1 %v2057_v19  ;;  %v2114_v19 = vld [vmem:[%s3103_s5 + $0xd4] ss:$8 sps:$4 sm:$0xff]  }
 0x158   :  { %714 = vmatpush1.bf16.msra.mxu0 %v2007_v20  ;;  %v2112_v20 = vld [vmem:[%s3103_s5 + $0xd0] ss:$8 sps:$4 sm:$0xff]  }
 0x159   :  { %715 = vmatprep.subr.bf16.mxu0 %v2012_v21  ;;  %v2117_v21 = vld [vmem:[%s3103_s5 + $0x1e4] ss:$8 sps:$4 sm:$0xff]  }
 0x15a   :  { %1614 = vmatpush1.bf16.msra.mxu1 %v2055_v22  ;;  %v2115_v22 = vld [vmem:[%s3103_s5 + $0x1e0] ss:$8 sps:$4 sm:$0xff]  }
 0x15b   :  { %1615 = vmatprep.subr.bf16.mxu1 %v2063_v23  ;;  %v2120_v23 = vld [vmem:[%s3103_s5 + $0xe4] ss:$8 sps:$4 sm:$0xff]  }
 0x15c   :  { %716 = vmatpush1.bf16.msra.mxu0 %v2010_v24  ;;  %v2118_v24 = vld [vmem:[%s3103_s5 + $0xe0] ss:$8 sps:$4 sm:$0xff]  }
 0x15d   :  { %717 = vmatprep.subr.bf16.mxu0 %v2015_v25  ;;  %v2123_v25 = vld [vmem:[%s3103_s5 + $0x1f4] ss:$8 sps:$4 sm:$0xff]  }
 0x15e   :  { %1616 = vmatpush1.bf16.msra.mxu1 %v2061_v26  ;;  %v2126_v26 = vld [vmem:[%s3103_s5 + $0xf4] ss:$8 sps:$4 sm:$0xff]  }
 0x15f   :  { %1617 = vmatprep.subr.bf16.mxu1 %v2069_v58 }
 0x160   :  { %718 = vmatpush1.bf16.msra.mxu0 %v2013_v27  ;;  %v2121_v27 = vld [vmem:[%s3103_s5 + $0x1f0] ss:$8 sps:$4 sm:$0xff]  }
 0x161   :  { %719 = vmatprep.subr.bf16.mxu0 %v2018_v28  ;;  %v2124_v28 = vld [vmem:[%s3103_s5 + $0xf0] ss:$8 sps:$4 sm:$0xff]  }
 0x162   :  { %1618 = vmatpush1.bf16.msra.mxu1 %v2067_v59 }
 0x163   :  { %1619 = vmatprep.subr.bf16.mxu1 %v2075_v61 }
 0x164   :  { %720 = vmatpush1.bf16.msra.mxu0 %v2016_v29  ;;  %v2129_v29 = vld [vmem:[%s3103_s5 + $0x204] ss:$8 sps:$4 sm:$0xff]  }
 0x165   :  { %721 = vmatprep.subr.bf16.mxu0 %v2021_v30  ;;  %v217_v30 = vsub.s32 2, %v2519_v34 }
 0x166   :  { %1620 = vmatpush1.bf16.msra.mxu1 %v2073_v62 }
 0x167   :  { %1621 = vmatprep.subr.bf16.mxu1 %v2081_v41 }
 0x168   :  { %722 = vmatpush1.bf16.msra.mxu0 %v2019_v31  ;;  %v2829_v31 = vld [vmem:[%s3106_s4] sm:$0x3f] }
 0x169   :  { %723 = vmatprep.subr.bf16.mxu0 %v2024_v32  ;;  %v221_v32 = vsub.s32 3, %v2519_v34 }
 0x16a   :  { %1622 = vmatpush1.bf16.msra.mxu1 %v2079_v1 }
 0x16b   :  { %1623 = vmatprep.subr.bf16.mxu1 %v2087_v48 }
 0x16c   :  { %724 = vmatpush1.bf16.msra.mxu0 %v2022_v33  ;;  %v210_v33 = vrot.slane %v2829_v31, %v2528_v37 }
 0x16d   :  { %725 = vmatprep.subr.bf16.mxu0 %v2027_v36  ;;  %v218_v36 = vrot.slane %v2829_v31, %v217_v30 }
 0x16e   :  { %1624 = vmatpush1.bf16.msra.mxu1 %v2085_v3 }
 0x16f   :  { %1625 = vmatprep.subr.bf16.mxu1 %v2093_v5 }
 0x170   :  { %726 = vmatpush1.bf16.msra.mxu0 %v2025_v42  ;;  %v214_v42 = vrot.slane %v2829_v31, %v2522_v35 }
 0x171   :  { %727 = vmatprep.subr.bf16.mxu0 %v2030_v43  ;;  %v2838_v43 = vrot.slane %v2829_v31, %v221_v32 }
 0x172   :  { %1626 = vmatpush1.bf16.msra.mxu1 %v2091_v6 }
 0x173   :  { %1627 = vmatprep.subr.bf16.mxu1 %v2099_v9 }
 0x174   :  { %728 = vmatpush1.bf16.msra.mxu0 %v2028_v44 }
 0x175   :  { %1554 = vmatprep.subr.bf16.mxu0 %v2036_v45 }
 0x176   :  { %1628 = vmatpush1.bf16.msra.mxu1 %v2097_v10 }
 0x177   :  { %738 = vmatmul.mubr.bf16.vlgmr.msra.gmra.mrb[8].mxu0 %v2546_v2  ;;  %v2082_v2 = vld [vmem:[%s3103_s5 + $0x80] ss:$8 sps:$4 sm:$0xff]   ;;  %1629 = vmatprep.subr.bf16.mxu1 %v2105_v13 }
 0x178   :  { %1806 = vmatprep.mubr.msk.bf16.mxu0 %vm35_vm0, %v2553_v40  ;;  %1555 = vmatpush1.bf16.msra.mxu0 %v2034_v46  ;;  %v2090_v40 = vld [vmem:[%s3103_s5 + $0x94] ss:$8 sps:$4 sm:$0xff]  }
 0x179   :  { %1556 = vmatprep.subr.bf16.mxu0 %v2042_v47 }
 0x17a   :  { %1630 = vmatpush1.bf16.msra.mxu1 %v2103_v14 }
 0x17b   :  { %1631 = vmatprep.subr.bf16.mxu1 %v2111_v17 }
 0x17c   :  { %1557 = vmatpush1.bf16.msra.mxu0 %v2040_v50 }
 0x17d   :  { %1558 = vmatprep.subr.bf16.mxu0 %v2048_v51 }
 0x17e   :  { %1632 = vmatpush1.bf16.msra.mxu1 %v2109_v18 }
 0x17f   :  { %748 = vmatmul.mubr.bf16.gmra.mrb[12].mxu0 %v2579_v11  ;;  %v2102_v11 = vld [vmem:[%s3103_s5 + $0xb4] ss:$8 sps:$4 sm:$0xff]   ;;  %1633 = vmatprep.subr.bf16.mxu1 %v2117_v21 }
 0x180   :  { %1559 = vmatpush1.bf16.msra.mxu0 %v2046_v52 }
 0x181   :  { %1560 = vmatprep.subr.bf16.mxu0 %v2054_v53 }
 0x182   :  { %1634 = vmatpush1.bf16.msra.mxu1 %v2115_v22 }
 0x183   :  { %1635 = vmatprep.subr.bf16.mxu1 %v2123_v25 }
 0x184   :  { %1561 = vmatpush1.bf16.msra.mxu0 %v2052_v54 }
 0x185   :  { %1562 = vmatprep.subr.bf16.mxu0 %v2060_v55 }
 0x186   :  { %1636 = vmatpush1.bf16.msra.mxu1 %v2121_v27 }
 0x187   :  { %1656 = vmatprep.subr.bf16.mxu1 %v2129_v29 }
 0x188   :  { %1563 = vmatpush1.bf16.msra.mxu0 %v2058_v39 }
 0x189   :  { %1564 = vmatprep.subr.bf16.mxu0 %v2066_v56 }
 0x18c   :  { %1565 = vmatpush1.bf16.msra.mxu0 %v2064_v57 }
 0x18d   :  { %1566 = vmatprep.subr.bf16.mxu0 %v2072_v60 }
 0x190   :  { %1567 = vmatpush1.bf16.msra.mxu0 %v2070_v38 }
 0x191   :  { %1568 = vmatprep.subr.bf16.mxu0 %v2078_v63 }
 0x194   :  { %1569 = vmatpush1.bf16.msra.mxu0 %v2076_v0 }
 0x195   :  { %1570 = vmatprep.subr.bf16.mxu0 %v2084_v49 }
 0x198   :  { %1571 = vmatpush1.bf16.msra.mxu0 %v2082_v2 }
 0x199   :  { %1572 = vmatprep.subr.bf16.mxu0 %v2090_v40 }
 0x19c   :  { %1573 = vmatpush1.bf16.msra.mxu0 %v2088_v4 }
 0x19d   :  { %1574 = vmatprep.subr.bf16.mxu0 %v2096_v7 }
 0x1a0   :  { %1575 = vmatpush1.bf16.msra.mxu0 %v2094_v8 }
 0x1a1   :  { %1576 = vmatprep.subr.bf16.mxu0 %v2102_v11 }
 0x1a4   :  { %1577 = vmatpush1.bf16.msra.mxu0 %v2100_v12 }
 0x1a5   :  { %1578 = vmatprep.subr.bf16.mxu0 %v2108_v15 }
 0x1a8   :  { %1579 = vmatpush1.bf16.msra.mxu0 %v2106_v16 }
 0x1a9   :  { %1580 = vmatprep.subr.bf16.mxu0 %v2114_v19 }
 0x1ac   :  { %1581 = vmatpush1.bf16.msra.mxu0 %v2112_v20 }
 0x1ad   :  { %1582 = vmatprep.subr.bf16.mxu0 %v2120_v23 }
 0x1b0   :  { %1583 = vmatpush1.bf16.msra.mxu0 %v2118_v24 }
 0x1b1   :  { %1584 = vmatprep.subr.bf16.mxu0 %v2126_v26 }
 0x1b4   :  { %1585 = vmatpush1.bf16.msra.mxu0 %v2124_v28 }
 0x21a   :  { %v637_v44 = vpop.f32.mrb[0].mxu0  ;;  %v688_v45 = vpop.f32.mrb[0].mxu1 }
 0x21b   :  { %v2840_v46 = vadd.f32 %v637_v44, %v210_v33  ;;  %v2842_v47 = vadd.f32 %v688_v45, %v218_v36  ;;  %v639_v50 = vpop.f32.mrb[1].mxu0  ;;  %v690_v51 = vpop.f32.mrb[1].mxu1 }
 0x21c   :  { %v2844_v52 = vadd.f32 %v639_v50, %v214_v42  ;;  %v2847_v53 = vadd.f32 %v690_v51, %v2838_v43  ;;  %v641_v54 = vpop.f32.mrb[2].mxu0  ;;  %v692_v55 = vpop.f32.mrb[2].mxu1 }
 0x21d   :  { %v756_v39 = vand.u32 2147483647, %v2840_v46  ;;  %v758_v56 = vand.u32 2147483647, %v2842_v47  ;;  %v2853_v38 = vadd.f32 %v641_v54, %v210_v33  ;;  %v2855_v61 = vadd.f32 %v692_v55, %v218_v36  ;;  %v643_v62 = vpop.f32.mrb[3].mxu0  ;;  %v694_v63 = vpop.f32.mrb[3].mxu1 }
 0x21e   :  { %v757_v57 = vand.u32 2147483647, %v2844_v52  ;;  %v759_v58 = vand.u32 2147483647, %v2847_v53  ;;  %v2857_v1 = vadd.f32 %v643_v62, %v214_v42  ;;  %v2860_v49 = vadd.f32 %v694_v63, %v2838_v43 }
 0x21f   :  { %v774_v59 = vsub.f32 0.0, %v756_v39  ;;  %v776_v60 = vsub.f32 0.0, %v758_v56  ;;  %v762_v3 = vand.u32 2147483647, %v2853_v38  ;;  %v764_v6 = vand.u32 2147483647, %v2855_v61 }
 0x220   :  { %v775_v0 = vsub.f32 0.0, %v757_v57  ;;  %v777_v41 = vsub.f32 0.0, %v759_v58  ;;  %v763_v7 = vand.u32 2147483647, %v2857_v1  ;;  %v765_v9 = vand.u32 2147483647, %v2860_v49 }
 0x221   :  { %v792_v2 = vmul.f32 1.442695, %v774_v59  ;;  %v796_v48 = vmul.f32 1.442695, %v776_v60  ;;  %v780_v5 = vsub.f32 0.0, %v762_v3  ;;  %v782_v13 = vsub.f32 0.0, %v764_v6 }
 0x222   :  { %v794_v40 = vmul.f32 1.442695, %v775_v0  ;;  %v798_v4 = vmul.f32 1.442695, %v777_v41  ;;  %v647_v8 = vpop.f32.mrb[4].mxu0  ;;  %v698_v10 = vpop.f32.mrb[4].mxu1 }
 0x223   :  { %2181 = vpow2.f32 %v792_v2  ;;  %v649_v11 = vpop.f32.mrb[5].mxu0  ;;  %v804_v12 = vmul.f32 1.442695, %v780_v5  ;;  %v781_v14 = vsub.f32 0.0, %v763_v7  ;;  %v700_v15 = vpop.f32.mrb[5].mxu1  ;;  %v783_v17 = vsub.f32 0.0, %v765_v9 }
 0x224   :  { %2183 = vpow2.f32 %v796_v48  ;;  %v651_v16 = vpop.f32.mrb[6].mxu0  ;;  %v2866_v18 = vadd.f32 %v647_v8, %v210_v33  ;;  %v2868_v19 = vadd.f32 %v698_v10, %v218_v36  ;;  %v702_v20 = vpop.f32.mrb[6].mxu1  ;;  %v808_v22 = vmul.f32 1.442695, %v782_v13 }
 0x225   :  { %2185 = vpow2.f32 %v794_v40  ;;  %v652_v21 = vpop.f32.mrb[7].mxu0  ;;  %v806_v23 = vmul.f32 1.442695, %v781_v14  ;;  %v2870_v24 = vadd.f32 %v649_v11, %v214_v42  ;;  %v703_v25 = vpop.f32.mrb[7].mxu1  ;;  %v810_v26 = vmul.f32 1.442695, %v783_v17 }
 0x226   :  { %2187 = vpow2.f32 %v798_v4  ;;  %v768_v27 = vand.u32 2147483647, %v2866_v18  ;;  %v770_v28 = vand.u32 2147483647, %v2868_v19  ;;  %v2876_v32 = vadd.f32 %v700_v15, %v2838_v43 }
 0x227   :  { %2189 = vpow2.f32 %v804_v12  ;;  %v769_v29 = vand.u32 2147483647, %v2870_v24  ;;  %vm828_vm3 = vcmp.ge.f32.partialorder %v2840_v46, 0.0  ;;  %vm830_vm4 = vcmp.ge.f32.partialorder %v2842_v47, 0.0 }
 0x228   :  { %2191 = vpow2.f32 %v808_v22  ;;  %v786_v30 = vsub.f32 0.0, %v768_v27  ;;  %v788_v33 = vsub.f32 0.0, %v770_v28  ;;  %v771_v50 = vand.u32 2147483647, %v2876_v32 }
 0x229   :  { %2193 = vpow2.f32 %v806_v23  ;;  %v787_v45 = vsub.f32 0.0, %v769_v29  ;;  %v225_v14 = vsub.s32 4, %v2519_v34  ;;  %v229_v15 = vsub.s32 5, %v2519_v34 }
 0x22a   :  { %2195 = vpow2.f32 %v810_v26  ;;  %v816_v36 = vmul.f32 1.442695, %v786_v30  ;;  %v820_v42 = vmul.f32 1.442695, %v788_v33  ;;  %v789_v60 = vsub.f32 0.0, %v771_v50 }
 0x22b   :  { %v818_v59 = vmul.f32 1.442695, %v787_v45  ;;  %vm829_vm5 = vcmp.ge.f32.partialorder %v2844_v52, 0.0  ;;  %vm831_vm6 = vcmp.ge.f32.partialorder %v2847_v53, 0.0  ;;  %vm834_vm7 = vcmp.ge.f32.partialorder %v2853_v38, 0.0 }
 0x22c   :  { %2197 = vpow2.f32 %v816_v36  ;;  %v822_v3 = vmul.f32 1.442695, %v789_v60  ;;  %vm836_vm8 = vcmp.ge.f32.partialorder %v2855_v61, 0.0  ;;  %vm835_vm9 = vcmp.ge.f32.partialorder %v2857_v1, 0.0 }
 0x22d   :  { %v2182_v44 = vpop.eup %2181  ;;  %2199 = vpow2.f32 %v820_v42  ;;  %vm837_vm10 = vcmp.ge.f32.partialorder %v2860_v49, 0.0  ;;  %vm840_vm11 = vcmp.ge.f32.partialorder %v2866_v18, 0.0  ;;  %vm842_vm12 = vcmp.ge.f32.partialorder %v2868_v19, 0.0 }
 0x22e   :  { %v2184_v51 = vpop.eup %2183  ;;  %v846_v54 = vadd.f32 1.0, %v2182_v44  ;;  %vm841_vm13 = vcmp.ge.f32.partialorder %v2870_v24, 0.0  ;;  %vm843_vm14 = vcmp.ge.f32.partialorder %v2876_v32, 0.0 }
 0x22f   :  { %v2186_v55 = vpop.eup %2185  ;;  %v848_v39 = vadd.f32 1.0, %v2184_v51 }
 0x230   :  { %v2188_v56 = vpop.eup %2187  ;;  %2201 = vrcp.f32 %v846_v54  ;;  %v847_v57 = vadd.f32 1.0, %v2186_v55 }
 0x231   :  { %v2190_v58 = vpop.eup %2189  ;;  %2203 = vrcp.f32 %v848_v39  ;;  %v849_v43 = vadd.f32 1.0, %v2188_v56 }
 0x232   :  { %2205 = vrcp.f32 %v847_v57  ;;  %v852_v62 = vadd.f32 1.0, %v2190_v58  ;;  %v2192_v63 = vpop.eup %2191 }
 0x233   :  { %2207 = vrcp.f32 %v849_v43  ;;  %v2194_v0 = vpop.eup %2193  ;;  %v854_v41 = vadd.f32 1.0, %v2192_v63 }
 0x234   :  { %2209 = vrcp.f32 %v852_v62  ;;  %v2196_v2 = vpop.eup %2195  ;;  %v853_v48 = vadd.f32 1.0, %v2194_v0 }
 0x235   :  { %2211 = vpow2.f32 %v818_v59  ;;  %v855_v40 = vadd.f32 1.0, %v2196_v2 }
 0x236   :  { %2213 = vrcp.f32 %v854_v41  ;;  %v2198_v4 = vpop.eup %2197 }
 0x237   :  { %2215 = vrcp.f32 %v853_v48  ;;  %v2879_v5 = vpop.eup %2199  ;;  %v858_v6 = vadd.f32 1.0, %v2198_v4 }
 0x238   :  { %2217 = vrcp.f32 %v855_v40  ;;  %v860_v8 = vadd.f32 1.0, %v2879_v5 }
 0x239   :  { %2219 = vpow2.f32 %v822_v3 }
 0x23a   :  { %v2202_v7 = vpop.eup %2201  ;;  %2221 = vrcp.f32 %v858_v6 }
 0x23b   :  { %v2204_v9 = vpop.eup %2203  ;;  %v900_v10 = vmul.f32 %v2202_v7, %v2182_v44  ;;  %2223 = vrcp.f32 %v860_v8 }
 0x23c   :  { %v2206_v11 = vpop.eup %2205  ;;  %v902_v12 = vmul.f32 %v2204_v9, %v2184_v51 }
 0x23d   :  { %v2208_v13 = vpop.eup %2207  ;;  %v918_v17 = vsel %vm828_vm3, %v2202_v7, %v900_v10  ;;  %v901_v20 = vmul.f32 %v2206_v11, %v2186_v55 }
 0x23e   :  { %v2210_v16 = vpop.eup %2209  ;;  %v903_v22 = vmul.f32 %v2208_v13, %v2188_v56  ;;  %v920_v26 = vsel %vm830_vm4, %v2204_v9, %v902_v12  ;;  %v936_v28 = vmul.f32 %v918_v17, %v2840_v46  ;;  %v2135_v12 = vld [vmem:[%s3103_s5 + $0x224] ss:$8 sps:$4 sm:$0xff]  }
 0x23f   :  { %v2887_v21 = vpop.eup %2211  ;;  %v906_v23 = vmul.f32 %v2210_v16, %v2190_v58  ;;  %v919_v36 = vsel %vm829_vm5, %v2206_v11, %v901_v20  ;;  %v938_v50 = vmul.f32 %v920_v26, %v2842_v47 }
 0x240   :  { %v2214_v25 = vpop.eup %2213  ;;  %v859_v34 = vadd.f32 1.0, %v2887_v21  ;;  %v921_v51 = vsel %vm831_vm6, %v2208_v13, %v903_v22  ;;  %v937_v58 = vmul.f32 %v919_v36, %v2844_v52  ;;  %v2127_v52 = vld [vmem:[%s3103_s5 + $0x200] ss:$8 sps:$4 sm:$0xff]  }
 0x241   :  { %v2216_v27 = vpop.eup %2215  ;;  %v924_v29 = vsel %vm834_vm7, %v2210_v16, %v906_v23  ;;  %v908_v30 = vmul.f32 %v2214_v25, %v2192_v63  ;;  %v939_v59 = vmul.f32 %v921_v51, %v2847_v53  ;;  %v2917_v63 = vrot.slane %v2829_v31, %v225_v14  ;;  %v2132_v53 = vld [vmem:[%s3103_s5 + $0x214] ss:$8 sps:$4 sm:$0xff]  }
 0x242   :  { %v2218_v33 = vpop.eup %2217  ;;  %v942_v44 = vmul.f32 %v924_v29, %v2853_v38  ;;  %v907_v42 = vmul.f32 %v2216_v27, %v2194_v0  ;;  %2225 = vrcp.f32 %v859_v34  ;;  %v2133_v34 = vld [vmem:[%s3103_s5 + $0x220] ss:$8 sps:$4 sm:$0xff]   ;;  %v2138_v29 = vld [vmem:[%s3103_s5 + $0x234] ss:$8 sps:$4 sm:$0xff]  }
 0x243   :  { %v2899_v45 = vpop.eup %2219  ;;  %v926_v46 = vsel %vm836_vm8, %v2214_v25, %v908_v30  ;;  %v909_v54 = vmul.f32 %v2218_v33, %v2196_v2 }
 0x244   :  { %v954_v55 = vpack.c.bf16 %v942_v44, %v936_v28  ;;  %v944_v39 = vmul.f32 %v926_v46, %v2855_v61  ;;  %v925_v56 = vsel %vm835_vm9, %v2216_v27, %v907_v42  ;;  %v861_v38 = vadd.f32 1.0, %v2899_v45  ;;  %v2222_v57 = vpop.eup %2221 }
 0x245   :  { %v943_v47 = vmul.f32 %v925_v56, %v2857_v1  ;;  %v927_v43 = vsel %vm837_vm10, %v2218_v33, %v909_v54  ;;  %v912_v0 = vmul.f32 %v2222_v57, %v2198_v4  ;;  %v2224_v41 = vpop.eup %2223  ;;  %v230_v1 = vrot.slane %v2829_v31, %v229_v15  ;;  %v2130_v31 = vld [vmem:[%s3103_s5 + $0x210] ss:$8 sps:$4 sm:$0xff]  }
 0x246   :  { %v956_v60 = vpack.c.bf16 %v944_v39, %v938_v50  ;;  %v945_v62 = vmul.f32 %v927_v43, %v2860_v49  ;;  %2227 = vrcp.f32 %v861_v38  ;;  %v914_v4 = vmul.f32 %v2224_v41, %v2879_v5  ;;  %v2141_v38 = vld [vmem:[%s3103_s5 + $0x244] ss:$8 sps:$4 sm:$0xff]  }
 0x247   :  { %v955_v61 = vpack.c.bf16 %v943_v47, %v937_v58  ;;  %v930_v40 = vsel %vm840_vm11, %v2222_v57, %v912_v0 }
 0x248   :  { %v957_v2 = vpack.c.bf16 %v945_v62, %v939_v59  ;;  %v948_v15 = vmul.f32 %v930_v40, %v2866_v18  ;;  %v932_v22 = vsel %vm842_vm12, %v2224_v41, %v914_v4  ;;  %v2139_v59 = vld [vmem:[%s3103_s5 + $0x240] ss:$8 sps:$4 sm:$0xff]   ;;  %v2147_v41 = vld [vmem:[%s3103_s5 + $0x264] ss:$8 sps:$4 sm:$0xff]  }
 0x249   :  { %1586 = vmatprep.mubr.bf16.mxu0 %v955_v61  ;;  %v950_v36 = vmul.f32 %v932_v22, %v2868_v19  ;;  %v2145_v4 = vld [vmem:[%s3103_s5 + $0x260] ss:$8 sps:$4 sm:$0xff]  }
 0x24a   :  { %1637 = vmatprep.mubr.bf16.mxu1 %v957_v2  ;;  %1587 = vmatmul.mubr.bf16.vlgmr.msra.gmra.mrb[16].mxu0 %v954_v55  ;;  %v739_v49 = vpop.f32.mrb[8].mxu0  ;;  %v960_v51 = vpack.c.bf16 %v948_v15, %v948_v15  ;;  %v2136_v55 = vld [vmem:[%s3103_s5 + $0x230] ss:$8 sps:$4 sm:$0xff]  }
 0x24b   :  { %1638 = vmatmul.mubr.bf16.vlgmr.msra.gmra.mrb[8].mxu1 %v956_v60  ;;  %v2928_v48 = vadd.f32 %v739_v49, %v2917_v63  ;;  %v741_v3 = vpop.f32.mrb[9].mxu0  ;;  %v962_v58 = vpack.c.bf16 %v950_v36, %v950_v36  ;;  %v2144_v60 = vld [vmem:[%s3103_s5 + $0x254] ss:$8 sps:$4 sm:$0xff]   ;;  %v2157_v36 = vld [vmem:[%s3103_s5 + $0x2a0] ss:$8 sps:$4 sm:$0xff]  }
 0x24c   :  { %v2226_v6 = vpop.eup %2225  ;;  %1657 = vmatpush1.bf16.msra.mxu1 %v2127_v52  ;;  %v2934_v7 = vadd.f32 %v741_v3, %v230_v1  ;;  %v743_v8 = vpop.f32.mrb[10].mxu0 }
 0x24d   :  { %v760_v9 = vand.u32 2147483647, %v2928_v48  ;;  %1658 = vmatprep.subr.bf16.mxu1 %v2132_v53  ;;  %v2939_v10 = vadd.f32 %v743_v8, %v2917_v63  ;;  %v913_v11 = vmul.f32 %v2226_v6, %v2887_v21  ;;  %v745_v5 = vpop.f32.mrb[11].mxu0  ;;  %vm832_vm15 = vcmp.ge.f32.partialorder %v2928_v48, 0.0 }
 0x24e   :  { %v761_v13 = vand.u32 2147483647, %v2934_v7  ;;  %v2947_v14 = vadd.f32 %v745_v5, %v230_v1  ;;  %v2151_v5 = vld [vmem:[%s3103_s5 + $0x280] ss:$8 sps:$4 sm:$0xff]   ;;  %vm833_vm1 = vcmp.ge.f32.partialorder %v2934_v7, 0.0 }
 0x24f   :  { %v778_v16 = vsub.f32 0.0, %v760_v9  ;;  %v766_v17 = vand.u32 2147483647, %v2939_v10  ;;  %v931_v20 = vsel %vm841_vm13, %v2226_v6, %v913_v11  ;;  %v2148_v9 = vld [vmem:[%s3103_s5 + $0x270] ss:$8 sps:$4 sm:$0xff]   ;;  %vm838_vm3 = vcmp.ge.f32.partialorder %v2939_v10, 0.0 }
 0x250   :  { %v2228_v23 = vpop.eup %2227  ;;  %v779_v21 = vsub.f32 0.0, %v761_v13  ;;  %1659 = vmatpush1.bf16.msra.mxu1 %v2130_v31  ;;  %v949_v25 = vmul.f32 %v931_v20, %v2870_v24  ;;  %v767_v26 = vand.u32 2147483647, %v2947_v14  ;;  %v2150_v31 = vld [vmem:[%s3103_s5 + $0x274] ss:$8 sps:$4 sm:$0xff]   ;;  %vm839_vm4 = vcmp.ge.f32.partialorder %v2947_v14, 0.0 }
 0x251   :  { %v800_v27 = vmul.f32 1.442695, %v778_v16  ;;  %v784_v18 = vsub.f32 0.0, %v766_v17  ;;  %v915_v28 = vmul.f32 %v2228_v23, %v2899_v45  ;;  %1660 = vmatprep.subr.bf16.mxu1 %v2135_v12  ;;  %v2153_v11 = vld [vmem:[%s3103_s5 + $0x284] ss:$8 sps:$4 sm:$0xff]  }
 0x252   :  { %v802_v30 = vmul.f32 1.442695, %v779_v21  ;;  %v961_v33 = vpack.c.bf16 %v949_v25, %v949_v25  ;;  %v785_v24 = vsub.f32 0.0, %v767_v26  ;;  %v749_v44 = vpop.f32.mrb[12].mxu0  ;;  %v2156_v13 = vld [vmem:[%s3103_s5 + $0x294] ss:$8 sps:$4 sm:$0xff]  }
 0x253   :  { %2229 = vpow2.f32 %v800_v27  ;;  %v812_v42 = vmul.f32 1.442695, %v784_v18  ;;  %v933_v50 = vsel %vm843_vm14, %v2228_v23, %v915_v28  ;;  %v751_v46 = vpop.f32.mrb[13].mxu0  ;;  %v2973_v47 = vadd.f32 %v749_v44, %v2917_v63  ;;  %v2142_v63 = vld [vmem:[%s3103_s5 + $0x250] ss:$8 sps:$4 sm:$0xff]  }
 0x254   :  { %2231 = vpow2.f32 %v802_v30  ;;  %1596 = vmatprep.mubr.bf16.mxu0 %v961_v33  ;;  %v951_v45 = vmul.f32 %v933_v50, %v2876_v32  ;;  %v814_v54 = vmul.f32 1.442695, %v785_v24  ;;  %1661 = vmatpush1.bf16.msra.mxu1 %v2133_v34  ;;  %v2966_v39 = vadd.f32 %v751_v46, %v230_v1  ;;  %v753_v56 = vpop.f32.mrb[14].mxu0  ;;  %v2154_v23 = vld [vmem:[%s3103_s5 + $0x290] ss:$8 sps:$4 sm:$0xff]  }
 0x255   :  { %2233 = vpow2.f32 %v812_v42  ;;  %1597 = vmatmul.mubr.bf16.gmra.mrb[20].mxu0 %v960_v51  ;;  %1662 = vmatprep.subr.bf16.mxu1 %v2138_v29  ;;  %v754_v19 = vpop.f32.mrb[15].mxu0  ;;  %v772_v61 = vand.u32 2147483647, %v2973_v47  ;;  %v2159_v34 = vld [vmem:[%s3103_s5 + $0x2a4] ss:$8 sps:$4 sm:$0xff]   ;;  %vm844_vm6 = vcmp.ge.f32.partialorder %v2973_v47, 0.0 }
 0x256   :  { %v963_v57 = vpack.c.bf16 %v951_v45, %v951_v45  ;;  %2235 = vpow2.f32 %v814_v54  ;;  %v773_v32 = vand.u32 2147483647, %v2966_v39  ;;  %v2162_v50 = vld [vmem:[%s3103_s5 + $0x2b4] ss:$8 sps:$4 sm:$0xff]   ;;  %v2166_v56 = vld [vmem:[%s3103_s5 + $0x2d0] ss:$8 sps:$4 sm:$0xff]  }
 0x257   :  { %v790_v40 = vsub.f32 0.0, %v772_v61  ;;  %v2168_v54 = vld [vmem:[%s3103_s5 + $0x2d4] ss:$8 sps:$4 sm:$0xff]   ;;  %v2171_v19 = vld [vmem:[%s3103_s5 + $0x2e4] ss:$8 sps:$4 sm:$0xff]   ;;  %vm845_vm5 = vcmp.ge.f32.partialorder %v2966_v39, 0.0 }
 0x258   :  { %1647 = vmatprep.mubr.bf16.mxu1 %v963_v57  ;;  %v791_v43 = vsub.f32 0.0, %v773_v32  ;;  %1663 = vmatpush1.bf16.msra.mxu1 %v2136_v55  ;;  %v2169_v57 = vld [vmem:[%s3103_s5 + $0x2e0] ss:$8 sps:$4 sm:$0xff]   ;;  %v2174_v32 = vld [vmem:[%s3103_s5 + $0x2f4] ss:$8 sps:$4 sm:$0xff]  }
 0x259   :  { %1648 = vmatmul.mubr.bf16.gmra.mrb[12].mxu1 %v962_v58  ;;  %1664 = vmatprep.subr.bf16.mxu1 %v2141_v38  ;;  %v824_v8 = vmul.f32 1.442695, %v790_v40 }
 0x25a   :  { %v826_v62 = vmul.f32 1.442695, %v791_v43 }
 0x25c   :  { %1665 = vmatpush1.bf16.msra.mxu1 %v2139_v59  ;;  %2237 = vpow2.f32 %v826_v62  ;;  %v2172_v59 = vld [vmem:[%s3103_s5 + $0x2f0] ss:$8 sps:$4 sm:$0xff]  }
 0x25d   :  { %v2230_v0 = vpop.eup %2229  ;;  %1666 = vmatprep.subr.bf16.mxu1 %v2144_v60 }
 0x25e   :  { %v2232_v2 = vpop.eup %2231  ;;  %v850_v52 = vadd.f32 1.0, %v2230_v0 }
 0x25f   :  { %v2234_v1 = vpop.eup %2233  ;;  %v851_v53 = vadd.f32 1.0, %v2232_v2 }
 0x260   :  { %v2236_v49 = vpop.eup %2235  ;;  %2239 = vrcp.f32 %v850_v52  ;;  %v856_v3 = vadd.f32 1.0, %v2234_v1  ;;  %1667 = vmatpush1.bf16.msra.mxu1 %v2142_v63 }
 0x261   :  { %2241 = vrcp.f32 %v851_v53  ;;  %v857_v6 = vadd.f32 1.0, %v2236_v49  ;;  %1668 = vmatprep.subr.bf16.mxu1 %v2147_v41 }
 0x262   :  { %2243 = vrcp.f32 %v856_v3 }
 0x263   :  { %2245 = vrcp.f32 %v857_v6 }
 0x264   :  { %1669 = vmatpush1.bf16.msra.mxu1 %v2145_v4  ;;  %2247 = vpow2.f32 %v824_v8  ;;  %v1062_v4 = vld [vmem:[%s3107_s6] sm:$0x3] }
 0x265   :  { %1670 = vmatprep.subr.bf16.mxu1 %v2150_v31  ;;  %v1067_v6 = vrot.slane %v1062_v4, %v2528_v37  ;;  %v1071_v31 = vrot.slane %v1062_v4, %v2522_v35  ;;  %v2253_v37 = vld [vmem:[%s3101_s0] sm:$0xff] }
 0x266   :  { %v2238_v12 = vpop.eup %2237 }
 0x267   :  { %v863_v28 = vadd.f32 1.0, %v2238_v12 }
 0x268   :  { %1671 = vmatpush1.bf16.msra.mxu1 %v2148_v9 }
 0x269   :  { %1672 = vmatprep.subr.bf16.mxu1 %v2153_v11  ;;  %2249 = vrcp.f32 %v863_v28  ;;  %v2255_v28 = vld [vmem:[%s3101_s0 + $0x10] sm:$0xff] }
 0x26a   :  { %v2240_v15 = vpop.eup %2239 }
 0x26b   :  { %v2242_v16 = vpop.eup %2241  ;;  %v904_v17 = vmul.f32 %v2240_v15, %v2230_v0 }
 0x26c   :  { %v2244_v20 = vpop.eup %2243  ;;  %v905_v22 = vmul.f32 %v2242_v16, %v2232_v2  ;;  %1673 = vmatpush1.bf16.msra.mxu1 %v2151_v5 }
 0x26d   :  { %v2246_v21 = vpop.eup %2245  ;;  %v922_v25 = vsel %vm832_vm15, %v2240_v15, %v904_v17  ;;  %v910_v26 = vmul.f32 %v2244_v20, %v2234_v1  ;;  %1674 = vmatprep.subr.bf16.mxu1 %v2156_v13 }
 0x26e   :  { %v923_v27 = vsel %vm833_vm1, %v2242_v16, %v905_v22  ;;  %v911_v18 = vmul.f32 %v2246_v21, %v2236_v49  ;;  %v940_v30 = vmul.f32 %v922_v25, %v2928_v48  ;;  %v2248_v51 = vpop.eup %2247 }
 0x26f   :  { %v928_v29 = vsel %vm838_vm3, %v2244_v20, %v910_v26  ;;  %v941_v44 = vmul.f32 %v923_v27, %v2934_v7  ;;  %v862_v45 = vadd.f32 1.0, %v2248_v51  ;;  %v2165_v7 = vld [vmem:[%s3103_s5 + $0x2c4] ss:$8 sps:$4 sm:$0xff]  }
 0x270   :  { %v946_v33 = vmul.f32 %v928_v29, %v2939_v10  ;;  %v929_v24 = vsel %vm839_vm4, %v2246_v21, %v911_v18  ;;  %1675 = vmatpush1.bf16.msra.mxu1 %v2154_v23  ;;  %v2160_v10 = vld [vmem:[%s3103_s5 + $0x2b0] ss:$8 sps:$4 sm:$0xff]   ;;  %v2254_v26 = vld [vmem:[%s3101_s0 + $0x8] sm:$0xff] }
 0x271   :  { %v947_v42 = vmul.f32 %v929_v24, %v2947_v14  ;;  %1676 = vmatprep.subr.bf16.mxu1 %v2159_v34  ;;  %v2163_v14 = vld [vmem:[%s3103_s5 + $0x2c0] ss:$8 sps:$4 sm:$0xff]   ;;  %2251 = vrcp.f32 %v862_v45 }
 0x272   :  { %v958_v46 = vpack.c.bf16 %v946_v33, %v940_v30  ;;  %v2256_v33 = vld [vmem:[%s3101_s0 + $0x18] sm:$0xff]  ;;  %v2257_v45 = vld [vmem:[%s3101_s0 + $0x20] sm:$0x3] }
 0x273   :  { %v959_v48 = vpack.c.bf16 %v947_v42, %v941_v44  ;;  %v2250_v55 = vpop.eup %2249 }
 0x274   :  { %1677 = vmatpush1.bf16.msra.mxu1 %v2157_v36  ;;  %v917_v38 = vmul.f32 %v2250_v55, %v2238_v12 }
 0x275   :  { %1678 = vmatprep.subr.bf16.mxu1 %v2162_v50  ;;  %1688 = vmatprep.mubr.bf16.mxu1 %v959_v48 }
 0x276   :  { %v935_v43 = vsel %vm845_vm5, %v2250_v55, %v917_v38 }
 0x277   :  { %v953_v60 = vmul.f32 %v935_v43, %v2966_v39 }
 0x278   :  { %1679 = vmatpush1.bf16.msra.mxu1 %v2160_v10 }
 0x279   :  { %1680 = vmatprep.subr.bf16.mxu1 %v2165_v7  ;;  %v965_v61 = vpack.c.bf16 %v953_v60, %v953_v60 }
 0x27b   :  { %v2252_v58 = vpop.eup %2251 }
 0x27c   :  { %1681 = vmatpush1.bf16.msra.mxu1 %v2163_v14  ;;  %v916_v62 = vmul.f32 %v2252_v58, %v2248_v51  ;;  %v2258_v14 = vld [vmem:[%s3101_s0 + $0x28] sm:$0x3] }
 0x27d   :  { %1682 = vmatprep.subr.bf16.mxu1 %v2168_v54 }
 0x27e   :  { %v934_v63 = vsel %vm844_vm6, %v2252_v58, %v916_v62 }
 0x27f   :  { %v952_v0 = vmul.f32 %v934_v63, %v2973_v47 }
 0x280   :  { %1683 = vmatpush1.bf16.msra.mxu1 %v2166_v56 }
 0x281   :  { %1684 = vmatprep.subr.bf16.mxu1 %v2171_v19  ;;  %v964_v41 = vpack.c.bf16 %v952_v0, %v952_v0 }
 0x284   :  { %1685 = vmatpush1.bf16.msra.mxu1 %v2169_v57 }
 0x285   :  { %1686 = vmatprep.subr.bf16.mxu1 %v2174_v32 }
 0x288   :  { %1687 = vmatpush1.bf16.msra.mxu1 %v2172_v59 }
 0x28b   :  { %1689 = vmatmul.mubr.bf16.vlgmr.msra.gmra.mrb[8].mxu1 %v958_v46 }
 0x28c   :  { %1698 = vmatprep.mubr.bf16.mxu1 %v965_v61 }
 0x293   :  { %1699 = vmatmul.mubr.bf16.gmra.mrb[12].mxu1 %v964_v41 }
 0x31d   :  { %v1588_v2 = vpop.f32.mrb[16].mxu0 }
 0x31e   :  { %v1590_v52 = vpop.f32.mrb[17].mxu0  ;;  %v1589_v8 = vadd.f32 %v1588_v2, %v1067_v6 }
 0x31f   :  { %v1592_v1 = vpop.f32.mrb[18].mxu0  ;;  %v1591_v47 = vadd.f32 %v1590_v52, %v1071_v31 }
 0x320   :  { %v1594_v53 = vpop.f32.mrb[19].mxu0  ;;  %v1593_v11 = vadd.f32 %v1592_v1, %v1067_v6 }
 0x321   :  { %v1595_v13 = vadd.f32 %v1594_v53, %v1071_v31 }
 0x328   :  { %v1598_v49 = vpop.f32.mrb[20].mxu0 }
 0x329   :  { %v1600_v3 = vpop.f32.mrb[21].mxu0  ;;  %v1599_v18 = vadd.f32 %v1598_v49, %v1067_v6 }
 0x32a   :  { %v1602_v40 = vpop.f32.mrb[22].mxu0  ;;  %v1601_v30 = vadd.f32 %v1600_v3, %v1071_v31 }
 0x32b   :  { %v1603_v39 = vpop.f32.mrb[23].mxu0 }
 0x35e   :  { %v1690_v9 = vpop.f32.mrb[8].mxu1 }
 0x35f   :  { %v1904_v5 = vadd.f32 %v1690_v9, %v1589_v8  ;;  %v1692_v12 = vpop.f32.mrb[9].mxu1 }
 0x360   :  { %v1906_v15 = vadd.f32 %v1692_v12, %v1591_v47  ;;  %v1694_v16 = vpop.f32.mrb[10].mxu1 }
 0x361   :  { %v1707_v17 = vmul.f32 0.5, %v1904_v5  ;;  %v1908_v20 = vadd.f32 %v1694_v16, %v1593_v11  ;;  %v1696_v22 = vpop.f32.mrb[11].mxu1 }
 0x362   :  { %v1708_v23 = vmul.f32 0.5, %v1906_v15  ;;  %v1910_v21 = vadd.f32 %v1696_v22, %v1595_v13 }
 0x363   :  { %v1713_v25 = vadd.f32 %v2253_v37, %v1707_v17  ;;  %v1709_v35 = vmul.f32 0.5, %v1908_v20 }
 0x364   :  { %v1714_v34 = vadd.f32 %v2254_v26, %v1708_v23  ;;  %v1710_v27 = vmul.f32 0.5, %v1910_v21 }
 0x365   :  { %1719 = vst [vmem:[%s3108_s7] sm:$0xff] %v1713_v25  ;;  %v1715_v29 = vadd.f32 %v2255_v28, %v1709_v35 }
 0x366   :  { %1720 = vst.msk [vmem:[%s3108_s7 + $0x8] sm:$0xff] %vm35_vm0, %v1714_v34  ;;  %v1716_v24 = vadd.f32 %v2256_v33, %v1710_v27  ;;  %v1700_v36 = vpop.f32.mrb[12].mxu1 }
 0x367   :  { %1721 = vst [vmem:[%s3108_s7 + $0x10] sm:$0xff] %v1715_v29  ;;  %v1912_v44 = vadd.f32 %v1700_v36, %v1599_v18  ;;  %v1702_v42 = vpop.f32.mrb[13].mxu1 }
 0x368   :  { %1722 = vst.msk [vmem:[%s3108_s7 + $0x18] sm:$0xff] %vm35_vm0, %v1716_v24  ;;  %v1914_v50 = vadd.f32 %v1702_v42, %v1601_v30  ;;  %v1704_v51 = vpop.f32.mrb[14].mxu1 }
 0x369   :  { %v1711_v46 = vmul.f32 0.5, %v1912_v44  ;;  %v1705_v48 = vpop.f32.mrb[15].mxu1 }
 0x36a   :  { %v1712_v10 = vmul.f32 0.5, %v1914_v50 }
 0x36b   :  { %v1717_v7 = vadd.f32 %v2257_v45, %v1711_v46 }
 0x36c   :  { %v1718_v54 = vadd.f32 %v2258_v14, %v1712_v10 }
 0x36d   :  { %1723 = vst [vmem:[%s3108_s7 + $0x20] sm:$0x3] %v1717_v7 }
 0x36e   :  { %1724 = vst.msk [vmem:[%s3108_s7 + $0x28] sm:$0x3] %vm46_vm2, %v1718_v54 }

// kernel: conformer_forward.35
= control target key start
LH: loop header
LB: loop body
LE: loop exit
PB: predicated region body
PF: predicated region fallthrough
CT: control target
= control target key end

     0   :  { %v246_v1 = vmov 0   ;;  %s322_s0 = inlined_call_operand.vmem [shape: f32[2,192], index: 0, kind: input, shape index: {}]   ;;  %s323_s1 = inlined_call_operand.vmem [shape: bf16[192,2], index: 1, kind: input, shape index: {}]   ;;  %s324_s2 = inlined_call_operand.vmem [shape: f32[1,2], index: 2, kind: input, shape index: {}]   ;;  %s325_s3 = inlined_call_operand.hbm [shape: f32[2,2], index: 3, kind: output, shape index: {}]  }
   0x1   :  { %v210_v0 = vld [vmem:[%s323_s1] sm:$0xff]   ;;  %137 = vmatprep.subr.bf16.mxu0 %v246_v1  ;;  %v211_v2 = vld [vmem:[%s323_s1 + $0x8] sm:$0xff]   ;;  %v212_v3 = vld [vmem:[%s323_s1 + $0x10] sm:$0xff]  }
   0x2   :  { %138 = vmatpush1.bf16.msra.mxu0 %v210_v0  ;;  %v213_v4 = vld [vmem:[%s323_s1 + $0x18] sm:$0xff]   ;;  %v193_v5 = vld.sshfl [vmem:[%s322_s0] sm:$0x33 pattern:$0x76325410] }
   0x3   :  { %139 = vmatprep.subr.bf16.mxu0 %v246_v1  ;;  %v25_v6 = vcombine.high %v193_v5, %v193_v5 }
   0x6   :  { %140 = vmatpush1.bf16.msra.mxu0 %v211_v2 }
   0x7   :  { %141 = vmatprep.subr.bf16.mxu0 %v246_v1 }
   0xa   :  { %142 = vmatpush1.bf16.msra.mxu0 %v212_v3 }
   0xb   :  { %143 = vmatprep.subr.bf16.mxu0 %v246_v1 }
   0xc   :  { %8 = vsyncpa [#allocation3], 0  ;;  %v214_v7 = vld [vmem:[%s323_s1 + $0x20] sm:$0xff]   ;;  %vm133_vm0 = vcmask 523264   ;;  %v29_v8 = vpack.c.bf16 %v25_v6, %v25_v6  ;;  %v215_v9 = vld [vmem:[%s323_s1 + $0x28] sm:$0xff]   ;;  %v28_v16 = vpack.c.bf16 %v193_v5, %v193_v5  ;;  %s247_s12 = smov [#allocation2]  }
   0xd   :  { %v216_v10 = vld [vmem:[%s323_s1 + $0x30] sm:$0xff]   ;;  %v217_v11 = vld [vmem:[%s323_s1 + $0x38] sm:$0xff]   ;;  %v218_v12 = vld [vmem:[%s323_s1 + $0x40] sm:$0xff]   ;;  %s185_s13 = sshll.u32 %s247_s12, 4  ;;  %vm177_vm1 = vcmask 9216   ;;  %s186_s13 = int_to_ptr.vmem [resolvable:$true] %s185_s13 }
   0xe   :  { %144 = vmatpush1.bf16.msra.mxu0 %v213_v4  ;;  %207 = vmatprep.mubr.msk.bf16.mxu0 %vm133_vm0, %v29_v8  ;;  %v219_v13 = vld [vmem:[%s323_s1 + $0x48] sm:$0xff]   ;;  %v220_v14 = vld [vmem:[%s323_s1 + $0x50] sm:$0xff]   ;;  %v221_v15 = vld [vmem:[%s323_s1 + $0x58] sm:$0xff]   ;;  %s222_s14 = scalar_lea.vmem %s186_s13, 32  ;;  %p227_p1 = scmp.lt.s32.totalorder %s186_s13, %s186_s13 }
   0xf   :  { %145 = vmatprep.subr.bf16.mxu0 %v246_v1  ;;  %v194_v17 = vld [vmem:[%s324_s2] ss:$0 sm:$0xff]  ;;  %p223_p0 = scmp.ne.s32.totalorder %s186_s13, %s222_s14  ;;  %p228_p2 = scmp.lt.s32.totalorder %s222_s14, %s222_s14 }
  0x11   :  { %p229_p3 = por %p228_p2, %p227_p1 }
  0x12   :  { %146 = vmatpush1.bf16.msra.mxu0 %v214_v7 }
  0x13   :  { %147 = vmatprep.subr.bf16.mxu0 %v246_v1  ;;  %p230_p4 = pnand %p229_p3, %p223_p0 }
  0x16   :  { %148 = vmatpush1.bf16.msra.mxu0 %v215_v9 }
  0x17   :  { %149 = vmatprep.subr.bf16.mxu0 %v246_v1 }
  0x1a   :  { %150 = vmatpush1.bf16.msra.mxu0 %v216_v10 }
  0x1b   :  { %151 = vmatprep.subr.bf16.mxu0 %v246_v1 }
  0x1e   :  { %152 = vmatpush1.bf16.msra.mxu0 %v217_v11 }
  0x1f   :  { %153 = vmatprep.subr.bf16.mxu0 %v246_v1 }
  0x22   :  { %154 = vmatpush1.bf16.msra.mxu0 %v218_v12 }
  0x23   :  { %155 = vmatprep.subr.bf16.mxu0 %v246_v1 }
  0x26   :  { %156 = vmatpush1.bf16.msra.mxu0 %v219_v13 }
  0x27   :  { %157 = vmatprep.subr.bf16.mxu0 %v246_v1 }
  0x2a   :  { %158 = vmatpush1.bf16.msra.mxu0 %v220_v14 }
  0x2b   :  { %159 = vmatprep.subr.bf16.mxu0 %v246_v1 }
  0x2e   :  { %160 = vmatpush1.bf16.msra.mxu0 %v221_v15 }
  0x31   :  { %170 = vmatmul.mubr.bf16.vlgmr.msra.gmra.mrb[0].mxu0 %v28_v16 }
 0x104   :  { %v171_v18 = vpop.f32.mrb[0].mxu0 }
 0x105   :  { %v172_v19 = vadd.f32 %v194_v17, %v171_v18  ;;  %v173_v20 = vpop.f32.mrb[1].mxu0 }
 0x106   :  { %v174_v21 = vpop.f32.mrb[2].mxu0 }
 0x107   :  { %v175_v22 = vpop.f32.mrb[3].mxu0  ;;  %178 = vst.msk [vmem:[#allocation2] sm:$0x3] %vm177_vm1, %v172_v19 }
 0x108   :  { %233 = shalt.err (!%p230_p4)
}
 0x109   :  { %s234_s2 = scalar_lea.hbm %s325_s3, 32 }
 0x10a   :  { %p235_p5 = scmp.ne.s32.totalorder %s325_s3, %s234_s2  ;;  %p238_p6 = scmp.lt.u32.totalorder %s234_s2, %s325_s3 }
 0x10c   :  { %p240_p7 = pnand %p238_p6, %p235_p5 }
 0x10e   :  { %243 = shalt.err (!%p240_p7)
}
 0x10f   :  { %188 = dma.vmem_to_hbm [thread:$0]  %s186_s13, 32, %s325_s3, [#allocation3]  }
 0x110   :  { %244 = dma.done.wait [#allocation3], 32  }
 0x111   :  { %245 = vsyncadd [#allocation3], 4294967264 }
 0x112   :  { %192 = vsyncpa [#allocation3], 1 }

// kernel: conformer_forward.22
= control target key start
LH: loop header
LB: loop body
LE: loop exit
PB: predicated region body
PF: predicated region fallthrough
CT: control target
= control target key end

     0   :  { %vm41_vm0 = vcmask 523264   ;;  %vm50_vm1 = vcmask 1041408   ;;  %vm52_vm2 = vcmask 517120   ;;  %s3233_s0 = inlined_call_operand.vmem [shape: f32[18,192], index: 0, kind: input, shape index: {}]   ;;  %s3234_s3 = inlined_call_operand.vmem [shape: bf16[192,768], index: 3, kind: input, shape index: {}]   ;;  %s3235_s5 = inlined_call_operand.vmem [shape: bf16[768,192], index: 5, kind: input, shape index: {}]   ;;  %s3236_s1 = inlined_call_operand.vmem [shape: f32[1,192], index: 1, kind: input, shape index: {}]   ;;  %s3237_s2 = inlined_call_operand.vmem [shape: f32[1,192], index: 2, kind: input, shape index: {}]   ;;  %s3238_s4 = inlined_call_operand.vmem [shape: f32[1,768], index: 4, kind: input, shape index: {}]   ;;  %s3239_s6 = inlined_call_operand.vmem [shape: f32[1,192], index: 6, kind: input, shape index: {}]   ;;  %s3240_s7 = inlined_call_operand.vmem [shape: f32[1,192], index: 7, kind: input, shape index: {}]   ;;  %s3241_s8 = inlined_call_operand.vmem [shape: f32[1,192], index: 8, kind: input, shape index: {}]   ;;  %s3242_s9 = inlined_call_operand.vmem [shape: f32[18,192], index: 9, kind: output, shape index: {}]  }
   0x1   :  { %v2416_v0 = vld [vmem:[%s3233_s0] sm:$0xff]  ;;  %v2421_v1 = vld [vmem:[%s3233_s0 + $0x8] sm:$0xff]  ;;  %v2438_v6 = vld [vmem:[%s3233_s0 + $0x10] sm:$0xff] }
   0x2   :  { %v2426_v2 = vld [vmem:[%s3233_s0 + $0x20] sm:$0x3]  ;;  %v42_v3 = vsel %vm41_vm0, %v2421_v1, 0.0  ;;  %v38_v4 = vld [vmem:[%s3233_s0 + $0x28] sm:$0x3]  ;;  %v2443_v7 = vld [vmem:[%s3233_s0 + $0x18] sm:$0xff] }
   0x3   :  { %v51_v5 = vsel %vm50_vm1, %v2426_v2, 0.0  ;;  %v43_v8 = vadd.f32 %v42_v3, %v2416_v0  ;;  %v53_v9 = vsel %vm52_vm2, %v38_v4, 0.0  ;;  %v46_v10 = vsel %vm41_vm0, %v2443_v7, 0.0  ;;  %v2021_v13 = vld [vmem:[%s3234_s3 + $0x4] ss:$24 sps:$4 sm:$0xff]  }
   0x4   :  { %v54_v11 = vadd.f32 %v53_v9, %v51_v5  ;;  %v47_v12 = vadd.f32 %v46_v10, %v2438_v6  ;;  %v2023_v14 = vld [vmem:[%s3234_s3] ss:$24 sps:$4 sm:$0xff]   ;;  %609 = vmatprep.subr.bf16.mxu0 %v2021_v13  ;;  %v2024_v15 = vld [vmem:[%s3234_s3 + $0xc] ss:$24 sps:$4 sm:$0xff]   ;;  %v2029_v18 = vld [vmem:[%s3234_s3 + $0x30] ss:$24 sps:$4 sm:$0xff]  }
   0x5   :  { %44 = vadd.xlane.f32.xlu0 %v43_v8  ;;  %v2026_v16 = vld [vmem:[%s3234_s3 + $0x8] ss:$24 sps:$4 sm:$0xff]   ;;  %610 = vmatpush1.bf16.msra.mxu0 %v2023_v14  ;;  %v2027_v17 = vld [vmem:[%s3234_s3 + $0x34] ss:$24 sps:$4 sm:$0xff]   ;;  %v2032_v20 = vld [vmem:[%s3234_s3 + $0x38] ss:$24 sps:$4 sm:$0xff]  }
   0x6   :  { %55 = vadd.xlane.f32.xlu1 %v54_v11  ;;  %660 = vmatprep.subr.bf16.mxu1 %v2024_v15  ;;  %v2030_v19 = vld [vmem:[%s3234_s3 + $0x3c] ss:$24 sps:$4 sm:$0xff]   ;;  %v2035_v22 = vld [vmem:[%s3234_s3 + $0x60] ss:$24 sps:$4 sm:$0xff]   ;;  %v2036_v23 = vld [vmem:[%s3234_s3 + $0x6c] ss:$24 sps:$4 sm:$0xff]  }
   0x7   :  { %661 = vmatpush1.bf16.msra.mxu1 %v2026_v16  ;;  %611 = vmatprep.subr.bf16.mxu0 %v2027_v17  ;;  %v2033_v21 = vld [vmem:[%s3234_s3 + $0x64] ss:$24 sps:$4 sm:$0xff]   ;;  %v2039_v24 = vld [vmem:[%s3234_s3 + $0x94] ss:$24 sps:$4 sm:$0xff]   ;;  %v2038_v25 = vld [vmem:[%s3234_s3 + $0x68] ss:$24 sps:$4 sm:$0xff]  }
   0x8   :  { %662 = vmatprep.subr.bf16.mxu1 %v2030_v19  ;;  %v2042_v26 = vld [vmem:[%s3234_s3 + $0x9c] ss:$24 sps:$4 sm:$0xff]   ;;  %v2041_v27 = vld [vmem:[%s3234_s3 + $0x90] ss:$24 sps:$4 sm:$0xff]   ;;  %v2047_v30 = vld [vmem:[%s3234_s3 + $0xc0] ss:$24 sps:$4 sm:$0xff]  }
   0x9   :  { %48 = vadd.xlane.f32.xlu0 %v47_v12  ;;  %612 = vmatpush1.bf16.msra.mxu0 %v2029_v18  ;;  %v2044_v28 = vld [vmem:[%s3234_s3 + $0x98] ss:$24 sps:$4 sm:$0xff]   ;;  %v2045_v29 = vld [vmem:[%s3234_s3 + $0xc4] ss:$24 sps:$4 sm:$0xff]   ;;  %v2051_v32 = vld [vmem:[%s3234_s3 + $0xf4] ss:$24 sps:$4 sm:$0xff]  }
   0xa   :  { %613 = vmatprep.subr.bf16.mxu0 %v2033_v21  ;;  %v2048_v31 = vld [vmem:[%s3234_s3 + $0xcc] ss:$24 sps:$4 sm:$0xff]   ;;  %v2050_v33 = vld [vmem:[%s3234_s3 + $0xc8] ss:$24 sps:$4 sm:$0xff]   ;;  %v2054_v60 = vld [vmem:[%s3234_s3 + $0xfc] ss:$24 sps:$4 sm:$0xff]  }
   0xb   :  { %663 = vmatpush1.bf16.msra.mxu1 %v2032_v20  ;;  %v2053_v59 = vld [vmem:[%s3234_s3 + $0xf0] ss:$24 sps:$4 sm:$0xff]   ;;  %v2057_v62 = vld [vmem:[%s3234_s3 + $0x124] ss:$24 sps:$4 sm:$0xff]   ;;  %v2059_v63 = vld [vmem:[%s3234_s3 + $0x120] ss:$24 sps:$4 sm:$0xff]  }
   0xc   :  { %664 = vmatprep.subr.bf16.mxu1 %v2036_v23  ;;  %v2056_v61 = vld [vmem:[%s3234_s3 + $0xf8] ss:$24 sps:$4 sm:$0xff]   ;;  %v2072_v8 = vld [vmem:[%s3234_s3 + $0x18c] ss:$24 sps:$4 sm:$0xff]   ;;  %v2074_v9 = vld [vmem:[%s3234_s3 + $0x188] ss:$24 sps:$4 sm:$0xff]  }
   0xd   :  { %614 = vmatpush1.bf16.msra.mxu0 %v2035_v22  ;;  %v2065_v3 = vld [vmem:[%s3234_s3 + $0x150] ss:$24 sps:$4 sm:$0xff]   ;;  %v2075_v10 = vld [vmem:[%s3234_s3 + $0x1b4] ss:$24 sps:$4 sm:$0xff]   ;;  %v2081_v14 = vld [vmem:[%s3234_s3 + $0x1e4] ss:$24 sps:$4 sm:$0xff]  }
   0xe   :  { %615 = vmatprep.subr.bf16.mxu0 %v2039_v24  ;;  %v2068_v5 = vld [vmem:[%s3234_s3 + $0x158] ss:$24 sps:$4 sm:$0xff]   ;;  %v2078_v11 = vld [vmem:[%s3234_s3 + $0x1bc] ss:$24 sps:$4 sm:$0xff]   ;;  %v2084_v15 = vld [vmem:[%s3234_s3 + $0x1ec] ss:$24 sps:$4 sm:$0xff]  }
   0xf   :  { %665 = vmatpush1.bf16.msra.mxu1 %v2038_v25  ;;  %v2077_v12 = vld [vmem:[%s3234_s3 + $0x1b0] ss:$24 sps:$4 sm:$0xff]   ;;  %v2083_v16 = vld [vmem:[%s3234_s3 + $0x1e0] ss:$24 sps:$4 sm:$0xff]   ;;  %v2087_v18 = vld [vmem:[%s3234_s3 + $0x214] ss:$24 sps:$4 sm:$0xff]  }
  0x10   :  { %666 = vmatprep.subr.bf16.mxu1 %v2042_v26  ;;  %v2080_v13 = vld [vmem:[%s3234_s3 + $0x1b8] ss:$24 sps:$4 sm:$0xff]   ;;  %v2086_v17 = vld [vmem:[%s3234_s3 + $0x1e8] ss:$24 sps:$4 sm:$0xff]   ;;  %v2090_v19 = vld [vmem:[%s3234_s3 + $0x21c] ss:$24 sps:$4 sm:$0xff]  }
  0x11   :  { %616 = vmatpush1.bf16.msra.mxu0 %v2041_v27  ;;  %v2089_v20 = vld [vmem:[%s3234_s3 + $0x210] ss:$24 sps:$4 sm:$0xff]   ;;  %v2095_v22 = vld [vmem:[%s3234_s3 + $0x14] ss:$24 sps:$4 sm:$0xff]  }
  0x12   :  { %617 = vmatprep.subr.bf16.mxu0 %v2045_v29  ;;  %v2092_v21 = vld [vmem:[%s3234_s3 + $0x218] ss:$24 sps:$4 sm:$0xff]   ;;  %v2131_v23 = vld [vmem:[%s3235_s5 + $0x104] ss:$8 sps:$4 sm:$0xff]   ;;  %v102_v29 = vlaneseq }
  0x13   :  { %667 = vmatpush1.bf16.msra.mxu1 %v2044_v28 }
  0x14   :  { %668 = vmatprep.subr.bf16.mxu1 %v2048_v31 }
  0x15   :  { %618 = vmatpush1.bf16.msra.mxu0 %v2047_v30 }
  0x16   :  { %619 = vmatprep.subr.bf16.mxu0 %v2051_v32 }
  0x17   :  { %669 = vmatpush1.bf16.msra.mxu1 %v2050_v33 }
  0x18   :  { %670 = vmatprep.subr.bf16.mxu1 %v2054_v60 }
  0x19   :  { %620 = vmatpush1.bf16.msra.mxu0 %v2053_v59 }
  0x1a   :  { %621 = vmatprep.subr.bf16.mxu0 %v2057_v62 }
  0x1b   :  { %671 = vmatpush1.bf16.msra.mxu1 %v2056_v61 }
  0x1d   :  { %622 = vmatpush1.bf16.msra.mxu0 %v2059_v63 }
  0x92   :  { %v45_v34 = vpop.xlane.xlu0 %44 }
  0x93   :  { %v58_v35 = vmul.f32 0.0052083335, %v45_v34  ;;  %v56_v36 = vpop.xlane.xlu1 %55  ;;  %v2633_v34 = vshrl.u32 %v102_v29, 7  ;;  %v2114_v29 = vld [vmem:[%s3234_s3 + $0x160] ss:$24 sps:$4 sm:$0xff]  }
  0x94   :  { %v60_v37 = vmul.f32 0.0052083335, %v56_v36  ;;  %v39_v36 = vld [vmem:[%s3236_s1] sm:$0x3] }
  0x95   :  { %v2514_v38 = vsub.f32 %v2416_v0, %v58_v35  ;;  %v2517_v39 = vsub.f32 %v2421_v1, %v58_v35  ;;  %v2060_v0 = vld [vmem:[%s3234_s3 + $0x12c] ss:$24 sps:$4 sm:$0xff]   ;;  %v2062_v1 = vld [vmem:[%s3234_s3 + $0x128] ss:$24 sps:$4 sm:$0xff]   ;;  %v2636_v35 = vsub.s32 1, %v2633_v34 }
  0x96   :  { %v2520_v40 = vsub.f32 %v2426_v2, %v60_v37  ;;  %v2522_v41 = vsub.f32 %v38_v4, %v60_v37  ;;  %v49_v42 = vpop.xlane.xlu0 %48  ;;  %672 = vmatprep.subr.bf16.mxu1 %v2060_v0  ;;  %v2063_v2 = vld [vmem:[%s3234_s3 + $0x154] ss:$24 sps:$4 sm:$0xff]   ;;  %v2642_v37 = vsub.s32 0, %v2633_v34 }
  0x97   :  { %v59_v43 = vmul.f32 0.0052083335, %v49_v42  ;;  %v67_v44 = vmul.f32 %v2514_v38, %v2514_v38  ;;  %v68_v45 = vmul.f32 %v2517_v39, %v2517_v39  ;;  %673 = vmatpush1.bf16.msra.mxu1 %v2062_v1  ;;  %v2066_v4 = vld [vmem:[%s3234_s3 + $0x15c] ss:$24 sps:$4 sm:$0xff]   ;;  %623 = vmatprep.subr.bf16.mxu0 %v2063_v2 }
  0x98   :  { %v71_v46 = vmul.f32 %v2520_v40, %v2520_v40  ;;  %v72_v47 = vmul.f32 %v2522_v41, %v2522_v41  ;;  %624 = vmatpush1.bf16.msra.mxu0 %v2065_v3  ;;  %674 = vmatprep.subr.bf16.mxu1 %v2066_v4  ;;  %v2129_v4 = vld [vmem:[%s3235_s5 + $0x100] ss:$8 sps:$4 sm:$0xff]  }
  0x99   :  { %v2533_v48 = vsub.f32 %v2438_v6, %v59_v43  ;;  %v2536_v49 = vsub.f32 %v2443_v7, %v59_v43  ;;  %v73_v50 = vsel %vm41_vm0, %v68_v45, 0.0  ;;  %v2069_v6 = vld [vmem:[%s3234_s3 + $0x184] ss:$24 sps:$4 sm:$0xff]   ;;  %v2071_v7 = vld [vmem:[%s3234_s3 + $0x180] ss:$24 sps:$4 sm:$0xff]  }
  0x9a   :  { %v74_v51 = vadd.f32 %v73_v50, %v67_v44  ;;  %v81_v52 = vsel %vm50_vm1, %v71_v46, 0.0  ;;  %v82_v53 = vsel %vm52_vm2, %v72_v47, 0.0  ;;  %625 = vmatprep.subr.bf16.mxu0 %v2069_v6  ;;  %v109_v44 = vrot.slane %v39_v36, %v2636_v35  ;;  %v40_v45 = vld [vmem:[%s3237_s2] sm:$0x3] }
  0x9b   :  { %v69_v54 = vmul.f32 %v2533_v48, %v2533_v48  ;;  %v70_v55 = vmul.f32 %v2536_v49, %v2536_v49  ;;  %v83_v56 = vadd.f32 %v82_v53, %v81_v52  ;;  %675 = vmatpush1.bf16.msra.mxu1 %v2068_v5  ;;  %v105_v47 = vrot.slane %v39_v36, %v2642_v37  ;;  %v2137_v5 = vld [vmem:[%s3235_s5 + $0x114] ss:$8 sps:$4 sm:$0xff]   ;;  %v2096_v6 = vld [vmem:[%s3234_s3 + $0x40] ss:$24 sps:$4 sm:$0xff]  }
  0x9c   :  { %75 = vadd.xlane.f32.xlu1 %v74_v51  ;;  %676 = vmatprep.subr.bf16.mxu1 %v2072_v8  ;;  %v126_v53 = vrot.slane %v40_v45, %v2636_v35  ;;  %v2125_v36 = vld [vmem:[%s3234_s3 + $0x1f4] ss:$24 sps:$4 sm:$0xff]  }
  0x9d   :  { %v77_v57 = vsel %vm41_vm0, %v70_v55, 0.0  ;;  %626 = vmatpush1.bf16.msra.mxu0 %v2071_v7  ;;  %v2101_v7 = vld [vmem:[%s3234_s3 + $0x74] ss:$24 sps:$4 sm:$0xff]  }
  0x9e   :  { %v78_v58 = vadd.f32 %v77_v57, %v69_v54  ;;  %627 = vmatprep.subr.bf16.mxu0 %v2075_v10  ;;  %v122_v57 = vrot.slane %v40_v45, %v2642_v37  ;;  %v2099_v10 = vld [vmem:[%s3234_s3 + $0x70] ss:$24 sps:$4 sm:$0xff]   ;;  %v2134_v45 = vld [vmem:[%s3235_s5 + $0x4] ss:$8 sps:$4 sm:$0xff]  }
  0x9f   :  { %677 = vmatpush1.bf16.msra.mxu1 %v2074_v9  ;;  %v2135_v9 = vld [vmem:[%s3235_s5 + $0x110] ss:$8 sps:$4 sm:$0xff]  }
  0xa0   :  { %84 = vadd.xlane.f32.xlu1 %v83_v56  ;;  %79 = vadd.xlane.f32.xlu0 %v78_v58 }
  0xa1   :  { %678 = vmatprep.subr.bf16.mxu1 %v2078_v11  ;;  %628 = vmatpush1.bf16.msra.mxu0 %v2077_v12  ;;  %v2104_v12 = vld [vmem:[%s3234_s3 + $0xa4] ss:$24 sps:$4 sm:$0xff]  }
  0xa2   :  { %629 = vmatprep.subr.bf16.mxu0 %v2081_v14  ;;  %v2141_v14 = vld [vmem:[%s3235_s5 + $0x120] ss:$8 sps:$4 sm:$0xff]  }
  0xa3   :  { %679 = vmatpush1.bf16.msra.mxu1 %v2080_v13  ;;  %v2143_v13 = vld [vmem:[%s3235_s5 + $0x124] ss:$8 sps:$4 sm:$0xff]  }
  0xa4   :  { %680 = vmatprep.subr.bf16.mxu1 %v2084_v15  ;;  %v2149_v15 = vld [vmem:[%s3235_s5 + $0x134] ss:$8 sps:$4 sm:$0xff]  }
  0xa5   :  { %630 = vmatpush1.bf16.msra.mxu0 %v2083_v16  ;;  %v2102_v16 = vld [vmem:[%s3234_s3 + $0xa0] ss:$24 sps:$4 sm:$0xff]  }
  0xa6   :  { %631 = vmatprep.subr.bf16.mxu0 %v2087_v18  ;;  %v2147_v18 = vld [vmem:[%s3235_s5 + $0x130] ss:$8 sps:$4 sm:$0xff]  }
  0xa7   :  { %681 = vmatpush1.bf16.msra.mxu1 %v2086_v17  ;;  %v2107_v17 = vld [vmem:[%s3234_s3 + $0xd4] ss:$24 sps:$4 sm:$0xff]  }
  0xa8   :  { %682 = vmatprep.subr.bf16.mxu1 %v2090_v19  ;;  %v2155_v19 = vld [vmem:[%s3235_s5 + $0x144] ss:$8 sps:$4 sm:$0xff]  }
  0xa9   :  { %632 = vmatpush1.bf16.msra.mxu0 %v2089_v20  ;;  %v2105_v20 = vld [vmem:[%s3234_s3 + $0xd0] ss:$24 sps:$4 sm:$0xff]  }
  0xaa   :  { %711 = vmatprep.subr.bf16.mxu0 %v2095_v22  ;;  %v2153_v22 = vld [vmem:[%s3235_s5 + $0x140] ss:$8 sps:$4 sm:$0xff]  }
  0xab   :  { %683 = vmatpush1.bf16.msra.mxu1 %v2092_v21  ;;  %v2110_v21 = vld [vmem:[%s3234_s3 + $0x104] ss:$24 sps:$4 sm:$0xff]  }
  0xac   :  { %1611 = vmatprep.subr.bf16.mxu1 %v2131_v23  ;;  %v2161_v23 = vld [vmem:[%s3235_s5 + $0x154] ss:$8 sps:$4 sm:$0xff]  }
 0x129   :  { %v76_v24 = vpop.xlane.xlu1 %75 }
 0x12a   :  { %v86_v25 = vmul.f32 0.0052083335, %v76_v24  ;;  %v2108_v24 = vld [vmem:[%s3234_s3 + $0x100] ss:$24 sps:$4 sm:$0xff]  }
 0x12c   :  { %v89_v26 = vadd.f32 1e-05, %v86_v25  ;;  %v2113_v25 = vld [vmem:[%s3234_s3 + $0x134] ss:$24 sps:$4 sm:$0xff]  }
 0x12d   :  { %v85_v27 = vpop.xlane.xlu1 %84  ;;  %v80_v28 = vpop.xlane.xlu0 %79 }
 0x12e   :  { %2273 = vrsqrt.f32 %v89_v26  ;;  %v88_v30 = vmul.f32 0.0052083335, %v85_v27  ;;  %v87_v31 = vmul.f32 0.0052083335, %v80_v28  ;;  %v2159_v26 = vld [vmem:[%s3235_s5 + $0x150] ss:$8 sps:$4 sm:$0xff]  }
 0x12f   :  { %v2111_v27 = vld [vmem:[%s3234_s3 + $0x130] ss:$24 sps:$4 sm:$0xff]   ;;  %v2116_v28 = vld [vmem:[%s3234_s3 + $0x164] ss:$24 sps:$4 sm:$0xff]  }
 0x130   :  { %v91_v32 = vadd.f32 1e-05, %v88_v30  ;;  %v90_v33 = vadd.f32 1e-05, %v87_v31  ;;  %v2119_v30 = vld [vmem:[%s3234_s3 + $0x194] ss:$24 sps:$4 sm:$0xff]  }
 0x131   :  { %v2117_v31 = vld [vmem:[%s3234_s3 + $0x190] ss:$24 sps:$4 sm:$0xff]  }
 0x132   :  { %2275 = vrsqrt.f32 %v91_v32  ;;  %v2122_v32 = vld [vmem:[%s3234_s3 + $0x1c4] ss:$24 sps:$4 sm:$0xff]  }
 0x133   :  { %2277 = vrsqrt.f32 %v90_v33  ;;  %v2120_v33 = vld [vmem:[%s3234_s3 + $0x1c0] ss:$24 sps:$4 sm:$0xff]  }
 0x138   :  { %v2274_v42 = vpop.eup %2273 }
 0x139   :  { %v96_v43 = vmul.f32 %v2274_v42, %v2517_v39  ;;  %v95_v46 = vmul.f32 %v2274_v42, %v2514_v38  ;;  %v2123_v42 = vld [vmem:[%s3234_s3 + $0x1f0] ss:$24 sps:$4 sm:$0xff]  }
 0x13b   :  { %v113_v52 = vmul.f32 %v109_v44, %v96_v43  ;;  %v112_v56 = vmul.f32 %v105_v47, %v95_v46  ;;  %v2128_v43 = vld [vmem:[%s3234_s3 + $0x224] ss:$24 sps:$4 sm:$0xff]   ;;  %v2132_v46 = vld [vmem:[%s3235_s5] ss:$8 sps:$4 sm:$0xff]  }
 0x13c   :  { %v2276_v50 = vpop.eup %2275 }
 0x13d   :  { %v2278_v51 = vpop.eup %2277  ;;  %v100_v54 = vmul.f32 %v2276_v50, %v2522_v41  ;;  %v130_v38 = vadd.f32 %v126_v53, %v113_v52  ;;  %v99_v61 = vmul.f32 %v2276_v50, %v2520_v40  ;;  %v129_v63 = vadd.f32 %v122_v57, %v112_v56  ;;  %v2093_v41 = vld [vmem:[%s3234_s3 + $0x10] ss:$24 sps:$4 sm:$0xff]   ;;  %v2164_v56 = vld [vmem:[%s3235_s5 + $0x54] ss:$8 sps:$4 sm:$0xff]  }
 0x13e   :  { %v98_v55 = vmul.f32 %v2278_v51, %v2536_v49  ;;  %v97_v39 = vmul.f32 %v2278_v51, %v2533_v48  ;;  %v2098_v48 = vld [vmem:[%s3234_s3 + $0x44] ss:$24 sps:$4 sm:$0xff]   ;;  %v2138_v50 = vld [vmem:[%s3235_s5 + $0x10] ss:$8 sps:$4 sm:$0xff]   ;;  %v2144_v52 = vld [vmem:[%s3235_s5 + $0x20] ss:$8 sps:$4 sm:$0xff]  }
 0x13f   :  { %v117_v58 = vmul.f32 %v109_v44, %v100_v54  ;;  %v116_v3 = vmul.f32 %v105_v47, %v99_v61  ;;  %v2146_v51 = vld [vmem:[%s3235_s5 + $0x24] ss:$8 sps:$4 sm:$0xff]   ;;  %v2150_v54 = vld [vmem:[%s3235_s5 + $0x30] ss:$8 sps:$4 sm:$0xff]   ;;  %v2173_v61 = vld [vmem:[%s3235_s5 + $0x174] ss:$8 sps:$4 sm:$0xff]  }
 0x140   :  { %v115_v59 = vmul.f32 %v109_v44, %v98_v55  ;;  %v114_v60 = vmul.f32 %v105_v47, %v97_v39  ;;  %v2126_v44 = vld [vmem:[%s3234_s3 + $0x220] ss:$24 sps:$4 sm:$0xff]   ;;  %v2140_v47 = vld [vmem:[%s3235_s5 + $0x14] ss:$8 sps:$4 sm:$0xff]   ;;  %v2158_v55 = vld [vmem:[%s3235_s5 + $0x44] ss:$8 sps:$4 sm:$0xff]  }
 0x141   :  { %v134_v1 = vadd.f32 %v126_v53, %v117_v58  ;;  %v133_v8 = vadd.f32 %v122_v57, %v116_v3  ;;  %v2156_v39 = vld [vmem:[%s3235_s5 + $0x40] ss:$8 sps:$4 sm:$0xff]   ;;  %v2167_v58 = vld [vmem:[%s3235_s5 + $0x164] ss:$8 sps:$4 sm:$0xff]   ;;  %v2183_v3 = vld [vmem:[%s3235_s5 + $0x190] ss:$8 sps:$4 sm:$0xff]  }
 0x142   :  { %v132_v62 = vadd.f32 %v126_v53, %v115_v59  ;;  %v131_v0 = vadd.f32 %v122_v57, %v114_v60  ;;  %v2152_v53 = vld [vmem:[%s3235_s5 + $0x34] ss:$8 sps:$4 sm:$0xff]   ;;  %v2162_v57 = vld [vmem:[%s3235_s5 + $0x50] ss:$8 sps:$4 sm:$0xff]   ;;  %v2165_v59 = vld [vmem:[%s3235_s5 + $0x160] ss:$8 sps:$4 sm:$0xff]  }
 0x143   :  { %v2667_v40 = vpack.c.bf16 %v134_v1, %v134_v1  ;;  %v2693_v11 = vpack.c.bf16 %v133_v8, %v133_v8  ;;  %v2170_v60 = vld [vmem:[%s3235_s5 + $0x64] ss:$8 sps:$4 sm:$0xff]   ;;  %v2192_v8 = vld [vmem:[%s3235_s5 + $0xa0] ss:$8 sps:$4 sm:$0xff]  }
 0x144   :  { %v136_v2 = vpack.c.bf16 %v132_v62, %v130_v38  ;;  %v2660_v49 = vpack.c.bf16 %v131_v0, %v129_v63  ;;  %v2168_v38 = vld [vmem:[%s3235_s5 + $0x60] ss:$8 sps:$4 sm:$0xff]   ;;  %v2171_v62 = vld [vmem:[%s3235_s5 + $0x170] ss:$8 sps:$4 sm:$0xff]   ;;  %v2176_v63 = vld [vmem:[%s3235_s5 + $0x74] ss:$8 sps:$4 sm:$0xff]  }
 0x145   :  { %v2174_v0 = vld [vmem:[%s3235_s5 + $0x70] ss:$8 sps:$4 sm:$0xff]   ;;  %v2179_v1 = vld [vmem:[%s3235_s5 + $0x184] ss:$8 sps:$4 sm:$0xff]  }
 0x146   :  { %1899 = vmatprep.mubr.msk.bf16.mxu0 %vm41_vm0, %v136_v2  ;;  %1901 = vmatprep.mubr.msk.bf16.mxu1 %vm41_vm0, %v136_v2 }
 0x147   :  { %642 = vmatmul.mubr.bf16.vlgmr.msra.gmra.mrb[0].mxu0 %v2660_v49  ;;  %693 = vmatmul.mubr.bf16.vlgmr.msra.gmra.mrb[0].mxu1 %v2660_v49 }
 0x148   :  { %712 = vmatpush1.bf16.msra.mxu0 %v2093_v41  ;;  %1900 = vmatprep.mubr.msk.bf16.mxu0 %vm41_vm0, %v2667_v40  ;;  %v2182_v41 = vld [vmem:[%s3235_s5 + $0x84] ss:$8 sps:$4 sm:$0xff]  }
 0x149   :  { %1902 = vmatprep.mubr.msk.bf16.mxu1 %vm41_vm0, %v2667_v40  ;;  %713 = vmatprep.subr.bf16.mxu0 %v2098_v48  ;;  %v2185_v48 = vld [vmem:[%s3235_s5 + $0x194] ss:$8 sps:$4 sm:$0xff]  }
 0x14a   :  { %1612 = vmatpush1.bf16.msra.mxu1 %v2129_v4  ;;  %v2186_v4 = vld [vmem:[%s3235_s5 + $0x90] ss:$8 sps:$4 sm:$0xff]  }
 0x14b   :  { %1613 = vmatprep.subr.bf16.mxu1 %v2137_v5  ;;  %v2191_v5 = vld [vmem:[%s3235_s5 + $0x1a4] ss:$8 sps:$4 sm:$0xff]  }
 0x14c   :  { %714 = vmatpush1.bf16.msra.mxu0 %v2096_v6  ;;  %v2189_v6 = vld [vmem:[%s3235_s5 + $0x1a0] ss:$8 sps:$4 sm:$0xff]  }
 0x14d   :  { %715 = vmatprep.subr.bf16.mxu0 %v2101_v7  ;;  %v2194_v7 = vld [vmem:[%s3235_s5 + $0xa4] ss:$8 sps:$4 sm:$0xff]  }
 0x14e   :  { %1614 = vmatpush1.bf16.msra.mxu1 %v2135_v9  ;;  %v2197_v9 = vld [vmem:[%s3235_s5 + $0x1b4] ss:$8 sps:$4 sm:$0xff]  }
 0x14f   :  { %652 = vmatmul.mubr.bf16.gmra.mrb[4].mxu0 %v2693_v11  ;;  %703 = vmatmul.mubr.bf16.gmra.mrb[4].mxu1 %v2693_v11 }
 0x150   :  { %716 = vmatpush1.bf16.msra.mxu0 %v2099_v10  ;;  %1903 = vmatprep.mubr.msk.bf16.mxu0 %vm41_vm0, %v136_v2  ;;  %v2177_v2 = vld [vmem:[%s3235_s5 + $0x180] ss:$8 sps:$4 sm:$0xff]   ;;  %v2195_v10 = vld [vmem:[%s3235_s5 + $0x1b0] ss:$8 sps:$4 sm:$0xff]  }
 0x151   :  { %717 = vmatprep.subr.bf16.mxu0 %v2104_v12  ;;  %1615 = vmatprep.subr.bf16.mxu1 %v2143_v13  ;;  %v2198_v12 = vld [vmem:[%s3235_s5 + $0xb0] ss:$8 sps:$4 sm:$0xff]   ;;  %v2203_v13 = vld [vmem:[%s3235_s5 + $0x1c4] ss:$8 sps:$4 sm:$0xff]  }
 0x152   :  { %1616 = vmatpush1.bf16.msra.mxu1 %v2141_v14  ;;  %v2201_v14 = vld [vmem:[%s3235_s5 + $0x1c0] ss:$8 sps:$4 sm:$0xff]  }
 0x153   :  { %1617 = vmatprep.subr.bf16.mxu1 %v2149_v15  ;;  %v2206_v15 = vld [vmem:[%s3235_s5 + $0xc4] ss:$8 sps:$4 sm:$0xff]  }
 0x154   :  { %718 = vmatpush1.bf16.msra.mxu0 %v2102_v16  ;;  %v2204_v16 = vld [vmem:[%s3235_s5 + $0xc0] ss:$8 sps:$4 sm:$0xff]  }
 0x155   :  { %719 = vmatprep.subr.bf16.mxu0 %v2107_v17  ;;  %v2209_v17 = vld [vmem:[%s3235_s5 + $0x1d4] ss:$8 sps:$4 sm:$0xff]  }
 0x156   :  { %1618 = vmatpush1.bf16.msra.mxu1 %v2147_v18  ;;  %v2207_v18 = vld [vmem:[%s3235_s5 + $0x1d0] ss:$8 sps:$4 sm:$0xff]  }
 0x157   :  { %1619 = vmatprep.subr.bf16.mxu1 %v2155_v19  ;;  %v2212_v19 = vld [vmem:[%s3235_s5 + $0xd4] ss:$8 sps:$4 sm:$0xff]  }
 0x158   :  { %720 = vmatpush1.bf16.msra.mxu0 %v2105_v20  ;;  %v2210_v20 = vld [vmem:[%s3235_s5 + $0xd0] ss:$8 sps:$4 sm:$0xff]  }
 0x159   :  { %721 = vmatprep.subr.bf16.mxu0 %v2110_v21  ;;  %v2215_v21 = vld [vmem:[%s3235_s5 + $0x1e4] ss:$8 sps:$4 sm:$0xff]  }
 0x15a   :  { %1620 = vmatpush1.bf16.msra.mxu1 %v2153_v22  ;;  %v2213_v22 = vld [vmem:[%s3235_s5 + $0x1e0] ss:$8 sps:$4 sm:$0xff]  }
 0x15b   :  { %1621 = vmatprep.subr.bf16.mxu1 %v2161_v23  ;;  %v2218_v23 = vld [vmem:[%s3235_s5 + $0xe4] ss:$8 sps:$4 sm:$0xff]  }
 0x15c   :  { %722 = vmatpush1.bf16.msra.mxu0 %v2108_v24  ;;  %v2216_v24 = vld [vmem:[%s3235_s5 + $0xe0] ss:$8 sps:$4 sm:$0xff]  }
 0x15d   :  { %723 = vmatprep.subr.bf16.mxu0 %v2113_v25  ;;  %v2221_v25 = vld [vmem:[%s3235_s5 + $0x1f4] ss:$8 sps:$4 sm:$0xff]  }
 0x15e   :  { %1622 = vmatpush1.bf16.msra.mxu1 %v2159_v26  ;;  %v2224_v26 = vld [vmem:[%s3235_s5 + $0xf4] ss:$8 sps:$4 sm:$0xff]  }
 0x15f   :  { %1623 = vmatprep.subr.bf16.mxu1 %v2167_v58 }
 0x160   :  { %724 = vmatpush1.bf16.msra.mxu0 %v2111_v27  ;;  %v2219_v27 = vld [vmem:[%s3235_s5 + $0x1f0] ss:$8 sps:$4 sm:$0xff]  }
 0x161   :  { %725 = vmatprep.subr.bf16.mxu0 %v2116_v28  ;;  %v2222_v28 = vld [vmem:[%s3235_s5 + $0xf0] ss:$8 sps:$4 sm:$0xff]  }
 0x162   :  { %1624 = vmatpush1.bf16.msra.mxu1 %v2165_v59 }
 0x163   :  { %1625 = vmatprep.subr.bf16.mxu1 %v2173_v61 }
 0x164   :  { %726 = vmatpush1.bf16.msra.mxu0 %v2114_v29  ;;  %v2227_v29 = vld [vmem:[%s3235_s5 + $0x204] ss:$8 sps:$4 sm:$0xff]  }
 0x165   :  { %727 = vmatprep.subr.bf16.mxu0 %v2119_v30  ;;  %v223_v30 = vsub.s32 2, %v2633_v34 }
 0x166   :  { %1626 = vmatpush1.bf16.msra.mxu1 %v2171_v62 }
 0x167   :  { %1627 = vmatprep.subr.bf16.mxu1 %v2179_v1 }
 0x168   :  { %728 = vmatpush1.bf16.msra.mxu0 %v2117_v31  ;;  %v2943_v31 = vld [vmem:[%s3238_s4] sm:$0x3f] }
 0x169   :  { %729 = vmatprep.subr.bf16.mxu0 %v2122_v32  ;;  %v227_v32 = vsub.s32 3, %v2633_v34 }
 0x16a   :  { %1628 = vmatpush1.bf16.msra.mxu1 %v2177_v2 }
 0x16b   :  { %1629 = vmatprep.subr.bf16.mxu1 %v2185_v48 }
 0x16c   :  { %730 = vmatpush1.bf16.msra.mxu0 %v2120_v33  ;;  %v216_v33 = vrot.slane %v2943_v31, %v2642_v37 }
 0x16d   :  { %731 = vmatprep.subr.bf16.mxu0 %v2125_v36  ;;  %v224_v36 = vrot.slane %v2943_v31, %v223_v30 }
 0x16e   :  { %1630 = vmatpush1.bf16.msra.mxu1 %v2183_v3 }
 0x16f   :  { %1631 = vmatprep.subr.bf16.mxu1 %v2191_v5 }
 0x170   :  { %732 = vmatpush1.bf16.msra.mxu0 %v2123_v42  ;;  %v220_v42 = vrot.slane %v2943_v31, %v2636_v35 }
 0x171   :  { %733 = vmatprep.subr.bf16.mxu0 %v2128_v43  ;;  %v2952_v43 = vrot.slane %v2943_v31, %v227_v32 }
 0x172   :  { %1632 = vmatpush1.bf16.msra.mxu1 %v2189_v6 }
 0x173   :  { %1633 = vmatprep.subr.bf16.mxu1 %v2197_v9 }
 0x174   :  { %734 = vmatpush1.bf16.msra.mxu0 %v2126_v44 }
 0x175   :  { %1560 = vmatprep.subr.bf16.mxu0 %v2134_v45 }
 0x176   :  { %1634 = vmatpush1.bf16.msra.mxu1 %v2195_v10 }
 0x177   :  { %744 = vmatmul.mubr.bf16.vlgmr.msra.gmra.mrb[8].mxu0 %v2660_v49  ;;  %v2180_v49 = vld [vmem:[%s3235_s5 + $0x80] ss:$8 sps:$4 sm:$0xff]   ;;  %1635 = vmatprep.subr.bf16.mxu1 %v2203_v13 }
 0x178   :  { %1904 = vmatprep.mubr.msk.bf16.mxu0 %vm41_vm0, %v2667_v40  ;;  %1561 = vmatpush1.bf16.msra.mxu0 %v2132_v46  ;;  %v2188_v40 = vld [vmem:[%s3235_s5 + $0x94] ss:$8 sps:$4 sm:$0xff]  }
 0x179   :  { %1562 = vmatprep.subr.bf16.mxu0 %v2140_v47 }
 0x17a   :  { %1636 = vmatpush1.bf16.msra.mxu1 %v2201_v14 }
 0x17b   :  { %1637 = vmatprep.subr.bf16.mxu1 %v2209_v17 }
 0x17c   :  { %1563 = vmatpush1.bf16.msra.mxu0 %v2138_v50 }
 0x17d   :  { %1564 = vmatprep.subr.bf16.mxu0 %v2146_v51 }
 0x17e   :  { %1638 = vmatpush1.bf16.msra.mxu1 %v2207_v18 }
 0x17f   :  { %754 = vmatmul.mubr.bf16.gmra.mrb[12].mxu0 %v2693_v11  ;;  %v2200_v11 = vld [vmem:[%s3235_s5 + $0xb4] ss:$8 sps:$4 sm:$0xff]   ;;  %1639 = vmatprep.subr.bf16.mxu1 %v2215_v21 }
 0x180   :  { %1565 = vmatpush1.bf16.msra.mxu0 %v2144_v52 }
 0x181   :  { %1566 = vmatprep.subr.bf16.mxu0 %v2152_v53 }
 0x182   :  { %1640 = vmatpush1.bf16.msra.mxu1 %v2213_v22 }
 0x183   :  { %1641 = vmatprep.subr.bf16.mxu1 %v2221_v25 }
 0x184   :  { %1567 = vmatpush1.bf16.msra.mxu0 %v2150_v54 }
 0x185   :  { %1568 = vmatprep.subr.bf16.mxu0 %v2158_v55 }
 0x186   :  { %1642 = vmatpush1.bf16.msra.mxu1 %v2219_v27 }
 0x187   :  { %1662 = vmatprep.subr.bf16.mxu1 %v2227_v29 }
 0x188   :  { %1569 = vmatpush1.bf16.msra.mxu0 %v2156_v39 }
 0x189   :  { %1570 = vmatprep.subr.bf16.mxu0 %v2164_v56 }
 0x18c   :  { %1571 = vmatpush1.bf16.msra.mxu0 %v2162_v57 }
 0x18d   :  { %1572 = vmatprep.subr.bf16.mxu0 %v2170_v60 }
 0x190   :  { %1573 = vmatpush1.bf16.msra.mxu0 %v2168_v38 }
 0x191   :  { %1574 = vmatprep.subr.bf16.mxu0 %v2176_v63 }
 0x194   :  { %1575 = vmatpush1.bf16.msra.mxu0 %v2174_v0 }
 0x195   :  { %1576 = vmatprep.subr.bf16.mxu0 %v2182_v41 }
 0x198   :  { %1577 = vmatpush1.bf16.msra.mxu0 %v2180_v49 }
 0x199   :  { %1578 = vmatprep.subr.bf16.mxu0 %v2188_v40 }
 0x19c   :  { %1579 = vmatpush1.bf16.msra.mxu0 %v2186_v4 }
 0x19d   :  { %1580 = vmatprep.subr.bf16.mxu0 %v2194_v7 }
 0x1a0   :  { %1581 = vmatpush1.bf16.msra.mxu0 %v2192_v8 }
 0x1a1   :  { %1582 = vmatprep.subr.bf16.mxu0 %v2200_v11 }
 0x1a4   :  { %1583 = vmatpush1.bf16.msra.mxu0 %v2198_v12 }
 0x1a5   :  { %1584 = vmatprep.subr.bf16.mxu0 %v2206_v15 }
 0x1a8   :  { %1585 = vmatpush1.bf16.msra.mxu0 %v2204_v16 }
 0x1a9   :  { %1586 = vmatprep.subr.bf16.mxu0 %v2212_v19 }
 0x1ac   :  { %1587 = vmatpush1.bf16.msra.mxu0 %v2210_v20 }
 0x1ad   :  { %1588 = vmatprep.subr.bf16.mxu0 %v2218_v23 }
 0x1b0   :  { %1589 = vmatpush1.bf16.msra.mxu0 %v2216_v24 }
 0x1b1   :  { %1590 = vmatprep.subr.bf16.mxu0 %v2224_v26 }
 0x1b4   :  { %1591 = vmatpush1.bf16.msra.mxu0 %v2222_v28 }
 0x21a   :  { %v643_v44 = vpop.f32.mrb[0].mxu0  ;;  %v694_v45 = vpop.f32.mrb[0].mxu1 }
 0x21b   :  { %v2954_v46 = vadd.f32 %v643_v44, %v216_v33  ;;  %v2956_v47 = vadd.f32 %v694_v45, %v224_v36  ;;  %v645_v50 = vpop.f32.mrb[1].mxu0  ;;  %v696_v51 = vpop.f32.mrb[1].mxu1 }
 0x21c   :  { %v2958_v52 = vadd.f32 %v645_v50, %v220_v42  ;;  %v2961_v53 = vadd.f32 %v696_v51, %v2952_v43  ;;  %v647_v54 = vpop.f32.mrb[2].mxu0  ;;  %v698_v55 = vpop.f32.mrb[2].mxu1 }
 0x21d   :  { %v762_v39 = vand.u32 2147483647, %v2954_v46  ;;  %v764_v56 = vand.u32 2147483647, %v2956_v47  ;;  %v2967_v38 = vadd.f32 %v647_v54, %v216_v33  ;;  %v2969_v61 = vadd.f32 %v698_v55, %v224_v36  ;;  %v649_v62 = vpop.f32.mrb[3].mxu0  ;;  %v700_v63 = vpop.f32.mrb[3].mxu1 }
 0x21e   :  { %v763_v57 = vand.u32 2147483647, %v2958_v52  ;;  %v765_v58 = vand.u32 2147483647, %v2961_v53  ;;  %v2971_v2 = vadd.f32 %v649_v62, %v220_v42  ;;  %v2974_v41 = vadd.f32 %v700_v63, %v2952_v43 }
 0x21f   :  { %v780_v59 = vsub.f32 0.0, %v762_v39  ;;  %v782_v60 = vsub.f32 0.0, %v764_v56  ;;  %v768_v3 = vand.u32 2147483647, %v2967_v38  ;;  %v770_v6 = vand.u32 2147483647, %v2969_v61 }
 0x220   :  { %v781_v0 = vsub.f32 0.0, %v763_v57  ;;  %v783_v1 = vsub.f32 0.0, %v765_v58  ;;  %v769_v7 = vand.u32 2147483647, %v2971_v2  ;;  %v771_v9 = vand.u32 2147483647, %v2974_v41 }
 0x221   :  { %v798_v49 = vmul.f32 1.442695, %v780_v59  ;;  %v802_v48 = vmul.f32 1.442695, %v782_v60  ;;  %v786_v5 = vsub.f32 0.0, %v768_v3  ;;  %v788_v13 = vsub.f32 0.0, %v770_v6 }
 0x222   :  { %v800_v40 = vmul.f32 1.442695, %v781_v0  ;;  %v804_v4 = vmul.f32 1.442695, %v783_v1  ;;  %v653_v8 = vpop.f32.mrb[4].mxu0  ;;  %v704_v10 = vpop.f32.mrb[4].mxu1 }
 0x223   :  { %2279 = vpow2.f32 %v798_v49  ;;  %v655_v11 = vpop.f32.mrb[5].mxu0  ;;  %v810_v12 = vmul.f32 1.442695, %v786_v5  ;;  %v787_v14 = vsub.f32 0.0, %v769_v7  ;;  %v706_v15 = vpop.f32.mrb[5].mxu1  ;;  %v789_v17 = vsub.f32 0.0, %v771_v9 }
 0x224   :  { %2281 = vpow2.f32 %v802_v48  ;;  %v657_v16 = vpop.f32.mrb[6].mxu0  ;;  %v2980_v18 = vadd.f32 %v653_v8, %v216_v33  ;;  %v2982_v19 = vadd.f32 %v704_v10, %v224_v36  ;;  %v708_v20 = vpop.f32.mrb[6].mxu1  ;;  %v814_v22 = vmul.f32 1.442695, %v788_v13 }
 0x225   :  { %2283 = vpow2.f32 %v800_v40  ;;  %v658_v21 = vpop.f32.mrb[7].mxu0  ;;  %v812_v23 = vmul.f32 1.442695, %v787_v14  ;;  %v2984_v24 = vadd.f32 %v655_v11, %v220_v42  ;;  %v709_v25 = vpop.f32.mrb[7].mxu1  ;;  %v816_v26 = vmul.f32 1.442695, %v789_v17 }
 0x226   :  { %2285 = vpow2.f32 %v804_v4  ;;  %v774_v27 = vand.u32 2147483647, %v2980_v18  ;;  %v776_v28 = vand.u32 2147483647, %v2982_v19  ;;  %v2990_v32 = vadd.f32 %v706_v15, %v2952_v43 }
 0x227   :  { %2287 = vpow2.f32 %v810_v12  ;;  %v775_v29 = vand.u32 2147483647, %v2984_v24  ;;  %vm834_vm3 = vcmp.ge.f32.partialorder %v2954_v46, 0.0  ;;  %vm836_vm4 = vcmp.ge.f32.partialorder %v2956_v47, 0.0 }
 0x228   :  { %2289 = vpow2.f32 %v814_v22  ;;  %v792_v30 = vsub.f32 0.0, %v774_v27  ;;  %v794_v33 = vsub.f32 0.0, %v776_v28  ;;  %v777_v50 = vand.u32 2147483647, %v2990_v32 }
 0x229   :  { %2291 = vpow2.f32 %v812_v23  ;;  %v793_v45 = vsub.f32 0.0, %v775_v29  ;;  %v231_v14 = vsub.s32 4, %v2633_v34  ;;  %v235_v15 = vsub.s32 5, %v2633_v34 }
 0x22a   :  { %2293 = vpow2.f32 %v816_v26  ;;  %v822_v36 = vmul.f32 1.442695, %v792_v30  ;;  %v826_v42 = vmul.f32 1.442695, %v794_v33  ;;  %v795_v60 = vsub.f32 0.0, %v777_v50 }
 0x22b   :  { %v824_v59 = vmul.f32 1.442695, %v793_v45  ;;  %vm835_vm5 = vcmp.ge.f32.partialorder %v2958_v52, 0.0  ;;  %vm837_vm6 = vcmp.ge.f32.partialorder %v2961_v53, 0.0  ;;  %vm840_vm7 = vcmp.ge.f32.partialorder %v2967_v38, 0.0 }
 0x22c   :  { %2295 = vpow2.f32 %v822_v36  ;;  %v828_v3 = vmul.f32 1.442695, %v795_v60  ;;  %vm842_vm8 = vcmp.ge.f32.partialorder %v2969_v61, 0.0  ;;  %vm841_vm9 = vcmp.ge.f32.partialorder %v2971_v2, 0.0 }
 0x22d   :  { %v2280_v44 = vpop.eup %2279  ;;  %2297 = vpow2.f32 %v826_v42  ;;  %vm843_vm10 = vcmp.ge.f32.partialorder %v2974_v41, 0.0  ;;  %vm846_vm11 = vcmp.ge.f32.partialorder %v2980_v18, 0.0  ;;  %vm848_vm12 = vcmp.ge.f32.partialorder %v2982_v19, 0.0 }
 0x22e   :  { %v2282_v51 = vpop.eup %2281  ;;  %v852_v54 = vadd.f32 1.0, %v2280_v44  ;;  %vm847_vm13 = vcmp.ge.f32.partialorder %v2984_v24, 0.0  ;;  %vm849_vm14 = vcmp.ge.f32.partialorder %v2990_v32, 0.0 }
 0x22f   :  { %v2284_v55 = vpop.eup %2283  ;;  %v854_v39 = vadd.f32 1.0, %v2282_v51 }
 0x230   :  { %v2286_v56 = vpop.eup %2285  ;;  %2299 = vrcp.f32 %v852_v54  ;;  %v853_v57 = vadd.f32 1.0, %v2284_v55 }
 0x231   :  { %v2288_v58 = vpop.eup %2287  ;;  %2301 = vrcp.f32 %v854_v39  ;;  %v855_v43 = vadd.f32 1.0, %v2286_v56 }
 0x232   :  { %2303 = vrcp.f32 %v853_v57  ;;  %v858_v62 = vadd.f32 1.0, %v2288_v58  ;;  %v2290_v63 = vpop.eup %2289 }
 0x233   :  { %2305 = vrcp.f32 %v855_v43  ;;  %v2292_v0 = vpop.eup %2291  ;;  %v860_v1 = vadd.f32 1.0, %v2290_v63 }
 0x234   :  { %2307 = vrcp.f32 %v858_v62  ;;  %v2294_v49 = vpop.eup %2293  ;;  %v859_v48 = vadd.f32 1.0, %v2292_v0 }
 0x235   :  { %2309 = vpow2.f32 %v824_v59  ;;  %v861_v40 = vadd.f32 1.0, %v2294_v49 }
 0x236   :  { %2311 = vrcp.f32 %v860_v1  ;;  %v2296_v4 = vpop.eup %2295 }
 0x237   :  { %2313 = vrcp.f32 %v859_v48  ;;  %v2993_v5 = vpop.eup %2297  ;;  %v864_v6 = vadd.f32 1.0, %v2296_v4 }
 0x238   :  { %2315 = vrcp.f32 %v861_v40  ;;  %v866_v8 = vadd.f32 1.0, %v2993_v5 }
 0x239   :  { %2317 = vpow2.f32 %v828_v3 }
 0x23a   :  { %v2300_v7 = vpop.eup %2299  ;;  %2319 = vrcp.f32 %v864_v6 }
 0x23b   :  { %v2302_v9 = vpop.eup %2301  ;;  %v906_v10 = vmul.f32 %v2300_v7, %v2280_v44  ;;  %2321 = vrcp.f32 %v866_v8 }
 0x23c   :  { %v2304_v11 = vpop.eup %2303  ;;  %v908_v12 = vmul.f32 %v2302_v9, %v2282_v51 }
 0x23d   :  { %v2306_v13 = vpop.eup %2305  ;;  %v924_v17 = vsel %vm834_vm3, %v2300_v7, %v906_v10  ;;  %v907_v20 = vmul.f32 %v2304_v11, %v2284_v55 }
 0x23e   :  { %v2308_v16 = vpop.eup %2307  ;;  %v909_v22 = vmul.f32 %v2306_v13, %v2286_v56  ;;  %v926_v26 = vsel %vm836_vm4, %v2302_v9, %v908_v12  ;;  %v942_v28 = vmul.f32 %v924_v17, %v2954_v46  ;;  %v2233_v12 = vld [vmem:[%s3235_s5 + $0x224] ss:$8 sps:$4 sm:$0xff]  }
 0x23f   :  { %v3001_v21 = vpop.eup %2309  ;;  %v912_v23 = vmul.f32 %v2308_v16, %v2288_v58  ;;  %v925_v36 = vsel %vm835_vm5, %v2304_v11, %v907_v20  ;;  %v944_v50 = vmul.f32 %v926_v26, %v2956_v47 }
 0x240   :  { %v2312_v25 = vpop.eup %2311  ;;  %v865_v34 = vadd.f32 1.0, %v3001_v21  ;;  %v927_v51 = vsel %vm837_vm6, %v2306_v13, %v909_v22  ;;  %v943_v58 = vmul.f32 %v925_v36, %v2958_v52  ;;  %v2225_v52 = vld [vmem:[%s3235_s5 + $0x200] ss:$8 sps:$4 sm:$0xff]  }
 0x241   :  { %v2314_v27 = vpop.eup %2313  ;;  %v930_v29 = vsel %vm840_vm7, %v2308_v16, %v912_v23  ;;  %v914_v30 = vmul.f32 %v2312_v25, %v2290_v63  ;;  %v945_v59 = vmul.f32 %v927_v51, %v2961_v53  ;;  %v3031_v63 = vrot.slane %v2943_v31, %v231_v14  ;;  %v2230_v53 = vld [vmem:[%s3235_s5 + $0x214] ss:$8 sps:$4 sm:$0xff]  }
 0x242   :  { %v2316_v33 = vpop.eup %2315  ;;  %v948_v44 = vmul.f32 %v930_v29, %v2967_v38  ;;  %v913_v42 = vmul.f32 %v2314_v27, %v2292_v0  ;;  %2323 = vrcp.f32 %v865_v34  ;;  %v2231_v34 = vld [vmem:[%s3235_s5 + $0x220] ss:$8 sps:$4 sm:$0xff]   ;;  %v2236_v29 = vld [vmem:[%s3235_s5 + $0x234] ss:$8 sps:$4 sm:$0xff]  }
 0x243   :  { %v3013_v45 = vpop.eup %2317  ;;  %v932_v46 = vsel %vm842_vm8, %v2312_v25, %v914_v30  ;;  %v915_v54 = vmul.f32 %v2316_v33, %v2294_v49 }
 0x244   :  { %v960_v55 = vpack.c.bf16 %v948_v44, %v942_v28  ;;  %v950_v39 = vmul.f32 %v932_v46, %v2969_v61  ;;  %v931_v56 = vsel %vm841_vm9, %v2314_v27, %v913_v42  ;;  %v867_v38 = vadd.f32 1.0, %v3013_v45  ;;  %v2320_v57 = vpop.eup %2319 }
 0x245   :  { %v949_v47 = vmul.f32 %v931_v56, %v2971_v2  ;;  %v933_v43 = vsel %vm843_vm10, %v2316_v33, %v915_v54  ;;  %v918_v0 = vmul.f32 %v2320_v57, %v2296_v4  ;;  %v2322_v1 = vpop.eup %2321  ;;  %v236_v2 = vrot.slane %v2943_v31, %v235_v15  ;;  %v2228_v31 = vld [vmem:[%s3235_s5 + $0x210] ss:$8 sps:$4 sm:$0xff]  }
 0x246   :  { %v962_v60 = vpack.c.bf16 %v950_v39, %v944_v50  ;;  %v951_v62 = vmul.f32 %v933_v43, %v2974_v41  ;;  %2325 = vrcp.f32 %v867_v38  ;;  %v920_v4 = vmul.f32 %v2322_v1, %v2993_v5  ;;  %v2239_v38 = vld [vmem:[%s3235_s5 + $0x244] ss:$8 sps:$4 sm:$0xff]  }
 0x247   :  { %v961_v61 = vpack.c.bf16 %v949_v47, %v943_v58  ;;  %v936_v40 = vsel %vm846_vm11, %v2320_v57, %v918_v0 }
 0x248   :  { %v963_v49 = vpack.c.bf16 %v951_v62, %v945_v59  ;;  %v954_v15 = vmul.f32 %v936_v40, %v2980_v18  ;;  %v938_v22 = vsel %vm848_vm12, %v2322_v1, %v920_v4  ;;  %v2237_v59 = vld [vmem:[%s3235_s5 + $0x240] ss:$8 sps:$4 sm:$0xff]   ;;  %v2245_v1 = vld [vmem:[%s3235_s5 + $0x264] ss:$8 sps:$4 sm:$0xff]  }
 0x249   :  { %1592 = vmatprep.mubr.bf16.mxu0 %v961_v61  ;;  %v956_v36 = vmul.f32 %v938_v22, %v2982_v19  ;;  %v2243_v4 = vld [vmem:[%s3235_s5 + $0x260] ss:$8 sps:$4 sm:$0xff]  }
 0x24a   :  { %1643 = vmatprep.mubr.bf16.mxu1 %v963_v49  ;;  %1593 = vmatmul.mubr.bf16.vlgmr.msra.gmra.mrb[16].mxu0 %v960_v55  ;;  %v745_v41 = vpop.f32.mrb[8].mxu0  ;;  %v966_v51 = vpack.c.bf16 %v954_v15, %v954_v15  ;;  %v2234_v55 = vld [vmem:[%s3235_s5 + $0x230] ss:$8 sps:$4 sm:$0xff]  }
 0x24b   :  { %1644 = vmatmul.mubr.bf16.vlgmr.msra.gmra.mrb[8].mxu1 %v962_v60  ;;  %v3042_v48 = vadd.f32 %v745_v41, %v3031_v63  ;;  %v747_v3 = vpop.f32.mrb[9].mxu0  ;;  %v968_v58 = vpack.c.bf16 %v956_v36, %v956_v36  ;;  %v2242_v60 = vld [vmem:[%s3235_s5 + $0x254] ss:$8 sps:$4 sm:$0xff]   ;;  %v2255_v36 = vld [vmem:[%s3235_s5 + $0x2a0] ss:$8 sps:$4 sm:$0xff]  }
 0x24c   :  { %v2324_v6 = vpop.eup %2323  ;;  %1663 = vmatpush1.bf16.msra.mxu1 %v2225_v52  ;;  %v3048_v7 = vadd.f32 %v747_v3, %v236_v2  ;;  %v749_v8 = vpop.f32.mrb[10].mxu0 }
 0x24d   :  { %v766_v9 = vand.u32 2147483647, %v3042_v48  ;;  %1664 = vmatprep.subr.bf16.mxu1 %v2230_v53  ;;  %v3053_v10 = vadd.f32 %v749_v8, %v3031_v63  ;;  %v919_v11 = vmul.f32 %v2324_v6, %v3001_v21  ;;  %v751_v5 = vpop.f32.mrb[11].mxu0  ;;  %vm838_vm15 = vcmp.ge.f32.partialorder %v3042_v48, 0.0 }
 0x24e   :  { %v767_v13 = vand.u32 2147483647, %v3048_v7  ;;  %v3061_v14 = vadd.f32 %v751_v5, %v236_v2  ;;  %v2249_v5 = vld [vmem:[%s3235_s5 + $0x280] ss:$8 sps:$4 sm:$0xff]   ;;  %vm839_vm3 = vcmp.ge.f32.partialorder %v3048_v7, 0.0 }
 0x24f   :  { %v784_v16 = vsub.f32 0.0, %v766_v9  ;;  %v772_v17 = vand.u32 2147483647, %v3053_v10  ;;  %v937_v20 = vsel %vm847_vm13, %v2324_v6, %v919_v11  ;;  %v2246_v9 = vld [vmem:[%s3235_s5 + $0x270] ss:$8 sps:$4 sm:$0xff]   ;;  %vm844_vm4 = vcmp.ge.f32.partialorder %v3053_v10, 0.0 }
 0x250   :  { %v2326_v23 = vpop.eup %2325  ;;  %v785_v21 = vsub.f32 0.0, %v767_v13  ;;  %1665 = vmatpush1.bf16.msra.mxu1 %v2228_v31  ;;  %v955_v25 = vmul.f32 %v937_v20, %v2984_v24  ;;  %v773_v26 = vand.u32 2147483647, %v3061_v14  ;;  %v2248_v31 = vld [vmem:[%s3235_s5 + $0x274] ss:$8 sps:$4 sm:$0xff]   ;;  %vm845_vm5 = vcmp.ge.f32.partialorder %v3061_v14, 0.0 }
 0x251   :  { %v806_v27 = vmul.f32 1.442695, %v784_v16  ;;  %v790_v18 = vsub.f32 0.0, %v772_v17  ;;  %v921_v28 = vmul.f32 %v2326_v23, %v3013_v45  ;;  %1666 = vmatprep.subr.bf16.mxu1 %v2233_v12  ;;  %v2251_v11 = vld [vmem:[%s3235_s5 + $0x284] ss:$8 sps:$4 sm:$0xff]  }
 0x252   :  { %v808_v30 = vmul.f32 1.442695, %v785_v21  ;;  %v967_v33 = vpack.c.bf16 %v955_v25, %v955_v25  ;;  %v791_v24 = vsub.f32 0.0, %v773_v26  ;;  %v755_v44 = vpop.f32.mrb[12].mxu0  ;;  %v2254_v13 = vld [vmem:[%s3235_s5 + $0x294] ss:$8 sps:$4 sm:$0xff]  }
 0x253   :  { %2327 = vpow2.f32 %v806_v27  ;;  %v818_v42 = vmul.f32 1.442695, %v790_v18  ;;  %v939_v50 = vsel %vm849_vm14, %v2326_v23, %v921_v28  ;;  %v757_v46 = vpop.f32.mrb[13].mxu0  ;;  %v3087_v47 = vadd.f32 %v755_v44, %v3031_v63  ;;  %v2240_v63 = vld [vmem:[%s3235_s5 + $0x250] ss:$8 sps:$4 sm:$0xff]  }
 0x254   :  { %2329 = vpow2.f32 %v808_v30  ;;  %1602 = vmatprep.mubr.bf16.mxu0 %v967_v33  ;;  %v957_v45 = vmul.f32 %v939_v50, %v2990_v32  ;;  %v820_v54 = vmul.f32 1.442695, %v791_v24  ;;  %1667 = vmatpush1.bf16.msra.mxu1 %v2231_v34  ;;  %v3080_v39 = vadd.f32 %v757_v46, %v236_v2  ;;  %v759_v56 = vpop.f32.mrb[14].mxu0  ;;  %v2252_v23 = vld [vmem:[%s3235_s5 + $0x290] ss:$8 sps:$4 sm:$0xff]  }
 0x255   :  { %2331 = vpow2.f32 %v818_v42  ;;  %1603 = vmatmul.mubr.bf16.gmra.mrb[20].mxu0 %v966_v51  ;;  %1668 = vmatprep.subr.bf16.mxu1 %v2236_v29  ;;  %v760_v19 = vpop.f32.mrb[15].mxu0  ;;  %v778_v61 = vand.u32 2147483647, %v3087_v47  ;;  %v2257_v34 = vld [vmem:[%s3235_s5 + $0x2a4] ss:$8 sps:$4 sm:$0xff]   ;;  %vm850_vm7 = vcmp.ge.f32.partialorder %v3087_v47, 0.0 }
 0x256   :  { %v969_v57 = vpack.c.bf16 %v957_v45, %v957_v45  ;;  %2333 = vpow2.f32 %v820_v54  ;;  %v779_v32 = vand.u32 2147483647, %v3080_v39  ;;  %v2260_v50 = vld [vmem:[%s3235_s5 + $0x2b4] ss:$8 sps:$4 sm:$0xff]   ;;  %v2264_v56 = vld [vmem:[%s3235_s5 + $0x2d0] ss:$8 sps:$4 sm:$0xff]  }
 0x257   :  { %v796_v40 = vsub.f32 0.0, %v778_v61  ;;  %v2266_v54 = vld [vmem:[%s3235_s5 + $0x2d4] ss:$8 sps:$4 sm:$0xff]   ;;  %v2269_v19 = vld [vmem:[%s3235_s5 + $0x2e4] ss:$8 sps:$4 sm:$0xff]   ;;  %vm851_vm6 = vcmp.ge.f32.partialorder %v3080_v39, 0.0 }
 0x258   :  { %1653 = vmatprep.mubr.bf16.mxu1 %v969_v57  ;;  %v797_v43 = vsub.f32 0.0, %v779_v32  ;;  %1669 = vmatpush1.bf16.msra.mxu1 %v2234_v55  ;;  %v2267_v57 = vld [vmem:[%s3235_s5 + $0x2e0] ss:$8 sps:$4 sm:$0xff]   ;;  %v2272_v32 = vld [vmem:[%s3235_s5 + $0x2f4] ss:$8 sps:$4 sm:$0xff]  }
 0x259   :  { %1654 = vmatmul.mubr.bf16.gmra.mrb[12].mxu1 %v968_v58  ;;  %1670 = vmatprep.subr.bf16.mxu1 %v2239_v38  ;;  %v830_v8 = vmul.f32 1.442695, %v796_v40 }
 0x25a   :  { %v832_v62 = vmul.f32 1.442695, %v797_v43 }
 0x25c   :  { %1671 = vmatpush1.bf16.msra.mxu1 %v2237_v59  ;;  %2335 = vpow2.f32 %v832_v62  ;;  %v2270_v59 = vld [vmem:[%s3235_s5 + $0x2f0] ss:$8 sps:$4 sm:$0xff]  }
 0x25d   :  { %v2328_v0 = vpop.eup %2327  ;;  %1672 = vmatprep.subr.bf16.mxu1 %v2242_v60 }
 0x25e   :  { %v2330_v49 = vpop.eup %2329  ;;  %v856_v52 = vadd.f32 1.0, %v2328_v0 }
 0x25f   :  { %v2332_v2 = vpop.eup %2331  ;;  %v857_v53 = vadd.f32 1.0, %v2330_v49 }
 0x260   :  { %v2334_v41 = vpop.eup %2333  ;;  %2337 = vrcp.f32 %v856_v52  ;;  %v862_v3 = vadd.f32 1.0, %v2332_v2  ;;  %1673 = vmatpush1.bf16.msra.mxu1 %v2240_v63 }
 0x261   :  { %2339 = vrcp.f32 %v857_v53  ;;  %v863_v6 = vadd.f32 1.0, %v2334_v41  ;;  %1674 = vmatprep.subr.bf16.mxu1 %v2245_v1 }
 0x262   :  { %2341 = vrcp.f32 %v862_v3 }
 0x263   :  { %2343 = vrcp.f32 %v863_v6 }
 0x264   :  { %1675 = vmatpush1.bf16.msra.mxu1 %v2243_v4  ;;  %2345 = vpow2.f32 %v830_v8  ;;  %v1068_v4 = vld [vmem:[%s3239_s6] sm:$0x3] }
 0x265   :  { %1676 = vmatprep.subr.bf16.mxu1 %v2248_v31  ;;  %v1073_v6 = vrot.slane %v1068_v4, %v2642_v37  ;;  %v1077_v31 = vrot.slane %v1068_v4, %v2636_v35 }
 0x266   :  { %v2336_v12 = vpop.eup %2335 }
 0x267   :  { %v869_v28 = vadd.f32 1.0, %v2336_v12 }
 0x268   :  { %1677 = vmatpush1.bf16.msra.mxu1 %v2246_v9 }
 0x269   :  { %1678 = vmatprep.subr.bf16.mxu1 %v2251_v11  ;;  %2347 = vrcp.f32 %v869_v28  ;;  %v2358_v28 = vld [vmem:[%s3233_s0] sm:$0xff] }
 0x26a   :  { %v2338_v15 = vpop.eup %2337 }
 0x26b   :  { %v2340_v16 = vpop.eup %2339  ;;  %v910_v17 = vmul.f32 %v2338_v15, %v2328_v0 }
 0x26c   :  { %v2342_v20 = vpop.eup %2341  ;;  %v911_v22 = vmul.f32 %v2340_v16, %v2330_v49  ;;  %1679 = vmatpush1.bf16.msra.mxu1 %v2249_v5 }
 0x26d   :  { %v2344_v21 = vpop.eup %2343  ;;  %v928_v25 = vsel %vm838_vm15, %v2338_v15, %v910_v17  ;;  %v916_v26 = vmul.f32 %v2342_v20, %v2332_v2  ;;  %1680 = vmatprep.subr.bf16.mxu1 %v2254_v13 }
 0x26e   :  { %v929_v27 = vsel %vm839_vm3, %v2340_v16, %v911_v22  ;;  %v917_v18 = vmul.f32 %v2344_v21, %v2334_v41  ;;  %v946_v30 = vmul.f32 %v928_v25, %v3042_v48  ;;  %v2346_v51 = vpop.eup %2345 }
 0x26f   :  { %v934_v29 = vsel %vm844_vm4, %v2342_v20, %v916_v26  ;;  %v947_v44 = vmul.f32 %v929_v27, %v3048_v7  ;;  %v868_v45 = vadd.f32 1.0, %v2346_v51  ;;  %v2263_v7 = vld [vmem:[%s3235_s5 + $0x2c4] ss:$8 sps:$4 sm:$0xff]  }
 0x270   :  { %v952_v33 = vmul.f32 %v934_v29, %v3053_v10  ;;  %v935_v24 = vsel %vm845_vm5, %v2344_v21, %v917_v18  ;;  %1681 = vmatpush1.bf16.msra.mxu1 %v2252_v23  ;;  %v2258_v10 = vld [vmem:[%s3235_s5 + $0x2b0] ss:$8 sps:$4 sm:$0xff]   ;;  %v2357_v26 = vld [vmem:[%s3233_s0 + $0x8] sm:$0xff] }
 0x271   :  { %v953_v42 = vmul.f32 %v935_v24, %v3061_v14  ;;  %1682 = vmatprep.subr.bf16.mxu1 %v2257_v34  ;;  %v2261_v14 = vld [vmem:[%s3235_s5 + $0x2c0] ss:$8 sps:$4 sm:$0xff]   ;;  %2349 = vrcp.f32 %v868_v45 }
 0x272   :  { %v964_v46 = vpack.c.bf16 %v952_v33, %v946_v30  ;;  %v2359_v33 = vld [vmem:[%s3233_s0 + $0x18] sm:$0xff] }
 0x273   :  { %v965_v48 = vpack.c.bf16 %v953_v42, %v947_v44  ;;  %v2348_v55 = vpop.eup %2347  ;;  %v2360_v42 = vld [vmem:[%s3233_s0 + $0x10] sm:$0xff] }
 0x274   :  { %1683 = vmatpush1.bf16.msra.mxu1 %v2255_v36  ;;  %v923_v38 = vmul.f32 %v2348_v55, %v2336_v12 }
 0x275   :  { %1684 = vmatprep.subr.bf16.mxu1 %v2260_v50  ;;  %1694 = vmatprep.mubr.bf16.mxu1 %v965_v48 }
 0x276   :  { %v941_v43 = vsel %vm851_vm6, %v2348_v55, %v923_v38 }
 0x277   :  { %v959_v60 = vmul.f32 %v941_v43, %v3080_v39 }
 0x278   :  { %1685 = vmatpush1.bf16.msra.mxu1 %v2258_v10 }
 0x279   :  { %1686 = vmatprep.subr.bf16.mxu1 %v2263_v7  ;;  %v971_v61 = vpack.c.bf16 %v959_v60, %v959_v60 }
 0x27b   :  { %v2350_v58 = vpop.eup %2349 }
 0x27c   :  { %1687 = vmatpush1.bf16.msra.mxu1 %v2261_v14  ;;  %v922_v62 = vmul.f32 %v2350_v58, %v2346_v51 }
 0x27d   :  { %1688 = vmatprep.subr.bf16.mxu1 %v2266_v54 }
 0x27e   :  { %v940_v63 = vsel %vm850_vm7, %v2350_v58, %v922_v62 }
 0x27f   :  { %v958_v0 = vmul.f32 %v940_v63, %v3087_v47 }
 0x280   :  { %1689 = vmatpush1.bf16.msra.mxu1 %v2264_v56 }
 0x281   :  { %1690 = vmatprep.subr.bf16.mxu1 %v2269_v19  ;;  %v970_v1 = vpack.c.bf16 %v958_v0, %v958_v0  ;;  %v2361_v19 = vld [vmem:[%s3233_s0 + $0x20] sm:$0x3] }
 0x284   :  { %1691 = vmatpush1.bf16.msra.mxu1 %v2267_v57  ;;  %v2362_v57 = vld [vmem:[%s3233_s0 + $0x28] sm:$0x3] }
 0x285   :  { %1692 = vmatprep.subr.bf16.mxu1 %v2272_v32 }
 0x288   :  { %1693 = vmatpush1.bf16.msra.mxu1 %v2270_v59 }
 0x28b   :  { %1695 = vmatmul.mubr.bf16.vlgmr.msra.gmra.mrb[8].mxu1 %v964_v46 }
 0x28c   :  { %1704 = vmatprep.mubr.bf16.mxu1 %v971_v61 }
 0x293   :  { %1705 = vmatmul.mubr.bf16.gmra.mrb[12].mxu1 %v970_v1 }
 0x31d   :  { %v1594_v49 = vpop.f32.mrb[16].mxu0 }
 0x31e   :  { %v1596_v52 = vpop.f32.mrb[17].mxu0  ;;  %v1595_v8 = vadd.f32 %v1594_v49, %v1073_v6 }
 0x31f   :  { %v1598_v2 = vpop.f32.mrb[18].mxu0  ;;  %v1597_v47 = vadd.f32 %v1596_v52, %v1077_v31 }
 0x320   :  { %v1600_v53 = vpop.f32.mrb[19].mxu0  ;;  %v1599_v11 = vadd.f32 %v1598_v2, %v1073_v6 }
 0x321   :  { %v1601_v13 = vadd.f32 %v1600_v53, %v1077_v31 }
 0x328   :  { %v1604_v41 = vpop.f32.mrb[20].mxu0 }
 0x329   :  { %v1606_v3 = vpop.f32.mrb[21].mxu0  ;;  %v1605_v18 = vadd.f32 %v1604_v41, %v1073_v6 }
 0x32a   :  { %v1608_v40 = vpop.f32.mrb[22].mxu0  ;;  %v1607_v30 = vadd.f32 %v1606_v3, %v1077_v31 }
 0x32b   :  { %v1609_v39 = vpop.f32.mrb[23].mxu0 }
 0x35e   :  { %v1696_v9 = vpop.f32.mrb[8].mxu1 }
 0x35f   :  { %v2002_v5 = vadd.f32 %v1696_v9, %v1595_v8  ;;  %v1698_v12 = vpop.f32.mrb[9].mxu1 }
 0x360   :  { %v2004_v15 = vadd.f32 %v1698_v12, %v1597_v47  ;;  %v1700_v16 = vpop.f32.mrb[10].mxu1 }
 0x361   :  { %v1713_v17 = vmul.f32 0.5, %v2002_v5  ;;  %v2006_v20 = vadd.f32 %v1700_v16, %v1599_v11  ;;  %v1702_v22 = vpop.f32.mrb[11].mxu1 }
 0x362   :  { %v1714_v23 = vmul.f32 0.5, %v2004_v15  ;;  %v2008_v21 = vadd.f32 %v1702_v22, %v1601_v13 }
 0x363   :  { %v1715_v25 = vmul.f32 0.5, %v2006_v20  ;;  %v1719_v29 = vadd.f32 %v2358_v28, %v1713_v17 }
 0x364   :  { %v1720_v34 = vadd.f32 %v2357_v26, %v1714_v23  ;;  %v1716_v27 = vmul.f32 0.5, %v2008_v21 }
 0x365   :  { %v1721_v50 = vadd.f32 %v2360_v42, %v1715_v25 }
 0x366   :  { %v1722_v24 = vadd.f32 %v2359_v33, %v1716_v27  ;;  %v1706_v36 = vpop.f32.mrb[12].mxu1  ;;  %v1727_v44 = vsel %vm41_vm0, %v1720_v34, 0.0 }
 0x367   :  { %v2010_v51 = vadd.f32 %v1706_v36, %v1605_v18  ;;  %v1708_v46 = vpop.f32.mrb[13].mxu1  ;;  %v1728_v48 = vadd.f32 %v1727_v44, %v1719_v29  ;;  %v1726_v18 = vld [vmem:[%s3241_s8] sm:$0x3] }
 0x368   :  { %v2012_v10 = vadd.f32 %v1708_v46, %v1607_v30  ;;  %v1710_v45 = vpop.f32.mrb[14].mxu1  ;;  %v1731_v7 = vsel %vm41_vm0, %v1722_v24, 0.0  ;;  %v1804_v33 = vrot.slane %v1726_v18, %v2642_v37 }
 0x369   :  { %v1717_v14 = vmul.f32 0.5, %v2010_v51  ;;  %v1711_v54 = vpop.f32.mrb[15].mxu1  ;;  %1729 = vadd.xlane.f32.xlu0 %v1728_v48  ;;  %v1732_v55 = vadd.f32 %v1731_v7, %v1721_v50 }
 0x36a   :  { %v1718_v56 = vmul.f32 0.5, %v2012_v10 }
 0x36b   :  { %v1723_v38 = vadd.f32 %v2361_v19, %v1717_v14  ;;  %1733 = vadd.xlane.f32.xlu1 %v1732_v55 }
 0x36c   :  { %v1724_v32 = vadd.f32 %v2362_v57, %v1718_v56 }
 0x36d   :  { %v1735_v58 = vsel %vm50_vm1, %v1723_v38, 0.0 }
 0x36e   :  { %v1736_v43 = vsel %vm52_vm2, %v1724_v32, 0.0 }
 0x36f   :  { %v1737_v59 = vadd.f32 %v1736_v43, %v1735_v58 }
 0x371   :  { %1738 = vadd.xlane.f32.xlu0 %v1737_v59 }
 0x3f6   :  { %v1730_v60 = vpop.xlane.xlu0 %1729 }
 0x3f7   :  { %v1740_v62 = vmul.f32 0.0052083335, %v1730_v60 }
 0x3f8   :  { %v1734_v61 = vpop.xlane.xlu1 %1733 }
 0x3f9   :  { %v1743_v63 = vsub.f32 %v1719_v29, %v1740_v62  ;;  %v1744_v0 = vsub.f32 %v1720_v34, %v1740_v62  ;;  %v1741_v1 = vmul.f32 0.0052083335, %v1734_v61  ;;  %v1725_v34 = vld [vmem:[%s3240_s7] sm:$0x3] }
 0x3fa   :  { %v1787_v28 = vrot.slane %v1725_v34, %v2642_v37  ;;  %v1791_v29 = vrot.slane %v1725_v34, %v2636_v35 }
 0x3fb   :  { %v1745_v49 = vsub.f32 %v1721_v50, %v1741_v1  ;;  %v1746_v52 = vsub.f32 %v1722_v24, %v1741_v1  ;;  %v1749_v2 = vmul.f32 %v1743_v63, %v1743_v63  ;;  %v1750_v53 = vmul.f32 %v1744_v0, %v1744_v0 }
 0x3fc   :  { %v1808_v24 = vrot.slane %v1726_v18, %v2636_v35 }
 0x3fd   :  { %v1755_v41 = vsel %vm41_vm0, %v1750_v53, 0.0  ;;  %v1751_v3 = vmul.f32 %v1745_v49, %v1745_v49  ;;  %v1752_v40 = vmul.f32 %v1746_v52, %v1746_v52 }
 0x3fe   :  { %v1739_v39 = vpop.xlane.xlu0 %1738  ;;  %v1756_v4 = vadd.f32 %v1755_v41, %v1749_v2 }
 0x3ff   :  { %v1742_v6 = vmul.f32 0.0052083335, %v1739_v39  ;;  %v1759_v31 = vsel %vm41_vm0, %v1752_v40, 0.0 }
 0x400   :  { %1757 = vadd.xlane.f32.xlu1 %v1756_v4  ;;  %v1760_v8 = vadd.f32 %v1759_v31, %v1751_v3 }
 0x401   :  { %v1747_v47 = vsub.f32 %v1723_v38, %v1742_v6  ;;  %v1748_v9 = vsub.f32 %v1724_v32, %v1742_v6 }
 0x402   :  { %1761 = vadd.xlane.f32.xlu0 %v1760_v8 }
 0x403   :  { %v1753_v11 = vmul.f32 %v1747_v47, %v1747_v47  ;;  %v1754_v5 = vmul.f32 %v1748_v9, %v1748_v9 }
 0x405   :  { %v1763_v12 = vsel %vm50_vm1, %v1753_v11, 0.0  ;;  %v1764_v13 = vsel %vm52_vm2, %v1754_v5, 0.0 }
 0x406   :  { %v1765_v15 = vadd.f32 %v1764_v13, %v1763_v12 }
 0x408   :  { %1766 = vadd.xlane.f32.xlu1 %v1765_v15 }
 0x48d   :  { %v1758_v16 = vpop.xlane.xlu1 %1757 }
 0x48e   :  { %v1768_v17 = vmul.f32 0.0052083335, %v1758_v16 }
 0x48f   :  { %v1762_v20 = vpop.xlane.xlu0 %1761 }
 0x490   :  { %v1771_v22 = vadd.f32 1e-05, %v1768_v17  ;;  %v1769_v23 = vmul.f32 0.0052083335, %v1762_v20 }
 0x492   :  { %2351 = vrsqrt.f32 %v1771_v22  ;;  %v1772_v21 = vadd.f32 1e-05, %v1769_v23 }
 0x494   :  { %2353 = vrsqrt.f32 %v1772_v21 }
 0x495   :  { %v1767_v25 = vpop.xlane.xlu1 %1766 }
 0x496   :  { %v1770_v26 = vmul.f32 0.0052083335, %v1767_v25 }
 0x498   :  { %v1773_v27 = vadd.f32 1e-05, %v1770_v26 }
 0x49a   :  { %2355 = vrsqrt.f32 %v1773_v27 }
 0x49c   :  { %v2352_v30 = vpop.eup %2351 }
 0x49d   :  { %v1777_v36 = vmul.f32 %v2352_v30, %v1743_v63  ;;  %v1778_v44 = vmul.f32 %v2352_v30, %v1744_v0 }
 0x49e   :  { %v2354_v42 = vpop.eup %2353 }
 0x49f   :  { %v1794_v50 = vmul.f32 %v1787_v28, %v1777_v36  ;;  %v1795_v51 = vmul.f32 %v1791_v29, %v1778_v44  ;;  %v1779_v46 = vmul.f32 %v2354_v42, %v1745_v49  ;;  %v1780_v48 = vmul.f32 %v2354_v42, %v1746_v52 }
 0x4a1   :  { %v1811_v10 = vadd.f32 %v1804_v33, %v1794_v50  ;;  %v1812_v45 = vadd.f32 %v1808_v24, %v1795_v51  ;;  %v1796_v7 = vmul.f32 %v1787_v28, %v1779_v46  ;;  %v1797_v14 = vmul.f32 %v1791_v29, %v1780_v48 }
 0x4a3   :  { %1817 = vst [vmem:[%s3242_s9] sm:$0xff] %v1811_v10  ;;  %1818 = vst.msk [vmem:[%s3242_s9 + $0x8] sm:$0xff] %vm41_vm0, %v1812_v45  ;;  %v1813_v35 = vadd.f32 %v1804_v33, %v1796_v7  ;;  %v1814_v37 = vadd.f32 %v1808_v24, %v1797_v14 }
 0x4a4   :  { %v2356_v54 = vpop.eup %2355 }
 0x4a5   :  { %1819 = vst [vmem:[%s3242_s9 + $0x10] sm:$0xff] %v1813_v35  ;;  %1820 = vst.msk [vmem:[%s3242_s9 + $0x18] sm:$0xff] %vm41_vm0, %v1814_v37  ;;  %v1781_v55 = vmul.f32 %v2356_v54, %v1747_v47  ;;  %v1782_v56 = vmul.f32 %v2356_v54, %v1748_v9 }
 0x4a7   :  { %v1798_v19 = vmul.f32 %v1787_v28, %v1781_v55  ;;  %v1799_v38 = vmul.f32 %v1791_v29, %v1782_v56 }
 0x4a9   :  { %v1815_v57 = vadd.f32 %v1804_v33, %v1798_v19  ;;  %v1816_v32 = vadd.f32 %v1808_v24, %v1799_v38 }
 0x4ab   :  { %1821 = vst [vmem:[%s3242_s9 + $0x20] sm:$0x3] %v1815_v57  ;;  %1822 = vst.msk [vmem:[%s3242_s9 + $0x28] sm:$0x3] %vm52_vm2, %v1816_v32 }

// kernel: conformer_forward.20
= control target key start
LH: loop header
LB: loop body
LE: loop exit
PB: predicated region body
PF: predicated region fallthrough
CT: control target
= control target key end

     0   :  { %s4072_s30 = smov 0   ;;  %s5084_s0 = inlined_call_operand.vmem [shape: f32[2,9,192], index: 0, kind: input, shape index: {}]   ;;  %s5085_s1 = inlined_call_operand.vmem [shape: f32[1,192], index: 1, kind: input, shape index: {}]   ;;  %s5086_s2 = inlined_call_operand.vmem [shape: f32[1,192], index: 2, kind: input, shape index: {}]   ;;  %s5087_s3 = inlined_call_operand.vmem [shape: bf16[4,192,48], index: 3, kind: input, shape index: {}]   ;;  %s5088_s4 = inlined_call_operand.vmem [shape: bf16[4,192,48], index: 4, kind: input, shape index: {}]   ;;  %s5089_s5 = inlined_call_operand.vmem [shape: bf16[4,192,48], index: 5, kind: input, shape index: {}]   ;;  %s5090_s6 = inlined_call_operand.vmem [shape: bf16[17,48], index: 6, kind: input, shape index: {}]   ;;  %s5091_s7 = inlined_call_operand.vmem [shape: bf16[192,192], index: 7, kind: input, shape index: {}]   ;;  %s5092_s8 = inlined_call_operand.vmem [shape: f32[1,192], index: 8, kind: input, shape index: {}]   ;;  %s5093_s9 = inlined_call_operand.vmem [shape: f32[2,9,192], index: 9, kind: output, shape index: {}]  }
   0x1 LB: > { %s3205_s10 = sadd.s32 4294967295, %s4004_s30   ;;  %p3209_p0 = scmp.ge.s32.totalorder %s4004_s30, 1  ;;  %s4004_s30 = sphi %s4072_s30, %s19_s30  }
   0x2   : > { %p287_p1 = scmp.lt.s32.totalorder %s4004_s30, 3 }
   0x4   : > { %p288_p2 = pnand %p3209_p0, %p287_p1 }
   0x5   : > { %p323_p3 = scmp.lt.s32.totalorder (!%p288_p2), %s3205_s10, 1  ;;  %vm340_vm0 = vcmask (!%p288_p2), 523264   ;;  %vm345_vm1 = vcmask (!%p288_p2), 1040384   ;;  %vm347_vm2 = vcmask (!%p288_p2), 516096   ;;  %v3776_v9 = vld [vmem:[%s5087_s3] sm:$0xff] (!%p288_p2)   ;;  %v4006_v11 = vmov (!%p288_p2), 0  }
   0x6   : > { %291 = sbr.rel (%p288_p2) target bundleno = 5026 (0x13a2), region = 56  ;;  %v3777_v10 = vld [vmem:[%s5088_s4] sm:$0xff] (!%p288_p2)   ;;  %516 = vmatprep.subr.bf16.mxu0 (!%p288_p2), %v4006_v11  ;;  %653 = vmatprep.subr.bf16.mxu1 (!%p288_p2), %v4006_v11  ;;  %v3778_v12 = vld [vmem:[%s5087_s3 + $0x8] sm:$0xff] (!%p288_p2)   ;;  %v3780_v14 = vld [vmem:[%s5087_s3 + $0x10] sm:$0xff] (!%p288_p2)   ;;  %v4007_v51 = vmov (!%p288_p2), 0.0   ;;  %v383_v55 = vlaneseq (!%p288_p2)  ;;  %vm841_vm3 = vcmask (!%p288_p2), 392192  }
   0x7   : > { %517 = vmatpush1.bf16.msra.mxu0 (!%p288_p2), %v3776_v9  ;;  %654 = vmatpush1.bf16.msra.mxu1 (!%p288_p2), %v3777_v10  ;;  %v3779_v13 = vld [vmem:[%s5088_s4 + $0x8] sm:$0xff] (!%p288_p2)   ;;  %v3781_v15 = vld [vmem:[%s5088_s4 + $0x10] sm:$0xff] (!%p288_p2)   ;;  %v3782_v16 = vld [vmem:[%s5087_s3 + $0x18] sm:$0xff] (!%p288_p2)   ;;  %vm4008_vm4 = vmmov (!%p288_p2), 0   ;;  %vm922_vm5 = vcmask (!%p288_p2), 1043456   ;;  %vm924_vm6 = vcmask (!%p288_p2), 1044480  }
   0x8   : > { %518 = vmatprep.subr.bf16.mxu0 (!%p288_p2), %v4006_v11  ;;  %655 = vmatprep.subr.bf16.mxu1 (!%p288_p2), %v4006_v11  ;;  %v3783_v17 = vld [vmem:[%s5088_s4 + $0x18] sm:$0xff] (!%p288_p2)   ;;  %v3784_v18 = vld [vmem:[%s5087_s3 + $0x20] sm:$0xff] (!%p288_p2)   ;;  %v3786_v37 = vld [vmem:[%s5087_s3 + $0x28] sm:$0xff] (!%p288_p2)   ;;  %v384_v59 = vshrl.u32 (!%p288_p2), %v383_v55, 7  ;;  %s4010_s17 = smov (!%p288_p2), 2   ;;  %s4011_s18 = smov (!%p288_p2), 1  }
   0x9   : > { %v3785_v19 = vld [vmem:[%s5088_s4 + $0x20] sm:$0xff] (!%p288_p2)   ;;  %v3787_v38 = vld [vmem:[%s5088_s4 + $0x28] sm:$0xff] (!%p288_p2)   ;;  %v3788_v39 = vld [vmem:[%s5087_s3 + $0x30] sm:$0xff] (!%p288_p2)   ;;  %s4012_s19 = smov (!%p288_p2), 3   ;;  %s4013_s20 = smov (!%p288_p2), 5   ;;  %vm918_vm7 = vcmask (!%p288_p2), 1041408  }
   0xa   : > { %v3789_v40 = vld [vmem:[%s5088_s4 + $0x30] sm:$0xff] (!%p288_p2)   ;;  %v3790_v41 = vld [vmem:[%s5087_s3 + $0x38] sm:$0xff] (!%p288_p2)   ;;  %v3792_v43 = vld [vmem:[%s5087_s3 + $0x40] sm:$0xff] (!%p288_p2)   ;;  %v4214_v60 = vsub.s32 (!%p288_p2), 0, %v384_v59  ;;  %v4216_v61 = vsub.s32 (!%p288_p2), 1, %v384_v59  ;;  %s4014_s21 = smov (!%p288_p2), 4  }
   0xb   : > { %519 = vmatpush1.bf16.msra.mxu0 (!%p288_p2), %v3778_v12  ;;  %656 = vmatpush1.bf16.msra.mxu1 (!%p288_p2), %v3779_v13  ;;  %v3791_v42 = vld [vmem:[%s5088_s4 + $0x38] sm:$0xff] (!%p288_p2)   ;;  %v3793_v44 = vld [vmem:[%s5088_s4 + $0x40] sm:$0xff] (!%p288_p2)   ;;  %v3794_v45 = vld [vmem:[%s5087_s3 + $0x48] sm:$0xff] (!%p288_p2)   ;;  %s4015_s22 = smov (!%p288_p2), 7   ;;  %s4016_s23 = smov (!%p288_p2), 6   ;;  %vm920_vm8 = vcmask (!%p288_p2), 1042432  }
   0xc   : > { %520 = vmatprep.subr.bf16.mxu0 (!%p288_p2), %v4006_v11  ;;  %657 = vmatprep.subr.bf16.mxu1 (!%p288_p2), %v4006_v11  ;;  %v3795_v46 = vld [vmem:[%s5088_s4 + $0x48] sm:$0xff] (!%p288_p2)   ;;  %v3796_v47 = vld [vmem:[%s5087_s3 + $0x50] sm:$0xff] (!%p288_p2)   ;;  %v3798_v49 = vld [vmem:[%s5087_s3 + $0x58] sm:$0xff] (!%p288_p2)   ;;  %s4017_s24 = smov (!%p288_p2), 8   ;;  %vm926_vm9 = vcmask (!%p288_p2), 1045504   ;;  %vm928_vm10 = vcmask (!%p288_p2), 1046528  }
   0xd   : > { %s5095_s10 = smov (!%p323_p3, %s3205_s10), 1  ;;  %v3797_v48 = vld [vmem:[%s5088_s4 + $0x50] sm:$0xff]   ;;  %v3799_v50 = vld [vmem:[%s5088_s4 + $0x58] sm:$0xff]   ;;  %v338_v62 = vld [vmem:[%s5085_s1] sm:$0x3]  ;;  %s4018_s25 = smov 120  }
   0xe   : > { %s3627_s11 = sshll.u32 %s5095_s10, 5  ;;  %vm983_vm11 = vcmask 72704   ;;  %vm987_vm12 = vcmask 65536   ;;  %vm2932_vm13 = vcmask 785408   ;;  %s4021_s16 = smov 16   ;;  %vm2935_vm14 = vcmask 130048  }
   0xf   : > { %s4088_s14 = scalar_lea.vmem %s5084_s0, %s3627_s11  ;;  %521 = vmatpush1.bf16.msra.mxu0 %v3780_v14  ;;  %658 = vmatpush1.bf16.msra.mxu1 %v3781_v15 }
  0x10   : > { %v334_v0 = vld [vmem:[%s4088_s14] sm:$0xff]  ;;  %v335_v1 = vld [vmem:[%s4088_s14 + $0x8] sm:$0xff]  ;;  %v336_v2 = vld [vmem:[%s4088_s14 + $0x10] sm:$0x1]  ;;  %522 = vmatprep.subr.bf16.mxu0 %v4006_v11  ;;  %659 = vmatprep.subr.bf16.mxu1 %v4006_v11 }
  0x11   : > { %v341_v3 = vsel %vm340_vm0, %v335_v1, 0.0  ;;  %v337_v4 = vld [vmem:[%s4088_s14 + $0x18] sm:$0x1]  ;;  %v346_v5 = vsel %vm345_vm1, %v336_v2, 0.0 }
  0x12   : > { %v342_v6 = vadd.f32 %v341_v3, %v334_v0  ;;  %v348_v7 = vsel %vm347_vm2, %v337_v4, 0.0 }
  0x13   : > { %v349_v8 = vadd.f32 %v348_v7, %v346_v5  ;;  %523 = vmatpush1.bf16.msra.mxu0 %v3782_v16  ;;  %660 = vmatpush1.bf16.msra.mxu1 %v3783_v17 }
  0x14   : > { %343 = vadd.xlane.f32.xlu0 %v342_v6  ;;  %524 = vmatprep.subr.bf16.mxu0 %v4006_v11 }
  0x15   : > { %661 = vmatprep.subr.bf16.mxu1 %v4006_v11 }
  0x17   : > { %525 = vmatpush1.bf16.msra.mxu0 %v3784_v18  ;;  %662 = vmatpush1.bf16.msra.mxu1 %v3785_v19  ;;  %v3824_v19 = vld [vmem:[%s5090_s6] sm:$0xff]  }
  0x18   : > { %350 = vadd.xlane.f32.xlu0 %v349_v8  ;;  %526 = vmatprep.subr.bf16.mxu0 %v4006_v11 }
  0x19   : > { %663 = vmatprep.subr.bf16.mxu1 %v4006_v11 }
  0x1b   : > { %527 = vmatpush1.bf16.msra.mxu0 %v3786_v37  ;;  %664 = vmatpush1.bf16.msra.mxu1 %v3787_v38  ;;  %v3812_v37 = vld [vmem:[%s5088_s4 + $0x60] sm:$0xff]   ;;  %v3813_v38 = vld [vmem:[%s5088_s4 + $0x68] sm:$0xff]  }
  0x1c   : > { %528 = vmatprep.subr.bf16.mxu0 %v4006_v11  ;;  %665 = vmatprep.subr.bf16.mxu1 %v4006_v11 }
  0x1f   : > { %529 = vmatpush1.bf16.msra.mxu0 %v3788_v39  ;;  %666 = vmatpush1.bf16.msra.mxu1 %v3789_v40  ;;  %v3814_v39 = vld [vmem:[%s5088_s4 + $0x70] sm:$0xff]   ;;  %v3815_v40 = vld [vmem:[%s5088_s4 + $0x78] sm:$0xff]  }
  0x20   : > { %530 = vmatprep.subr.bf16.mxu0 %v4006_v11  ;;  %667 = vmatprep.subr.bf16.mxu1 %v4006_v11 }
  0x23   : > { %531 = vmatpush1.bf16.msra.mxu0 %v3790_v41  ;;  %668 = vmatpush1.bf16.msra.mxu1 %v3791_v42  ;;  %v3816_v41 = vld [vmem:[%s5088_s4 + $0x80] sm:$0xff]   ;;  %v3817_v42 = vld [vmem:[%s5088_s4 + $0x88] sm:$0xff]  }
  0x24   : > { %532 = vmatprep.subr.bf16.mxu0 %v4006_v11  ;;  %669 = vmatprep.subr.bf16.mxu1 %v4006_v11 }
  0x27   : > { %533 = vmatpush1.bf16.msra.mxu0 %v3792_v43  ;;  %670 = vmatpush1.bf16.msra.mxu1 %v3793_v44  ;;  %v3818_v43 = vld [vmem:[%s5088_s4 + $0x90] sm:$0xff]   ;;  %v3819_v44 = vld [vmem:[%s5088_s4 + $0x98] sm:$0xff]  }
  0x28   : > { %534 = vmatprep.subr.bf16.mxu0 %v4006_v11  ;;  %671 = vmatprep.subr.bf16.mxu1 %v4006_v11 }
  0x2b   : > { %535 = vmatpush1.bf16.msra.mxu0 %v3794_v45  ;;  %672 = vmatpush1.bf16.msra.mxu1 %v3795_v46  ;;  %v3820_v45 = vld [vmem:[%s5088_s4 + $0xa0] sm:$0xff]   ;;  %v3821_v46 = vld [vmem:[%s5088_s4 + $0xa8] sm:$0xff]  }
  0x2c   : > { %536 = vmatprep.subr.bf16.mxu0 %v4006_v11  ;;  %673 = vmatprep.subr.bf16.mxu1 %v4006_v11 }
  0x2f   : > { %537 = vmatpush1.bf16.msra.mxu0 %v3796_v47  ;;  %674 = vmatpush1.bf16.msra.mxu1 %v3797_v48  ;;  %v3822_v47 = vld [vmem:[%s5088_s4 + $0xb0] sm:$0xff]   ;;  %v3823_v48 = vld [vmem:[%s5088_s4 + $0xb8] sm:$0xff]  }
  0x30   : > { %538 = vmatprep.subr.bf16.mxu0 %v4006_v11  ;;  %675 = vmatprep.subr.bf16.mxu1 %v4006_v11 }
  0x33   : > { %539 = vmatpush1.bf16.msra.mxu0 %v3798_v49  ;;  %676 = vmatpush1.bf16.msra.mxu1 %v3799_v50 }
  0x34   : > { %790 = vmatprep.subr.bf16.mxu0 %v4006_v11  ;;  %3657 = vmatprep.subr.bf16.mxu1 %v4007_v51 }
  0xa1   : > { %v344_v20 = vpop.xlane.xlu0 %343 }
  0xa2   : > { %v353_v21 = vmul.f32 0.0052083335, %v344_v20 }
  0xa4   : > { %v4139_v22 = vsub.f32 %v334_v0, %v353_v21  ;;  %v4141_v23 = vsub.f32 %v335_v1, %v353_v21  ;;  %v339_v0 = vld [vmem:[%s5086_s2] sm:$0x3]  ;;  %v386_v1 = vrot.slane %v338_v62, %v4214_v60 }
  0xa5   : > { %v351_v24 = vpop.xlane.xlu0 %350  ;;  %v401_v6 = vrot.slane %v339_v0, %v4214_v60  ;;  %v405_v7 = vrot.slane %v339_v0, %v4216_v61 }
  0xa6   : > { %v354_v25 = vmul.f32 0.0052083335, %v351_v24  ;;  %v359_v26 = vmul.f32 %v4139_v22, %v4139_v22  ;;  %v360_v27 = vmul.f32 %v4141_v23, %v4141_v23  ;;  %v3801_v24 = vld [vmem:[%s5089_s5 + $0x8] sm:$0xff]  }
  0xa8   : > { %v4147_v28 = vsub.f32 %v336_v2, %v354_v25  ;;  %v4149_v29 = vsub.f32 %v337_v4, %v354_v25  ;;  %v363_v30 = vsel %vm340_vm0, %v360_v27, 0.0  ;;  %v390_v2 = vrot.slane %v338_v62, %v4216_v61  ;;  %v3825_v25 = vld [vmem:[%s5090_s6 + $0x8] ss:$0 sps:$4 sm:$0x11]  }
  0xa9   : > { %v364_v31 = vadd.f32 %v363_v30, %v359_v26  ;;  %v3802_v26 = vld [vmem:[%s5089_s5 + $0x10] sm:$0xff]   ;;  %v4267_v27 = vsel %vm841_vm3, %v3825_v25, 0  ;;  %v3805_v30 = vld [vmem:[%s5089_s5 + $0x28] sm:$0xff]  }
  0xaa   : > { %v361_v32 = vmul.f32 %v4147_v28, %v4147_v28  ;;  %v362_v33 = vmul.f32 %v4149_v29, %v4149_v29 }
  0xab   : > { %365 = vadd.xlane.f32.xlu1 %v364_v31  ;;  %v3806_v31 = vld [vmem:[%s5089_s5 + $0x30] sm:$0xff]  }
  0xac   : > { %v367_v34 = vsel %vm345_vm1, %v361_v32, 0.0  ;;  %v368_v35 = vsel %vm347_vm2, %v362_v33, 0.0  ;;  %v3807_v32 = vld [vmem:[%s5089_s5 + $0x38] sm:$0xff]   ;;  %v3808_v33 = vld [vmem:[%s5089_s5 + $0x40] sm:$0xff]  }
  0xad   : > { %v369_v36 = vadd.f32 %v368_v35, %v367_v34  ;;  %v3809_v34 = vld [vmem:[%s5089_s5 + $0x48] sm:$0xff]   ;;  %v3810_v35 = vld [vmem:[%s5089_s5 + $0x50] sm:$0xff]  }
  0xaf   : > { %370 = vadd.xlane.f32.xlu1 %v369_v36  ;;  %v3811_v36 = vld [vmem:[%s5089_s5 + $0x58] sm:$0xff]  }
 0x138   : > { %v366_v52 = vpop.xlane.xlu1 %365 }
 0x139   : > { %v372_v53 = vmul.f32 0.0052083335, %v366_v52 }
 0x13b   : > { %v374_v54 = vadd.f32 1e-05, %v372_v53 }
 0x13c   : > { %v371_v56 = vpop.xlane.xlu1 %370 }
 0x13d   : > { %3958 = vrsqrt.f32 %v374_v54  ;;  %v373_v57 = vmul.f32 0.0052083335, %v371_v56 }
 0x13f   : > { %v375_v58 = vadd.f32 1e-05, %v373_v57 }
 0x141   : > { %3960 = vrsqrt.f32 %v375_v58 }
 0x147   : > { %v3959_v63 = vpop.eup %3958 }
 0x148   : > { %v378_v3 = vmul.f32 %v3959_v63, %v4139_v22  ;;  %v379_v4 = vmul.f32 %v3959_v63, %v4141_v23  ;;  %v3800_v22 = vld [vmem:[%s5089_s5] sm:$0xff]   ;;  %v4247_v23 = vsel %vm841_vm3, %v3824_v19, 0  ;;  %v4009_v63 = vmov 65535  }
 0x149   : > { %v1012_v0 = vsel %vm922_vm5, 4294967295, %v4009_v63 }
 0x14a   : > { %v393_v8 = vmul.f32 %v386_v1, %v378_v3  ;;  %v394_v9 = vmul.f32 %v390_v2, %v379_v4  ;;  %v4374_v4 = vsel %vm924_vm6, %v1012_v0, 0 }
 0x14b   : > { %v3961_v5 = vpop.eup %3960 }
 0x14c   : > { %v380_v10 = vmul.f32 %v3961_v5, %v4147_v28  ;;  %v381_v12 = vmul.f32 %v3961_v5, %v4149_v29  ;;  %v408_v15 = vadd.f32 %v401_v6, %v393_v8  ;;  %v409_v16 = vadd.f32 %v405_v7, %v394_v9  ;;  %v3803_v28 = vld [vmem:[%s5089_s5 + $0x18] sm:$0xff]   ;;  %v3804_v29 = vld [vmem:[%s5089_s5 + $0x20] sm:$0xff]  }
 0x14e   : > { %v395_v13 = vmul.f32 %v386_v1, %v380_v10  ;;  %v396_v14 = vmul.f32 %v390_v2, %v381_v12 }
 0x150   : > { %v410_v17 = vadd.f32 %v401_v6, %v395_v13  ;;  %v411_v18 = vadd.f32 %v405_v7, %v396_v14 }
 0x152   : > { %v4235_v20 = vpack.c.bf16 %v410_v17, %v408_v15  ;;  %v4237_v21 = vpack.c.bf16 %v411_v18, %v409_v16 }
 0x154   : > { %3226 = vmatprep.mubr.msk.bf16.mxu0 %vm340_vm0, %v4237_v21  ;;  %3239 = vmatprep.mubr.msk.bf16.mxu1 %vm340_vm0, %v4237_v21 }
 0x155   : > { %549 = vmatmul.mubr.bf16.vlgmr.msra.gmra.mrb[0].mxu0 %v4235_v20  ;;  %686 = vmatmul.mubr.bf16.vlgmr.msra.gmra.mrb[0].mxu1 %v4235_v20 }
 0x156   : > { %791 = vmatpush1.bf16.msra.mxu0 %v3800_v22  ;;  %3252 = vmatprep.mubr.msk.bf16.mxu0 %vm340_vm0, %v4237_v21 }
 0x157   : > { %792 = vmatprep.subr.bf16.mxu0 %v4006_v11  ;;  %3658 = vmatpush3.bf16.xpose.msra.mxu1 %v4247_v23 }
 0x158   : > { %3659 = vmatprep.subr.bf16.mxu1 %v4007_v51  ;;  %3661 = vmatprep.mubr.msk.bf16.mxu1 %vm4008_vm4, %v4007_v51 }
 0x15a   : > { %793 = vmatpush1.bf16.msra.mxu0 %v3801_v24 }
 0x15b   : > { %794 = vmatprep.subr.bf16.mxu0 %v4006_v11 }
 0x15e   : > { %795 = vmatpush1.bf16.msra.mxu0 %v3802_v26 }
 0x15f   : > { %796 = vmatprep.subr.bf16.mxu0 %v4006_v11  ;;  %3660 = vmatpush3.bf16.xpose.msra.mxu1 %v4267_v27 }
 0x160   : > { %3665 = vmatprep.subr.bf16.mxu1 %v4007_v51 }
 0x162   : > { %797 = vmatpush1.bf16.msra.mxu0 %v3803_v28 }
 0x163   : > { %798 = vmatprep.subr.bf16.mxu0 %v4006_v11 }
 0x166   : > { %799 = vmatpush1.bf16.msra.mxu0 %v3804_v29 }
 0x167   : > { %800 = vmatprep.subr.bf16.mxu0 %v4006_v11 }
 0x16a   : > { %801 = vmatpush1.bf16.msra.mxu0 %v3805_v30 }
 0x16b   : > { %802 = vmatprep.subr.bf16.mxu0 %v4006_v11 }
 0x16e   : > { %803 = vmatpush1.bf16.msra.mxu0 %v3806_v31 }
 0x16f   : > { %804 = vmatprep.subr.bf16.mxu0 %v4006_v11 }
 0x172   : > { %805 = vmatpush1.bf16.msra.mxu0 %v3807_v32 }
 0x173   : > { %806 = vmatprep.subr.bf16.mxu0 %v4006_v11 }
 0x176   : > { %807 = vmatpush1.bf16.msra.mxu0 %v3808_v33 }
 0x177   : > { %808 = vmatprep.subr.bf16.mxu0 %v4006_v11 }
 0x17a   : > { %809 = vmatpush1.bf16.msra.mxu0 %v3809_v34 }
 0x17b   : > { %810 = vmatprep.subr.bf16.mxu0 %v4006_v11 }
 0x17e   : > { %811 = vmatpush1.bf16.msra.mxu0 %v3810_v35 }
 0x17f   : > { %812 = vmatprep.subr.bf16.mxu0 %v4006_v11 }
 0x182   : > { %813 = vmatpush1.bf16.msra.mxu0 %v3811_v36 }
 0x183   : > { %1293 = vmatprep.subr.bf16.mxu0 %v4006_v11 }
 0x185   : > { %823 = vmatmul.mubr.bf16.vlgmr.msra.gmra.mrb[4].mxu0 %v4235_v20 }
 0x186   : > { %1294 = vmatpush1.bf16.msra.mxu0 %v3812_v37  ;;  %3331 = vmatprep.mubr.msk.bf16.mxu0 %vm340_vm0, %v4237_v21 }
 0x187   : > { %1295 = vmatprep.subr.bf16.mxu0 %v4006_v11 }
 0x18a   : > { %1296 = vmatpush1.bf16.msra.mxu0 %v3813_v38 }
 0x18b   : > { %1297 = vmatprep.subr.bf16.mxu0 %v4006_v11 }
 0x18e   : > { %1298 = vmatpush1.bf16.msra.mxu0 %v3814_v39 }
 0x18f   : > { %1299 = vmatprep.subr.bf16.mxu0 %v4006_v11 }
 0x192   : > { %1300 = vmatpush1.bf16.msra.mxu0 %v3815_v40 }
 0x193   : > { %1301 = vmatprep.subr.bf16.mxu0 %v4006_v11 }
 0x196   : > { %1302 = vmatpush1.bf16.msra.mxu0 %v3816_v41 }
 0x197   : > { %1303 = vmatprep.subr.bf16.mxu0 %v4006_v11 }
 0x19a   : > { %1304 = vmatpush1.bf16.msra.mxu0 %v3817_v42 }
 0x19b   : > { %1305 = vmatprep.subr.bf16.mxu0 %v4006_v11 }
 0x19e   : > { %1306 = vmatpush1.bf16.msra.mxu0 %v3818_v43 }
 0x19f   : > { %1307 = vmatprep.subr.bf16.mxu0 %v4006_v11 }
 0x1a2   : > { %1308 = vmatpush1.bf16.msra.mxu0 %v3819_v44 }
 0x1a3   : > { %1309 = vmatprep.subr.bf16.mxu0 %v4006_v11 }
 0x1a6   : > { %1310 = vmatpush1.bf16.msra.mxu0 %v3820_v45 }
 0x1a7   : > { %1311 = vmatprep.subr.bf16.mxu0 %v4006_v11 }
 0x1aa   : > { %1312 = vmatpush1.bf16.msra.mxu0 %v3821_v46 }
 0x1ab   : > { %1313 = vmatprep.subr.bf16.mxu0 %v4006_v11 }
 0x1ae   : > { %1314 = vmatpush1.bf16.msra.mxu0 %v3822_v47 }
 0x1af   : > { %1315 = vmatprep.subr.bf16.mxu0 %v4006_v11 }
 0x1b2   : > { %1316 = vmatpush1.bf16.msra.mxu0 %v3823_v48 }
 0x1b3   : > { %3691 = vmatprep.subr.bf16.mxu0 %v4007_v51 }
 0x1b5   : > { %1326 = vmatmul.mubr.bf16.vlgmr.msra.gmra.mrb[8].mxu0 %v4235_v20 }
 0x1b6   : > { %3693 = vmatprep.mubr.msk.bf16.mxu0 %vm4008_vm4, %v4007_v51 }
 0x228   : > { %v550_v49 = vpop.f32.mrb[0].mxu0  ;;  %v687_v50 = vpop.f32.mrb[0].mxu1 }
 0x229   : > { %v552_v52 = vpop.f32.mrb[1].mxu0  ;;  %v689_v53 = vpop.f32.mrb[1].mxu1 }
 0x22a   : > { %v553_v54 = vpop.f32.mrb[2].mxu0  ;;  %v690_v55 = vpop.f32.mrb[2].mxu1 }
 0x22b   : > { %v831_v56 = vpack.c.bf16 %v553_v54, %v550_v49  ;;  %v832_v57 = vpack.c.bf16 %v690_v55, %v687_v50  ;;  %v555_v58 = vpop.f32.mrb[3].mxu0  ;;  %v692_v59 = vpop.f32.mrb[3].mxu1 }
 0x22d   : > { %v938_v62 = vsel %vm841_vm3, %v832_v57, 0  ;;  %3662 = vmatmul.mubr.msk.bf16.vlgmr.msra.gmra.mrb[4].mxu1 %vm841_vm3, %v831_v56 }
 0x22e   : > { %3666 = vmatpush3.bf16.xpose.msra.mxu1 %v938_v62  ;;  %3667 = vmatprep.mubr.msk.bf16.mxu1 %vm4008_vm4, %v4007_v51 }
 0x22f   : > { %3671 = vmatprep.subr.bf16.mxu1 %v4007_v51 }
 0x235   : > { %3668 = vmatmul.mubr.msk.bf16.vlgmr.msra.gmra.mrb[8].mxu1 %vm841_vm3, %v831_v56 }
 0x236   : > { %3673 = vmatprep.mubr.msk.bf16.mxu1 %vm4008_vm4, %v4007_v51 }
 0x258   : > { %v824_v1 = vpop.f32.mrb[4].mxu0 }
 0x259   : > { %v826_v2 = vpop.f32.mrb[5].mxu0 }
 0x25a   : > { %v827_v3 = vpop.f32.mrb[6].mxu0 }
 0x25b   : > { %v1008_v5 = vpack.c.bf16 %v827_v3, %v824_v1  ;;  %v829_v6 = vpop.f32.mrb[7].mxu0 }
 0x25d   : > { %v1015_v7 = vand.u32 %v4374_v4, %v1008_v5  ;;  %v3826_v5 = vld [vmem:[%s5087_s3 + $0x60] sm:$0xff]  }
 0x25f   : > { %3672 = vmatpush3.bf16.msra.mxu1 %v1015_v7  ;;  %v3827_v7 = vld [vmem:[%s5087_s3 + $0x68] sm:$0xff]  }
 0x260   : > { %1155 = vmatprep.subr.bf16.mxu1 %v4006_v11 }
 0x288   : > { %v4378_v8 = vpop.f32.mrb[8].mxu0 }
 0x289   : > { %v1329_v9 = vpop.f32.mrb[9].mxu0 }
 0x28a   : > { %v4380_v10 = vpop.f32.mrb[10].mxu0  ;;  %v3828_v9 = vld [vmem:[%s5087_s3 + $0x70] sm:$0xff]  }
 0x28b   : > { %v1473_v12 = vpack.c.bf16 %v4380_v10, %v4378_v8  ;;  %v1332_v13 = vpop.f32.mrb[11].mxu0  ;;  %v3851_v8 = vld [vmem:[%s5088_s4 + $0xc8] sm:$0xff]   ;;  %v3852_v10 = vld [vmem:[%s5088_s4 + $0xd0] sm:$0xff]  }
 0x28c   : > { %v3829_v13 = vld [vmem:[%s5087_s3 + $0x78] sm:$0xff]  }
 0x300   : > { %v885_v14 = vpop.f32.mrb[4].mxu1 }
 0x301   : > { %896 = vrot.lane.b32.xlu1 %v885_v14, %s4010_s17  ;;  %893 = vrot.lane.b32.xlu0 %v885_v14, %s4011_s18  ;;  %v3663_v15 = vpop.f32.mrb[5].mxu1 }
 0x302   : > { %v888_v16 = vpop.f32.mrb[6].mxu1  ;;  %v3831_v15 = vld [vmem:[%s5087_s3 + $0x88] sm:$0xff]  }
 0x303   : > { %v3664_v17 = vpop.f32.mrb[7].mxu1 }
 0x304   : > { %v3833_v17 = vld [vmem:[%s5087_s3 + $0x98] sm:$0xff]  }
 0x305   : > { %899 = vrot.lane.b32.xlu1 %v885_v14, %s4012_s19  ;;  %905 = vrot.lane.b32.xlu0 %v885_v14, %s4013_s20 }
 0x308   : > { %v974_v18 = vpop.f32.mrb[8].mxu1 }
 0x309   : > { %902 = vrot.lane.b32.xlu1 %v885_v14, %s4014_s21  ;;  %911 = vrot.lane.b32.xlu0 %v885_v14, %s4015_s22  ;;  %v3669_v19 = vpop.f32.mrb[9].mxu1 }
 0x30a   : > { %v977_v22 = vpop.f32.mrb[10].mxu1  ;;  %v3835_v19 = vld [vmem:[%s5087_s3 + $0xa8] sm:$0xff]  }
 0x30b   : > { %v3670_v24 = vpop.f32.mrb[11].mxu1 }
 0x30c   : > { %v3837_v24 = vld [vmem:[%s5087_s3 + $0xb8] sm:$0xff]  }
 0x30d   : > { %908 = vrot.lane.b32.xlu1 %v885_v14, %s4016_s23 }
 0x311   : > { %915 = vrot.lane.b32.xlu1 %v888_v16, %s4017_s24  ;;  %v3832_v16 = vld [vmem:[%s5087_s3 + $0x90] sm:$0xff]  }
 0x373   : > { %v897_v25 = vpop.permute.xlu1 %896  ;;  %v894_v26 = vpop.permute.xlu0 %893 }
 0x374   : > { %v917_v28 = vsel %vm345_vm1, %v885_v14, %v894_v26  ;;  %v3830_v14 = vld [vmem:[%s5087_s3 + $0x80] sm:$0xff]   ;;  %v3839_v26 = vld [vmem:[%s5089_s5 + $0x68] sm:$0xff]  }
 0x375   : > { %v919_v30 = vsel %vm918_vm7, %v917_v28, %v897_v25  ;;  %v3838_v25 = vld [vmem:[%s5089_s5 + $0x60] sm:$0xff]   ;;  %v3840_v28 = vld [vmem:[%s5089_s5 + $0x70] sm:$0xff]  }
 0x377   : > { %v900_v29 = vpop.permute.xlu1 %899  ;;  %v906_v31 = vpop.permute.xlu0 %905 }
 0x378   : > { %v921_v32 = vsel %vm920_vm8, %v919_v30, %v900_v29  ;;  %v3841_v29 = vld [vmem:[%s5089_s5 + $0x78] sm:$0xff]   ;;  %v3842_v30 = vld [vmem:[%s5089_s5 + $0x80] sm:$0xff]  }
 0x37b   : > { %v903_v33 = vpop.permute.xlu1 %902  ;;  %v912_v37 = vpop.permute.xlu0 %911 }
 0x37c   : > { %v923_v34 = vsel %vm922_vm5, %v921_v32, %v903_v33  ;;  %v3844_v32 = vld [vmem:[%s5089_s5 + $0x90] sm:$0xff]   ;;  %v3845_v33 = vld [vmem:[%s5089_s5 + $0x98] sm:$0xff]  }
 0x37d   : > { %v925_v36 = vsel %vm924_vm6, %v923_v34, %v906_v31  ;;  %v3843_v31 = vld [vmem:[%s5089_s5 + $0x88] sm:$0xff]   ;;  %v3846_v34 = vld [vmem:[%s5089_s5 + $0xa0] sm:$0xff]  }
 0x37f   : > { %v909_v35 = vpop.permute.xlu1 %908 }
 0x380   : > { %v927_v38 = vsel %vm926_vm9, %v925_v36, %v909_v35  ;;  %v3847_v35 = vld [vmem:[%s5089_s5 + $0xa8] sm:$0xff]   ;;  %v3848_v36 = vld [vmem:[%s5089_s5 + $0xb0] sm:$0xff]  }
 0x381   : > { %v929_v39 = vsel %vm928_vm10, %v927_v38, %v912_v37  ;;  %v3849_v37 = vld [vmem:[%s5089_s5 + $0xb8] sm:$0xff]  }
 0x382   : > { %931 = vrot.lane.b32.xlu0 %v929_v39, %s4018_s25 }
 0x383   : > { %v916_v40 = vpop.permute.xlu1 %915 }
 0x384   : > { %933 = vrot.lane.b32.xlu1 %v916_v40, %s4018_s25 }
 0x3f4   : > { %v932_v41 = vpop.permute.xlu0 %931 }
 0x3f5   : > { %v975_v42 = vadd.f32 %v974_v18, %v932_v41  ;;  %v3834_v18 = vld [vmem:[%s5087_s3 + $0xa0] sm:$0xff]  }
 0x3f6   : > { %v934_v43 = vpop.permute.xlu1 %933 }
 0x3f7   : > { %v981_v44 = vmul.f32 0.14433756, %v975_v42  ;;  %v978_v45 = vadd.f32 %v977_v22, %v934_v43  ;;  %v3836_v22 = vld [vmem:[%s5087_s3 + $0xb0] sm:$0xff]  }
 0x3f9   : > { %v982_v46 = vmul.f32 0.14433756, %v978_v45  ;;  %v984_v47 = vsel %vm983_vm11, %v981_v44, -inf }
 0x3fa   : > { %985 = vmax.xlane.f32.xlu0 %v984_v47  ;;  %v1558_v47 = vsel %vm841_vm3, %v1473_v12, 0  ;;  %v3853_v12 = vld [vmem:[%s5088_s4 + $0xd8] sm:$0xff]  }
 0x3fb   : > { %v988_v48 = vsel %vm987_vm12, %v982_v46, -inf }
 0x3fc   : > { %989 = vmax.xlane.f32.xlu1 %v988_v48  ;;  %v3850_v48 = vld [vmem:[%s5088_s4 + $0xc0] sm:$0xff]  }
 0x487   : > { %v986_v49 = vpop.xlane.xlu0 %985 }
 0x488   : > { %v991_v50 = vsub.f32 %v981_v44, %v986_v49  ;;  %v3854_v49 = vld [vmem:[%s5088_s4 + $0xe0] sm:$0xff]  }
 0x489   : > { %v990_v52 = vpop.xlane.xlu1 %989 }
 0x48a   : > { %v993_v53 = vmul.f32 1.442695, %v991_v50  ;;  %v992_v54 = vsub.f32 %v982_v46, %v990_v52  ;;  %v3855_v50 = vld [vmem:[%s5088_s4 + $0xe8] sm:$0xff]   ;;  %v3856_v52 = vld [vmem:[%s5088_s4 + $0xf0] sm:$0xff]  }
 0x48c   : > { %3962 = vpow2.f32 %v993_v53  ;;  %v995_v55 = vmul.f32 1.442695, %v992_v54  ;;  %v3857_v53 = vld [vmem:[%s5088_s4 + $0xf8] sm:$0xff]   ;;  %v3858_v54 = vld [vmem:[%s5088_s4 + $0x100] sm:$0xff]  }
 0x48e   : > { %3964 = vpow2.f32 %v995_v55  ;;  %v3859_v55 = vld [vmem:[%s5088_s4 + $0x108] sm:$0xff]  }
 0x496   : > { %v3963_v56 = vpop.eup %3962 }
 0x497   : > { %v997_v57 = vsel %vm983_vm11, %v3963_v56, 0.0 }
 0x498   : > { %v3965_v58 = vpop.eup %3964  ;;  %998 = vadd.xlane.f32.xlu0 %v997_v57 }
 0x499   : > { %v1000_v59 = vsel %vm987_vm12, %v3965_v58, 0.0 }
 0x49c   : > { %1001 = vadd.xlane.f32.xlu0 %v1000_v59  ;;  %v3860_v59 = vld [vmem:[%s5088_s4 + $0x110] sm:$0xff]  }
 0x525   : > { %v999_v62 = vpop.xlane.xlu0 %998 }
 0x526   : > { %3966 = vrcp.f32 %v999_v62 }
 0x529   : > { %v1002_v63 = vpop.xlane.xlu0 %1001 }
 0x52a   : > { %3968 = vrcp.f32 %v1002_v63 }
 0x530   : > { %v3967_v0 = vpop.eup %3966 }
 0x531   : > { %v1004_v2 = vmul.f32 %v3967_v0, %v3963_v56 }
 0x534   : > { %v3969_v1 = vpop.eup %3968 }
 0x535   : > { %v1006_v3 = vmul.f32 %v3969_v1, %v3965_v58  ;;  %v3861_v1 = vld [vmem:[%s5088_s4 + $0x118] sm:$0xff]  }
 0x537   : > { %v1007_v6 = vpack.c.bf16 %v1006_v3, %v1004_v2 }
 0x539   : > { %3674 = vmatmul.mubr.msk.bf16.vlgmr.msra.gmra.mrb[12].mxu1 %vm983_vm11, %v1007_v6 }
 0x53a   : > { %1156 = vmatpush1.bf16.msra.mxu1 %v3826_v5  ;;  %3294 = vmatprep.mubr.msk.bf16.mxu1 %vm340_vm0, %v4237_v21 }
 0x53b   : > { %1157 = vmatprep.subr.bf16.mxu1 %v4006_v11 }
 0x53e   : > { %1158 = vmatpush1.bf16.msra.mxu1 %v3827_v7 }
 0x53f   : > { %1159 = vmatprep.subr.bf16.mxu1 %v4006_v11 }
 0x542   : > { %1160 = vmatpush1.bf16.msra.mxu1 %v3828_v9 }
 0x543   : > { %1161 = vmatprep.subr.bf16.mxu1 %v4006_v11 }
 0x546   : > { %1162 = vmatpush1.bf16.msra.mxu1 %v3829_v13 }
 0x547   : > { %1163 = vmatprep.subr.bf16.mxu1 %v4006_v11 }
 0x54a   : > { %1164 = vmatpush1.bf16.msra.mxu1 %v3830_v14 }
 0x54b   : > { %1165 = vmatprep.subr.bf16.mxu1 %v4006_v11 }
 0x54e   : > { %1166 = vmatpush1.bf16.msra.mxu1 %v3831_v15 }
 0x54f   : > { %1167 = vmatprep.subr.bf16.mxu1 %v4006_v11 }
 0x552   : > { %1168 = vmatpush1.bf16.msra.mxu1 %v3832_v16 }
 0x553   : > { %1169 = vmatprep.subr.bf16.mxu1 %v4006_v11 }
 0x556   : > { %1170 = vmatpush1.bf16.msra.mxu1 %v3833_v17 }
 0x557   : > { %1171 = vmatprep.subr.bf16.mxu1 %v4006_v11 }
 0x55a   : > { %1172 = vmatpush1.bf16.msra.mxu1 %v3834_v18 }
 0x55b   : > { %1173 = vmatprep.subr.bf16.mxu1 %v4006_v11 }
 0x55e   : > { %1174 = vmatpush1.bf16.msra.mxu1 %v3835_v19 }
 0x55f   : > { %1175 = vmatprep.subr.bf16.mxu1 %v4006_v11 }
 0x562   : > { %1176 = vmatpush1.bf16.msra.mxu1 %v3836_v22 }
 0x563   : > { %1177 = vmatprep.subr.bf16.mxu1 %v4006_v11 }
 0x566   : > { %1178 = vmatpush1.bf16.msra.mxu1 %v3837_v24 }
 0x567   : > { %1431 = vmatprep.subr.bf16.mxu1 %v4006_v11 }
 0x569   : > { %1188 = vmatmul.mubr.bf16.vlgmr.msra.gmra.mrb[16].mxu1 %v4235_v20 }
 0x56a   : > { %1432 = vmatpush1.bf16.msra.mxu1 %v3838_v25  ;;  %3368 = vmatprep.mubr.msk.bf16.mxu1 %vm340_vm0, %v4237_v21 }
 0x56b   : > { %1433 = vmatprep.subr.bf16.mxu1 %v4006_v11 }
 0x56e   : > { %1434 = vmatpush1.bf16.msra.mxu1 %v3839_v26 }
 0x56f   : > { %1435 = vmatprep.subr.bf16.mxu1 %v4006_v11 }
 0x572   : > { %1436 = vmatpush1.bf16.msra.mxu1 %v3840_v28 }
 0x573   : > { %1437 = vmatprep.subr.bf16.mxu1 %v4006_v11 }
 0x576   : > { %1438 = vmatpush1.bf16.msra.mxu1 %v3841_v29 }
 0x577   : > { %1439 = vmatprep.subr.bf16.mxu1 %v4006_v11 }
 0x57a   : > { %1440 = vmatpush1.bf16.msra.mxu1 %v3842_v30 }
 0x57b   : > { %1441 = vmatprep.subr.bf16.mxu1 %v4006_v11 }
 0x57e   : > { %1442 = vmatpush1.bf16.msra.mxu1 %v3843_v31 }
 0x57f   : > { %1443 = vmatprep.subr.bf16.mxu1 %v4006_v11 }
 0x582   : > { %1444 = vmatpush1.bf16.msra.mxu1 %v3844_v32 }
 0x583   : > { %1445 = vmatprep.subr.bf16.mxu1 %v4006_v11 }
 0x586   : > { %1446 = vmatpush1.bf16.msra.mxu1 %v3845_v33 }
 0x587   : > { %1447 = vmatprep.subr.bf16.mxu1 %v4006_v11 }
 0x58a   : > { %1448 = vmatpush1.bf16.msra.mxu1 %v3846_v34 }
 0x58b   : > { %1449 = vmatprep.subr.bf16.mxu1 %v4006_v11 }
 0x58e   : > { %1450 = vmatpush1.bf16.msra.mxu1 %v3847_v35 }
 0x58f   : > { %1451 = vmatprep.subr.bf16.mxu1 %v4006_v11 }
 0x592   : > { %1452 = vmatpush1.bf16.msra.mxu1 %v3848_v36 }
 0x593   : > { %1453 = vmatprep.subr.bf16.mxu1 %v4006_v11 }
 0x596   : > { %1454 = vmatpush1.bf16.msra.mxu1 %v3849_v37 }
 0x597   : > { %3677 = vmatprep.subr.bf16.mxu1 %v4007_v51 }
 0x599   : > { %1464 = vmatmul.mubr.bf16.vlgmr.msra.gmra.mrb[20].mxu1 %v4235_v20 }
 0x59a   : > { %3681 = vmatprep.mubr.msk.bf16.mxu1 %vm4008_vm4, %v4007_v51 }
 0x59f   : > { %3678 = vmatpush3.bf16.xpose.msra.mxu1 %v4247_v23 }
 0x5a0   : > { %3679 = vmatprep.subr.bf16.mxu1 %v4007_v51 }
 0x5a7   : > { %3680 = vmatpush3.bf16.xpose.msra.mxu1 %v4267_v27 }
 0x5a8   : > { %3685 = vmatprep.subr.bf16.mxu1 %v4007_v51 }
 0x60c   : > { %v4514_v38 = vpop.f32.mrb[12].mxu1 }
 0x60d   : > { %v3675_v39 = vpop.f32.mrb[13].mxu1 }
 0x60e   : > { %v4516_v40 = vpop.f32.mrb[14].mxu1 }
 0x60f   : > { %v3676_v41 = vpop.f32.mrb[15].mxu1 }
 0x63c   : > { %v1189_v42 = vpop.f32.mrb[16].mxu1 }
 0x63d   : > { %v1191_v43 = vpop.f32.mrb[17].mxu1 }
 0x63e   : > { %v1192_v44 = vpop.f32.mrb[18].mxu1 }
 0x63f   : > { %v1472_v45 = vpack.c.bf16 %v1192_v44, %v1189_v42  ;;  %v1194_v46 = vpop.f32.mrb[19].mxu1 }
 0x641   : > { %3682 = vmatmul.mubr.msk.bf16.vlgmr.msra.gmra.mrb[24].mxu1 %vm841_vm3, %v1472_v45 }
 0x642   : > { %3686 = vmatpush3.bf16.xpose.msra.mxu1 %v1558_v47  ;;  %3687 = vmatprep.mubr.msk.bf16.mxu1 %vm4008_vm4, %v4007_v51 }
 0x643   : > { %1909 = vmatprep.subr.bf16.mxu1 %v4006_v11 }
 0x649   : > { %3688 = vmatmul.mubr.msk.bf16.vlgmr.msra.gmra.mrb[28].mxu1 %vm841_vm3, %v1472_v45 }
 0x64a   : > { %1910 = vmatpush1.bf16.msra.mxu1 %v3850_v48  ;;  %3445 = vmatprep.mubr.msk.bf16.mxu1 %vm340_vm0, %v4237_v21 }
 0x64b   : > { %1911 = vmatprep.subr.bf16.mxu1 %v4006_v11 }
 0x64e   : > { %1912 = vmatpush1.bf16.msra.mxu1 %v3851_v8 }
 0x64f   : > { %1913 = vmatprep.subr.bf16.mxu1 %v4006_v11 }
 0x652   : > { %1914 = vmatpush1.bf16.msra.mxu1 %v3852_v10 }
 0x653   : > { %1915 = vmatprep.subr.bf16.mxu1 %v4006_v11 }
 0x656   : > { %1916 = vmatpush1.bf16.msra.mxu1 %v3853_v12 }
 0x657   : > { %1917 = vmatprep.subr.bf16.mxu1 %v4006_v11 }
 0x65a   : > { %1918 = vmatpush1.bf16.msra.mxu1 %v3854_v49 }
 0x65b   : > { %1919 = vmatprep.subr.bf16.mxu1 %v4006_v11 }
 0x65e   : > { %1920 = vmatpush1.bf16.msra.mxu1 %v3855_v50 }
 0x65f   : > { %1921 = vmatprep.subr.bf16.mxu1 %v4006_v11 }
 0x662   : > { %1922 = vmatpush1.bf16.msra.mxu1 %v3856_v52 }
 0x663   : > { %1923 = vmatprep.subr.bf16.mxu1 %v4006_v11 }
 0x666   : > { %1924 = vmatpush1.bf16.msra.mxu1 %v3857_v53 }
 0x667   : > { %1925 = vmatprep.subr.bf16.mxu1 %v4006_v11 }
 0x66a   : > { %1926 = vmatpush1.bf16.msra.mxu1 %v3858_v54 }
 0x66b   : > { %1927 = vmatprep.subr.bf16.mxu1 %v4006_v11 }
 0x66c   : > { %v1465_v56 = vpop.f32.mrb[20].mxu1 }
 0x66d   : > { %v1467_v57 = vpop.f32.mrb[21].mxu1 }
 0x66e   : > { %1928 = vmatpush1.bf16.msra.mxu1 %v3859_v55  ;;  %v1468_v58 = vpop.f32.mrb[22].mxu1 }
 0x66f   : > { %v1626_v62 = vpack.c.bf16 %v1468_v58, %v1465_v56  ;;  %v1470_v63 = vpop.f32.mrb[23].mxu1  ;;  %1929 = vmatprep.subr.bf16.mxu1 %v4006_v11 }
 0x671   : > { %v1631_v0 = vand.u32 %v1626_v62, %v4374_v4 }
 0x672   : > { %1930 = vmatpush1.bf16.msra.mxu1 %v3860_v59 }
 0x673   : > { %3692 = vmatpush3.bf16.msra.mxu0 %v1631_v0  ;;  %1931 = vmatprep.subr.bf16.mxu1 %v4006_v11 }
 0x674   : > { %1771 = vmatprep.subr.bf16.mxu0 %v4006_v11 }
 0x676   : > { %1932 = vmatpush1.bf16.msra.mxu1 %v3861_v1  ;;  %v3862_v1 = vld [vmem:[%s5087_s3 + $0xc0] sm:$0xff]  }
 0x677   : > { %3697 = vmatprep.subr.bf16.mxu1 %v4007_v51 }
 0x679   : > { %1942 = vmatmul.mubr.bf16.vlgmr.msra.gmra.mrb[32].mxu1 %v4235_v20 }
 0x67a   : > { %3701 = vmatprep.mubr.msk.bf16.mxu1 %vm4008_vm4, %v4007_v51 }
 0x67f   : > { %3698 = vmatpush3.bf16.xpose.msra.mxu1 %v4247_v23 }
 0x680   : > { %3699 = vmatprep.subr.bf16.mxu1 %v4007_v51 }
 0x687   : > { %3700 = vmatpush3.bf16.xpose.msra.mxu1 %v4267_v27 }
 0x688   : > { %3705 = vmatprep.subr.bf16.mxu1 %v4007_v51 }
 0x714   : > { %v1511_v2 = vpop.f32.mrb[24].mxu1 }
 0x715   : > { %1522 = vrot.lane.b32.xlu1 %v1511_v2, %s4010_s17  ;;  %1519 = vrot.lane.b32.xlu0 %v1511_v2, %s4011_s18  ;;  %v3683_v3 = vpop.f32.mrb[25].mxu1 }
 0x716   : > { %v1514_v5 = vpop.f32.mrb[26].mxu1  ;;  %v3863_v3 = vld [vmem:[%s5087_s3 + $0xc8] sm:$0xff]  }
 0x717   : > { %v3684_v6 = vpop.f32.mrb[27].mxu1 }
 0x718   : > { %v3865_v6 = vld [vmem:[%s5087_s3 + $0xd8] sm:$0xff]  }
 0x719   : > { %1525 = vrot.lane.b32.xlu1 %v1511_v2, %s4012_s19  ;;  %1531 = vrot.lane.b32.xlu0 %v1511_v2, %s4013_s20 }
 0x71c   : > { %v1594_v7 = vpop.f32.mrb[28].mxu1 }
 0x71d   : > { %1528 = vrot.lane.b32.xlu1 %v1511_v2, %s4014_s21  ;;  %1537 = vrot.lane.b32.xlu0 %v1511_v2, %s4015_s22  ;;  %v3689_v9 = vpop.f32.mrb[29].mxu1 }
 0x71e   : > { %v1597_v13 = vpop.f32.mrb[30].mxu1  ;;  %v3867_v9 = vld [vmem:[%s5087_s3 + $0xe8] sm:$0xff]  }
 0x71f   : > { %v3690_v14 = vpop.f32.mrb[31].mxu1 }
 0x720   : > { %v3869_v14 = vld [vmem:[%s5087_s3 + $0xf8] sm:$0xff]  }
 0x721   : > { %1534 = vrot.lane.b32.xlu1 %v1511_v2, %s4016_s23 }
 0x725   : > { %1541 = vrot.lane.b32.xlu1 %v1514_v5, %s4017_s24  ;;  %v3864_v5 = vld [vmem:[%s5087_s3 + $0xd0] sm:$0xff]  }
 0x74c   : > { %v4594_v15 = vpop.f32.mrb[32].mxu1 }
 0x74d   : > { %v1945_v16 = vpop.f32.mrb[33].mxu1 }
 0x74e   : > { %v4596_v17 = vpop.f32.mrb[34].mxu1  ;;  %v3870_v16 = vld [vmem:[%s5087_s3 + $0x100] sm:$0xff]  }
 0x74f   : > { %v2089_v18 = vpack.c.bf16 %v4596_v17, %v4594_v15  ;;  %v1948_v19 = vpop.f32.mrb[35].mxu1 }
 0x750   : > { %v3871_v19 = vld [vmem:[%s5087_s3 + $0x108] sm:$0xff]  }
 0x787   : > { %v1523_v22 = vpop.permute.xlu1 %1522  ;;  %v1520_v24 = vpop.permute.xlu0 %1519 }
 0x788   : > { %v1543_v25 = vsel %vm345_vm1, %v1511_v2, %v1520_v24  ;;  %v3873_v24 = vld [vmem:[%s5087_s3 + $0x118] sm:$0xff]  }
 0x789   : > { %v1544_v28 = vsel %vm918_vm7, %v1543_v25, %v1523_v22  ;;  %v3872_v22 = vld [vmem:[%s5087_s3 + $0x110] sm:$0xff]   ;;  %v3874_v25 = vld [vmem:[%s5089_s5 + $0xc0] sm:$0xff]  }
 0x78b   : > { %v1526_v26 = vpop.permute.xlu1 %1525  ;;  %v1532_v29 = vpop.permute.xlu0 %1531 }
 0x78c   : > { %v1545_v30 = vsel %vm920_vm8, %v1544_v28, %v1526_v26  ;;  %v3875_v26 = vld [vmem:[%s5089_s5 + $0xc8] sm:$0xff]   ;;  %v3876_v28 = vld [vmem:[%s5089_s5 + $0xd0] sm:$0xff]  }
 0x78f   : > { %v1529_v31 = vpop.permute.xlu1 %1528  ;;  %v1538_v35 = vpop.permute.xlu0 %1537 }
 0x790   : > { %v1546_v32 = vsel %vm922_vm5, %v1545_v30, %v1529_v31  ;;  %v3878_v30 = vld [vmem:[%s5089_s5 + $0xe0] sm:$0xff]   ;;  %v3879_v31 = vld [vmem:[%s5089_s5 + $0xe8] sm:$0xff]  }
 0x791   : > { %v1547_v34 = vsel %vm924_vm6, %v1546_v32, %v1532_v29  ;;  %v3877_v29 = vld [vmem:[%s5089_s5 + $0xd8] sm:$0xff]   ;;  %v3880_v32 = vld [vmem:[%s5089_s5 + $0xf0] sm:$0xff]  }
 0x793   : > { %v1535_v33 = vpop.permute.xlu1 %1534 }
 0x794   : > { %v1548_v36 = vsel %vm926_vm9, %v1547_v34, %v1535_v33  ;;  %v3881_v33 = vld [vmem:[%s5089_s5 + $0xf8] sm:$0xff]   ;;  %v3882_v34 = vld [vmem:[%s5089_s5 + $0x100] sm:$0xff]  }
 0x795   : > { %v1549_v37 = vsel %vm928_vm10, %v1548_v36, %v1538_v35  ;;  %v3883_v35 = vld [vmem:[%s5089_s5 + $0x108] sm:$0xff]   ;;  %v3884_v36 = vld [vmem:[%s5089_s5 + $0x110] sm:$0xff]  }
 0x796   : > { %1551 = vrot.lane.b32.xlu0 %v1549_v37, %s4018_s25  ;;  %v3885_v37 = vld [vmem:[%s5089_s5 + $0x118] sm:$0xff]  }
 0x797   : > { %v1542_v39 = vpop.permute.xlu1 %1541 }
 0x798   : > { %1553 = vrot.lane.b32.xlu1 %v1542_v39, %s4018_s25  ;;  %v3886_v39 = vld [vmem:[%s5088_s4 + $0x120] sm:$0xff]  }
 0x808   : > { %v1552_v41 = vpop.permute.xlu0 %1551 }
 0x809   : > { %v1595_v42 = vadd.f32 %v1594_v7, %v1552_v41  ;;  %v3866_v7 = vld [vmem:[%s5087_s3 + $0xe0] sm:$0xff]   ;;  %v3887_v41 = vld [vmem:[%s5088_s4 + $0x128] sm:$0xff]  }
 0x80a   : > { %v1554_v43 = vpop.permute.xlu1 %1553 }
 0x80b   : > { %v1601_v44 = vmul.f32 0.14433756, %v1595_v42  ;;  %v1598_v45 = vadd.f32 %v1597_v13, %v1554_v43  ;;  %v3868_v13 = vld [vmem:[%s5087_s3 + $0xf0] sm:$0xff]   ;;  %v3889_v43 = vld [vmem:[%s5088_s4 + $0x138] sm:$0xff]  }
 0x80c   : > { %v3888_v42 = vld [vmem:[%s5088_s4 + $0x130] sm:$0xff]  }
 0x80d   : > { %v1602_v46 = vmul.f32 0.14433756, %v1598_v45  ;;  %v1603_v47 = vsel %vm983_vm11, %v1601_v44, -inf  ;;  %v3891_v45 = vld [vmem:[%s5088_s4 + $0x148] sm:$0xff]  }
 0x80e   : > { %1604 = vmax.xlane.f32.xlu0 %v1603_v47  ;;  %v3893_v47 = vld [vmem:[%s5088_s4 + $0x158] sm:$0xff]  }
 0x80f   : > { %v1606_v48 = vsel %vm987_vm12, %v1602_v46, -inf }
 0x810   : > { %1607 = vmax.xlane.f32.xlu1 %v1606_v48  ;;  %v3894_v48 = vld [vmem:[%s5088_s4 + $0x160] sm:$0xff]  }
 0x89b   : > { %v1605_v8 = vpop.xlane.xlu0 %1604 }
 0x89c   : > { %v1609_v10 = vsub.f32 %v1601_v44, %v1605_v8  ;;  %v3890_v44 = vld [vmem:[%s5088_s4 + $0x140] sm:$0xff]   ;;  %v3895_v8 = vld [vmem:[%s5088_s4 + $0x168] sm:$0xff]  }
 0x89d   : > { %v1608_v12 = vpop.xlane.xlu1 %1607 }
 0x89e   : > { %v1611_v49 = vmul.f32 1.442695, %v1609_v10  ;;  %v1610_v50 = vsub.f32 %v1602_v46, %v1608_v12  ;;  %v3892_v46 = vld [vmem:[%s5088_s4 + $0x150] sm:$0xff]   ;;  %v3897_v12 = vld [vmem:[%s5088_s4 + $0x178] sm:$0xff]  }
 0x89f   : > { %v3896_v10 = vld [vmem:[%s5088_s4 + $0x170] sm:$0xff]  }
 0x8a0   : > { %3970 = vpow2.f32 %v1611_v49  ;;  %v1613_v52 = vmul.f32 1.442695, %v1610_v50 }
 0x8a2   : > { %3972 = vpow2.f32 %v1613_v52 }
 0x8aa   : > { %v3971_v53 = vpop.eup %3970 }
 0x8ab   : > { %v1615_v54 = vsel %vm983_vm11, %v3971_v53, 0.0 }
 0x8ac   : > { %v3973_v55 = vpop.eup %3972  ;;  %1616 = vadd.xlane.f32.xlu0 %v1615_v54 }
 0x8ad   : > { %v1618_v56 = vsel %vm987_vm12, %v3973_v55, 0.0 }
 0x8b0   : > { %1619 = vadd.xlane.f32.xlu0 %v1618_v56 }
 0x939   : > { %v1617_v57 = vpop.xlane.xlu0 %1616 }
 0x93a   : > { %3974 = vrcp.f32 %v1617_v57 }
 0x93d   : > { %v1620_v58 = vpop.xlane.xlu0 %1619 }
 0x93e   : > { %3976 = vrcp.f32 %v1620_v58 }
 0x944   : > { %v3975_v59 = vpop.eup %3974 }
 0x945   : > { %v1622_v63 = vmul.f32 %v3975_v59, %v3971_v53 }
 0x948   : > { %v3977_v62 = vpop.eup %3976 }
 0x949   : > { %v1624_v0 = vmul.f32 %v3977_v62, %v3973_v55 }
 0x94b   : > { %v1625_v2 = vpack.c.bf16 %v1624_v0, %v1622_v63 }
 0x94d   : > { %3694 = vmatmul.mubr.msk.bf16.vlgmr.msra.gmra.mrb[12].mxu0 %vm983_vm11, %v1625_v2 }
 0x94e   : > { %1772 = vmatpush1.bf16.msra.mxu0 %v3862_v1  ;;  %3408 = vmatprep.mubr.msk.bf16.mxu0 %vm340_vm0, %v4237_v21 }
 0x94f   : > { %1773 = vmatprep.subr.bf16.mxu0 %v4006_v11 }
 0x952   : > { %1774 = vmatpush1.bf16.msra.mxu0 %v3863_v3 }
 0x953   : > { %1775 = vmatprep.subr.bf16.mxu0 %v4006_v11 }
 0x956   : > { %1776 = vmatpush1.bf16.msra.mxu0 %v3864_v5 }
 0x957   : > { %1777 = vmatprep.subr.bf16.mxu0 %v4006_v11 }
 0x95a   : > { %1778 = vmatpush1.bf16.msra.mxu0 %v3865_v6 }
 0x95b   : > { %1779 = vmatprep.subr.bf16.mxu0 %v4006_v11 }
 0x95e   : > { %1780 = vmatpush1.bf16.msra.mxu0 %v3866_v7 }
 0x95f   : > { %1781 = vmatprep.subr.bf16.mxu0 %v4006_v11 }
 0x962   : > { %1782 = vmatpush1.bf16.msra.mxu0 %v3867_v9 }
 0x963   : > { %1783 = vmatprep.subr.bf16.mxu0 %v4006_v11 }
 0x966   : > { %1784 = vmatpush1.bf16.msra.mxu0 %v3868_v13 }
 0x967   : > { %1785 = vmatprep.subr.bf16.mxu0 %v4006_v11 }
 0x96a   : > { %1786 = vmatpush1.bf16.msra.mxu0 %v3869_v14 }
 0x96b   : > { %1787 = vmatprep.subr.bf16.mxu0 %v4006_v11 }
 0x96e   : > { %1788 = vmatpush1.bf16.msra.mxu0 %v3870_v16 }
 0x96f   : > { %1789 = vmatprep.subr.bf16.mxu0 %v4006_v11 }
 0x972   : > { %1790 = vmatpush1.bf16.msra.mxu0 %v3871_v19 }
 0x973   : > { %1791 = vmatprep.subr.bf16.mxu0 %v4006_v11 }
 0x976   : > { %1792 = vmatpush1.bf16.msra.mxu0 %v3872_v22 }
 0x977   : > { %1793 = vmatprep.subr.bf16.mxu0 %v4006_v11 }
 0x97a   : > { %1794 = vmatpush1.bf16.msra.mxu0 %v3873_v24 }
 0x97b   : > { %2047 = vmatprep.subr.bf16.mxu0 %v4006_v11 }
 0x97d   : > { %1804 = vmatmul.mubr.bf16.vlgmr.msra.gmra.mrb[16].mxu0 %v4235_v20 }
 0x97e   : > { %2048 = vmatpush1.bf16.msra.mxu0 %v3874_v25  ;;  %3482 = vmatprep.mubr.msk.bf16.mxu0 %vm340_vm0, %v4237_v21 }
 0x97f   : > { %2049 = vmatprep.subr.bf16.mxu0 %v4006_v11 }
 0x982   : > { %2050 = vmatpush1.bf16.msra.mxu0 %v3875_v26 }
 0x983   : > { %2051 = vmatprep.subr.bf16.mxu0 %v4006_v11 }
 0x986   : > { %2052 = vmatpush1.bf16.msra.mxu0 %v3876_v28 }
 0x987   : > { %2053 = vmatprep.subr.bf16.mxu0 %v4006_v11 }
 0x98a   : > { %2054 = vmatpush1.bf16.msra.mxu0 %v3877_v29 }
 0x98b   : > { %2055 = vmatprep.subr.bf16.mxu0 %v4006_v11 }
 0x98e   : > { %2056 = vmatpush1.bf16.msra.mxu0 %v3878_v30 }
 0x98f   : > { %2057 = vmatprep.subr.bf16.mxu0 %v4006_v11 }
 0x992   : > { %2058 = vmatpush1.bf16.msra.mxu0 %v3879_v31 }
 0x993   : > { %2059 = vmatprep.subr.bf16.mxu0 %v4006_v11 }
 0x996   : > { %2060 = vmatpush1.bf16.msra.mxu0 %v3880_v32 }
 0x997   : > { %2061 = vmatprep.subr.bf16.mxu0 %v4006_v11 }
 0x99a   : > { %2062 = vmatpush1.bf16.msra.mxu0 %v3881_v33 }
 0x99b   : > { %2063 = vmatprep.subr.bf16.mxu0 %v4006_v11 }
 0x99e   : > { %2064 = vmatpush1.bf16.msra.mxu0 %v3882_v34 }
 0x99f   : > { %2065 = vmatprep.subr.bf16.mxu0 %v4006_v11 }
 0x9a2   : > { %2066 = vmatpush1.bf16.msra.mxu0 %v3883_v35 }
 0x9a3   : > { %2067 = vmatprep.subr.bf16.mxu0 %v4006_v11 }
 0x9a6   : > { %2068 = vmatpush1.bf16.msra.mxu0 %v3884_v36 }
 0x9a7   : > { %2069 = vmatprep.subr.bf16.mxu0 %v4006_v11 }
 0x9aa   : > { %2070 = vmatpush1.bf16.msra.mxu0 %v3885_v37 }
 0x9ab   : > { %2525 = vmatprep.subr.bf16.mxu0 %v4006_v11 }
 0x9ad   : > { %2080 = vmatmul.mubr.bf16.vlgmr.msra.gmra.mrb[20].mxu0 %v4235_v20 }
 0x9ae   : > { %2526 = vmatpush1.bf16.msra.mxu0 %v3886_v39  ;;  %3559 = vmatprep.mubr.msk.bf16.mxu0 %vm340_vm0, %v4237_v21 }
 0x9af   : > { %2527 = vmatprep.subr.bf16.mxu0 %v4006_v11 }
 0x9b2   : > { %2528 = vmatpush1.bf16.msra.mxu0 %v3887_v41 }
 0x9b3   : > { %2529 = vmatprep.subr.bf16.mxu0 %v4006_v11 }
 0x9b6   : > { %2530 = vmatpush1.bf16.msra.mxu0 %v3888_v42 }
 0x9b7   : > { %2531 = vmatprep.subr.bf16.mxu0 %v4006_v11 }
 0x9ba   : > { %2532 = vmatpush1.bf16.msra.mxu0 %v3889_v43 }
 0x9bb   : > { %2533 = vmatprep.subr.bf16.mxu0 %v4006_v11 }
 0x9be   : > { %2534 = vmatpush1.bf16.msra.mxu0 %v3890_v44 }
 0x9bf   : > { %2535 = vmatprep.subr.bf16.mxu0 %v4006_v11 }
 0x9c2   : > { %2536 = vmatpush1.bf16.msra.mxu0 %v3891_v45 }
 0x9c3   : > { %2537 = vmatprep.subr.bf16.mxu0 %v4006_v11 }
 0x9c6   : > { %2538 = vmatpush1.bf16.msra.mxu0 %v3892_v46 }
 0x9c7   : > { %2539 = vmatprep.subr.bf16.mxu0 %v4006_v11 }
 0x9ca   : > { %2540 = vmatpush1.bf16.msra.mxu0 %v3893_v47 }
 0x9cb   : > { %2541 = vmatprep.subr.bf16.mxu0 %v4006_v11 }
 0x9ce   : > { %2542 = vmatpush1.bf16.msra.mxu0 %v3894_v48 }
 0x9cf   : > { %2543 = vmatprep.subr.bf16.mxu0 %v4006_v11 }
 0x9d2   : > { %2544 = vmatpush1.bf16.msra.mxu0 %v3895_v8 }
 0x9d3   : > { %2545 = vmatprep.subr.bf16.mxu0 %v4006_v11 }
 0x9d6   : > { %2546 = vmatpush1.bf16.msra.mxu0 %v3896_v10 }
 0x9d7   : > { %2547 = vmatprep.subr.bf16.mxu0 %v4006_v11 }
 0x9da   : > { %2548 = vmatpush1.bf16.msra.mxu0 %v3897_v12 }
 0x9db   : > { %3717 = vmatprep.subr.bf16.mxu0 %v4007_v51 }
 0x9dd   : > { %2558 = vmatmul.mubr.bf16.vlgmr.msra.gmra.mrb[24].mxu0 %v4235_v20 }
 0x9de   : > { %3721 = vmatprep.mubr.msk.bf16.mxu0 %vm4008_vm4, %v4007_v51 }
 0x9e3   : > { %3718 = vmatpush3.bf16.xpose.msra.mxu0 %v4247_v23 }
 0x9e4   : > { %3719 = vmatprep.subr.bf16.mxu0 %v4007_v51 }
 0x9eb   : > { %3720 = vmatpush3.bf16.xpose.msra.mxu0 %v4267_v27  ;;  %v2174_v27 = vsel %vm841_vm3, %v2089_v18, 0 }
 0x9ec   : > { %3725 = vmatprep.subr.bf16.mxu0 %v4007_v51 }
 0xa20   : > { %v4773_v49 = vpop.f32.mrb[12].mxu0 }
 0xa21   : > { %v3695_v50 = vpop.f32.mrb[13].mxu0 }
 0xa22   : > { %v4775_v52 = vpop.f32.mrb[14].mxu0 }
 0xa23   : > { %v3761_v53 = vpack.i.bf16 %v4775_v52, %v4773_v49  ;;  %v3696_v54 = vpop.f32.mrb[15].mxu0 }
 0xa50   : > { %v1805_v55 = vpop.f32.mrb[16].mxu0 }
 0xa51   : > { %v1807_v56 = vpop.f32.mrb[17].mxu0 }
 0xa52   : > { %v1808_v57 = vpop.f32.mrb[18].mxu0 }
 0xa53   : > { %v2088_v58 = vpack.c.bf16 %v1808_v57, %v1805_v55  ;;  %v1810_v23 = vpop.f32.mrb[19].mxu0 }
 0xa55   : > { %3702 = vmatmul.mubr.msk.bf16.vlgmr.msra.gmra.mrb[36].mxu1 %vm841_vm3, %v2088_v58 }
 0xa56   : > { %3706 = vmatpush3.bf16.xpose.msra.mxu1 %v2174_v27  ;;  %3707 = vmatprep.mubr.msk.bf16.mxu1 %vm4008_vm4, %v4007_v51 }
 0xa57   : > { %3711 = vmatprep.subr.bf16.mxu1 %v4007_v51 }
 0xa5d   : > { %3708 = vmatmul.mubr.msk.bf16.vlgmr.msra.gmra.mrb[40].mxu1 %vm841_vm3, %v2088_v58 }
 0xa5e   : > { %3713 = vmatprep.mubr.msk.bf16.mxu1 %vm4008_vm4, %v4007_v51 }
 0xa80   : > { %v2081_v59 = vpop.f32.mrb[20].mxu0 }
 0xa81   : > { %v2083_v62 = vpop.f32.mrb[21].mxu0 }
 0xa82   : > { %v2084_v63 = vpop.f32.mrb[22].mxu0 }
 0xa83   : > { %v2242_v0 = vpack.c.bf16 %v2084_v63, %v2081_v59  ;;  %v2086_v15 = vpop.f32.mrb[23].mxu0 }
 0xa85   : > { %v2247_v17 = vand.u32 %v2242_v0, %v4374_v4 }
 0xa87   : > { %3712 = vmatpush3.bf16.msra.mxu1 %v2247_v17 }
 0xa88   : > { %2387 = vmatprep.subr.bf16.mxu1 %v4006_v11 }
 0xab0   : > { %v4792_v18 = vpop.f32.mrb[24].mxu0 }
 0xab1   : > { %v2561_v1 = vpop.f32.mrb[25].mxu0 }
 0xab2   : > { %v4794_v2 = vpop.f32.mrb[26].mxu0  ;;  %v3898_v1 = vld [vmem:[%s5087_s3 + $0x120] sm:$0xff]  }
 0xab3   : > { %v2705_v3 = vpack.c.bf16 %v4794_v2, %v4792_v18  ;;  %v2564_v5 = vpop.f32.mrb[27].mxu0 }
 0xb28   : > { %v2127_v6 = vpop.f32.mrb[36].mxu1 }
 0xb29   : > { %2138 = vrot.lane.b32.xlu1 %v2127_v6, %s4010_s17  ;;  %2135 = vrot.lane.b32.xlu0 %v2127_v6, %s4011_s18  ;;  %v3703_v7 = vpop.f32.mrb[37].mxu1 }
 0xb2a   : > { %v2130_v9 = vpop.f32.mrb[38].mxu1  ;;  %v3900_v7 = vld [vmem:[%s5087_s3 + $0x130] sm:$0xff]  }
 0xb2b   : > { %v3704_v13 = vpop.f32.mrb[39].mxu1 }
 0xb2c   : > { %v3902_v13 = vld [vmem:[%s5087_s3 + $0x140] sm:$0xff]  }
 0xb2d   : > { %2141 = vrot.lane.b32.xlu1 %v2127_v6, %s4012_s19  ;;  %2147 = vrot.lane.b32.xlu0 %v2127_v6, %s4013_s20 }
 0xb30   : > { %v2210_v14 = vpop.f32.mrb[40].mxu1 }
 0xb31   : > { %2144 = vrot.lane.b32.xlu1 %v2127_v6, %s4014_s21  ;;  %2153 = vrot.lane.b32.xlu0 %v2127_v6, %s4015_s22  ;;  %v3709_v16 = vpop.f32.mrb[41].mxu1 }
 0xb32   : > { %v2213_v19 = vpop.f32.mrb[42].mxu1  ;;  %v3904_v16 = vld [vmem:[%s5087_s3 + $0x150] sm:$0xff]  }
 0xb33   : > { %v3710_v22 = vpop.f32.mrb[43].mxu1 }
 0xb34   : > { %v3906_v22 = vld [vmem:[%s5087_s3 + $0x160] sm:$0xff]  }
 0xb35   : > { %2150 = vrot.lane.b32.xlu1 %v2127_v6, %s4016_s23 }
 0xb39   : > { %2157 = vrot.lane.b32.xlu1 %v2130_v9, %s4017_s24  ;;  %v3901_v9 = vld [vmem:[%s5087_s3 + $0x138] sm:$0xff]  }
 0xb9b   : > { %v2139_v24 = vpop.permute.xlu1 %2138  ;;  %v2136_v25 = vpop.permute.xlu0 %2135 }
 0xb9c   : > { %v2159_v26 = vsel %vm345_vm1, %v2127_v6, %v2136_v25  ;;  %v3899_v6 = vld [vmem:[%s5087_s3 + $0x128] sm:$0xff]   ;;  %v3908_v25 = vld [vmem:[%s5087_s3 + $0x170] sm:$0xff]  }
 0xb9d   : > { %v2160_v29 = vsel %vm918_vm7, %v2159_v26, %v2139_v24  ;;  %v3907_v24 = vld [vmem:[%s5087_s3 + $0x168] sm:$0xff]   ;;  %v3909_v26 = vld [vmem:[%s5087_s3 + $0x178] sm:$0xff]  }
 0xb9f   : > { %v2142_v28 = vpop.permute.xlu1 %2141  ;;  %v2148_v30 = vpop.permute.xlu0 %2147 }
 0xba0   : > { %v2161_v31 = vsel %vm920_vm8, %v2160_v29, %v2142_v28  ;;  %v3910_v28 = vld [vmem:[%s5089_s5 + $0x120] sm:$0xff]   ;;  %v3911_v29 = vld [vmem:[%s5089_s5 + $0x128] sm:$0xff]  }
 0xba3   : > { %v2145_v32 = vpop.permute.xlu1 %2144  ;;  %v2154_v36 = vpop.permute.xlu0 %2153 }
 0xba4   : > { %v2162_v33 = vsel %vm922_vm5, %v2161_v31, %v2145_v32  ;;  %v3913_v31 = vld [vmem:[%s5089_s5 + $0x138] sm:$0xff]   ;;  %v3915_v32 = vld [vmem:[%s5089_s5 + $0x148] sm:$0xff]  }
 0xba5   : > { %v2163_v35 = vsel %vm924_vm6, %v2162_v33, %v2148_v30  ;;  %v3912_v30 = vld [vmem:[%s5089_s5 + $0x130] sm:$0xff]  }
 0xba6   : > { %v3916_v33 = vld [vmem:[%s5089_s5 + $0x150] sm:$0xff]  }
 0xba7   : > { %v2151_v34 = vpop.permute.xlu1 %2150 }
 0xba8   : > { %v2164_v37 = vsel %vm926_vm9, %v2163_v35, %v2151_v34  ;;  %v3917_v34 = vld [vmem:[%s5089_s5 + $0x158] sm:$0xff]   ;;  %v3918_v35 = vld [vmem:[%s5089_s5 + $0x160] sm:$0xff]  }
 0xba9   : > { %v2165_v39 = vsel %vm928_vm10, %v2164_v37, %v2154_v36  ;;  %v3919_v36 = vld [vmem:[%s5089_s5 + $0x168] sm:$0xff]   ;;  %v3920_v37 = vld [vmem:[%s5089_s5 + $0x170] sm:$0xff]  }
 0xbaa   : > { %2167 = vrot.lane.b32.xlu0 %v2165_v39, %s4018_s25  ;;  %v3921_v39 = vld [vmem:[%s5089_s5 + $0x178] sm:$0xff]  }
 0xbab   : > { %v2158_v41 = vpop.permute.xlu1 %2157 }
 0xbac   : > { %2169 = vrot.lane.b32.xlu1 %v2158_v41, %s4018_s25 }
 0xc1c   : > { %v2168_v42 = vpop.permute.xlu0 %2167 }
 0xc1d   : > { %v2211_v43 = vadd.f32 %v2210_v14, %v2168_v42  ;;  %v3903_v14 = vld [vmem:[%s5087_s3 + $0x148] sm:$0xff]  }
 0xc1e   : > { %v2170_v44 = vpop.permute.xlu1 %2169 }
 0xc1f   : > { %v2217_v45 = vmul.f32 0.14433756, %v2211_v43  ;;  %v2214_v46 = vadd.f32 %v2213_v19, %v2170_v44  ;;  %v3905_v19 = vld [vmem:[%s5087_s3 + $0x158] sm:$0xff]  }
 0xc21   : > { %v2218_v47 = vmul.f32 0.14433756, %v2214_v46  ;;  %v2219_v48 = vsel %vm983_vm11, %v2217_v45, -inf }
 0xc22   : > { %2220 = vmax.xlane.f32.xlu0 %v2219_v48 }
 0xc23   : > { %v2222_v8 = vsel %vm987_vm12, %v2218_v47, -inf }
 0xc24   : > { %2223 = vmax.xlane.f32.xlu1 %v2222_v8 }
 0xcaf   : > { %v2221_v10 = vpop.xlane.xlu0 %2220 }
 0xcb0   : > { %v2225_v12 = vsub.f32 %v2217_v45, %v2221_v10 }
 0xcb1   : > { %v2224_v50 = vpop.xlane.xlu1 %2223 }
 0xcb2   : > { %v2227_v54 = vmul.f32 1.442695, %v2225_v12  ;;  %v2226_v55 = vsub.f32 %v2218_v47, %v2224_v50 }
 0xcb4   : > { %3978 = vpow2.f32 %v2227_v54  ;;  %v2229_v56 = vmul.f32 1.442695, %v2226_v55 }
 0xcb6   : > { %3980 = vpow2.f32 %v2229_v56 }
 0xcbe   : > { %v3979_v57 = vpop.eup %3978 }
 0xcbf   : > { %v2231_v58 = vsel %vm983_vm11, %v3979_v57, 0.0 }
 0xcc0   : > { %v3981_v23 = vpop.eup %3980  ;;  %2232 = vadd.xlane.f32.xlu0 %v2231_v58 }
 0xcc1   : > { %v2234_v27 = vsel %vm987_vm12, %v3981_v23, 0.0 }
 0xcc4   : > { %2235 = vadd.xlane.f32.xlu0 %v2234_v27 }
 0xd4d   : > { %v2233_v59 = vpop.xlane.xlu0 %2232 }
 0xd4e   : > { %3982 = vrcp.f32 %v2233_v59 }
 0xd51   : > { %v2236_v62 = vpop.xlane.xlu0 %2235 }
 0xd52   : > { %3984 = vrcp.f32 %v2236_v62 }
 0xd58   : > { %v3983_v63 = vpop.eup %3982 }
 0xd59   : > { %v2238_v15 = vmul.f32 %v3983_v63, %v3979_v57 }
 0xd5c   : > { %v3985_v0 = vpop.eup %3984 }
 0xd5d   : > { %v2240_v17 = vmul.f32 %v3985_v0, %v3981_v23 }
 0xd5f   : > { %v2241_v5 = vpack.c.bf16 %v2240_v17, %v2238_v15 }
 0xd61   : > { %3714 = vmatmul.mubr.msk.bf16.vlgmr.msra.gmra.mrb[44].mxu1 %vm983_vm11, %v2241_v5 }
 0xd62   : > { %2388 = vmatpush1.bf16.msra.mxu1 %v3898_v1  ;;  %3522 = vmatprep.mubr.msk.bf16.mxu1 %vm340_vm0, %v4237_v21 }
 0xd63   : > { %2389 = vmatprep.subr.bf16.mxu1 %v4006_v11 }
 0xd66   : > { %2390 = vmatpush1.bf16.msra.mxu1 %v3899_v6 }
 0xd67   : > { %2391 = vmatprep.subr.bf16.mxu1 %v4006_v11 }
 0xd6a   : > { %2392 = vmatpush1.bf16.msra.mxu1 %v3900_v7 }
 0xd6b   : > { %2393 = vmatprep.subr.bf16.mxu1 %v4006_v11 }
 0xd6e   : > { %2394 = vmatpush1.bf16.msra.mxu1 %v3901_v9 }
 0xd6f   : > { %2395 = vmatprep.subr.bf16.mxu1 %v4006_v11 }
 0xd72   : > { %2396 = vmatpush1.bf16.msra.mxu1 %v3902_v13 }
 0xd73   : > { %2397 = vmatprep.subr.bf16.mxu1 %v4006_v11 }
 0xd76   : > { %2398 = vmatpush1.bf16.msra.mxu1 %v3903_v14 }
 0xd77   : > { %2399 = vmatprep.subr.bf16.mxu1 %v4006_v11 }
 0xd7a   : > { %2400 = vmatpush1.bf16.msra.mxu1 %v3904_v16 }
 0xd7b   : > { %2401 = vmatprep.subr.bf16.mxu1 %v4006_v11 }
 0xd7e   : > { %2402 = vmatpush1.bf16.msra.mxu1 %v3905_v19 }
 0xd7f   : > { %2403 = vmatprep.subr.bf16.mxu1 %v4006_v11 }
 0xd82   : > { %2404 = vmatpush1.bf16.msra.mxu1 %v3906_v22 }
 0xd83   : > { %2405 = vmatprep.subr.bf16.mxu1 %v4006_v11 }
 0xd86   : > { %2406 = vmatpush1.bf16.msra.mxu1 %v3907_v24 }
 0xd87   : > { %2407 = vmatprep.subr.bf16.mxu1 %v4006_v11 }
 0xd8a   : > { %2408 = vmatpush1.bf16.msra.mxu1 %v3908_v25 }
 0xd8b   : > { %2409 = vmatprep.subr.bf16.mxu1 %v4006_v11 }
 0xd8e   : > { %2410 = vmatpush1.bf16.msra.mxu1 %v3909_v26 }
 0xd8f   : > { %2663 = vmatprep.subr.bf16.mxu1 %v4006_v11 }
 0xd91   : > { %2420 = vmatmul.mubr.bf16.vlgmr.msra.gmra.mrb[48].mxu1 %v4235_v20 }
 0xd92   : > { %2664 = vmatpush1.bf16.msra.mxu1 %v3910_v28  ;;  %3596 = vmatprep.mubr.msk.bf16.mxu1 %vm340_vm0, %v4237_v21  ;;  %v3914_v21 = vld [vmem:[%s5089_s5 + $0x140] sm:$0xff]  }
 0xd93   : > { %2665 = vmatprep.subr.bf16.mxu1 %v4006_v11 }
 0xd96   : > { %2666 = vmatpush1.bf16.msra.mxu1 %v3911_v29 }
 0xd97   : > { %2667 = vmatprep.subr.bf16.mxu1 %v4006_v11 }
 0xd9a   : > { %2668 = vmatpush1.bf16.msra.mxu1 %v3912_v30 }
 0xd9b   : > { %2669 = vmatprep.subr.bf16.mxu1 %v4006_v11 }
 0xd9e   : > { %2670 = vmatpush1.bf16.msra.mxu1 %v3913_v31 }
 0xd9f   : > { %2671 = vmatprep.subr.bf16.mxu1 %v4006_v11 }
 0xda2   : > { %2672 = vmatpush1.bf16.msra.mxu1 %v3914_v21 }
 0xda3   : > { %2673 = vmatprep.subr.bf16.mxu1 %v4006_v11 }
 0xda6   : > { %2674 = vmatpush1.bf16.msra.mxu1 %v3915_v32 }
 0xda7   : > { %2675 = vmatprep.subr.bf16.mxu1 %v4006_v11 }
 0xdaa   : > { %2676 = vmatpush1.bf16.msra.mxu1 %v3916_v33 }
 0xdab   : > { %2677 = vmatprep.subr.bf16.mxu1 %v4006_v11 }
 0xdae   : > { %2678 = vmatpush1.bf16.msra.mxu1 %v3917_v34 }
 0xdaf   : > { %2679 = vmatprep.subr.bf16.mxu1 %v4006_v11 }
 0xdb2   : > { %2680 = vmatpush1.bf16.msra.mxu1 %v3918_v35 }
 0xdb3   : > { %2681 = vmatprep.subr.bf16.mxu1 %v4006_v11 }
 0xdb6   : > { %2682 = vmatpush1.bf16.msra.mxu1 %v3919_v36 }
 0xdb7   : > { %2683 = vmatprep.subr.bf16.mxu1 %v4006_v11 }
 0xdba   : > { %2684 = vmatpush1.bf16.msra.mxu1 %v3920_v37 }
 0xdbb   : > { %2685 = vmatprep.subr.bf16.mxu1 %v4006_v11  ;;  %v2790_v11 = vsel %vm841_vm3, %v2705_v3, 0 }
 0xdbe   : > { %2686 = vmatpush1.bf16.msra.mxu1 %v3921_v39 }
 0xdc1   : > { %2696 = vmatmul.mubr.bf16.vlgmr.msra.gmra.mrb[52].mxu1 %v4235_v20 }
 0xe34   : > { %v4921_v41 = vpop.f32.mrb[44].mxu1 }
 0xe35   : > { %v3715_v42 = vpop.f32.mrb[45].mxu1 }
 0xe36   : > { %v4923_v43 = vpop.f32.mrb[46].mxu1 }
 0xe37   : > { %v3766_v44 = vpack.i.bf16 %v4923_v43, %v4921_v41  ;;  %v3716_v45 = vpop.f32.mrb[47].mxu1 }
 0xe64   : > { %v2421_v46 = vpop.f32.mrb[48].mxu1 }
 0xe65   : > { %v2423_v47 = vpop.f32.mrb[49].mxu1 }
 0xe66   : > { %v2424_v48 = vpop.f32.mrb[50].mxu1 }
 0xe67   : > { %v2704_v8 = vpack.c.bf16 %v2424_v48, %v2421_v46  ;;  %v2426_v10 = vpop.f32.mrb[51].mxu1 }
 0xe69   : > { %3722 = vmatmul.mubr.msk.bf16.vlgmr.msra.gmra.mrb[28].mxu0 %vm841_vm3, %v2704_v8 }
 0xe6a   : > { %3726 = vmatpush3.bf16.xpose.msra.mxu0 %v2790_v11  ;;  %3727 = vmatprep.mubr.msk.bf16.mxu0 %vm4008_vm4, %v4007_v51 }
 0xe6b   : > { %3731 = vmatprep.subr.bf16.mxu0 %v4007_v51 }
 0xe71   : > { %3728 = vmatmul.mubr.msk.bf16.vlgmr.msra.gmra.mrb[32].mxu0 %vm841_vm3, %v2704_v8 }
 0xe72   : > { %3733 = vmatprep.mubr.msk.bf16.mxu0 %vm4008_vm4, %v4007_v51 }
 0xe94   : > { %v2697_v20 = vpop.f32.mrb[52].mxu1 }
 0xe95   : > { %v2699_v12 = vpop.f32.mrb[53].mxu1 }
 0xe96   : > { %v2700_v50 = vpop.f32.mrb[54].mxu1 }
 0xe97   : > { %v2858_v54 = vpack.c.bf16 %v2700_v50, %v2697_v20  ;;  %v2702_v18 = vpop.f32.mrb[55].mxu1 }
 0xe99   : > { %v2863_v2 = vand.u32 %v2858_v54, %v4374_v4 }
 0xe9b   : > { %3732 = vmatpush3.bf16.msra.mxu0 %v2863_v2  ;;  %v3927_v2 = vld [vmem:[%s5091_s7 + $0x14] ss:$8 sps:$4 sm:$0xff]  }
 0xf3c   : > { %v2743_v3 = vpop.f32.mrb[28].mxu0 }
 0xf3d   : > { %2754 = vrot.lane.b32.xlu1 %v2743_v3, %s4010_s17  ;;  %2751 = vrot.lane.b32.xlu0 %v2743_v3, %s4011_s18  ;;  %v3723_v55 = vpop.f32.mrb[29].mxu0  ;;  %s4019_s17 = smov 96   ;;  %s4020_s18 = smov 48  }
 0xf3e   : > { %v2746_v56 = vpop.f32.mrb[30].mxu0  ;;  %v3930_v55 = vld [vmem:[%s5091_s7 + $0x24] ss:$8 sps:$4 sm:$0xff]  }
 0xf3f   : > { %v3724_v57 = vpop.f32.mrb[31].mxu0 }
 0xf40   : > { %v3933_v57 = vld [vmem:[%s5091_s7 + $0x34] ss:$8 sps:$4 sm:$0xff]  }
 0xf41   : > { %2757 = vrot.lane.b32.xlu1 %v2743_v3, %s4012_s19  ;;  %2763 = vrot.lane.b32.xlu0 %v2743_v3, %s4013_s20 }
 0xf44   : > { %v2826_v51 = vpop.f32.mrb[32].mxu0 }
 0xf45   : > { %2760 = vrot.lane.b32.xlu1 %v2743_v3, %s4014_s21  ;;  %2769 = vrot.lane.b32.xlu0 %v2743_v3, %s4015_s22  ;;  %v3729_v58 = vpop.f32.mrb[33].mxu0  ;;  %s332_s21 = scalar_lea.vmem %s5093_s9, %s3627_s11 }
 0xf46   : > { %v2829_v4 = vpop.f32.mrb[34].mxu0  ;;  %v3936_v58 = vld [vmem:[%s5091_s7 + $0x44] ss:$8 sps:$4 sm:$0xff]  }
 0xf47   : > { %v3730_v23 = vpop.f32.mrb[35].mxu0 }
 0xf48   : > { %v3939_v23 = vld [vmem:[%s5091_s7 + $0x54] ss:$8 sps:$4 sm:$0xff]  }
 0xf49   : > { %2766 = vrot.lane.b32.xlu1 %v2743_v3, %s4016_s23 }
 0xf4d   : > { %2773 = vrot.lane.b32.xlu1 %v2746_v56, %s4017_s24  ;;  %v3928_v56 = vld [vmem:[%s5091_s7 + $0x20] ss:$8 sps:$4 sm:$0xff]  }
 0xfaf   : > { %v2755_v27 = vpop.permute.xlu1 %2754  ;;  %v2752_v59 = vpop.permute.xlu0 %2751 }
 0xfb0   : > { %v2775_v62 = vsel %vm345_vm1, %v2743_v3, %v2752_v59  ;;  %v3925_v3 = vld [vmem:[%s5091_s7 + $0x10] ss:$8 sps:$4 sm:$0xff]   ;;  %v3942_v59 = vld [vmem:[%s5091_s7 + $0x64] ss:$8 sps:$4 sm:$0xff]  }
 0xfb1   : > { %v2776_v0 = vsel %vm918_vm7, %v2775_v62, %v2755_v27  ;;  %v3937_v27 = vld [vmem:[%s5091_s7 + $0x50] ss:$8 sps:$4 sm:$0xff]   ;;  %v3940_v62 = vld [vmem:[%s5091_s7 + $0x60] ss:$8 sps:$4 sm:$0xff]  }
 0xfb3   : > { %v2758_v63 = vpop.permute.xlu1 %2757  ;;  %v2764_v15 = vpop.permute.xlu0 %2763 }
 0xfb4   : > { %v2777_v17 = vsel %vm920_vm8, %v2776_v0, %v2758_v63  ;;  %v3945_v63 = vld [vmem:[%s5091_s7 + $0x74] ss:$8 sps:$4 sm:$0xff]   ;;  %v3943_v0 = vld [vmem:[%s5091_s7 + $0x70] ss:$8 sps:$4 sm:$0xff]  }
 0xfb7   : > { %v2761_v1 = vpop.permute.xlu1 %2760  ;;  %v2770_v9 = vpop.permute.xlu0 %2769 }
 0xfb8   : > { %v2778_v5 = vsel %vm922_vm5, %v2777_v17, %v2761_v1  ;;  %v3946_v17 = vld [vmem:[%s5091_s7 + $0x80] ss:$8 sps:$4 sm:$0xff]   ;;  %v3951_v1 = vld [vmem:[%s5091_s7 + $0x94] ss:$8 sps:$4 sm:$0xff]  }
 0xfb9   : > { %v2779_v7 = vsel %vm924_vm6, %v2778_v5, %v2764_v15  ;;  %v3948_v15 = vld [vmem:[%s5091_s7 + $0x84] ss:$8 sps:$4 sm:$0xff]   ;;  %v3949_v5 = vld [vmem:[%s5091_s7 + $0x90] ss:$8 sps:$4 sm:$0xff]  }
 0xfbb   : > { %v2767_v6 = vpop.permute.xlu1 %2766 }
 0xfbc   : > { %v2780_v13 = vsel %vm926_vm9, %v2779_v7, %v2767_v6  ;;  %v3954_v6 = vld [vmem:[%s5091_s7 + $0xa4] ss:$8 sps:$4 sm:$0xff]   ;;  %v3952_v7 = vld [vmem:[%s5091_s7 + $0xa0] ss:$8 sps:$4 sm:$0xff]  }
 0xfbd   : > { %v2781_v14 = vsel %vm928_vm10, %v2780_v13, %v2770_v9  ;;  %v3957_v9 = vld [vmem:[%s5091_s7 + $0xb4] ss:$8 sps:$4 sm:$0xff]   ;;  %v3955_v13 = vld [vmem:[%s5091_s7 + $0xb0] ss:$8 sps:$4 sm:$0xff]  }
 0xfbe   : > { %2783 = vrot.lane.b32.xlu0 %v2781_v14, %s4018_s25 }
 0xfbf   : > { %v2774_v16 = vpop.permute.xlu1 %2773 }
 0xfc0   : > { %2785 = vrot.lane.b32.xlu1 %v2774_v16, %s4018_s25 }
0x1030   : > { %v2784_v19 = vpop.permute.xlu0 %2783 }
0x1031   : > { %v2827_v22 = vadd.f32 %v2826_v51, %v2784_v19  ;;  %v3931_v51 = vld [vmem:[%s5091_s7 + $0x30] ss:$8 sps:$4 sm:$0xff]  }
0x1032   : > { %v2786_v24 = vpop.permute.xlu1 %2785 }
0x1033   : > { %v2833_v25 = vmul.f32 0.14433756, %v2827_v22  ;;  %v2830_v26 = vadd.f32 %v2829_v4, %v2786_v24  ;;  %v3934_v4 = vld [vmem:[%s5091_s7 + $0x40] ss:$8 sps:$4 sm:$0xff]  }
0x1035   : > { %v2834_v28 = vmul.f32 0.14433756, %v2830_v26  ;;  %v2835_v29 = vsel %vm983_vm11, %v2833_v25, -inf }
0x1036   : > { %2836 = vmax.xlane.f32.xlu0 %v2835_v29 }
0x1037   : > { %v2838_v30 = vsel %vm987_vm12, %v2834_v28, -inf }
0x1038   : > { %2839 = vmax.xlane.f32.xlu1 %v2838_v30 }
0x1049   : > { %3767 = vrot.lane.b32.xlu1 %v3766_v44, %s4019_s17 }
0x10c3   : > { %v2837_v31 = vpop.xlane.xlu0 %2836 }
0x10c4   : > { %v2841_v21 = vsub.f32 %v2833_v25, %v2837_v31 }
0x10c5   : > { %v2840_v32 = vpop.xlane.xlu1 %2839 }
0x10c6   : > { %v2843_v33 = vmul.f32 1.442695, %v2841_v21  ;;  %v2842_v34 = vsub.f32 %v2834_v28, %v2840_v32  ;;  %v2964_v21 = vld [vmem:[%s5092_s8] sm:$0x3] }
0x10c7   : > { %v2969_v32 = vrot.slane %v2964_v21, %v4214_v60 }
0x10c8   : > { %3986 = vpow2.f32 %v2843_v33  ;;  %v2845_v35 = vmul.f32 1.442695, %v2842_v34  ;;  %v2973_v33 = vrot.slane %v2964_v21, %v4216_v61  ;;  %v3996_v61 = vld [vmem:[%s4088_s14 + $0x10] sm:$0x1] }
0x10c9   : > { %v4966_v44 = vpop.permute.xlu1 %3767 }
0x10ca   : > { %3988 = vpow2.f32 %v2845_v35  ;;  %v3770_v48 = vunpack.i.h.bf16 %v4966_v44  ;;  %v3769_v8 = vunpack.i.l.bf16 %v4966_v44 }
0x10d2   : > { %v3987_v36 = vpop.eup %3986 }
0x10d3   : > { %v2847_v37 = vsel %vm983_vm11, %v3987_v36, 0.0 }
0x10d4   : > { %v3989_v39 = vpop.eup %3988  ;;  %2848 = vadd.xlane.f32.xlu0 %v2847_v37 }
0x10d5   : > { %v2850_v42 = vsel %vm987_vm12, %v3989_v39, 0.0 }
0x10d8   : > { %2851 = vadd.xlane.f32.xlu0 %v2850_v42  ;;  %v3994_v42 = vld [vmem:[%s4088_s14] sm:$0xff] }
0x10ee   : > { %3762 = vrot.lane.b32.xlu0 %v3761_v53, %s4020_s18 }
0x1161   : > { %v2849_v41 = vpop.xlane.xlu0 %2848 }
0x1162   : > { %3990 = vrcp.f32 %v2849_v41 }
0x1165   : > { %v2852_v43 = vpop.xlane.xlu0 %2851 }
0x1166   : > { %3992 = vrcp.f32 %v2852_v43 }
0x1169   : > { %v3763_v45 = vpop.permute.xlu0 %3762 }
0x116a   : > { %v3765_v46 = vunpack.i.h.bf16 %v3763_v45  ;;  %v3764_v47 = vunpack.i.l.bf16 %v3763_v45  ;;  %v3995_v45 = vld [vmem:[%s4088_s14 + $0x8] sm:$0xff] }
0x116c   : > { %v2931_v10 = vsel %vm841_vm3, %v4516_v40, %v3765_v46  ;;  %v2930_v49 = vsel %vm841_vm3, %v4514_v38, %v3764_v47  ;;  %v3991_v11 = vpop.eup %3990  ;;  %v3922_v38 = vld [vmem:[%s5091_s7] ss:$8 sps:$4 sm:$0xff]   ;;  %v3924_v40 = vld [vmem:[%s5091_s7 + $0x4] ss:$8 sps:$4 sm:$0xff]  }
0x116d   : > { %v4976_v52 = vsel %vm2932_vm13, %v2930_v49, %v3769_v8  ;;  %v4980_v53 = vsel %vm2932_vm13, %v2931_v10, %v3770_v48  ;;  %v2854_v50 = vmul.f32 %v3991_v11, %v3987_v36  ;;  %3099 = vmatprep.subr.bf16.mxu0 %v3924_v40 }
0x116e   : > { %v2938_v20 = vpack.c.bf16 %v4980_v53, %v4976_v52 }
0x1170   : > { %v3993_v12 = vpop.eup %3992 }
0x1171   : > { %v2856_v54 = vmul.f32 %v3993_v12, %v3989_v39 }
0x1173   : > { %v2857_v18 = vpack.c.bf16 %v2856_v54, %v2854_v50 }
0x1175   : > { %3734 = vmatmul.mubr.msk.bf16.vlgmr.msra.gmra.mrb[36].mxu0 %vm983_vm11, %v2857_v18 }
0x1176   : > { %3100 = vmatpush1.bf16.msra.mxu0 %v3922_v38 }
0x1177   : > { %3101 = vmatprep.subr.bf16.mxu0 %v3927_v2 }
0x117a   : > { %3102 = vmatpush1.bf16.msra.mxu0 %v3925_v3 }
0x117b   : > { %3103 = vmatprep.subr.bf16.mxu0 %v3930_v55 }
0x117e   : > { %3104 = vmatpush1.bf16.msra.mxu0 %v3928_v56 }
0x117f   : > { %3105 = vmatprep.subr.bf16.mxu0 %v3933_v57 }
0x1182   : > { %3106 = vmatpush1.bf16.msra.mxu0 %v3931_v51 }
0x1183   : > { %3107 = vmatprep.subr.bf16.mxu0 %v3936_v58 }
0x1186   : > { %3108 = vmatpush1.bf16.msra.mxu0 %v3934_v4 }
0x1187   : > { %3109 = vmatprep.subr.bf16.mxu0 %v3939_v23 }
0x118a   : > { %3110 = vmatpush1.bf16.msra.mxu0 %v3937_v27 }
0x118b   : > { %3111 = vmatprep.subr.bf16.mxu0 %v3942_v59 }
0x118e   : > { %3112 = vmatpush1.bf16.msra.mxu0 %v3940_v62 }
0x118f   : > { %3113 = vmatprep.subr.bf16.mxu0 %v3945_v63 }
0x1192   : > { %3114 = vmatpush1.bf16.msra.mxu0 %v3943_v0 }
0x1193   : > { %3115 = vmatprep.subr.bf16.mxu0 %v3948_v15 }
0x1196   : > { %3116 = vmatpush1.bf16.msra.mxu0 %v3946_v17 }
0x1197   : > { %3117 = vmatprep.subr.bf16.mxu0 %v3951_v1 }
0x119a   : > { %3118 = vmatpush1.bf16.msra.mxu0 %v3949_v5 }
0x119b   : > { %3119 = vmatprep.subr.bf16.mxu0 %v3954_v6 }
0x119e   : > { %3120 = vmatpush1.bf16.msra.mxu0 %v3952_v7 }
0x119f   : > { %3121 = vmatprep.subr.bf16.mxu0 %v3957_v9 }
0x11a2   : > { %3122 = vmatpush1.bf16.msra.mxu0 %v3955_v13 }
0x1248   : > { %v2899_v14 = vpop.f32.mrb[36].mxu0 }
0x1249   : > { %v3735_v16 = vpop.f32.mrb[37].mxu0 }
0x124a   : > { %v2902_v19 = vpop.f32.mrb[38].mxu0 }
0x124b   : > { %v3771_v22 = vpack.i.bf16 %v2902_v19, %v2899_v14  ;;  %v3736_v24 = vpop.f32.mrb[39].mxu0 }
0x124d   : > { %3772 = vrot.lane.b32.xlu1 %v3771_v22, %s4021_s16 }
0x12bf   : > { %v3773_v25 = vpop.permute.xlu1 %3772 }
0x12c0   : > { %v3775_v26 = vunpack.i.h.bf16 %v3773_v25  ;;  %v3774_v28 = vunpack.i.l.bf16 %v3773_v25 }
0x12c2   : > { %v2937_v29 = vsel %vm2935_vm14, %v3770_v48, %v3775_v26  ;;  %v2936_v30 = vsel %vm2935_vm14, %v3769_v8, %v3774_v28  ;;  %v3997_v48 = vld [vmem:[%s4088_s14 + $0x18] sm:$0x1] }
0x12c3   : > { %v2939_v31 = vpack.c.bf16 %v2937_v29, %v2936_v30 }
0x12c5   : > { %3624 = vmatprep.mubr.msk.bf16.mxu0 %vm340_vm0, %v2939_v31 }
0x12c6   : > { %3132 = vmatmul.mubr.bf16.vlgmr.msra.gmra.mrb[40].mxu0 %v2938_v20 }
0x1399   : > { %v3133_v34 = vpop.f32.mrb[40].mxu0 }
0x139a   : > { %v3134_v35 = vadd.f32 %v3133_v34, %v2969_v32  ;;  %v3135_v36 = vpop.f32.mrb[41].mxu0 }
0x139b   : > { %v3136_v37 = vadd.f32 %v3135_v36, %v2973_v33  ;;  %v3137_v39 = vpop.f32.mrb[42].mxu0 }
0x139c   : > { %v3142_v41 = vadd.f32 %v3994_v42, %v3134_v35  ;;  %v3138_v43 = vadd.f32 %v3137_v39, %v2969_v32  ;;  %v3139_v44 = vpop.f32.mrb[43].mxu0 }
0x139d   : > { %v3143_v60 = vadd.f32 %v3995_v45, %v3136_v37  ;;  %v3140_v46 = vadd.f32 %v3139_v44, %v2973_v33 }
0x139e   : > { %3146 = vst [vmem:[%s332_s21] sm:$0xff] %v3142_v41  ;;  %v3144_v47 = vadd.f32 %v3996_v61, %v3138_v43 }
0x139f   : > { %3147 = vst.msk [vmem:[%s332_s21 + $0x8] sm:$0xff] %vm340_vm0, %v3143_v60  ;;  %v3145_v8 = vadd.f32 %v3997_v48, %v3140_v46 }
0x13a0   : > { %3148 = vst [vmem:[%s332_s21 + $0x10] sm:$0x1] %v3144_v47 }
0x13a1   : > { %3149 = vst.msk [vmem:[%s332_s21 + $0x18] sm:$0x1] %vm347_vm2, %v3145_v8 }
0x13a2 PF: > { %s19_s30 = sadd.s32 1, %s4004_s30  }
0x13a3   : > { %p16_p4 = scmp.ge.s32.totalorder %s19_s30, 4  }
0x13a5   :  { %18 = sbr.rel (!%p16_p4) target bundleno = 1 (0x1), region = 95 }

// kernel: conformer_forward.21
= control target key start
LH: loop header
LB: loop body
LE: loop exit
PB: predicated region body
PF: predicated region fallthrough
CT: control target
= control target key end

     0   :  { %s3703_s13 = smov 0   ;;  %s5373_s0 = inlined_call_operand.vmem [shape: f32[2,9,192], index: 0, kind: input, shape index: {}]   ;;  %s5374_s1 = inlined_call_operand.vmem [shape: f32[1,192], index: 1, kind: input, shape index: {}]   ;;  %s5375_s2 = inlined_call_operand.vmem [shape: f32[1,192], index: 2, kind: input, shape index: {}]   ;;  %s5376_s3 = inlined_call_operand.vmem [shape: bf16[192,768], index: 3, kind: input, shape index: {}]   ;;  %s5377_s4 = inlined_call_operand.vmem [shape: f32[1,768], index: 4, kind: input, shape index: {}]   ;;  %s5378_s5 = inlined_call_operand.vmem [shape: f32[32,384], index: 5, kind: input, shape index: {}]   ;;  %s5379_s6 = inlined_call_operand.vmem [shape: f32[1,384], index: 6, kind: input, shape index: {}]   ;;  %s5380_s7 = inlined_call_operand.vmem [shape: f32[1,384], index: 7, kind: input, shape index: {}]   ;;  %s5381_s8 = inlined_call_operand.vmem [shape: bf16[384,192], index: 8, kind: input, shape index: {}]   ;;  %s5382_s9 = inlined_call_operand.vmem [shape: f32[1,192], index: 9, kind: input, shape index: {}]   ;;  %s5383_s10 = inlined_call_operand.vmem [shape: f32[2,9,192], index: 10, kind: output, shape index: {}]  }
   0x1 LB: > { %s3245_s14 = sadd.s32 4294967295, %s3644_s13   ;;  %p3249_p0 = scmp.ge.s32.totalorder %s3644_s13, 1  ;;  %s3644_s13 = sphi %s3703_s13, %s20_s13  }
   0x2   : > { %p312_p1 = scmp.lt.s32.totalorder %s3644_s13, 3 }
   0x4   : > { %p313_p2 = pnand %p3249_p0, %p312_p1 }
   0x6   : > { %316 = sbr.rel (%p313_p2) target bundleno = 1004 (0x3ec), region = 60 }
   0xd   : > { %p350_p3 = scmp.lt.s32.totalorder %s3245_s14, 1  ;;  %vm367_vm0 = vcmask 523264   ;;  %vm372_vm1 = vcmask 1040384   ;;  %vm374_vm2 = vcmask 516096   ;;  %v3399_v9 = vld [vmem:[%s5376_s3 + $0x4] ss:$24 sps:$4 sm:$0xff]  }
   0xe   : > { %v3401_v10 = vld [vmem:[%s5376_s3] ss:$24 sps:$4 sm:$0xff]   ;;  %v3402_v11 = vld [vmem:[%s5376_s3 + $0xc] ss:$24 sps:$4 sm:$0xff]   ;;  %908 = vmatprep.subr.bf16.mxu0 %v3399_v9  ;;  %v3408_v14 = vld [vmem:[%s5376_s3 + $0x3c] ss:$24 sps:$4 sm:$0xff]  }
   0xf   : > { %s5749_s14 = smov (!%p350_p3, %s3245_s14), 1  ;;  %v3404_v12 = vld [vmem:[%s5376_s3 + $0x8] ss:$24 sps:$4 sm:$0xff]   ;;  %v3405_v13 = vld [vmem:[%s5376_s3 + $0x34] ss:$24 sps:$4 sm:$0xff]   ;;  %951 = vmatprep.subr.bf16.mxu1 %v3402_v11  ;;  %909 = vmatpush1.bf16.msra.mxu0 %v3401_v10  ;;  %vm1196_vm3 = vcmask 1046528  }
  0x10   : > { %s3379_s15 = sshll.u32 %s5749_s14, 5  ;;  %952 = vmatpush1.bf16.msra.mxu1 %v3404_v12  ;;  %v3407_v15 = vld [vmem:[%s5376_s3 + $0x30] ss:$24 sps:$4 sm:$0xff]   ;;  %910 = vmatprep.subr.bf16.mxu0 %v3405_v13  ;;  %v3411_v17 = vld [vmem:[%s5376_s3 + $0x64] ss:$24 sps:$4 sm:$0xff]   ;;  %vm1248_vm4 = vcmask 1045504  }
  0x11   : > { %s3719_s18 = scalar_lea.vmem %s5373_s0, %s3379_s15  ;;  %v3410_v16 = vld [vmem:[%s5376_s3 + $0x38] ss:$24 sps:$4 sm:$0xff]   ;;  %953 = vmatprep.subr.bf16.mxu1 %v3408_v14  ;;  %v3414_v18 = vld [vmem:[%s5376_s3 + $0x6c] ss:$24 sps:$4 sm:$0xff]   ;;  %v3416_v20 = vld [vmem:[%s5376_s3 + $0x68] ss:$24 sps:$4 sm:$0xff]   ;;  %s359_s27 = scalar_lea.vmem %s5383_s10, %s3379_s15 }
  0x12   : > { %v361_v0 = vld [vmem:[%s3719_s18] sm:$0xff]  ;;  %v362_v1 = vld [vmem:[%s3719_s18 + $0x8] sm:$0xff]  ;;  %v363_v2 = vld [vmem:[%s3719_s18 + $0x10] sm:$0x1]  ;;  %vm1300_vm5 = vcmask 1044480   ;;  %vm1352_vm6 = vcmask 1043456  }
  0x13   : > { %v368_v3 = vsel %vm367_vm0, %v362_v1, 0.0  ;;  %v364_v4 = vld [vmem:[%s3719_s18 + $0x18] sm:$0x1]  ;;  %v373_v5 = vsel %vm372_vm1, %v363_v2, 0.0  ;;  %v3417_v21 = vld [vmem:[%s5376_s3 + $0x94] ss:$24 sps:$4 sm:$0xff]   ;;  %911 = vmatpush1.bf16.msra.mxu0 %v3407_v15  ;;  %v410_v15 = vlaneseq }
  0x14   : > { %v369_v6 = vadd.f32 %v368_v3, %v361_v0  ;;  %v375_v7 = vsel %vm374_vm2, %v364_v4, 0.0  ;;  %v3413_v19 = vld [vmem:[%s5376_s3 + $0x60] ss:$24 sps:$4 sm:$0xff]   ;;  %v3420_v22 = vld [vmem:[%s5376_s3 + $0x9c] ss:$24 sps:$4 sm:$0xff]   ;;  %954 = vmatpush1.bf16.msra.mxu1 %v3410_v16  ;;  %912 = vmatprep.subr.bf16.mxu0 %v3411_v17  ;;  %vm1404_vm7 = vcmask 1042432  }
  0x15   : > { %v376_v8 = vadd.f32 %v375_v7, %v373_v5  ;;  %955 = vmatprep.subr.bf16.mxu1 %v3414_v18  ;;  %v3419_v23 = vld [vmem:[%s5376_s3 + $0x90] ss:$24 sps:$4 sm:$0xff]   ;;  %v3423_v25 = vld [vmem:[%s5376_s3 + $0xc4] ss:$24 sps:$4 sm:$0xff]   ;;  %v3425_v27 = vld [vmem:[%s5376_s3 + $0xc0] ss:$24 sps:$4 sm:$0xff]  }
  0x16   : > { %370 = vadd.xlane.f32.xlu0 %v369_v6  ;;  %v3422_v24 = vld [vmem:[%s5376_s3 + $0x98] ss:$24 sps:$4 sm:$0xff]   ;;  %v3426_v26 = vld [vmem:[%s5376_s3 + $0xcc] ss:$24 sps:$4 sm:$0xff]   ;;  %v3428_v28 = vld [vmem:[%s5376_s3 + $0xc8] ss:$24 sps:$4 sm:$0xff]  }
  0x17   : > { %913 = vmatpush1.bf16.msra.mxu0 %v3413_v19  ;;  %v3429_v29 = vld [vmem:[%s5376_s3 + $0xf4] ss:$24 sps:$4 sm:$0xff]   ;;  %v3431_v47 = vld [vmem:[%s5376_s3 + $0xf0] ss:$24 sps:$4 sm:$0xff]   ;;  %v3435_v50 = vld [vmem:[%s5376_s3 + $0x124] ss:$24 sps:$4 sm:$0xff]  }
  0x18   : > { %956 = vmatpush1.bf16.msra.mxu1 %v3416_v20  ;;  %914 = vmatprep.subr.bf16.mxu0 %v3417_v21  ;;  %v3432_v48 = vld [vmem:[%s5376_s3 + $0xfc] ss:$24 sps:$4 sm:$0xff]   ;;  %v3434_v49 = vld [vmem:[%s5376_s3 + $0xf8] ss:$24 sps:$4 sm:$0xff]   ;;  %v3438_v52 = vld [vmem:[%s5376_s3 + $0x12c] ss:$24 sps:$4 sm:$0xff]  }
  0x19   : > { %957 = vmatprep.subr.bf16.mxu1 %v3420_v22  ;;  %v3437_v51 = vld [vmem:[%s5376_s3 + $0x120] ss:$24 sps:$4 sm:$0xff]   ;;  %v3441_v54 = vld [vmem:[%s5376_s3 + $0x154] ss:$24 sps:$4 sm:$0xff]   ;;  %v3443_v55 = vld [vmem:[%s5376_s3 + $0x150] ss:$24 sps:$4 sm:$0xff]  }
  0x1a   : > { %377 = vadd.xlane.f32.xlu0 %v376_v8  ;;  %v3440_v53 = vld [vmem:[%s5376_s3 + $0x128] ss:$24 sps:$4 sm:$0xff]   ;;  %v3444_v56 = vld [vmem:[%s5376_s3 + $0x15c] ss:$24 sps:$4 sm:$0xff]   ;;  %v3446_v57 = vld [vmem:[%s5376_s3 + $0x158] ss:$24 sps:$4 sm:$0xff]  }
  0x1b   : > { %915 = vmatpush1.bf16.msra.mxu0 %v3419_v23  ;;  %v3447_v58 = vld [vmem:[%s5376_s3 + $0x184] ss:$24 sps:$4 sm:$0xff]   ;;  %v3449_v59 = vld [vmem:[%s5376_s3 + $0x180] ss:$24 sps:$4 sm:$0xff]   ;;  %v3453_v62 = vld [vmem:[%s5376_s3 + $0x1b4] ss:$24 sps:$4 sm:$0xff]  }
  0x1c   : > { %958 = vmatpush1.bf16.msra.mxu1 %v3422_v24  ;;  %916 = vmatprep.subr.bf16.mxu0 %v3423_v25  ;;  %v3450_v60 = vld [vmem:[%s5376_s3 + $0x18c] ss:$24 sps:$4 sm:$0xff]   ;;  %v3452_v61 = vld [vmem:[%s5376_s3 + $0x188] ss:$24 sps:$4 sm:$0xff]   ;;  %v3456_v63 = vld [vmem:[%s5376_s3 + $0x1bc] ss:$24 sps:$4 sm:$0xff]  }
  0x1d   : > { %959 = vmatprep.subr.bf16.mxu1 %v3426_v26  ;;  %v3462_v3 = vld [vmem:[%s5376_s3 + $0x1ec] ss:$24 sps:$4 sm:$0xff]   ;;  %v3464_v5 = vld [vmem:[%s5376_s3 + $0x1e8] ss:$24 sps:$4 sm:$0xff]   ;;  %v3468_v7 = vld [vmem:[%s5376_s3 + $0x21c] ss:$24 sps:$4 sm:$0xff]  }
  0x1e   : > { %v3465_v6 = vld [vmem:[%s5376_s3 + $0x214] ss:$24 sps:$4 sm:$0xff]   ;;  %v3467_v8 = vld [vmem:[%s5376_s3 + $0x210] ss:$24 sps:$4 sm:$0xff]   ;;  %v3894_v18 = vshrl.u32 %v410_v15, 7  ;;  %vm1456_vm8 = vcmask 1041408  }
  0x1f   : > { %917 = vmatpush1.bf16.msra.mxu0 %v3425_v27  ;;  %v3470_v9 = vld [vmem:[%s5376_s3 + $0x218] ss:$24 sps:$4 sm:$0xff]   ;;  %v3473_v10 = vld [vmem:[%s5376_s3 + $0x14] ss:$24 sps:$4 sm:$0xff]   ;;  %v365_v21 = vld [vmem:[%s5374_s1] sm:$0x3] }
  0x20   : > { %960 = vmatpush1.bf16.msra.mxu1 %v3428_v28  ;;  %918 = vmatprep.subr.bf16.mxu0 %v3429_v29  ;;  %v3897_v19 = vsub.s32 1, %v3894_v18  ;;  %v3900_v20 = vsub.s32 0, %v3894_v18  ;;  %v366_v23 = vld [vmem:[%s5375_s2] sm:$0x3]  ;;  %v4006_v15 = vsub.s32 4, %v3894_v18 }
  0x21   : > { %961 = vmatprep.subr.bf16.mxu1 %v3432_v48  ;;  %v3482_v48 = vld [vmem:[%s5376_s3 + $0xa4] ss:$24 sps:$4 sm:$0xff]  }
  0x22   : > { %5480 = vst [vmem:[#allocation3_spill] sm:$0xff] %v3897_v19  ;;  %5481 = vst [vmem:[#allocation4_spill] sm:$0xff] %v3900_v20  ;;  %v417_v25 = vrot.slane %v365_v21, %v3897_v19  ;;  %v413_v27 = vrot.slane %v365_v21, %v3900_v20  ;;  %v432_v29 = vrot.slane %v366_v23, %v3897_v19 }
  0x23   : > { %919 = vmatpush1.bf16.msra.mxu0 %v3431_v47  ;;  %v3477_v47 = vld [vmem:[%s5376_s3 + $0x70] ss:$24 sps:$4 sm:$0xff]   ;;  %5484 = vst [vmem:[#allocation7_spill] sm:$0xff] %v4006_v15 }
  0x24   : > { %962 = vmatpush1.bf16.msra.mxu1 %v3434_v49  ;;  %920 = vmatprep.subr.bf16.mxu0 %v3435_v50  ;;  %v3480_v49 = vld [vmem:[%s5376_s3 + $0xa0] ss:$24 sps:$4 sm:$0xff]   ;;  %v3485_v50 = vld [vmem:[%s5376_s3 + $0xd4] ss:$24 sps:$4 sm:$0xff]  }
  0x25   : > { %963 = vmatprep.subr.bf16.mxu1 %v3438_v52  ;;  %v3488_v52 = vld [vmem:[%s5376_s3 + $0x104] ss:$24 sps:$4 sm:$0xff]  }
  0x27   : > { %921 = vmatpush1.bf16.msra.mxu0 %v3437_v51  ;;  %v3483_v51 = vld [vmem:[%s5376_s3 + $0xd0] ss:$24 sps:$4 sm:$0xff]  }
  0x28   : > { %964 = vmatpush1.bf16.msra.mxu1 %v3440_v53  ;;  %922 = vmatprep.subr.bf16.mxu0 %v3441_v54  ;;  %v3486_v53 = vld [vmem:[%s5376_s3 + $0x100] ss:$24 sps:$4 sm:$0xff]   ;;  %v3491_v54 = vld [vmem:[%s5376_s3 + $0x134] ss:$24 sps:$4 sm:$0xff]  }
  0x29   : > { %965 = vmatprep.subr.bf16.mxu1 %v3444_v56  ;;  %v3494_v56 = vld [vmem:[%s5376_s3 + $0x164] ss:$24 sps:$4 sm:$0xff]  }
  0x2b   : > { %923 = vmatpush1.bf16.msra.mxu0 %v3443_v55  ;;  %v3489_v55 = vld [vmem:[%s5376_s3 + $0x130] ss:$24 sps:$4 sm:$0xff]  }
  0x2c   : > { %966 = vmatpush1.bf16.msra.mxu1 %v3446_v57  ;;  %924 = vmatprep.subr.bf16.mxu0 %v3447_v58  ;;  %v3492_v57 = vld [vmem:[%s5376_s3 + $0x160] ss:$24 sps:$4 sm:$0xff]   ;;  %v3497_v58 = vld [vmem:[%s5376_s3 + $0x194] ss:$24 sps:$4 sm:$0xff]  }
  0x2d   : > { %967 = vmatprep.subr.bf16.mxu1 %v3450_v60  ;;  %v3500_v60 = vld [vmem:[%s5376_s3 + $0x1c4] ss:$24 sps:$4 sm:$0xff]  }
  0x2f   : > { %925 = vmatpush1.bf16.msra.mxu0 %v3449_v59  ;;  %v3495_v59 = vld [vmem:[%s5376_s3 + $0x190] ss:$24 sps:$4 sm:$0xff]  }
  0x30   : > { %968 = vmatpush1.bf16.msra.mxu1 %v3452_v61  ;;  %926 = vmatprep.subr.bf16.mxu0 %v3453_v62  ;;  %v3498_v61 = vld [vmem:[%s5376_s3 + $0x1c0] ss:$24 sps:$4 sm:$0xff]   ;;  %v3503_v62 = vld [vmem:[%s5376_s3 + $0x1f4] ss:$24 sps:$4 sm:$0xff]  }
  0x31   : > { %969 = vmatprep.subr.bf16.mxu1 %v3456_v63  ;;  %v3501_v63 = vld [vmem:[%s5376_s3 + $0x1f0] ss:$24 sps:$4 sm:$0xff]  }
  0xa3   : > { %v371_v30 = vpop.xlane.xlu0 %370 }
  0xa4   : > { %v380_v31 = vmul.f32 0.0052083335, %v371_v30  ;;  %v428_v30 = vrot.slane %v366_v23, %v3900_v20 }
  0xa6   : > { %v3791_v32 = vsub.f32 %v361_v0, %v380_v31  ;;  %v3793_v33 = vsub.f32 %v362_v1, %v380_v31  ;;  %v3455_v0 = vld [vmem:[%s5376_s3 + $0x1b0] ss:$24 sps:$4 sm:$0xff]  }
  0xa7   : > { %v378_v34 = vpop.xlane.xlu0 %377  ;;  %v3458_v1 = vld [vmem:[%s5376_s3 + $0x1b8] ss:$24 sps:$4 sm:$0xff]   ;;  %927 = vmatpush1.bf16.msra.mxu0 %v3455_v0  ;;  %v3506_v0 = vld [vmem:[%s5376_s3 + $0x224] ss:$24 sps:$4 sm:$0xff]  }
  0xa8   : > { %v381_v35 = vmul.f32 0.0052083335, %v378_v34  ;;  %v386_v36 = vmul.f32 %v3791_v32, %v3791_v32  ;;  %v387_v37 = vmul.f32 %v3793_v33, %v3793_v33  ;;  %970 = vmatpush1.bf16.msra.mxu1 %v3458_v1  ;;  %v3504_v1 = vld [vmem:[%s5376_s3 + $0x220] ss:$24 sps:$4 sm:$0xff]  }
  0xa9   : > { %971 = vmatprep.subr.bf16.mxu1 %v3462_v3  ;;  %v3991_v3 = vld [vmem:[%s5378_s5] sm:$0xff] }
  0xaa   : > { %v3799_v38 = vsub.f32 %v363_v2, %v381_v35  ;;  %v3801_v39 = vsub.f32 %v364_v4, %v381_v35  ;;  %v390_v40 = vsel %vm367_vm0, %v387_v37, 0.0  ;;  %v3459_v2 = vld [vmem:[%s5376_s3 + $0x1e4] ss:$24 sps:$4 sm:$0xff]   ;;  %v3461_v4 = vld [vmem:[%s5376_s3 + $0x1e0] ss:$24 sps:$4 sm:$0xff]  }
  0xab   : > { %v391_v41 = vadd.f32 %v390_v40, %v386_v36  ;;  %928 = vmatprep.subr.bf16.mxu0 %v3459_v2  ;;  %v3646_v2 = vmov 0.0  }
  0xac   : > { %v388_v42 = vmul.f32 %v3799_v38, %v3799_v38  ;;  %v389_v43 = vmul.f32 %v3801_v39, %v3801_v39  ;;  %929 = vmatpush1.bf16.msra.mxu0 %v3461_v4  ;;  %972 = vmatpush1.bf16.msra.mxu1 %v3464_v5  ;;  %1103 = vst [vmem:[#allocation2] sm:$0xff] %v3646_v2  ;;  %1106 = vst [vmem:[#allocation2 + $0x18] sm:$0xff] %v3646_v2 }
  0xad   : > { %392 = vadd.xlane.f32.xlu1 %v391_v41  ;;  %930 = vmatprep.subr.bf16.mxu0 %v3465_v6  ;;  %1104 = vst [vmem:[#allocation2 + $0x8] sm:$0xff] %v3646_v2  ;;  %1105 = vst [vmem:[#allocation2 + $0x10] sm:$0xff] %v3646_v2  ;;  %v1175_v4 = vrot.slane %v3991_v3, %v3897_v19 }
  0xae   : > { %v394_v44 = vsel %vm372_vm1, %v388_v42, 0.0  ;;  %v395_v45 = vsel %vm374_vm2, %v389_v43, 0.0  ;;  %973 = vmatprep.subr.bf16.mxu1 %v3468_v7  ;;  %1107 = vst [vmem:[#allocation2 + $0x20] sm:$0xff] %v3646_v2  ;;  %1108 = vst [vmem:[#allocation2 + $0x28] sm:$0xff] %v3646_v2  ;;  %v3996_v7 = vsub.s32 2, %v3894_v18 }
  0xaf   : > { %v396_v46 = vadd.f32 %v395_v45, %v394_v44  ;;  %v3471_v44 = vld [vmem:[%s5376_s3 + $0x10] ss:$24 sps:$4 sm:$0xff]   ;;  %1109 = vst [vmem:[#allocation2 + $0x48] sm:$0xfe] %v3646_v2  ;;  %1110 = vst [vmem:[#allocation2 + $0x50] sm:$0xfe] %v3646_v2 }
  0xb0   : > { %931 = vmatpush1.bf16.msra.mxu0 %v3467_v8  ;;  %974 = vmatpush1.bf16.msra.mxu1 %v3470_v9  ;;  %1111 = vst [vmem:[#allocation2 + $0x58] sm:$0xfe] %v3646_v2  ;;  %1112 = vst [vmem:[#allocation2 + $0x60] sm:$0xff] %v3646_v2 }
  0xb1   : > { %397 = vadd.xlane.f32.xlu1 %v396_v46  ;;  %994 = vmatprep.subr.bf16.mxu0 %v3473_v10  ;;  %v3479_v46 = vld [vmem:[%s5376_s3 + $0x74] ss:$24 sps:$4 sm:$0xff]   ;;  %1113 = vst [vmem:[#allocation2 + $0x68] sm:$0xff] %v3646_v2  ;;  %1114 = vst [vmem:[#allocation2 + $0x70] sm:$0xff] %v3646_v2  ;;  %v1227_v10 = vrot.slane %v3991_v3, %v3996_v7 }
  0xb2   : > { %5482 = vst [vmem:[#allocation5_spill] sm:$0xff] %v3996_v7 }
  0xb3   : > { %v1166_v5 = vld [vmem:[#allocation2] sm:$0xfe]  ;;  %v1169_v6 = vld [vmem:[#allocation2 + $0x18] sm:$0x3] }
  0xb4   : > { %v1184_v8 = vmul.f32 %v1175_v4, %v1166_v5  ;;  %v1187_v9 = vmul.f32 %v1175_v4, %v1169_v6 }
  0xb6   : > { %v1198_v21 = vrot.slane %v1187_v9, 1  ;;  %v4052_v9 = vld [vmem:[%s5378_s5 + $0x18] sm:$0xff] }
 0x13a   : > { %v393_v11 = vpop.xlane.xlu1 %392 }
 0x13b   : > { %v399_v12 = vmul.f32 0.0052083335, %v393_v11  ;;  %v1218_v11 = vld [vmem:[#allocation2] sm:$0xfc] }
 0x13d   : > { %v401_v13 = vadd.f32 1e-05, %v399_v12  ;;  %v1221_v12 = vld [vmem:[#allocation2 + $0x18] sm:$0x7] }
 0x13e   : > { %v398_v14 = vpop.xlane.xlu1 %397  ;;  %v1239_v23 = vmul.f32 %v1227_v10, %v1221_v12 }
 0x13f   : > { %3579 = vrsqrt.f32 %v401_v13  ;;  %v400_v16 = vmul.f32 0.0052083335, %v398_v14  ;;  %v4001_v13 = vsub.s32 3, %v3894_v18  ;;  %v1145_v14 = vrot.slane %v3991_v3, %v3900_v20 }
 0x141   : > { %v402_v17 = vadd.f32 1e-05, %v400_v16  ;;  %5483 = vst [vmem:[#allocation6_spill] sm:$0xff] %v4001_v13  ;;  %v1139_v16 = vld [vmem:[#allocation2 + $0x18] sm:$0x1] }
 0x143   : > { %3581 = vrsqrt.f32 %v402_v17  ;;  %v1197_v17 = vrot.slane %v1184_v8, 1 }
 0x149   : > { %v3580_v22 = vpop.eup %3579 }
 0x14a   : > { %v406_v24 = vmul.f32 %v3580_v22, %v3793_v33  ;;  %v405_v26 = vmul.f32 %v3580_v22, %v3791_v32  ;;  %v1236_v22 = vmul.f32 %v1227_v10, %v1218_v11  ;;  %v4057_v10 = vld [vmem:[%s5378_s5 + $0x30] sm:$0xff] }
 0x14c   : > { %v421_v34 = vmul.f32 %v417_v25, %v406_v24  ;;  %v420_v36 = vmul.f32 %v413_v27, %v405_v26  ;;  %v1279_v24 = vrot.slane %v3991_v3, %v4001_v13  ;;  %v1273_v26 = vld [vmem:[#allocation2 + $0x18] sm:$0xf] }
 0x14d   : > { %v3582_v28 = vpop.eup %3581 }
 0x14e   : > { %v408_v31 = vmul.f32 %v3582_v28, %v3801_v39  ;;  %v407_v35 = vmul.f32 %v3582_v28, %v3799_v38  ;;  %v436_v33 = vadd.f32 %v432_v29, %v421_v34  ;;  %v435_v42 = vadd.f32 %v428_v30, %v420_v36  ;;  %v3476_v39 = vld [vmem:[%s5376_s3 + $0x44] ss:$24 sps:$4 sm:$0xff]   ;;  %v3474_v38 = vld [vmem:[%s5376_s3 + $0x40] ss:$24 sps:$4 sm:$0xff]  }
 0x14f   : > { %v4011_v28 = vsub.s32 5, %v3894_v18  ;;  %v1249_v34 = vrot.slane %v1236_v22, 2  ;;  %v1167_v22 = vld [vmem:[#allocation2 + $0x8] sm:$0xfe] }
 0x150   : > { %v423_v37 = vmul.f32 %v417_v25, %v408_v31  ;;  %v422_v40 = vmul.f32 %v413_v27, %v407_v35  ;;  %v1270_v25 = vld [vmem:[#allocation2] sm:$0xf8]  ;;  %v1157_v27 = vmul.f32 %v1145_v14, %v1139_v16  ;;  %v1331_v31 = vrot.slane %v3991_v3, %v4006_v15 }
 0x151   : > { %5485 = vst [vmem:[#allocation8_spill] sm:$0xff] %v4011_v28  ;;  %v1250_v35 = vrot.slane %v1239_v23, 2  ;;  %v1288_v36 = vmul.f32 %v1279_v24, %v1270_v25  ;;  %v1170_v23 = vld [vmem:[#allocation2 + $0x20] sm:$0x3]  ;;  %v4068_v25 = vrot.slane %v4052_v9, %v3897_v19 }
 0x152   : > { %v438_v41 = vadd.f32 %v432_v29, %v423_v37  ;;  %v437_v43 = vadd.f32 %v428_v30, %v422_v40  ;;  %v1154_v29 = vmul.f32 0.0, %v1145_v14  ;;  %v1199_v30 = vsel %vm1196_vm3, %v1197_v17, %v1198_v21  ;;  %v1322_v40 = vld [vmem:[#allocation2] sm:$0xf0] }
 0x153   : > { %v1291_v37 = vmul.f32 %v1279_v24, %v1273_v26  ;;  %v4072_v26 = vrot.slane %v4052_v9, %v3996_v7 }
 0x154   : > { %v440_v32 = vpack.c.bf16 %v438_v41, %v436_v33  ;;  %v439_v45 = vpack.c.bf16 %v437_v43, %v435_v42  ;;  %v1325_v33 = vld [vmem:[#allocation2 + $0x18] sm:$0x1f]  ;;  %v1215_v41 = vadd.f32 %v1198_v21, %v1157_v27  ;;  %v1212_v42 = vadd.f32 %v1199_v30, %v1154_v29 }
 0x155   : > { %v1340_v43 = vmul.f32 %v1331_v31, %v1322_v40 }
 0x156   : > { %3326 = vmatprep.mubr.msk.bf16.mxu0 %vm367_vm0, %v440_v32  ;;  %3327 = vmatprep.mubr.msk.bf16.mxu1 %vm367_vm0, %v440_v32 }
 0x157   : > { %941 = vmatmul.mubr.bf16.vlgmr.msra.gmra.mrb[0].mxu0 %v439_v45  ;;  %984 = vmatmul.mubr.bf16.vlgmr.msra.gmra.mrb[0].mxu1 %v439_v45 }
 0x158   : > { %995 = vmatpush1.bf16.msra.mxu0 %v3471_v44  ;;  %3328 = vmatprep.mubr.msk.bf16.mxu0 %vm367_vm0, %v440_v32  ;;  %v1383_v32 = vrot.slane %v3991_v3, %v4011_v28  ;;  %v4019_v44 = vsub.s32 6, %v3894_v18 }
 0x159   : > { %996 = vmatprep.subr.bf16.mxu0 %v3476_v39  ;;  %v1301_v39 = vrot.slane %v1288_v36, 3 }
 0x15c   : > { %997 = vmatpush1.bf16.msra.mxu0 %v3474_v38  ;;  %v1302_v38 = vrot.slane %v1291_v37, 3  ;;  %v4084_v37 = vrot.slane %v4052_v9, %v4001_v13 }
 0x15d   : > { %998 = vmatprep.subr.bf16.mxu0 %v3479_v46  ;;  %v1343_v46 = vmul.f32 %v1331_v31, %v1325_v33  ;;  %v1556_v31 = vld [vmem:[#allocation2 + $0x18] sm:$0xfe] }
 0x160   : > { %999 = vmatpush1.bf16.msra.mxu0 %v3477_v47  ;;  %v1374_v47 = vld [vmem:[#allocation2] sm:$0xe0] }
 0x161   : > { %1000 = vmatprep.subr.bf16.mxu0 %v3482_v48  ;;  %v1377_v48 = vld [vmem:[#allocation2 + $0x18] sm:$0x3f] }
 0x164   : > { %1001 = vmatpush1.bf16.msra.mxu0 %v3480_v49  ;;  %v1267_v49 = vadd.f32 %v1250_v35, %v1215_v41 }
 0x165   : > { %1002 = vmatprep.subr.bf16.mxu0 %v3485_v50 }
 0x168   : > { %1003 = vmatpush1.bf16.msra.mxu0 %v3483_v51  ;;  %v1353_v51 = vrot.slane %v1340_v43, 4  ;;  %v4089_v43 = vrot.slane %v4052_v9, %v3900_v20 }
 0x169   : > { %1004 = vmatprep.subr.bf16.mxu0 %v3488_v52  ;;  %v1435_v52 = vrot.slane %v3991_v3, %v4019_v44 }
 0x16c   : > { %1005 = vmatpush1.bf16.msra.mxu0 %v3486_v53  ;;  %v1303_v53 = vsel %vm1300_vm5, %v1301_v39, %v1302_v38  ;;  %v4094_v39 = vmul.f32 %v4068_v25, %v1556_v31 }
 0x16d   : > { %1006 = vmatprep.subr.bf16.mxu0 %v3491_v54  ;;  %v1354_v54 = vrot.slane %v1343_v46, 4  ;;  %v4101_v46 = vrot.slane %v4052_v9, %v4006_v15 }
 0x16e   : > { %5487 = vst [vmem:[#allocation10_spill] sm:$0xff] %v4094_v39 }
 0x16f   : > { %v1355_v2 = vsel %vm1352_vm6, %v1353_v51, %v1354_v54 }
 0x170   : > { %1007 = vmatpush1.bf16.msra.mxu0 %v3489_v55  ;;  %v1392_v55 = vmul.f32 %v1383_v32, %v1374_v47 }
 0x171   : > { %1008 = vmatprep.subr.bf16.mxu0 %v3494_v56  ;;  %v1395_v56 = vmul.f32 %v1383_v32, %v1377_v48  ;;  %v1658_v32 = vld [vmem:[#allocation2 + $0x18] sm:$0xf8]  ;;  %v1219_v48 = vld [vmem:[#allocation2 + $0x8] sm:$0xfc] }
 0x172   : > { %v1405_v4 = vrot.slane %v1392_v55, 5  ;;  %v1140_v55 = vld [vmem:[#allocation2 + $0x20] sm:$0x1] }
 0x173   : > { %v1406_v5 = vrot.slane %v1395_v56, 5 }
 0x174   : > { %1009 = vmatpush1.bf16.msra.mxu0 %v3492_v57  ;;  %v1426_v57 = vld [vmem:[#allocation2] sm:$0xc0] }
 0x175   : > { %1010 = vmatprep.subr.bf16.mxu0 %v3497_v58  ;;  %v1429_v58 = vld [vmem:[#allocation2 + $0x18] sm:$0x7f]  ;;  %v1407_v24 = vsel %vm1404_vm7, %v1405_v4, %v1406_v5 }
 0x178   : > { %1011 = vmatpush1.bf16.msra.mxu0 %v3495_v59  ;;  %v1319_v59 = vadd.f32 %v1302_v38, %v1267_v49  ;;  %v1222_v49 = vld [vmem:[#allocation2 + $0x20] sm:$0x7] }
 0x179   : > { %1012 = vmatprep.subr.bf16.mxu0 %v3500_v60  ;;  %v4028_v60 = vld [vmem:[%s5377_s4] sm:$0x3f] }
 0x17a   : > { %v4043_v8 = vrot.slane %v4028_v60, %v3900_v20  ;;  %v1371_v11 = vadd.f32 %v1354_v54, %v1319_v59  ;;  %v4063_v14 = vrot.slane %v4028_v60, %v3897_v19  ;;  %v4076_v27 = vrot.slane %v4028_v60, %v4001_v13  ;;  %v1811_v59 = vld [vmem:[#allocation2 + $0x18] sm:$0xc0] }
 0x17b   : > { %v4111_v54 = vrot.slane %v4052_v9, %v4019_v44 }
 0x17c   : > { %1013 = vmatpush1.bf16.msra.mxu0 %v3498_v61  ;;  %v1423_v36 = vadd.f32 %v1406_v5, %v1371_v11 }
 0x17d   : > { %1014 = vmatprep.subr.bf16.mxu0 %v3503_v62  ;;  %v1444_v62 = vmul.f32 %v1435_v52, %v1426_v57  ;;  %5489 = vst [vmem:[#allocation12_spill] sm:$0xff] %v4111_v54  ;;  %v4114_v57 = vmul.f32 %v4084_v37, %v1658_v32  ;;  %v1326_v32 = vld [vmem:[#allocation2 + $0x20] sm:$0x1f] }
 0x17f   : > { %v1457_v17 = vrot.slane %v1444_v62, 6  ;;  %5490 = vst [vmem:[#allocation13_spill] sm:$0xff] %v4114_v57  ;;  %v1379_v57 = vld [vmem:[#allocation2 + $0x28] sm:$0x3f] }
 0x180   : > { %1015 = vmatpush1.bf16.msra.mxu0 %v3501_v63  ;;  %v1447_v63 = vmul.f32 %v1435_v52, %v1429_v58  ;;  %v1709_v52 = vld [vmem:[#allocation2 + $0x18] sm:$0xf0] }
 0x181   : > { %1016 = vmatprep.subr.bf16.mxu0 %v3506_v0  ;;  %v4031_v0 = vsub.s32 7, %v3894_v18  ;;  %v4047_v18 = vrot.slane %v4028_v60, %v3996_v7  ;;  %v1760_v58 = vld [vmem:[#allocation2 + $0x18] sm:$0xe0] }
 0x182   : > { %v1458_v21 = vrot.slane %v1447_v63, 6  ;;  %v1544_v63 = vmul.f32 0.0, %v4089_v43 }
 0x183   : > { %v1487_v6 = vrot.slane %v3991_v3, %v4031_v0  ;;  %v1478_v3 = vld [vmem:[#allocation2] sm:$0x80] }
 0x184   : > { %1017 = vmatpush1.bf16.msra.mxu0 %v3504_v1  ;;  %v4036_v1 = vld [vmem:[%s5378_s5 + $0x8] sm:$0xff]  ;;  %v1475_v56 = vadd.f32 %v1458_v21, %v1423_v36 }
 0x185   : > { %v1179_v12 = vrot.slane %v4036_v1, %v3897_v19  ;;  %v1496_v29 = vmul.f32 %v1487_v6, %v1478_v3  ;;  %v1499_v30 = vmul.f32 0.0, %v1487_v6  ;;  %v1149_v47 = vrot.slane %v4036_v1, %v3900_v20 }
 0x186   : > { %v1283_v5 = vrot.slane %v4036_v1, %v4001_v13 }
 0x187   : > { %1027 = vmatmul.mubr.bf16.vlgmr.msra.gmra.mrb[4].mxu0 %v439_v45  ;;  %v1251_v45 = vsel %vm1248_vm4, %v1249_v34, %v1250_v35  ;;  %v1607_v34 = vld [vmem:[#allocation2 + $0x18] sm:$0xfc]  ;;  %v4080_v35 = vrot.slane %v4057_v10, %v3900_v20  ;;  %v1185_v40 = vmul.f32 %v1179_v12, %v1167_v22  ;;  %v1188_v33 = vmul.f32 %v1179_v12, %v1170_v23 }
 0x188   : > { %v1264_v50 = vadd.f32 %v1251_v45, %v1212_v42  ;;  %v1459_v42 = vsel %vm1456_vm8, %v1457_v17, %v1458_v21  ;;  %v1231_v45 = vrot.slane %v4036_v1, %v3996_v7  ;;  %v4097_v38 = vmul.f32 %v4072_v26, %v1607_v34  ;;  %v1274_v17 = vld [vmem:[#allocation2 + $0x20] sm:$0xf] }
 0x189   : > { %5486 = vst [vmem:[#allocation9_spill] sm:$0xff] %v4080_v35  ;;  %v1509_v51 = vrot.slane %v1499_v30, 7  ;;  %v1201_v62 = vrot.slane %v1188_v33, 1  ;;  %v1158_v12 = vmul.f32 %v1149_v47, %v1140_v55  ;;  %v4123_v22 = vmul.f32 %v4101_v46, %v1709_v52  ;;  %v1275_v35 = vld [vmem:[#allocation2 + $0x28] sm:$0xf] }
 0x18a   : > { %v1316_v61 = vadd.f32 %v1303_v53, %v1264_v50  ;;  %5488 = vst [vmem:[#allocation11_spill] sm:$0xff] %v4097_v38  ;;  %v1508_v50 = vrot.slane %v1496_v29, 7  ;;  %v4107_v53 = vrot.slane %v4052_v9, %v4011_v28  ;;  %v1240_v4 = vmul.f32 %v1231_v45, %v1222_v49 }
 0x18b   : > { %5491 = vst [vmem:[#allocation14_spill] sm:$0xff] %v4123_v22  ;;  %v1155_v30 = vmul.f32 0.0, %v1149_v47  ;;  %v1335_v34 = vrot.slane %v4036_v1, %v4006_v15  ;;  %v4139_v49 = vrot.slane %v4052_v9, %v4031_v0  ;;  %v4144_v47 = vld [vmem:[%s5378_s5 + $0x10] sm:$0xff] }
 0x18c   : > { %v1368_v16 = vadd.f32 %v1355_v2, %v1316_v61  ;;  %v1200_v61 = vrot.slane %v1185_v40, 1  ;;  %v1237_v2 = vmul.f32 %v1231_v45, %v1219_v48  ;;  %v1510_v21 = vsel %vm372_vm1, %v1508_v50, %v1509_v51 }
 0x18d   : > { %v4126_v23 = vmul.f32 %v4107_v53, %v1760_v58  ;;  %v1253_v40 = vrot.slane %v1240_v4, 2  ;;  %v4135_v48 = vadd.f32 %v1509_v51, %v1475_v56  ;;  %5495 = vst [vmem:[#allocation18_spill] sm:$0xff] %v4139_v49  ;;  %v1216_v50 = vadd.f32 %v1201_v62, %v1158_v12 }
 0x18e   : > { %v1420_v41 = vadd.f32 %v1407_v24, %v1368_v16  ;;  %v1271_v16 = vld [vmem:[#allocation2 + $0x8] sm:$0xf8]  ;;  %v4129_v24 = vmul.f32 %v4111_v54, %v1811_v59  ;;  %v1202_v31 = vsel %vm1196_vm3, %v1200_v61, %v1201_v62  ;;  %v1252_v36 = vrot.slane %v1237_v2, 2  ;;  %v1862_v59 = vld [vmem:[#allocation2 + $0x18] sm:$0x80] }
 0x18f   : > { %5492 = vst [vmem:[#allocation15_spill] sm:$0xff] %v4126_v23  ;;  %v1289_v33 = vmul.f32 %v1283_v5, %v1271_v16  ;;  %5494 = vst [vmem:[#allocation17_spill] sm:$0xff] %v4135_v48  ;;  %v4151_v51 = vrot.slane %v4057_v10, %v3897_v19  ;;  %v1213_v56 = vadd.f32 %v1202_v31, %v1155_v30  ;;  %v1168_v31 = vld [vmem:[#allocation2 + $0x10] sm:$0xfe]  ;;  %v1431_v54 = vld [vmem:[#allocation2 + $0x28] sm:$0x7f] }
 0x190   : > { %v1472_v6 = vadd.f32 %v1459_v42, %v1420_v41  ;;  %5493 = vst [vmem:[#allocation16_spill] sm:$0xff] %v4129_v24  ;;  %v1292_v41 = vmul.f32 %v1283_v5, %v1274_v17  ;;  %v1323_v42 = vld [vmem:[#allocation2 + $0x8] sm:$0xf0]  ;;  %v1344_v61 = vmul.f32 %v1335_v34, %v1326_v32  ;;  %v1387_v62 = vrot.slane %v4036_v1, %v4011_v28  ;;  %v1378_v32 = vld [vmem:[#allocation2 + $0x20] sm:$0x3f] }
 0x191   : > { %5496 = vst [vmem:[#allocation19_spill] sm:$0xff] %v4151_v51  ;;  %v1341_v9 = vmul.f32 %v1335_v34, %v1323_v42  ;;  %v1254_v2 = vsel %vm1248_vm4, %v1252_v36, %v1253_v40  ;;  %v1304_v4 = vrot.slane %v1289_v33, 3  ;;  %v1183_v12 = vrot.slane %v4144_v47, %v3897_v19  ;;  %v1171_v34 = vld [vmem:[#allocation2 + $0x28] sm:$0x3] }
 0x192   : > { %v1523_v45 = vadd.f32 %v1510_v21, %v1472_v6  ;;  %v1305_v5 = vrot.slane %v1292_v41, 3  ;;  %v1375_v6 = vld [vmem:[#allocation2 + $0x8] sm:$0xe0]  ;;  %v4159_v16 = vmul.f32 %v4139_v49, %v1862_v59  ;;  %v4163_v17 = vrot.slane %v4057_v10, %v3996_v7 }
 0x193   : > { %v4167_v21 = vrot.slane %v4057_v10, %v4001_v13  ;;  %v1268_v30 = vadd.f32 %v1253_v40, %v1216_v50  ;;  %v4173_v33 = vrot.slane %v4057_v10, %v4006_v15  ;;  %v4177_v41 = vrot.slane %v4057_v10, %v4011_v28 }
 0x194   : > { %5497 = vst [vmem:[#allocation20_spill] sm:$0xff] %v4159_v16  ;;  %5498 = vst [vmem:[#allocation21_spill] sm:$0xff] %v4163_v17  ;;  %v4169_v36 = vadd.f32 %v1544_v63, %v1523_v45  ;;  %v4181_v42 = vrot.slane %v4057_v10, %v4019_v44  ;;  %v1265_v59 = vadd.f32 %v1254_v2, %v1213_v56  ;;  %v1356_v58 = vrot.slane %v1341_v9, 4  ;;  %v1427_v9 = vld [vmem:[#allocation2 + $0x8] sm:$0xc0] }
 0x195   : > { %5499 = vst [vmem:[#allocation22_spill] sm:$0xff] %v4167_v21  ;;  %5501 = vst [vmem:[#allocation24_spill] sm:$0xff] %v4173_v33  ;;  %v1357_v40 = vrot.slane %v1344_v61, 4  ;;  %v1393_v50 = vmul.f32 %v1387_v62, %v1375_v6  ;;  %v1306_v63 = vsel %vm1300_vm5, %v1304_v4, %v1305_v5  ;;  %v1186_v45 = vmul.f32 %v1183_v12, %v1168_v31  ;;  %v1223_v33 = vld [vmem:[#allocation2 + $0x28] sm:$0x7] }
 0x196   : > { %5500 = vst [vmem:[#allocation23_spill] sm:$0xff] %v4169_v36  ;;  %5502 = vst [vmem:[#allocation25_spill] sm:$0xff] %v4177_v41  ;;  %v1189_v55 = vmul.f32 %v1183_v12, %v1171_v34  ;;  %v1235_v52 = vrot.slane %v4144_v47, %v3996_v7  ;;  %v1320_v3 = vadd.f32 %v1305_v5, %v1268_v30  ;;  %v1430_v61 = vld [vmem:[#allocation2 + $0x20] sm:$0x7f]  ;;  %v1479_v31 = vld [vmem:[#allocation2 + $0x8] sm:$0x80] }
 0x197   : > { %5503 = vst [vmem:[#allocation26_spill] sm:$0xff] %v4181_v42  ;;  %v1396_v11 = vmul.f32 %v1387_v62, %v1378_v32  ;;  %v1439_v41 = vrot.slane %v4036_v1, %v4019_v44  ;;  %v1220_v42 = vld [vmem:[#allocation2 + $0x10] sm:$0xfc]  ;;  %v4191_v56 = vrot.slane %v4028_v60, %v4006_v15  ;;  %v1491_v2 = vrot.slane %v4036_v1, %v4031_v0  ;;  %v4204_v5 = vld [vmem:[%s5378_s5 + $0x20] sm:$0xff]  ;;  %v1141_v34 = vld [vmem:[#allocation2 + $0x28] sm:$0x1] }
 0x198   : > { %v4197_v4 = vrot.slane %v4028_v60, %v4011_v28  ;;  %v1153_v62 = vrot.slane %v4144_v47, %v3900_v20  ;;  %v1317_v6 = vadd.f32 %v1306_v63, %v1265_v59  ;;  %v1358_v12 = vsel %vm1352_vm6, %v1356_v58, %v1357_v40 }
 0x199   : > { %5504 = vst [vmem:[#allocation27_spill] sm:$0xff] %v4191_v56  ;;  %v1408_v30 = vrot.slane %v1393_v50, 5  ;;  %v1287_v1 = vrot.slane %v4144_v47, %v4001_v13  ;;  %v1203_v32 = vrot.slane %v1186_v45, 1  ;;  %v1204_v60 = vrot.slane %v1189_v55, 1  ;;  %v1272_v56 = vld [vmem:[#allocation2 + $0x10] sm:$0xf8] }
 0x19a   : > { %5505 = vst [vmem:[#allocation28_spill] sm:$0xff] %v4197_v4  ;;  %v1238_v29 = vmul.f32 %v1235_v52, %v1220_v42  ;;  %v1241_v4 = vmul.f32 %v1235_v52, %v1223_v33  ;;  %v1372_v24 = vadd.f32 %v1357_v40, %v1320_v3  ;;  %v1409_v23 = vrot.slane %v1396_v11, 5  ;;  %v1324_v40 = vld [vmem:[#allocation2 + $0x10] sm:$0xf0] }
 0x19b   : > { %v1445_v22 = vmul.f32 %v1439_v41, %v1427_v9  ;;  %v4209_v21 = vmul.f32 %v1439_v41, %v1430_v61  ;;  %v4211_v59 = vmul.f32 %v1491_v2, %v1479_v31  ;;  %v4213_v58 = vmul.f32 0.0, %v1491_v2 }
 0x19c   : > { %v4217_v50 = vrot.slane %v4204_v5, %v4031_v0  ;;  %v1159_v63 = vmul.f32 %v1153_v62, %v1141_v34  ;;  %v1369_v45 = vadd.f32 %v1358_v12, %v1317_v6  ;;  %v1156_v55 = vmul.f32 0.0, %v1153_v62 }
 0x19d   : > { %v1290_v42 = vmul.f32 %v1287_v1, %v1272_v56  ;;  %v1339_v3 = vrot.slane %v4144_v47, %v4006_v15  ;;  %v1205_v11 = vsel %vm1196_vm3, %v1203_v32, %v1204_v60  ;;  %v1255_v52 = vrot.slane %v1238_v29, 2  ;;  %v1327_v56 = vld [vmem:[#allocation2 + $0x28] sm:$0x1f] }
 0x19e   : > { %5506 = vst [vmem:[#allocation29_spill] sm:$0xff] %v4217_v50  ;;  %v1256_v33 = vrot.slane %v1241_v4, 2  ;;  %v1293_v41 = vmul.f32 %v1287_v1, %v1275_v35  ;;  %v1410_v2 = vsel %vm1404_vm7, %v1408_v30, %v1409_v23  ;;  %v1424_v31 = vadd.f32 %v1409_v23, %v1372_v24 }
 0x19f   : > { %v1460_v34 = vrot.slane %v1445_v22, 6  ;;  %v1461_v62 = vrot.slane %v4209_v21, 6  ;;  %v1511_v32 = vrot.slane %v4211_v59, 7  ;;  %v1217_v35 = vadd.f32 %v1204_v60, %v1159_v63  ;;  %v1376_v59 = vld [vmem:[#allocation2 + $0x10] sm:$0xe0] }
 0x1a0   : > { %v1391_v4 = vrot.slane %v4144_v47, %v4011_v28  ;;  %v4243_v23 = vrot.slane %v4204_v5, %v3900_v20  ;;  %v1214_v24 = vadd.f32 %v1205_v11, %v1156_v55  ;;  %v1342_v21 = vmul.f32 %v1339_v3, %v1324_v40 }
 0x1a1   : > { %v1257_v63 = vsel %vm1248_vm4, %v1255_v52, %v1256_v33  ;;  %v1307_v29 = vrot.slane %v1290_v42, 3  ;;  %v1308_v17 = vrot.slane %v1293_v41, 3  ;;  %v1421_v36 = vadd.f32 %v1410_v2, %v1369_v45 }
 0x1a2   : > { %5507 = vst [vmem:[#allocation30_spill] sm:$0xff] %v4243_v23  ;;  %v1462_v55 = vsel %vm1456_vm8, %v1460_v34, %v1461_v62  ;;  %v4257_v11 = vrot.slane %v4204_v5, %v3897_v19  ;;  %v4261_v52 = vrot.slane %v4204_v5, %v3996_v7  ;;  %v1269_v42 = vadd.f32 %v1256_v33, %v1217_v35 }
 0x1a3   : > { %v4264_v39 = vmul.f32 %v1391_v4, %v1379_v57  ;;  %v1309_v45 = vsel %vm1300_vm5, %v1307_v29, %v1308_v17  ;;  %v1359_v2 = vrot.slane %v1342_v21, 4  ;;  %v1443_v48 = vrot.slane %v4144_v47, %v4019_v44  ;;  %v1608_v57 = vld [vmem:[#allocation2 + $0x20] sm:$0xfc] }
 0x1a4   : > { %5508 = vst [vmem:[#allocation31_spill] sm:$0xff] %v4257_v11  ;;  %5509 = vst [vmem:[#allocation32_spill] sm:$0xff] %v4261_v52  ;;  %v1476_v35 = vadd.f32 %v1461_v62, %v1424_v31  ;;  %v3507_v29 = vld [vmem:[%s5381_s8] ss:$8 sps:$4 sm:$0xff]   ;;  %v3509_v31 = vld [vmem:[%s5381_s8 + $0x4] ss:$8 sps:$4 sm:$0xff]  }
 0x1a5   : > { %v1659_v21 = vld [vmem:[#allocation2 + $0x20] sm:$0xf8]  ;;  %3096 = vmatprep.subr.bf16.mxu1 %v3509_v31 }
 0x1a6   : > { %3097 = vmatpush1.bf16.msra.mxu1 %v3507_v29  ;;  %v1863_v29 = vld [vmem:[#allocation2 + $0x20] sm:$0x80] }
 0x22a   : > { %v4222_v9 = vpop.f32.mrb[0].mxu0  ;;  %v4224_v61 = vpop.f32.mrb[0].mxu1 }
 0x22b   : > { %v4228_v6 = vpop.f32.mrb[1].mxu0  ;;  %v987_v12 = vpop.f32.mrb[1].mxu1 }
 0x22c   : > { %v4235_v1 = vadd.f32 %v987_v12, %v4076_v27  ;;  %v4237_v30 = vpop.f32.mrb[2].mxu0  ;;  %v4239_v22 = vpop.f32.mrb[2].mxu1  ;;  %v4248_v12 = vmul.f32 %v1339_v3, %v1327_v56  ;;  %v1394_v3 = vmul.f32 %v1391_v4, %v1376_v59  ;;  %v1266_v56 = vadd.f32 %v1257_v63, %v1214_v24 }
 0x22d   : > { %v4245_v16 = vpop.f32.mrb[3].mxu0  ;;  %v991_v60 = vpop.f32.mrb[3].mxu1  ;;  %v1473_v4 = vadd.f32 %v1462_v55, %v1421_v36  ;;  %v4278_v59 = vrot.slane %v4204_v5, %v4001_v13  ;;  %v1321_v63 = vadd.f32 %v1308_v17, %v1269_v42  ;;  %v3512_v36 = vld [vmem:[%s5381_s8 + $0x14] ss:$8 sps:$4 sm:$0xff]   ;;  %v1495_v17 = vrot.slane %v4144_v47, %v4031_v0 }
 0x22e   : > { %v1037_v51 = vand.u32 2147483647, %v4235_v1  ;;  %v4252_v38 = vadd.f32 %v991_v60, %v4076_v27  ;;  %v1557_v27 = vld [vmem:[#allocation2 + $0x20] sm:$0xfe]  ;;  %v1360_v34 = vrot.slane %v4248_v12, 4  ;;  %v1411_v12 = vrot.slane %v1394_v3, 5  ;;  %3098 = vmatprep.subr.bf16.mxu1 %v3512_v36 }
 0x22f   : > { %v1428_v60 = vld [vmem:[#allocation2 + $0x10] sm:$0xc0]  ;;  %5511 = vst [vmem:[#allocation33_spill] sm:$0xff] %v4278_v59  ;;  %v4294_v42 = vmul.f32 %v4257_v11, %v1557_v27  ;;  %v4307_v47 = vmul.f32 %v4278_v59, %v1659_v21  ;;  %v4311_v27 = vrot.slane %v4204_v5, %v4011_v28  ;;  %v1812_v59 = vld [vmem:[#allocation2 + $0x20] sm:$0xc0]  ;;  %v4327_v11 = vmul.f32 0.0, %v1495_v17 }
 0x230   : > { %v1043_v41 = vsub.f32 0.0, %v1037_v51  ;;  %v1040_v40 = vand.u32 2147483647, %v4252_v38  ;;  %v5510_v51 = vrot.slane %v4213_v58, 7  ;;  %v1361_v55 = vsel %vm1352_vm6, %v1359_v2, %v1360_v34  ;;  %v1480_v3 = vld [vmem:[#allocation2 + $0x10] sm:$0x80] }
 0x231   : > { %5512 = vst [vmem:[#allocation34_spill] sm:$0xff] %v4294_v42  ;;  %5515 = vst [vmem:[#allocation37_spill] sm:$0xff] %v4307_v47  ;;  %v3515_v2 = vld [vmem:[%s5381_s8 + $0x24] ss:$8 sps:$4 sm:$0xff]   ;;  %v1373_v31 = vadd.f32 %v1360_v34, %v1321_v63  ;;  %v3513_v63 = vld [vmem:[%s5381_s8 + $0x20] ss:$8 sps:$4 sm:$0xff]  }
 0x232   : > { %v1049_v49 = vmul.f32 1.442695, %v1043_v41  ;;  %v1046_v33 = vsub.f32 0.0, %v1040_v40  ;;  %v1513_v24 = vsel %vm372_vm1, %v1511_v32, %v5510_v51  ;;  %v1318_v32 = vadd.f32 %v1309_v45, %v1266_v56  ;;  %v1710_v56 = vld [vmem:[#allocation2 + $0x20] sm:$0xf0]  ;;  %5516 = vst [vmem:[#allocation38_spill] sm:$0xff] %v4311_v27 }
 0x233   : > { %v1412_v41 = vrot.slane %v4264_v39, 5  ;;  %v1446_v40 = vmul.f32 %v1443_v48, %v1428_v60  ;;  %v4288_v51 = vmul.f32 %v1443_v48, %v1431_v54  ;;  %v4298_v39 = vrot.slane %v4204_v5, %v4006_v15  ;;  %v3510_v54 = vld [vmem:[%s5381_s8 + $0x10] ss:$8 sps:$4 sm:$0xff]   ;;  %v4323_v60 = vld [vmem:[%s5378_s5 + $0x48] sm:$0xff] }
 0x234   : > { %3583 = vpow2.f32 %v1049_v49  ;;  %v1055_v62 = vmul.f32 1.442695, %v1046_v33  ;;  %v1545_v49 = vmul.f32 0.0, %v4243_v23  ;;  %v4304_v48 = vmul.f32 %v4261_v52, %v1608_v57  ;;  %v1761_v57 = vld [vmem:[#allocation2 + $0x20] sm:$0xe0]  ;;  %3099 = vmatpush1.bf16.msra.mxu1 %v3510_v54 }
 0x235   : > { %5513 = vst [vmem:[#allocation35_spill] sm:$0xff] %v4298_v39  ;;  %v4315_v45 = vrot.slane %v4204_v5, %v4019_v44  ;;  %v1524_v33 = vadd.f32 %v1513_v24, %v1473_v4  ;;  %v1370_v21 = vadd.f32 %v1361_v55, %v1318_v32  ;;  %v1463_v5 = vrot.slane %v1446_v40, 6  ;;  %v3534_v23 = vld [vmem:[%s5381_s8 + $0x100] ss:$8 sps:$4 sm:$0xff]   ;;  %v4335_v24 = vld [vmem:[%s5378_s5 + $0x38] sm:$0xff]  ;;  %3100 = vmatprep.subr.bf16.mxu1 %v3515_v2 }
 0x236   : > { %3585 = vpow2.f32 %v1055_v62  ;;  %5514 = vst [vmem:[#allocation36_spill] sm:$0xff] %v4304_v48  ;;  %v1413_v62 = vsel %vm1404_vm7, %v1411_v12, %v1412_v41  ;;  %v1464_v36 = vrot.slane %v4288_v51, 6  ;;  %v1498_v52 = vmul.f32 %v1495_v17, %v1480_v3  ;;  %v3536_v12 = vld [vmem:[%s5381_s8 + $0x104] ss:$8 sps:$4 sm:$0xff]  }
 0x237   : > { %5517 = vst [vmem:[#allocation39_spill] sm:$0xff] %v4315_v45  ;;  %v4339_v4 = vmul.f32 %v4298_v39, %v1710_v56  ;;  %v4349_v32 = vrot.slane %v4057_v10, %v4031_v0  ;;  %v4353_v55 = vrot.slane %v4323_v60, %v3900_v20  ;;  %v5519_v40 = vrot.slane %v4213_v58, 7  ;;  %v3518_v10 = vld [vmem:[%s5381_s8 + $0x34] ss:$8 sps:$4 sm:$0xff]   ;;  %3139 = vmatprep.subr.bf16.mxu0 %v3536_v12  ;;  %v4381_v2 = vld [vmem:[%s5378_s5 + $0x28] sm:$0xff] }
 0x238   : > { %v4362_v54 = vmul.f32 %v4311_v27, %v1761_v57  ;;  %v3542_v56 = vld [vmem:[%s5381_s8 + $0x114] ss:$8 sps:$4 sm:$0xff]   ;;  %v4370_v34 = vadd.f32 %v1545_v49, %v1524_v33  ;;  %v4373_v58 = vmul.f32 %v4315_v45, %v1812_v59  ;;  %v1425_v57 = vadd.f32 %v1412_v41, %v1373_v31  ;;  %3140 = vmatpush1.bf16.msra.mxu0 %v3534_v23  ;;  %v3540_v59 = vld [vmem:[%s5381_s8 + $0x110] ss:$8 sps:$4 sm:$0xff]   ;;  %v1660_v47 = vld [vmem:[#allocation2 + $0x28] sm:$0xf8] }
 0x239   : > { %5518 = vst [vmem:[#allocation40_spill] sm:$0xff] %v4339_v4  ;;  %v4357_v51 = vadd.f32 %v5519_v40, %v1476_v35  ;;  %v4376_v35 = vmul.f32 %v4217_v50, %v1863_v29  ;;  %v1422_v40 = vadd.f32 %v1413_v62, %v1370_v21  ;;  %v1465_v3 = vsel %vm1456_vm8, %v1463_v5, %v1464_v36  ;;  %v3516_v23 = vld [vmem:[%s5381_s8 + $0x30] ss:$8 sps:$4 sm:$0xff]   ;;  %v1558_v5 = vld [vmem:[#allocation2 + $0x28] sm:$0xfe] }
 0x23a   : > { %5521 = vst [vmem:[#allocation42_spill] sm:$0xff] %v4362_v54  ;;  %5522 = vst [vmem:[#allocation43_spill] sm:$0xff] %v4370_v34  ;;  %v1514_v17 = vrot.slane %v1498_v52, 7  ;;  %v1515_v49 = vrot.slane %v4327_v11, 7  ;;  %v4393_v21 = vrot.slane %v4335_v24, %v3900_v20  ;;  %v4397_v41 = vrot.slane %v4335_v24, %v3897_v19  ;;  %3101 = vmatpush1.bf16.msra.mxu1 %v3513_v63  ;;  %v3548_v52 = vld [vmem:[%s5381_s8 + $0x124] ss:$8 sps:$4 sm:$0xff]  }
 0x23b   : > { %5520 = vst [vmem:[#allocation41_spill] sm:$0xff] %v4357_v51  ;;  %5523 = vst [vmem:[#allocation44_spill] sm:$0xff] %v4373_v58  ;;  %v4401_v11 = vrot.slane %v4381_v2, %v3897_v19  ;;  %3141 = vmatprep.subr.bf16.mxu0 %v3542_v56  ;;  %v4413_v12 = vrot.slane %v4381_v2, %v3996_v7  ;;  %v4417_v63 = vrot.slane %v4381_v2, %v4001_v13  ;;  %v3521_v56 = vld [vmem:[%s5381_s8 + $0x44] ss:$8 sps:$4 sm:$0xff]   ;;  %v3531_v51 = vld [vmem:[%s5381_s8 + $0x80] ss:$8 sps:$4 sm:$0xff]  }
 0x23c   : > { %5524 = vst [vmem:[#allocation45_spill] sm:$0xff] %v4376_v35  ;;  %5525 = vst [vmem:[#allocation46_spill] sm:$0xff] %v4393_v21  ;;  %3102 = vmatprep.subr.bf16.mxu1 %v3518_v10  ;;  %v4427_v62 = vrot.slane %v4381_v2, %v3900_v20  ;;  %v1609_v54 = vld [vmem:[#allocation2 + $0x28] sm:$0xfc]  ;;  %v4431_v48 = vrot.slane %v4381_v2, %v4006_v15  ;;  %v1477_v34 = vadd.f32 %v1464_v36, %v1425_v57  ;;  %v3554_v57 = vld [vmem:[%s5381_s8 + $0x134] ss:$8 sps:$4 sm:$0xff]  }
 0x23d   : > { %5526 = vst [vmem:[#allocation47_spill] sm:$0xff] %v4397_v41  ;;  %5527 = vst [vmem:[#allocation48_spill] sm:$0xff] %v4401_v11  ;;  %v1474_v41 = vadd.f32 %v1465_v3, %v1422_v40  ;;  %v1516_v42 = vsel %vm372_vm1, %v1514_v17, %v1515_v49  ;;  %v1711_v21 = vld [vmem:[#allocation2 + $0x28] sm:$0xf0]  ;;  %3142 = vmatpush1.bf16.msra.mxu0 %v3540_v59  ;;  %v3546_v3 = vld [vmem:[%s5381_s8 + $0x120] ss:$8 sps:$4 sm:$0xff]   ;;  %v4441_v4 = vrot.slane %v4335_v24, %v3996_v7 }
 0x23e   : > { %v4388_v33 = vpop.eup %3583  ;;  %5528 = vst [vmem:[#allocation49_spill] sm:$0xff] %v4413_v12  ;;  %5529 = vst [vmem:[#allocation50_spill] sm:$0xff] %v4417_v63  ;;  %v4444_v58 = vmul.f32 %v4401_v11, %v1558_v5  ;;  %v4448_v36 = vrot.slane %v4381_v2, %v4011_v28  ;;  %3103 = vmatpush1.bf16.msra.mxu1 %v3516_v23  ;;  %v3519_v17 = vld [vmem:[%s5381_s8 + $0x40] ss:$8 sps:$4 sm:$0xff]   ;;  %3143 = vmatprep.subr.bf16.mxu0 %v3548_v52  ;;  %v1762_v23 = vld [vmem:[#allocation2 + $0x28] sm:$0xe0] }
 0x23f   : > { %v1067_v31 = vadd.f32 1.0, %v4388_v33  ;;  %5530 = vst [vmem:[#allocation51_spill] sm:$0xff] %v4427_v62  ;;  %5531 = vst [vmem:[#allocation52_spill] sm:$0xff] %v4431_v48  ;;  %v4458_v59 = vrot.slane %v4335_v24, %v4001_v13  ;;  %v4464_v5 = vmul.f32 %v4417_v63, %v1660_v47  ;;  %3104 = vmatprep.subr.bf16.mxu1 %v3521_v56  ;;  %v3524_v52 = vld [vmem:[%s5381_s8 + $0x54] ss:$8 sps:$4 sm:$0xff]   ;;  %vm1061_vm9 = vcmp.ge.f32.partialorder %v4235_v1, 0.0 }
 0x240   : > { %v4422_v29 = vpop.eup %3585  ;;  %5532 = vst [vmem:[#allocation53_spill] sm:$0xff] %v4441_v4  ;;  %5533 = vst [vmem:[#allocation54_spill] sm:$0xff] %v4444_v58  ;;  %v4471_v40 = vrot.slane %v4335_v24, %v4006_v15  ;;  %v1546_v4 = vmul.f32 0.0, %v4427_v62  ;;  %v4479_v47 = vadd.f32 %v4222_v9, %v4043_v8  ;;  %v4485_v56 = vadd.f32 %v1515_v49, %v1477_v34  ;;  %v1813_v63 = vld [vmem:[#allocation2 + $0x28] sm:$0xc0] }
 0x241   : > { %3587 = vrcp.f32 %v1067_v31  ;;  %v1070_v10 = vadd.f32 1.0, %v4422_v29  ;;  %5534 = vst [vmem:[#allocation55_spill] sm:$0xff] %v4448_v36  ;;  %5535 = vst [vmem:[#allocation56_spill] sm:$0xff] %v4458_v59  ;;  %v4461_v31 = vmul.f32 %v4413_v12, %v1609_v54  ;;  %v4475_v59 = vmul.f32 %v4431_v48, %v1711_v21  ;;  %3144 = vmatpush1.bf16.msra.mxu0 %v3546_v3  ;;  %v1864_v34 = vld [vmem:[#allocation2 + $0x28] sm:$0x80] }
 0x242   : > { %5537 = vst [vmem:[#allocation58_spill] sm:$0xff] %v4464_v5  ;;  %5538 = vst [vmem:[#allocation59_spill] sm:$0xff] %v4471_v40  ;;  %v4483_v54 = vadd.f32 %v4224_v61, %v4047_v18  ;;  %v4489_v40 = vrot.slane %v4381_v2, %v4019_v44  ;;  %v4496_v9 = vadd.f32 %v4228_v6, %v4063_v14  ;;  %v4501_v61 = vld [vmem:[%s5378_s5 + $0x40] sm:$0xff]  ;;  %3105 = vmatpush1.bf16.msra.mxu1 %v3519_v17  ;;  %v3522_v6 = vld [vmem:[%s5381_s8 + $0x50] ss:$8 sps:$4 sm:$0xff]  }
 0x243   : > { %3589 = vrcp.f32 %v1070_v10  ;;  %5536 = vst [vmem:[#allocation57_spill] sm:$0xff] %v4461_v31  ;;  %v1525_v10 = vadd.f32 %v1516_v42, %v1474_v41  ;;  %5539 = vst [vmem:[#allocation60_spill] sm:$0xff] %v4475_v59  ;;  %v3552_v42 = vld [vmem:[%s5381_s8 + $0x130] ss:$8 sps:$4 sm:$0xff]   ;;  %v4505_v49 = vmul.f32 %v4448_v36, %v1762_v23  ;;  %v4509_v21 = vrot.slane %v4381_v2, %v4031_v0  ;;  %v3560_v41 = vld [vmem:[%s5381_s8 + $0x144] ss:$8 sps:$4 sm:$0xff]  }
 0x244   : > { %5540 = vst [vmem:[#allocation61_spill] sm:$0xff] %v4483_v54  ;;  %5541 = vst [vmem:[#allocation62_spill] sm:$0xff] %v4485_v56  ;;  %3145 = vmatprep.subr.bf16.mxu0 %v3554_v57  ;;  %v4519_v3 = vadd.f32 %v4237_v30, %v4043_v8  ;;  %v4523_v23 = vadd.f32 %v4239_v22, %v4047_v18  ;;  %3106 = vmatprep.subr.bf16.mxu1 %v3524_v52  ;;  %v3527_v57 = vld [vmem:[%s5381_s8 + $0x64] ss:$8 sps:$4 sm:$0xff]   ;;  %vm1064_vm10 = vcmp.ge.f32.partialorder %v4252_v38, 0.0 }
 0x245   : > { %5542 = vst [vmem:[#allocation63_spill] sm:$0xff] %v4489_v40  ;;  %5543 = vst [vmem:[#allocation64_spill] sm:$0xff] %v4496_v9  ;;  %v4533_v8 = vadd.f32 %v4245_v16, %v4063_v14  ;;  %v4535_v30 = vadd.f32 %v1546_v4, %v1525_v10  ;;  %v4540_v22 = vmul.f32 %v4489_v40, %v1813_v63  ;;  %3146 = vmatpush1.bf16.msra.mxu0 %v3552_v42  ;;  %v3558_v17 = vld [vmem:[%s5381_s8 + $0x140] ss:$8 sps:$4 sm:$0xff]   ;;  %v3566_v4 = vld [vmem:[%s5381_s8 + $0x154] ss:$8 sps:$4 sm:$0xff]  }
 0x246   : > { %5544 = vst [vmem:[#allocation65_spill] sm:$0xff] %v4505_v49  ;;  %5545 = vst [vmem:[#allocation66_spill] sm:$0xff] %v4509_v21  ;;  %v4544_v52 = vrot.slane %v4501_v61, %v3900_v20  ;;  %v2324_v14 = vld [vmem:[#allocation2 + $0x48] sm:$0xfe]  ;;  %v2333_v16 = vrot.slane %v4323_v60, %v3897_v19  ;;  %v4553_v10 = vmul.f32 %v4509_v21, %v1864_v34  ;;  %3107 = vmatpush1.bf16.msra.mxu1 %v3522_v6  ;;  %v2297_v49 = vld [vmem:[#allocation2 + $0x60] sm:$0x1] }
 0x247   : > { %5546 = vst [vmem:[#allocation67_spill] sm:$0xff] %v4523_v23  ;;  %5547 = vst [vmem:[#allocation68_spill] sm:$0xff] %v4533_v8  ;;  %v4557_v63 = vrot.slane %v4501_v61, %v3897_v19  ;;  %v4561_v42 = vrot.slane %v4501_v61, %v3996_v7  ;;  %v3525_v18 = vld [vmem:[%s5381_s8 + $0x60] ss:$8 sps:$4 sm:$0xff]   ;;  %3147 = vmatprep.subr.bf16.mxu0 %v3560_v41  ;;  %v4571_v2 = vrot.slane %v4501_v61, %v4001_v13  ;;  %v2477_v48 = vld [vmem:[#allocation2 + $0x48] sm:$0xf0] }
 0x248   : > { %5548 = vst [vmem:[#allocation69_spill] sm:$0xff] %v4535_v30  ;;  %5549 = vst [vmem:[#allocation70_spill] sm:$0xff] %v4540_v22  ;;  %v4579_v6 = vrot.slane %v4501_v61, %v4011_v28  ;;  %v4583_v41 = vrot.slane %v4501_v61, %v4019_v44  ;;  %3108 = vmatprep.subr.bf16.mxu1 %v3527_v57  ;;  %v2327_v59 = vld [vmem:[#allocation2 + $0x60] sm:$0x3]  ;;  %v4600_v57 = vrot.slane %v4335_v24, %v4019_v44  ;;  %v2426_v30 = vld [vmem:[#allocation2 + $0x48] sm:$0xf8] }
 0x249   : > { %5550 = vst [vmem:[#allocation71_spill] sm:$0xff] %v4544_v52  ;;  %5551 = vst [vmem:[#allocation72_spill] sm:$0xff] %v4553_v10  ;;  %v2384_v31 = vrot.slane %v4323_v60, %v3996_v7  ;;  %3148 = vmatpush1.bf16.msra.mxu0 %v3558_v17  ;;  %v4609_v58 = vrot.slane %v4335_v24, %v4031_v0  ;;  %v2429_v36 = vld [vmem:[#allocation2 + $0x60] sm:$0xf]  ;;  %v2486_v56 = vrot.slane %v4323_v60, %v4006_v15  ;;  %v2579_v22 = vld [vmem:[#allocation2 + $0x48] sm:$0xc0] }
 0x24a   : > { %5552 = vst [vmem:[#allocation73_spill] sm:$0xff] %v4557_v63  ;;  %5553 = vst [vmem:[#allocation74_spill] sm:$0xff] %v4561_v42  ;;  %v4575_v63 = vrot.slane %v4501_v61, %v4006_v15  ;;  %v3530_v42 = vld [vmem:[%s5381_s8 + $0x74] ss:$8 sps:$4 sm:$0xff]   ;;  %3109 = vmatpush1.bf16.msra.mxu1 %v3525_v18  ;;  %3149 = vmatprep.subr.bf16.mxu0 %v3566_v4  ;;  %v2480_v62 = vld [vmem:[#allocation2 + $0x60] sm:$0x1f]  ;;  %v2588_v35 = vrot.slane %v4323_v60, %v4019_v44 }
 0x24b   : > { %v3588_v34 = vpop.eup %3587  ;;  %5554 = vst [vmem:[#allocation75_spill] sm:$0xff] %v4571_v2  ;;  %5556 = vst [vmem:[#allocation77_spill] sm:$0xff] %v4579_v6  ;;  %v2375_v2 = vld [vmem:[#allocation2 + $0x48] sm:$0xfc]  ;;  %v4596_v6 = vrot.slane %v4335_v24, %v4011_v28  ;;  %v3528_v24 = vld [vmem:[%s5381_s8 + $0x70] ss:$8 sps:$4 sm:$0xff]   ;;  %3110 = vmatprep.subr.bf16.mxu1 %v3530_v42  ;;  %v2639_v45 = vrot.slane %v4323_v60, %v4031_v0  ;;  %v4710_v21 = vrot.slane %v4501_v61, %v4031_v0 }
 0x24c   : > { %5555 = vst [vmem:[#allocation76_spill] sm:$0xff] %v4575_v63  ;;  %5557 = vst [vmem:[#allocation78_spill] sm:$0xff] %v4583_v41  ;;  %v1085_v5 = vmul.f32 %v3588_v34, %v4388_v33  ;;  %v4592_v63 = vld [vmem:[%s5378_s5 + $0x50] sm:$0xff]  ;;  %v2378_v41 = vld [vmem:[#allocation2 + $0x60] sm:$0x7]  ;;  %v4648_v11 = vmul.f32 %v2384_v31, %v2375_v2 }
 0x24d   : > { %5558 = vst [vmem:[#allocation79_spill] sm:$0xff] %v4596_v6  ;;  %5559 = vst [vmem:[#allocation80_spill] sm:$0xff] %v4600_v57  ;;  %v3590_v40 = vpop.eup %3589  ;;  %v3564_v33 = vld [vmem:[%s5381_s8 + $0x150] ss:$8 sps:$4 sm:$0xff]   ;;  %v4611_v6 = vmul.f32 %v2333_v16, %v2324_v14  ;;  %v2435_v57 = vrot.slane %v4323_v60, %v4001_v13  ;;  %v3572_v14 = vld [vmem:[%s5381_s8 + $0x164] ss:$8 sps:$4 sm:$0xff]   ;;  %v2337_v18 = vrot.slane %v4592_v63, %v3897_v19 }
 0x24e   : > { %5560 = vst [vmem:[#allocation81_spill] sm:$0xff] %v4609_v58  ;;  %v1091_v17 = vsel %vm1061_vm9, %v3588_v34, %v1085_v5  ;;  %v1088_v12 = vmul.f32 %v3590_v40, %v4422_v29  ;;  %v4627_v58 = vmul.f32 %v2333_v16, %v2327_v59  ;;  %v3533_v29 = vld [vmem:[%s5381_s8 + $0x84] ss:$8 sps:$4 sm:$0xff]   ;;  %v4637_v5 = vrot.slane %v4592_v63, %v3900_v20  ;;  %v2325_v16 = vld [vmem:[#allocation2 + $0x50] sm:$0xfe] }
 0x24f   : > { %v4630_v1 = vmul.f32 %v1091_v17, %v4479_v47  ;;  %v2528_v4 = vld [vmem:[#allocation2 + $0x48] sm:$0xe0]  ;;  %v2531_v34 = vld [vmem:[#allocation2 + $0x60] sm:$0x3f]  ;;  %v2537_v59 = vrot.slane %v4323_v60, %v4011_v28  ;;  %v2328_v42 = vld [vmem:[#allocation2 + $0x68] sm:$0x3]  ;;  %v4646_v17 = vmul.f32 %v4353_v55, %v2297_v49  ;;  %3150 = vmatpush1.bf16.msra.mxu0 %v3564_v33  ;;  %3111 = vmatpush1.bf16.msra.mxu1 %v3528_v24 }
 0x250   : > { %5561 = vst [vmem:[#allocation82_spill] sm:$0xff] %v4637_v5  ;;  %v1094_v47 = vsel %vm1064_vm10, %v3590_v40, %v1088_v12  ;;  %v3570_v38 = vld [vmem:[%s5381_s8 + $0x160] ss:$8 sps:$4 sm:$0xff]   ;;  %v4657_v12 = vmul.f32 %v2384_v31, %v2378_v41  ;;  %v4659_v40 = vmul.f32 %v2435_v57, %v2426_v30  ;;  %v2630_v2 = vld [vmem:[#allocation2 + $0x48] sm:$0x80]  ;;  %3151 = vmatprep.subr.bf16.mxu0 %v3572_v14  ;;  %v2354_v31 = vrot.slane %v4611_v6, 1 }
 0x251   : > { %1118 = vst [vmem:[#allocation2 + $0x30] sm:$0xff] %v4630_v1  ;;  %v1100_v52 = vmul.f32 %v1094_v47, %v4519_v3  ;;  %v2582_v49 = vld [vmem:[#allocation2 + $0x60] sm:$0x7f]  ;;  %v3578_v3 = vld [vmem:[%s5381_s8 + $0x174] ss:$8 sps:$4 sm:$0xff]   ;;  %v4671_v41 = vmul.f32 %v2435_v57, %v2429_v36  ;;  %v4673_v33 = vmul.f32 %v2486_v56, %v2477_v48  ;;  %3112 = vmatprep.subr.bf16.mxu1 %v3533_v29  ;;  %5568 = vst [vmem:[#allocation89_spill] sm:$0xff] %v4710_v21 }
 0x252   : > { %v3539_v60 = vld [vmem:[%s5381_s8 + $0x94] ss:$8 sps:$4 sm:$0xff]   ;;  %v4678_v24 = vmul.f32 %v2337_v18, %v2325_v16  ;;  %v4680_v14 = vmul.f32 %v2337_v18, %v2328_v42  ;;  %v4682_v47 = vmul.f32 %v2486_v56, %v2480_v62  ;;  %v4684_v27 = vmul.f32 %v2537_v59, %v2528_v4  ;;  %v3576_v48 = vld [vmem:[%s5381_s8 + $0x170] ss:$8 sps:$4 sm:$0xff]   ;;  %v2379_v18 = vld [vmem:[#allocation2 + $0x68] sm:$0x7] }
 0x253   : > { %1121 = vst [vmem:[#allocation2 + $0x48] sm:$0x1] %v1100_v52  ;;  %v4689_v36 = vld [vmem:[%s5378_s5 + $0x58] sm:$0xff]  ;;  %v2298_v52 = vld [vmem:[#allocation2 + $0x68] sm:$0x1]  ;;  %v2388_v57 = vrot.slane %v4592_v63, %v3996_v7  ;;  %v2439_v62 = vrot.slane %v4592_v63, %v4001_v13  ;;  %v4698_v56 = vmul.f32 %v2537_v59, %v2531_v34  ;;  %v4700_v29 = vmul.f32 %v2588_v35, %v2579_v22 }
 0x254   : > { %5562 = vst [vmem:[#allocation83_spill] sm:$0xff] %v4680_v14  ;;  %5563 = vst [vmem:[#allocation84_spill] sm:$0xff] %v4689_v36  ;;  %v2376_v6 = vld [vmem:[#allocation2 + $0x50] sm:$0xfc]  ;;  %3152 = vmatpush1.bf16.msra.mxu0 %v3570_v38  ;;  %v2430_v16 = vld [vmem:[#allocation2 + $0x68] sm:$0xf]  ;;  %v2490_v42 = vrot.slane %v4592_v63, %v4006_v15  ;;  %v4704_v30 = vmul.f32 %v2588_v35, %v2582_v49  ;;  %v4706_v39 = vmul.f32 %v2639_v45, %v2630_v2 }
 0x255   : > { %5564 = vst [vmem:[#allocation85_spill] sm:$0xff] %v4698_v56  ;;  %5565 = vst [vmem:[#allocation86_spill] sm:$0xff] %v4700_v29  ;;  %v2427_v4 = vld [vmem:[#allocation2 + $0x50] sm:$0xf8]  ;;  %3113 = vmatpush1.bf16.msra.mxu1 %v3531_v51  ;;  %3153 = vmatprep.subr.bf16.mxu0 %v3578_v3  ;;  %v5569_v38 = vrot.slane %v4627_v58, 1  ;;  %v4721_v49 = vld [vmem:[#allocation2] sm:$0xff]  ;;  %v4728_v61 = vrot.slane %v4689_v36, %v3900_v20  ;;  %v4734_v3 = vmul.f32 %v4637_v5, %v2298_v52 }
 0x256   : > { %5566 = vst [vmem:[#allocation87_spill] sm:$0xff] %v4704_v30  ;;  %5567 = vst [vmem:[#allocation88_spill] sm:$0xff] %v4706_v39  ;;  %v3537_v22 = vld [vmem:[%s5381_s8 + $0x90] ss:$8 sps:$4 sm:$0xff]   ;;  %v2478_v59 = vld [vmem:[#allocation2 + $0x50] sm:$0xf0]  ;;  %v4724_v2 = vmul.f32 %v4721_v49, %v2639_v45  ;;  %3114 = vmatprep.subr.bf16.mxu1 %v3539_v60  ;;  %v4740_v45 = vrot.slane %v4592_v63, %v4011_v28  ;;  %v4742_v60 = vmul.f32 %v2388_v57, %v2376_v6 }
 0x257   : > { %v4719_v35 = vsel %vm1196_vm3, %v2354_v31, %v5569_v38  ;;  %5571 = vst [vmem:[#allocation91_spill] sm:$0xff] %v4728_v61  ;;  %v3545_v51 = vld [vmem:[%s5381_s8 + $0xa4] ss:$8 sps:$4 sm:$0xff]   ;;  %5572 = vst [vmem:[#allocation92_spill] sm:$0xff] %v4734_v3  ;;  %v4744_v23 = vmul.f32 %v2388_v57, %v2379_v18  ;;  %v4746_v8 = vmul.f32 %v2439_v62, %v2427_v4  ;;  %v5604_v29 = vld [vmem:[#allocation27_spill] sm:$0xff] }
 0x258   : > { %5570 = vst [vmem:[#allocation90_spill] sm:$0xff] %v4724_v2  ;;  %v2481_v34 = vld [vmem:[#allocation2 + $0x68] sm:$0x1f]  ;;  %v1529_v21 = vld [vmem:[#allocation2 + $0x30] sm:$0x1]  ;;  %v4748_v52 = vmul.f32 %v2439_v62, %v2430_v16  ;;  %3154 = vmatpush1.bf16.msra.mxu0 %v3576_v48  ;;  %v4753_v54 = vmul.f32 %v2490_v42, %v2478_v59 }
 0x259   : > { %v1559_v10 = vld [vmem:[#allocation2 + $0x30] sm:$0x3]  ;;  %5573 = vst [vmem:[#allocation93_spill] sm:$0xff] %v4744_v23  ;;  %v1547_v31 = vmul.f32 %v4089_v43, %v1529_v21  ;;  %v5574_v43 = vld [vmem:[#allocation18_spill] sm:$0xff]  ;;  %3115 = vmatpush1.bf16.msra.mxu1 %v3537_v22  ;;  %v4782_v59 = vmul.f32 %v2490_v42, %v2481_v34  ;;  %v1991_v15 = vld [vmem:[#allocation2 + $0x30] sm:$0xfc] }
 0x25a   : > { %v1610_v61 = vld [vmem:[#allocation2 + $0x30] sm:$0x7]  ;;  %v1577_v38 = vmul.f32 %v4068_v25, %v1559_v10  ;;  %v4762_v21 = vmul.f32 %v5574_v43, %v4630_v1  ;;  %v3543_v25 = vld [vmem:[%s5381_s8 + $0xa0] ss:$8 sps:$4 sm:$0xff]   ;;  %3116 = vmatprep.subr.bf16.mxu1 %v3545_v51  ;;  %v2042_v7 = vld [vmem:[#allocation2 + $0x30] sm:$0xf8] }
 0x25b   : > { %v1628_v3 = vmul.f32 %v4072_v26, %v1610_v61  ;;  %v1661_v5 = vld [vmem:[#allocation2 + $0x30] sm:$0xf]  ;;  %v5575_v26 = vld [vmem:[#allocation17_spill] sm:$0xff]  ;;  %v2529_v61 = vld [vmem:[#allocation2 + $0x50] sm:$0xe0] }
 0x25c   : > { %v1712_v28 = vld [vmem:[#allocation2 + $0x30] sm:$0x1f]  ;;  %v1679_v6 = vmul.f32 %v4084_v37, %v1661_v5  ;;  %v1553_v10 = vadd.f32 %v1547_v31, %v5575_v26  ;;  %v1587_v48 = vrot.slane %v1577_v38, 1  ;;  %v5576_v37 = vld [vmem:[#allocation12_spill] sm:$0xff]  ;;  %v5577_v51 = vld [vmem:[#allocation10_spill] sm:$0xff] }
 0x25d   : > { %v1763_v50 = vld [vmem:[#allocation2 + $0x30] sm:$0x3f]  ;;  %v1730_v57 = vmul.f32 %v4101_v46, %v1712_v28  ;;  %v1638_v4 = vrot.slane %v1628_v3, 2  ;;  %v4774_v46 = vpop.f32.mrb[4].mxu0  ;;  %v5578_v3 = vrot.slane %v5577_v51, 1  ;;  %3117 = vmatpush1.bf16.msra.mxu1 %v3543_v25  ;;  %v5583_v25 = vrot.slane %v4680_v14, 1 }
 0x25e   : > { %v4758_v18 = vmul.f32 %v4107_v53, %v1763_v50  ;;  %v1814_v62 = vld [vmem:[#allocation2 + $0x30] sm:$0x7f]  ;;  %v2408_v50 = vrot.slane %v4742_v60, 2  ;;  %v1604_v38 = vadd.f32 %v1587_v48, %v1553_v10  ;;  %v4787_v26 = vpop.f32.mrb[5].mxu0  ;;  %v3557_v60 = vld [vmem:[%s5381_s8 + $0xc4] ss:$8 sps:$4 sm:$0xff]   ;;  %v4861_v56 = vadd.f32 %v4774_v46, %v5604_v29 }
 0x25f   : > { %v4769_v5 = vmul.f32 %v5576_v37, %v1814_v62  ;;  %v3551_v28 = vld [vmem:[%s5381_s8 + $0xb4] ss:$8 sps:$4 sm:$0xff]   ;;  %v3549_v53 = vld [vmem:[%s5381_s8 + $0xb0] ss:$8 sps:$4 sm:$0xff]   ;;  %v1588_v31 = vsel %vm1196_vm3, %v5578_v3, %v1587_v48  ;;  %v1689_v62 = vrot.slane %v1679_v6, 3  ;;  %v1740_v42 = vrot.slane %v1730_v57, 4 }
 0x260   : > { %v1940_v43 = vld [vmem:[#allocation2 + $0x30] sm:$0xfe]  ;;  %v1655_v3 = vadd.f32 %v1638_v4, %v1604_v38  ;;  %v1791_v9 = vrot.slane %v4758_v18, 5  ;;  %v1032_v37 = vpop.f32.mrb[6].mxu0  ;;  %3118 = vmatprep.subr.bf16.mxu1 %v3551_v28  ;;  %v5584_v51 = vrot.slane %v4678_v24, 1  ;;  %v5586_v18 = vld [vmem:[#allocation13_spill] sm:$0xff] }
 0x261   : > { %v5579_v16 = vld [vmem:[#allocation23_spill] sm:$0xff]  ;;  %v1842_v13 = vrot.slane %v4769_v5, 6  ;;  %v1034_v34 = vpop.f32.mrb[7].mxu0  ;;  %v5587_v5 = vrot.slane %v5586_v18, 3  ;;  %v5589_v14 = vrot.slane %v4744_v23, 2  ;;  %3119 = vmatpush1.bf16.msra.mxu1 %v3549_v53  ;;  %vm1062_vm11 = vcmp.ge.f32.partialorder %v4861_v56, 0.0 }
 0x262   : > { %v1601_v22 = vadd.f32 %v1588_v31, %v5579_v16  ;;  %v5580_v10 = vld [vmem:[#allocation11_spill] sm:$0xff]  ;;  %v1706_v28 = vadd.f32 %v1689_v62, %v1655_v3  ;;  %v5595_v3 = vld [vmem:[#allocation22_spill] sm:$0xff]  ;;  %3120 = vmatprep.subr.bf16.mxu1 %v3557_v60 }
 0x263   : > { %v5581_v6 = vrot.slane %v5580_v10, 2  ;;  %v5582_v57 = vld [vmem:[#allocation19_spill] sm:$0xff]  ;;  %v4809_v10 = vsel %vm1196_vm3, %v5584_v51, %v5583_v25  ;;  %v1690_v38 = vsel %vm1300_vm5, %v5587_v5, %v1689_v62  ;;  %v4823_v24 = vsel %vm1248_vm4, %v2408_v50, %v5589_v14  ;;  %v5594_v5 = vld [vmem:[#allocation9_spill] sm:$0xff]  ;;  %v1943_v20 = vld [vmem:[#allocation2 + $0x48] sm:$0x3] }
 0x264   : > { %v4802_v31 = vmul.f32 %v5582_v57, %v1940_v43  ;;  %5585 = vst [vmem:[#allocation18_spill] sm:$0xff] %v4809_v10  ;;  %v2093_v43 = vld [vmem:[#allocation2 + $0x30] sm:$0xf0]  ;;  %5590 = vst [vmem:[#allocation17_spill] sm:$0xff] %v4823_v24  ;;  %v5591_v25 = vrot.slane %v4762_v21, 7  ;;  %v1928_v62 = vmul.f32 %v5594_v5, %v4630_v1  ;;  %v5596_v50 = vld [vmem:[#allocation14_spill] sm:$0xff]  ;;  %v1757_v24 = vadd.f32 %v1740_v42, %v1706_v28 }
 0x265   : > { %v1639_v48 = vsel %vm1248_vm4, %v5581_v6, %v1638_v4  ;;  %v4812_v4 = vmul.f32 %v4740_v45, %v2529_v61  ;;  %v5592_v61 = vld [vmem:[#allocation20_spill] sm:$0xff]  ;;  %v3555_v14 = vld [vmem:[%s5381_s8 + $0xc0] ss:$8 sps:$4 sm:$0xff]   ;;  %v2195_v36 = vld [vmem:[#allocation2 + $0x30] sm:$0xc0]  ;;  %v1961_v60 = vmul.f32 %v5582_v57, %v1943_v20 }
 0x266   : > { %v1652_v16 = vadd.f32 %v1639_v48, %v1601_v22  ;;  %v5588_v22 = vld [vmem:[#allocation21_spill] sm:$0xff]  ;;  %v2144_v48 = vld [vmem:[#allocation2 + $0x30] sm:$0xe0]  ;;  %v5593_v10 = vrot.slane %v5592_v61, 7  ;;  %v1913_v19 = vld [vmem:[#allocation2 + $0x48] sm:$0x1]  ;;  %v1808_v39 = vadd.f32 %v1791_v9, %v1757_v24  ;;  %3121 = vmatpush1.bf16.msra.mxu1 %v3555_v14 }
 0x267   : > { %v4818_v6 = vmul.f32 %v5588_v22, %v1991_v15  ;;  %v4833_v15 = vmul.f32 %v5595_v3, %v2042_v7  ;;  %v5598_v61 = vld [vmem:[#allocation15_spill] sm:$0xff]  ;;  %v5603_v28 = vld [vmem:[#allocation25_spill] sm:$0xff]  ;;  %v2096_v30 = vld [vmem:[#allocation2 + $0x48] sm:$0x1f] }
 0x268   : > { %v1703_v51 = vadd.f32 %v1690_v38, %v1652_v16  ;;  %v1894_v18 = vsel %vm372_vm1, %v5593_v10, %v5591_v25  ;;  %v5597_v16 = vrot.slane %v5596_v50, 4  ;;  %v5599_v23 = vrot.slane %v5598_v61, 5  ;;  %v5600_v25 = vld [vmem:[#allocation16_spill] sm:$0xff]  ;;  %v2147_v46 = vld [vmem:[#allocation2 + $0x48] sm:$0x3f] }
 0x269   : > { %v5601_v1 = vrot.slane %v5600_v25, 6  ;;  %v3563_v53 = vld [vmem:[%s5381_s8 + $0xd4] ss:$8 sps:$4 sm:$0xff]   ;;  %v1970_v50 = vrot.slane %v4802_v31, 1  ;;  %v4855_v61 = vmul.f32 %v5603_v28, %v2144_v48  ;;  %v2045_v25 = vld [vmem:[#allocation2 + $0x48] sm:$0xf]  ;;  %v1931_v48 = vmul.f32 %v5594_v5, %v1913_v19 }
 0x26a   : > { %v1741_v38 = vsel %vm1352_vm6, %v5597_v16, %v1740_v42  ;;  %v1792_v10 = vsel %vm1404_vm7, %v5599_v23, %v1791_v9  ;;  %v5602_v16 = vld [vmem:[#allocation24_spill] sm:$0xff]  ;;  %v1994_v23 = vld [vmem:[#allocation2 + $0x48] sm:$0x7]  ;;  %v2072_v31 = vrot.slane %v4833_v15, 3  ;;  %v2063_v57 = vmul.f32 %v5595_v3, %v2045_v25  ;;  %3122 = vmatprep.subr.bf16.mxu1 %v3563_v53 }
 0x26b   : > { %v1843_v7 = vsel %vm1456_vm8, %v5601_v1, %v1842_v13  ;;  %v1754_v2 = vadd.f32 %v1741_v38, %v1703_v51  ;;  %v4852_v42 = vmul.f32 %v5602_v16, %v2093_v43  ;;  %v2021_v1 = vrot.slane %v4818_v6, 2  ;;  %v5605_v43 = vld [vmem:[#allocation26_spill] sm:$0xff]  ;;  %v3561_v9 = vld [vmem:[%s5381_s8 + $0xd0] ss:$8 sps:$4 sm:$0xff]  }
 0x26c   : > { %v4865_v38 = vmul.f32 %v5605_v43, %v2195_v36  ;;  %v1859_v6 = vadd.f32 %v1842_v13, %v1808_v39  ;;  %v2012_v20 = vmul.f32 %v5588_v22, %v1994_v23  ;;  %v3569_v36 = vld [vmem:[%s5381_s8 + $0xe4] ss:$8 sps:$4 sm:$0xff]   ;;  %v2114_v19 = vmul.f32 %v5602_v16, %v2096_v30  ;;  %v5606_v5 = vld [vmem:[#allocation28_spill] sm:$0xff]  ;;  %3123 = vmatpush1.bf16.msra.mxu1 %v3561_v9 }
 0x26d   : > { %v1805_v51 = vadd.f32 %v1792_v10, %v1754_v2  ;;  %v1038_v2 = vand.u32 2147483647, %v4861_v56  ;;  %v4880_v15 = vadd.f32 %v4787_v26, %v5606_v5  ;;  %v4883_v13 = vadd.f32 %v1032_v37, %v5604_v29  ;;  %3124 = vmatprep.subr.bf16.mxu1 %v3569_v36  ;;  %v2249_v36 = vld [vmem:[#allocation2 + $0x48] sm:$0xff] }
 0x26e   : > { %v5607_v39 = vrot.slane %v4762_v21, 7  ;;  %v1971_v3 = vrot.slane %v1961_v60, 1  ;;  %v4888_v10 = vadd.f32 %v1034_v34, %v5606_v5  ;;  %v2165_v53 = vmul.f32 %v5603_v28, %v2147_v46  ;;  %v3575_v21 = vld [vmem:[%s5381_s8 + $0xf4] ss:$8 sps:$4 sm:$0xff]  }
 0x26f   : > { %v1856_v24 = vadd.f32 %v1843_v7, %v1805_v51  ;;  %v1044_v14 = vsub.f32 0.0, %v1038_v2  ;;  %v3567_v7 = vld [vmem:[%s5381_s8 + $0xe0] ss:$8 sps:$4 sm:$0xff]   ;;  %v1039_v26 = vand.u32 2147483647, %v4880_v15  ;;  %v2022_v16 = vrot.slane %v2012_v20, 2 }
 0x270   : > { %v1910_v22 = vadd.f32 %v5607_v39, %v1859_v6  ;;  %v1041_v29 = vand.u32 2147483647, %v4883_v13  ;;  %v1042_v23 = vand.u32 2147483647, %v4888_v10  ;;  %v2073_v60 = vrot.slane %v2063_v57, 3  ;;  %3125 = vmatpush1.bf16.msra.mxu1 %v3567_v7 }
 0x271   : > { %v1907_v30 = vadd.f32 %v1894_v18, %v1856_v24  ;;  %v1051_v34 = vmul.f32 1.442695, %v1044_v14  ;;  %v2198_v18 = vld [vmem:[#allocation2 + $0x48] sm:$0x7f]  ;;  %v1045_v51 = vsub.f32 0.0, %v1039_v26  ;;  %v1972_v6 = vsel %vm1196_vm3, %v1970_v50, %v1971_v3  ;;  %3126 = vmatprep.subr.bf16.mxu1 %v3575_v21 }
 0x272   : > { %v1937_v37 = vadd.f32 %v1931_v48, %v1910_v22  ;;  %v1047_v28 = vsub.f32 0.0, %v1041_v29  ;;  %v1048_v9 = vsub.f32 0.0, %v1042_v23  ;;  %v3573_v2 = vld [vmem:[%s5381_s8 + $0xf0] ss:$8 sps:$4 sm:$0xff]   ;;  %v2124_v20 = vrot.slane %v2114_v19, 4 }
 0x273   : > { %v1934_v25 = vadd.f32 %v1928_v62, %v1907_v30  ;;  %3591 = vpow2.f32 %v1051_v34  ;;  %v1053_v24 = vmul.f32 1.442695, %v1045_v51  ;;  %v2023_v62 = vsel %vm1248_vm4, %v2021_v1, %v2022_v16  ;;  %v2532_v19 = vld [vmem:[#allocation2 + $0x68] sm:$0x3f] }
 0x274   : > { %v1988_v46 = vadd.f32 %v1971_v3, %v1937_v37  ;;  %v1057_v5 = vmul.f32 1.442695, %v1047_v28  ;;  %v1059_v39 = vmul.f32 1.442695, %v1048_v9  ;;  %v2216_v50 = vmul.f32 %v5605_v43, %v2198_v18  ;;  %v2246_v3 = vld [vmem:[#allocation2 + $0x30] sm:$0x80]  ;;  %3127 = vmatpush1.bf16.msra.mxu1 %v3573_v2 }
 0x275   : > { %v1985_v48 = vadd.f32 %v1972_v6, %v1934_v25  ;;  %v2123_v22 = vrot.slane %v4852_v42, 4  ;;  %v2175_v14 = vrot.slane %v2165_v53, 5  ;;  %3593 = vpow2.f32 %v1053_v24 }
 0x276   : > { %v2039_v57 = vadd.f32 %v2022_v16, %v1988_v46  ;;  %3595 = vpow2.f32 %v1057_v5  ;;  %v2074_v29 = vsel %vm1300_vm5, %v2072_v31, %v2073_v60  ;;  %v2267_v7 = vmul.f32 %v4349_v32, %v2249_v36  ;;  %v2580_v46 = vld [vmem:[#allocation2 + $0x50] sm:$0xc0] }
 0x277   : > { %v2036_v30 = vadd.f32 %v2023_v62, %v1985_v48  ;;  %v2174_v1 = vrot.slane %v4855_v61, 5  ;;  %3597 = vpow2.f32 %v1059_v39  ;;  %v5468_v21 = vrot.slane %v4782_v59, 4 }
 0x278   : > { %v2090_v26 = vadd.f32 %v2073_v60, %v2039_v57  ;;  %v2125_v42 = vsel %vm1352_vm6, %v2123_v22, %v2124_v20  ;;  %v2226_v53 = vrot.slane %v2216_v50, 6  ;;  %v2264_v16 = vmul.f32 %v4349_v32, %v2246_v3 }
 0x279   : > { %v2087_v43 = vadd.f32 %v2074_v29, %v2036_v30  ;;  %v5608_v34 = vrot.slane %v4748_v52, 3  ;;  %v5609_v23 = vrot.slane %v4746_v8, 3  ;;  %v4921_v61 = vmul.f32 %v4740_v45, %v2532_v19  ;;  %v2583_v8 = vld [vmem:[#allocation2 + $0x68] sm:$0x7f] }
 0x27a   : > { %v2141_v37 = vadd.f32 %v2124_v20, %v2090_v26  ;;  %v2592_v25 = vrot.slane %v4592_v63, %v4019_v44  ;;  %v2225_v18 = vrot.slane %v4865_v38, 6  ;;  %v2176_v51 = vsel %vm1404_vm7, %v2174_v1, %v2175_v14  ;;  %v2631_v20 = vld [vmem:[#allocation2 + $0x50] sm:$0x80] }
 0x27b   : > { %v4918_v31 = vsel %vm1300_vm5, %v5609_v23, %v5608_v34  ;;  %v2138_v60 = vadd.f32 %v2125_v42, %v2087_v43  ;;  %v2277_v32 = vrot.slane %v2267_v7, 7  ;;  %v2561_v6 = vrot.slane %v4812_v4, 5 }
 0x27c   : > { %v2192_v28 = vadd.f32 %v2175_v14, %v2141_v37  ;;  %v2643_v9 = vrot.slane %v4592_v63, %v4031_v0  ;;  %v5610_v48 = vrot.slane %v4753_v54, 4  ;;  %v3647_v24 = vmov 0  }
 0x27d   : > { %v2189_v2 = vadd.f32 %v2176_v51, %v2138_v60  ;;  %v4930_v45 = vpop.eup %3591  ;;  %3171 = vmatprep.mubr.bf16.mxu0 %v3647_v24  ;;  %v2227_v5 = vsel %vm1456_vm8, %v2225_v18, %v2226_v53  ;;  %v2276_v57 = vrot.slane %v2264_v16, 7  ;;  %v2405_v50 = vrot.slane %v4648_v11, 2  ;;  %v5614_v51 = vld [vmem:[#allocation85_spill] sm:$0xff] }
 0x27e   : > { %v4937_v38 = vsel %vm1352_vm6, %v5610_v48, %v5468_v21  ;;  %v2243_v62 = vadd.f32 %v2226_v53, %v2192_v28  ;;  %v1068_v39 = vadd.f32 1.0, %v4930_v45  ;;  %v2406_v22 = vrot.slane %v4657_v12, 2  ;;  %v5651_v21 = vld [vmem:[#allocation46_spill] sm:$0xff] }
 0x27f   : > { %v2240_v63 = vadd.f32 %v2227_v5, %v2189_v2  ;;  %v4943_v3 = vmul.f32 %v2592_v25, %v2580_v46  ;;  %v4945_v54 = vmul.f32 %v2592_v25, %v2583_v8  ;;  %v2278_v14 = vsel %vm372_vm1, %v2276_v57, %v2277_v32  ;;  %v4948_v26 = vpop.eup %3593  ;;  %v5615_v46 = vld [vmem:[#allocation86_spill] sm:$0xff] }
 0x280   : > { %v2294_v30 = vadd.f32 %v2277_v32, %v2243_v62  ;;  %3599 = vrcp.f32 %v1068_v39  ;;  %v4950_v19 = vmul.f32 %v2643_v9, %v2631_v20  ;;  %v2312_v7 = vmul.f32 %v4353_v55, %v2249_v36  ;;  %v4953_v1 = vpop.eup %3595  ;;  %v5619_v20 = vld [vmem:[#allocation90_spill] sm:$0xff]  ;;  %v5620_v39 = vld [vmem:[#allocation3_spill] sm:$0xff] }
 0x281   : > { %5611 = vst [vmem:[#allocation12_spill] sm:$0xff] %v4945_v54  ;;  %v2291_v29 = vadd.f32 %v2278_v14, %v2240_v63  ;;  %v1069_v11 = vadd.f32 1.0, %v4948_v26  ;;  %v2456_v43 = vrot.slane %v4659_v40, 3  ;;  %v2457_v42 = vrot.slane %v4671_v41, 3  ;;  %v4959_v37 = vpop.eup %3597  ;;  %v5621_v63 = vld [vmem:[#allocation84_spill] sm:$0xff] }
 0x282   : > { %v2321_v12 = vadd.f32 %v4646_v17, %v2294_v30  ;;  %v1071_v53 = vadd.f32 1.0, %v4953_v1  ;;  %v2407_v34 = vsel %vm1248_vm4, %v2405_v50, %v2406_v22  ;;  %v2507_v23 = vrot.slane %v4673_v33, 4 }
 0x283   : > { %v2318_v16 = vadd.f32 %v2312_v7, %v2291_v29  ;;  %3601 = vrcp.f32 %v1069_v11  ;;  %v1072_v55 = vadd.f32 1.0, %v4959_v37  ;;  %v5612_v36 = vrot.slane %v4627_v58, 1  ;;  %v2326_v7 = vld [vmem:[#allocation2 + $0x58] sm:$0xfe]  ;;  %v2329_v11 = vld [vmem:[#allocation2 + $0x70] sm:$0x3] }
 0x284   : > { %v2508_v17 = vrot.slane %v4682_v47, 4  ;;  %3603 = vrcp.f32 %v1071_v53  ;;  %v4969_v40 = vmul.f32 %v4721_v49, %v2643_v9  ;;  %v2558_v60 = vrot.slane %v4684_v27, 5  ;;  %v5616_v47 = vld [vmem:[#allocation87_spill] sm:$0xff]  ;;  %v4981_v49 = vld [vmem:[%s5379_s6] sm:$0x7]  ;;  %v5618_v9 = vld [vmem:[#allocation88_spill] sm:$0xff] }
 0x285   : > { %v2372_v25 = vadd.f32 %v5612_v36, %v2321_v12  ;;  %v2369_v41 = vadd.f32 %v4719_v35, %v2318_v16  ;;  %3605 = vrcp.f32 %v1072_v55  ;;  %v2458_v33 = vsel %vm1300_vm5, %v2456_v43, %v2457_v42  ;;  %5617 = vst [vmem:[#allocation23_spill] sm:$0xff] %v4981_v49  ;;  %v5622_v53 = vld [vmem:[#allocation4_spill] sm:$0xff] }
 0x286   : > { %5613 = vst [vmem:[#allocation10_spill] sm:$0xff] %v4969_v40  ;;  %v2559_v28 = vrot.slane %v5614_v51, 5  ;;  %v5467_v32 = vrot.slane %v4921_v61, 5  ;;  %v2609_v8 = vrot.slane %v5615_v46, 6  ;;  %v2610_v2 = vrot.slane %v5616_v47, 6  ;;  %v5625_v47 = vld [vmem:[#allocation64_spill] sm:$0xff] }
 0x287   : > { %v2423_v18 = vadd.f32 %v2406_v22, %v2372_v25  ;;  %v2420_v58 = vadd.f32 %v2407_v34, %v2369_v41  ;;  %v2509_v27 = vsel %vm1352_vm6, %v2507_v23, %v2508_v17  ;;  %v2660_v48 = vrot.slane %v5618_v9, 7  ;;  %v5623_v34 = vld [vmem:[#allocation5_spill] sm:$0xff]  ;;  %v5624_v41 = vld [vmem:[#allocation6_spill] sm:$0xff]  ;;  %v2380_v51 = vld [vmem:[#allocation2 + $0x70] sm:$0x7] }
 0x288   : > { %v2661_v24 = vrot.slane %v5619_v20, 7  ;;  %v2612_v5 = vrot.slane %v4943_v3, 6  ;;  %v5464_v62 = vrot.slane %v4945_v54, 6  ;;  %v2341_v50 = vrot.slane %v5621_v63, %v5620_v39  ;;  %v2431_v9 = vld [vmem:[#allocation2 + $0x70] sm:$0xf] }
 0x289   : > { %v2474_v35 = vadd.f32 %v2457_v42, %v2423_v18  ;;  %v2471_v57 = vadd.f32 %v2458_v33, %v2420_v58  ;;  %v2663_v22 = vrot.slane %v4950_v19, 7  ;;  %v5463_v14 = vrot.slane %v4969_v40, 7  ;;  %v2428_v58 = vld [vmem:[#allocation2 + $0x58] sm:$0xf8]  ;;  %v5675_v40 = vld [vmem:[#allocation53_spill] sm:$0xff] }
 0x28a   : > { %v2560_v29 = vsel %vm1404_vm7, %v2558_v60, %v2559_v28  ;;  %v3600_v12 = vpop.eup %3599  ;;  %v2611_v42 = vsel %vm1456_vm8, %v2609_v8, %v2610_v2  ;;  %v4996_v16 = vrot.slane %v4981_v49, %v5622_v53  ;;  %v2392_v23 = vrot.slane %v5621_v63, %v5623_v34 }
 0x28b   : > { %v2525_v30 = vadd.f32 %v2508_v17, %v2474_v35  ;;  %v2522_v43 = vadd.f32 %v2509_v27, %v2471_v57  ;;  %v1086_v55 = vmul.f32 %v3600_v12, %v4930_v45  ;;  %v2662_v25 = vsel %vm372_vm1, %v2660_v48, %v2661_v24  ;;  %v2377_v17 = vld [vmem:[#allocation2 + $0x58] sm:$0xfc]  ;;  %v5626_v48 = vld [vmem:[#allocation7_spill] sm:$0xff] }
 0x28c   : > { %v2443_v60 = vrot.slane %v5621_v63, %v5624_v41  ;;  %vm1063_vm12 = vcmp.ge.f32.partialorder %v4880_v15, 0.0  ;;  %v2344_v18 = vmul.f32 %v2341_v50, %v2326_v7  ;;  %v5006_v33 = vmul.f32 %v2341_v50, %v2329_v11 }
 0x28d   : > { %v2576_v36 = vadd.f32 %v2559_v28, %v2525_v30  ;;  %v3602_v46 = vpop.eup %3601  ;;  %v1092_v8 = vsel %vm1062_vm11, %v3600_v12, %v1086_v55  ;;  %vm1065_vm13 = vcmp.ge.f32.partialorder %v4883_v13, 0.0  ;;  %vm1066_vm14 = vcmp.ge.f32.partialorder %v4888_v10, 0.0 }
 0x28e   : > { %v2573_v45 = vadd.f32 %v2560_v29, %v2522_v43  ;;  %v3604_v28 = vpop.eup %3603  ;;  %v5011_v35 = vmul.f32 %v1092_v8, %v5625_v47  ;;  %v1087_v56 = vmul.f32 %v3602_v46, %v4948_v26  ;;  %v2395_v27 = vmul.f32 %v2392_v23, %v2377_v17  ;;  %v2479_v29 = vld [vmem:[#allocation2 + $0x58] sm:$0xf0]  ;;  %v5628_v17 = vld [vmem:[#allocation61_spill] sm:$0xff] }
 0x28f   : > { %v2494_v20 = vrot.slane %v5621_v63, %v5626_v48  ;;  %v3606_v57 = vpop.eup %3605  ;;  %v1089_v50 = vmul.f32 %v3604_v28, %v4953_v1  ;;  %v2627_v30 = vadd.f32 %v2610_v2, %v2576_v36  ;;  %v5017_v7 = vmul.f32 %v2392_v23, %v2380_v51  ;;  %v5629_v36 = vld [vmem:[#allocation29_spill] sm:$0xff] }
 0x290   : > { %v5019_v11 = vmul.f32 %v2443_v60, %v2428_v58  ;;  %1119 = vst [vmem:[#allocation2 + $0x38] sm:$0xff] %v5011_v35  ;;  %v1093_v12 = vsel %vm1063_vm12, %v3602_v46, %v1087_v56  ;;  %v1090_v26 = vmul.f32 %v3606_v57, %v4959_v37  ;;  %v2360_v43 = vrot.slane %v2344_v18, 1  ;;  %v5630_v58 = vld [vmem:[#allocation68_spill] sm:$0xff]  ;;  %v5041_v18 = vld [vmem:[%s5380_s7] sm:$0x7] }
 0x291   : > { %5627 = vst [vmem:[#allocation11_spill] sm:$0xff] %v5017_v7  ;;  %v5465_v55 = vrot.slane %v5006_v33, 1  ;;  %v1099_v41 = vmul.f32 %v1093_v12, %v5628_v17  ;;  %v1095_v1 = vsel %vm1065_vm13, %v3604_v28, %v1089_v50  ;;  %v2624_v2 = vadd.f32 %v2611_v42, %v2573_v45  ;;  %5631 = vst [vmem:[#allocation19_spill] sm:$0xff] %v5041_v18  ;;  %v2299_v46 = vld [vmem:[#allocation2 + $0x70] sm:$0x1] }
 0x292   : > { %v5029_v23 = vmul.f32 %v2443_v60, %v2431_v9  ;;  %v5033_v51 = vmul.f32 %v5629_v36, %v5011_v35  ;;  %v1101_v15 = vmul.f32 %v1095_v1, %v5630_v58  ;;  %v1096_v37 = vsel %vm1066_vm14, %v3606_v57, %v1090_v26  ;;  %v5633_v42 = vld [vmem:[#allocation67_spill] sm:$0xff]  ;;  %v5642_v1 = vld [vmem:[#allocation30_spill] sm:$0xff] }
 0x293   : > { %v5043_v13 = vmul.f32 %v2494_v20, %v2479_v29  ;;  %1120 = vst [vmem:[#allocation2 + $0x40] sm:$0xff] %v1099_v41  ;;  %v1102_v60 = vmul.f32 %v1096_v37, %v5633_v42  ;;  %v2678_v8 = vadd.f32 %v2661_v24, %v2627_v30  ;;  %v2411_v45 = vrot.slane %v2395_v27, 2  ;;  %v2482_v27 = vld [vmem:[#allocation2 + $0x70] sm:$0x1f] }
 0x294   : > { %v5466_v28 = vrot.slane %v5017_v7, 2  ;;  %1122 = vst [vmem:[#allocation2 + $0x50] sm:$0x1] %v1101_v15  ;;  %v5052_v10 = vsel %vm1404_vm7, %v2561_v6, %v5467_v32  ;;  %v5059_v47 = vsel %vm1456_vm8, %v2612_v5, %v5464_v62  ;;  %v5063_v24 = vrot.slane %v4981_v49, %v5620_v39  ;;  %v5639_v5 = vld [vmem:[#allocation91_spill] sm:$0xff]  ;;  %v5644_v15 = vld [vmem:[#allocation32_spill] sm:$0xff] }
 0x295   : > { %5632 = vst [vmem:[#allocation13_spill] sm:$0xff] %v5043_v13  ;;  %5634 = vst [vmem:[#allocation21_spill] sm:$0xff] %v5052_v10  ;;  %v5067_v56 = vrot.slane %v5041_v18, %v5620_v39  ;;  %v5074_v4 = vsel %vm372_vm1, %v2663_v22, %v5463_v14  ;;  %v2675_v6 = vadd.f32 %v2662_v25, %v2624_v2  ;;  %v5469_v48 = vrot.slane %v5033_v51, 7  ;;  %v5643_v36 = vld [vmem:[#allocation31_spill] sm:$0xff] }
 0x296   : > { %5635 = vst [vmem:[#allocation20_spill] sm:$0xff] %v5059_v47  ;;  %5636 = vst [vmem:[#allocation9_spill] sm:$0xff] %v5063_v24  ;;  %v2709_v3 = vrot.slane %v5041_v18, %v5622_v53  ;;  %v5079_v9 = vmul.f32 %v5639_v5, %v2299_v46  ;;  %v2701_v22 = vmul.f32 %v4996_v16, %v2678_v8  ;;  %v5645_v8 = vld [vmem:[#allocation66_spill] sm:$0xff]  ;;  %v5647_v62 = vld [vmem:[#allocation35_spill] sm:$0xff] }
 0x297   : > { %5637 = vst [vmem:[#allocation22_spill] sm:$0xff] %v5067_v56  ;;  %1123 = vst [vmem:[#allocation2 + $0x58] sm:$0x1] %v1102_v60  ;;  %v1530_v29 = vld [vmem:[#allocation2 + $0x38] sm:$0x1]  ;;  %v5089_v25 = vsel %vm1196_vm3, %v2360_v43, %v5465_v55  ;;  %v5094_v26 = vsel %vm1248_vm4, %v2411_v45, %v5466_v28  ;;  %v5096_v17 = vmul.f32 %v2494_v20, %v2482_v27  ;;  %v5646_v43 = vld [vmem:[#allocation33_spill] sm:$0xff] }
 0x298   : > { %5638 = vst [vmem:[#allocation14_spill] sm:$0xff] %v5074_v4  ;;  %v1560_v19 = vld [vmem:[#allocation2 + $0x38] sm:$0x3]  ;;  %5640 = vst [vmem:[#allocation15_spill] sm:$0xff] %v5089_v25  ;;  %v1548_v2 = vmul.f32 %v5642_v1, %v1530_v29  ;;  %v5102_v14 = vmul.f32 %v5645_v8, %v1099_v41  ;;  %v5648_v45 = vld [vmem:[#allocation38_spill] sm:$0xff]  ;;  %v2698_v27 = vmul.f32 %v4996_v16, %v2675_v6 }
 0x299   : > { %v1611_v12 = vld [vmem:[#allocation2 + $0x38] sm:$0x7]  ;;  %5641 = vst [vmem:[#allocation16_spill] sm:$0xff] %v5094_v26  ;;  %v1578_v58 = vmul.f32 %v5643_v36, %v1560_v19  ;;  %v5649_v29 = vld [vmem:[#allocation41_spill] sm:$0xff]  ;;  %v5112_v8 = vmul.f32 %v5651_v21, %v5011_v35  ;;  %v5652_v57 = vld [vmem:[#allocation71_spill] sm:$0xff] }
 0x29a   : > { %v1629_v37 = vmul.f32 %v5644_v15, %v1611_v12  ;;  %v1662_v46 = vld [vmem:[#allocation2 + $0x38] sm:$0xf]  ;;  %v1554_v1 = vadd.f32 %v1548_v2, %v5649_v29  ;;  %v5650_v12 = vld [vmem:[#allocation39_spill] sm:$0xff]  ;;  %v5138_v50 = vadd.f32 %v2709_v3, %v2698_v27  ;;  %v1663_v53 = vld [vmem:[#allocation2 + $0x40] sm:$0xf] }
 0x29b   : > { %v1713_v42 = vld [vmem:[#allocation2 + $0x38] sm:$0x1f]  ;;  %v1680_v30 = vmul.f32 %v5646_v43, %v1662_v46  ;;  %v1590_v19 = vrot.slane %v1578_v58, 1  ;;  %v5115_v46 = vmul.f32 %v5652_v57, %v1099_v41  ;;  %v1531_v41 = vld [vmem:[#allocation2 + $0x40] sm:$0x1]  ;;  %v5677_v13 = vld [vmem:[#allocation55_spill] sm:$0xff] }
 0x29c   : > { %v1764_v60 = vld [vmem:[#allocation2 + $0x38] sm:$0x3f]  ;;  %v1731_v55 = vmul.f32 %v5647_v62, %v1713_v42  ;;  %v1641_v36 = vrot.slane %v1629_v37, 2  ;;  %v5668_v27 = vld [vmem:[#allocation49_spill] sm:$0xff]  ;;  %vm2751_vm15 = vcmp.ge.f32.partialorder %v5138_v50, 0.0 }
 0x29d   : > { %v1782_v28 = vmul.f32 %v5648_v45, %v1764_v60  ;;  %v1815_v20 = vld [vmem:[#allocation2 + $0x38] sm:$0x7f]  ;;  %v1692_v32 = vrot.slane %v1680_v30, 3  ;;  %v5654_v60 = vld [vmem:[#allocation34_spill] sm:$0xff]  ;;  %v1605_v2 = vadd.f32 %v1590_v19, %v1554_v1  ;;  %v5656_v30 = vld [vmem:[#allocation45_spill] sm:$0xff] }
 0x29e   : > { %v1833_v15 = vmul.f32 %v5650_v12, %v1815_v20  ;;  %v5653_v62 = vld [vmem:[#allocation8_spill] sm:$0xff]  ;;  %v5655_v16 = vrot.slane %v5654_v60, 1  ;;  %v1743_v58 = vrot.slane %v1731_v55, 4  ;;  %v5657_v37 = vrot.slane %v5656_v30, 7  ;;  %v5658_v45 = vld [vmem:[#allocation43_spill] sm:$0xff] }
 0x29f   : > { %v5119_v42 = vrot.slane %v5621_v63, %v5653_v62  ;;  %v1941_v43 = vld [vmem:[#allocation2 + $0x38] sm:$0xfe]  ;;  %v1794_v29 = vrot.slane %v1782_v28, 5  ;;  %v1561_v12 = vld [vmem:[#allocation2 + $0x40] sm:$0x3]  ;;  %v5132_v60 = vadd.f32 %v2709_v3, %v2701_v22  ;;  %v5663_v28 = vld [vmem:[#allocation47_spill] sm:$0xff] }
 0x2a0   : > { %v1591_v6 = vsel %vm1196_vm3, %v5655_v16, %v1590_v19  ;;  %v5129_v35 = vsel %vm372_vm1, %v5657_v37, %v5469_v48  ;;  %v1845_v63 = vrot.slane %v1833_v15, 6  ;;  %v1612_v62 = vld [vmem:[#allocation2 + $0x40] sm:$0x7]  ;;  %v5659_v16 = vld [vmem:[#allocation36_spill] sm:$0xff]  ;;  %v1656_v19 = vadd.f32 %v1641_v36, %v1605_v2 }
 0x2a1   : > { %v1602_v20 = vadd.f32 %v1591_v6, %v5658_v45  ;;  %v5660_v1 = vrot.slane %v5659_v16, 2  ;;  %v5661_v48 = vld [vmem:[#allocation37_spill] sm:$0xff]  ;;  %v5144_v15 = vmul.f32 %v5663_v28, %v1941_v43  ;;  %v5664_v45 = vld [vmem:[#allocation51_spill] sm:$0xff]  ;;  %v5665_v16 = vld [vmem:[#allocation40_spill] sm:$0xff] }
 0x2a2   : > { %v5662_v39 = vrot.slane %v5661_v48, 3  ;;  %v1549_v22 = vmul.f32 %v5664_v45, %v1531_v41  ;;  %v1707_v18 = vadd.f32 %v1692_v32, %v1656_v19  ;;  %v5666_v49 = vrot.slane %v5665_v16, 4  ;;  %v1992_v2 = vld [vmem:[#allocation2 + $0x38] sm:$0xfc]  ;;  %v1765_v48 = vld [vmem:[#allocation2 + $0x40] sm:$0x3f] }
 0x2a3   : > { %v1642_v55 = vsel %vm1248_vm4, %v5660_v1, %v1641_v36  ;;  %v5667_v1 = vld [vmem:[#allocation48_spill] sm:$0xff]  ;;  %v5673_v19 = vld [vmem:[#allocation62_spill] sm:$0xff]  ;;  %v1816_v16 = vld [vmem:[#allocation2 + $0x40] sm:$0x7f] }
 0x2a4   : > { %v1653_v37 = vadd.f32 %v1642_v55, %v1602_v20  ;;  %v1693_v6 = vsel %vm1300_vm5, %v5662_v39, %v1692_v32  ;;  %v1744_v36 = vsel %vm1352_vm6, %v5666_v49, %v1743_v58  ;;  %v1579_v3 = vmul.f32 %v5667_v1, %v1561_v12  ;;  %v1714_v55 = vld [vmem:[#allocation2 + $0x40] sm:$0x1f]  ;;  %v5669_v39 = vld [vmem:[#allocation42_spill] sm:$0xff]  ;;  %v5671_v56 = vld [vmem:[#allocation44_spill] sm:$0xff] }
 0x2a5   : > { %v1630_v20 = vmul.f32 %v5668_v27, %v1612_v62  ;;  %v5670_v34 = vrot.slane %v5669_v39, 5  ;;  %v5672_v41 = vrot.slane %v5671_v56, 6  ;;  %v1555_v45 = vadd.f32 %v1549_v22, %v5673_v19  ;;  %v2043_v24 = vld [vmem:[#allocation2 + $0x38] sm:$0xf8]  ;;  %v5674_v1 = vld [vmem:[#allocation50_spill] sm:$0xff] }
 0x2a6   : > { %v1704_v30 = vadd.f32 %v1693_v6, %v1653_v37  ;;  %v1758_v49 = vadd.f32 %v1743_v58, %v1707_v18  ;;  %v1593_v4 = vrot.slane %v1579_v3, 1  ;;  %v1681_v62 = vmul.f32 %v5674_v1, %v1663_v53  ;;  %v2094_v6 = vld [vmem:[#allocation2 + $0x38] sm:$0xf0]  ;;  %v5680_v58 = vld [vmem:[#allocation63_spill] sm:$0xff]  ;;  %v1996_v54 = vld [vmem:[#allocation2 + $0x58] sm:$0x7] }
 0x2a7   : > { %v1795_v43 = vsel %vm1404_vm7, %v5670_v34, %v1794_v29  ;;  %v1846_v32 = vsel %vm1456_vm8, %v5672_v41, %v1845_v63  ;;  %v1644_v12 = vrot.slane %v1630_v20, 2  ;;  %v5161_v37 = vmul.f32 %v5675_v40, %v1992_v2  ;;  %v5676_v39 = vld [vmem:[#allocation52_spill] sm:$0xff]  ;;  %v5678_v41 = vld [vmem:[#allocation54_spill] sm:$0xff]  ;;  %v5683_v1 = vld [vmem:[#allocation59_spill] sm:$0xff] }
 0x2a8   : > { %v1755_v27 = vadd.f32 %v1744_v36, %v1704_v30  ;;  %v1732_v34 = vmul.f32 %v5676_v39, %v1714_v55  ;;  %v1783_v56 = vmul.f32 %v5677_v13, %v1765_v48  ;;  %v1809_v26 = vadd.f32 %v1794_v29, %v1758_v49  ;;  %v5681_v19 = vld [vmem:[#allocation56_spill] sm:$0xff]  ;;  %v5682_v30 = vld [vmem:[#allocation69_spill] sm:$0xff] }
 0x2a9   : > { %v5679_v47 = vrot.slane %v5678_v41, 1  ;;  %v1606_v18 = vadd.f32 %v1593_v4, %v1555_v45  ;;  %v1834_v3 = vmul.f32 %v5680_v58, %v1816_v16  ;;  %v5170_v53 = vmul.f32 %v5681_v19, %v2043_v24  ;;  %v5684_v55 = vld [vmem:[#allocation57_spill] sm:$0xff]  ;;  %v5686_v24 = vld [vmem:[#allocation58_spill] sm:$0xff]  ;;  %v2047_v25 = vld [vmem:[#allocation2 + $0x58] sm:$0xf] }
 0x2aa   : > { %v1806_v20 = vadd.f32 %v1795_v43, %v1755_v27  ;;  %v1695_v2 = vrot.slane %v1681_v62, 3  ;;  %v5174_v7 = vmul.f32 %v5683_v1, %v2094_v6  ;;  %v5685_v13 = vrot.slane %v5684_v55, 2  ;;  %v1942_v6 = vld [vmem:[#allocation2 + $0x40] sm:$0xfe]  ;;  %v5697_v58 = vld [vmem:[#allocation70_spill] sm:$0xff]  ;;  %v5700_v43 = vld [vmem:[#allocation75_spill] sm:$0xff] }
 0x2ab   : > { %v1594_v22 = vsel %vm1196_vm3, %v5679_v47, %v1593_v4  ;;  %v1657_v48 = vadd.f32 %v1644_v12, %v1606_v18  ;;  %v1746_v49 = vrot.slane %v1732_v34, 4  ;;  %v1860_v4 = vadd.f32 %v1845_v63, %v1809_v26  ;;  %v5689_v26 = vld [vmem:[#allocation72_spill] sm:$0xff]  ;;  %v2095_v18 = vld [vmem:[#allocation2 + $0x40] sm:$0xf0] }
 0x2ac   : > { %v1603_v36 = vadd.f32 %v1594_v22, %v5682_v30  ;;  %v1645_v29 = vsel %vm1248_vm4, %v5685_v13, %v1644_v12  ;;  %v1857_v47 = vadd.f32 %v1846_v32, %v1806_v20  ;;  %v1797_v16 = vrot.slane %v1783_v56, 5  ;;  %v1993_v22 = vld [vmem:[#allocation2 + $0x40] sm:$0xfc] }
 0x2ad   : > { %v5687_v27 = vrot.slane %v5686_v24, 3  ;;  %v1708_v62 = vadd.f32 %v1695_v2, %v1657_v48  ;;  %v1848_v41 = vrot.slane %v1834_v3, 6  ;;  %v5688_v32 = vrot.slane %v5102_v14, 7  ;;  %v2044_v56 = vld [vmem:[#allocation2 + $0x40] sm:$0xf8]  ;;  %v5691_v3 = vld [vmem:[#allocation60_spill] sm:$0xff] }
 0x2ae   : > { %v1654_v45 = vadd.f32 %v1645_v29, %v1603_v36  ;;  %v5690_v63 = vrot.slane %v5689_v26, 7  ;;  %v1908_v20 = vadd.f32 %v5129_v35, %v1857_v47  ;;  %v1914_v29 = vld [vmem:[#allocation2 + $0x50] sm:$0x1]  ;;  %v2146_v35 = vld [vmem:[#allocation2 + $0x40] sm:$0xe0] }
 0x2af   : > { %v1696_v39 = vsel %vm1300_vm5, %v5687_v27, %v1695_v2  ;;  %v5692_v2 = vrot.slane %v5691_v3, 4  ;;  %v1759_v13 = vadd.f32 %v1746_v49, %v1708_v62  ;;  %v1944_v48 = vld [vmem:[#allocation2 + $0x50] sm:$0x3]  ;;  %v5698_v3 = vrot.slane %v5697_v58, 6 }
 0x2b0   : > { %v1705_v12 = vadd.f32 %v1696_v39, %v1654_v45  ;;  %v1900_v34 = vsel %vm372_vm1, %v5690_v63, %v5688_v32  ;;  %v5693_v45 = vrot.slane %v5033_v51, 7  ;;  %v5694_v39 = vld [vmem:[#allocation65_spill] sm:$0xff]  ;;  %v1995_v47 = vld [vmem:[#allocation2 + $0x50] sm:$0x7]  ;;  %v5208_v51 = vmul.f32 %v5700_v43, %v2044_v56 }
 0x2b1   : > { %v1747_v55 = vsel %vm1352_vm6, %v5692_v2, %v1746_v49  ;;  %v5695_v26 = vrot.slane %v5694_v39, 5  ;;  %v5696_v63 = vld [vmem:[#allocation73_spill] sm:$0xff]  ;;  %v1810_v36 = vadd.f32 %v1797_v16, %v1759_v13  ;;  %v1849_v2 = vsel %vm1456_vm8, %v5698_v3, %v1848_v41  ;;  %v5699_v49 = vld [vmem:[#allocation74_spill] sm:$0xff]  ;;  %v1945_v13 = vld [vmem:[#allocation2 + $0x58] sm:$0x3] }
 0x2b2   : > { %v1911_v24 = vadd.f32 %v5693_v45, %v1860_v4  ;;  %v1756_v27 = vadd.f32 %v1747_v55, %v1705_v12  ;;  %v1960_v30 = vmul.f32 %v5696_v63, %v1942_v6  ;;  %v5205_v62 = vmul.f32 %v5699_v49, %v1993_v22  ;;  %v2046_v4 = vld [vmem:[#allocation2 + $0x50] sm:$0xf]  ;;  %v5701_v55 = vld [vmem:[#allocation76_spill] sm:$0xff]  ;;  %v5702_v3 = vld [vmem:[#allocation77_spill] sm:$0xff] }
 0x2b3   : > { %v1798_v32 = vsel %vm1404_vm7, %v5695_v26, %v1797_v16  ;;  %v5211_v45 = vmul.f32 %v5701_v55, %v2095_v18  ;;  %v1932_v6 = vmul.f32 %v5651_v21, %v1914_v29  ;;  %v1962_v39 = vmul.f32 %v5663_v28, %v1944_v48  ;;  %v1915_v16 = vld [vmem:[#allocation2 + $0x58] sm:$0x1] }
 0x2b4   : > { %v1807_v12 = vadd.f32 %v1798_v32, %v1756_v27  ;;  %v1935_v58 = vadd.f32 %v5112_v8, %v1908_v20  ;;  %v1861_v26 = vadd.f32 %v1848_v41, %v1810_v36  ;;  %v5217_v22 = vmul.f32 %v5702_v3, %v2146_v35  ;;  %v2098_v41 = vld [vmem:[#allocation2 + $0x58] sm:$0x1f] }
 0x2b5   : > { %v2013_v56 = vmul.f32 %v5675_v40, %v1995_v47  ;;  %v1976_v32 = vrot.slane %v1960_v30, 1  ;;  %v1938_v18 = vadd.f32 %v1932_v6, %v1911_v24  ;;  %v2064_v10 = vmul.f32 %v5681_v19, %v2046_v4  ;;  %v2149_v30 = vld [vmem:[#allocation2 + $0x58] sm:$0x3f]  ;;  %v2148_v6 = vld [vmem:[#allocation2 + $0x50] sm:$0x3f] }
 0x2b6   : > { %v1858_v27 = vadd.f32 %v1849_v2, %v1807_v12  ;;  %v5703_v21 = vrot.slane %v5102_v14, 7  ;;  %v1974_v29 = vrot.slane %v1962_v39, 1  ;;  %v1933_v48 = vmul.f32 %v5652_v57, %v1915_v16  ;;  %v2196_v39 = vld [vmem:[#allocation2 + $0x38] sm:$0xc0] }
 0x2b7   : > { %v1963_v8 = vmul.f32 %v5696_v63, %v1945_v13  ;;  %v2027_v36 = vrot.slane %v5205_v62, 2  ;;  %v2014_v40 = vmul.f32 %v5699_v49, %v1996_v54  ;;  %v5228_v35 = vmul.f32 %v5700_v43, %v2047_v25  ;;  %v2097_v63 = vld [vmem:[#allocation2 + $0x50] sm:$0x1f]  ;;  %v2145_v62 = vld [vmem:[#allocation2 + $0x38] sm:$0xe0] }
 0x2b8   : > { %v1912_v28 = vadd.f32 %v5703_v21, %v1861_v26  ;;  %v1909_v20 = vadd.f32 %v1900_v34, %v1858_v27  ;;  %v1989_v24 = vadd.f32 %v1974_v29, %v1938_v18  ;;  %v2025_v19 = vrot.slane %v2013_v56, 2  ;;  %v2199_v13 = vld [vmem:[#allocation2 + $0x50] sm:$0x7f] }
 0x2b9   : > { %v1977_v14 = vrot.slane %v1963_v8, 1  ;;  %v2078_v2 = vrot.slane %v5208_v51, 3  ;;  %v2129_v57 = vrot.slane %v5211_v45, 4  ;;  %v2076_v4 = vrot.slane %v2064_v10, 3 }
 0x2ba   : > { %v1939_v47 = vadd.f32 %v1933_v48, %v1912_v28  ;;  %v5233_v34 = vmul.f32 %v5701_v55, %v2098_v41  ;;  %v2028_v54 = vrot.slane %v2014_v40, 2  ;;  %v5236_v25 = vmul.f32 %v5702_v3, %v2149_v30  ;;  %v2247_v48 = vld [vmem:[#allocation2 + $0x38] sm:$0x80] }
 0x2bb   : > { %v5704_v43 = vrot.slane %v5144_v15, 1  ;;  %v1936_v51 = vadd.f32 %v5115_v46, %v1909_v20  ;;  %v1978_v10 = vsel %vm1196_vm3, %v1976_v32, %v1977_v14  ;;  %v2079_v16 = vrot.slane %v5228_v35, 3  ;;  %v5707_v46 = vld [vmem:[#allocation79_spill] sm:$0xff]  ;;  %v5708_v20 = vld [vmem:[#allocation80_spill] sm:$0xff] }
 0x2bc   : > { %v1990_v12 = vadd.f32 %v1977_v14, %v1939_v47  ;;  %v5705_v56 = vrot.slane %v5161_v37, 2  ;;  %v2040_v27 = vadd.f32 %v2025_v19, %v1989_v24  ;;  %v2115_v15 = vmul.f32 %v5683_v1, %v2097_v63  ;;  %v2250_v35 = vld [vmem:[#allocation2 + $0x50] sm:$0xff] }
 0x2bd   : > { %v1975_v49 = vsel %vm1196_vm3, %v5704_v43, %v1974_v29  ;;  %v5706_v21 = vrot.slane %v5170_v53, 3  ;;  %v2163_v29 = vmul.f32 %v5707_v46, %v2145_v62  ;;  %v2166_v32 = vmul.f32 %v5707_v46, %v2148_v6  ;;  %v5710_v62 = vld [vmem:[#allocation81_spill] sm:$0xff]  ;;  %v5711_v43 = vld [vmem:[#allocation78_spill] sm:$0xff] }
 0x2be   : > { %v1986_v55 = vadd.f32 %v1975_v49, %v1935_v58  ;;  %v2041_v26 = vadd.f32 %v2028_v54, %v1990_v12  ;;  %v2026_v3 = vsel %vm1248_vm4, %v5705_v56, %v2025_v19  ;;  %v2197_v58 = vld [vmem:[#allocation2 + $0x40] sm:$0xc0]  ;;  %v2091_v8 = vadd.f32 %v2076_v4, %v2040_v27 }
 0x2bf   : > { %v2077_v28 = vsel %vm1300_vm5, %v5706_v21, %v2076_v4  ;;  %v2127_v41 = vrot.slane %v2115_v15, 4  ;;  %v2214_v37 = vmul.f32 %v5708_v20, %v2196_v39  ;;  %v2217_v40 = vmul.f32 %v5708_v20, %v2199_v13  ;;  %v2200_v15 = vld [vmem:[#allocation2 + $0x58] sm:$0x7f]  ;;  %v5712_v20 = vld [vmem:[#allocation82_spill] sm:$0xff] }
 0x2c0   : > { %v2037_v18 = vadd.f32 %v2026_v3, %v1986_v55  ;;  %v1987_v30 = vadd.f32 %v1978_v10, %v1936_v51  ;;  %v2177_v24 = vrot.slane %v2163_v29, 5  ;;  %v2178_v19 = vrot.slane %v2166_v32, 5 }
 0x2c1   : > { %v5709_v53 = vrot.slane %v5174_v7, 4  ;;  %v2142_v14 = vadd.f32 %v2127_v41, %v2091_v8  ;;  %v2229_v63 = vrot.slane %v2217_v40, 6  ;;  %v2265_v12 = vmul.f32 %v5710_v62, %v2247_v48  ;;  %v2248_v48 = vld [vmem:[#allocation2 + $0x40] sm:$0x80]  ;;  %v2251_v8 = vld [vmem:[#allocation2 + $0x58] sm:$0xff] }
 0x2c2   : > { %v2088_v1 = vadd.f32 %v2077_v28, %v2037_v18  ;;  %v2215_v4 = vmul.f32 %v5711_v43, %v2197_v58  ;;  %v2130_v49 = vrot.slane %v5233_v34, 4  ;;  %v2268_v39 = vmul.f32 %v5710_v62, %v2250_v35  ;;  %v5715_v62 = vld [vmem:[#allocation83_spill] sm:$0xff] }
 0x2c3   : > { %v2128_v47 = vsel %vm1352_vm6, %v5709_v53, %v2127_v41  ;;  %v2092_v55 = vadd.f32 %v2079_v16, %v2041_v26  ;;  %v2179_v51 = vsel %vm1404_vm7, %v2177_v24, %v2178_v19  ;;  %v2193_v10 = vadd.f32 %v2178_v19, %v2142_v14 }
 0x2c4   : > { %v2139_v6 = vadd.f32 %v2128_v47, %v2088_v1  ;;  %v2228_v13 = vrot.slane %v2214_v37, 6  ;;  %v2029_v7 = vsel %vm1248_vm4, %v2027_v36, %v2028_v54  ;;  %v2181_v56 = vrot.slane %v5236_v25, 5  ;;  %v5714_v47 = vld [vmem:[#allocation89_spill] sm:$0xff] }
 0x2c5   : > { %v2280_v27 = vrot.slane %v2268_v39, 7  ;;  %v2244_v21 = vadd.f32 %v2229_v63, %v2193_v10  ;;  %v2279_v28 = vrot.slane %v2265_v12, 7  ;;  %v2038_v34 = vadd.f32 %v2029_v7, %v1987_v30  ;;  %v5713_v30 = vld [vmem:[#allocation92_spill] sm:$0xff]  ;;  %v2533_v39 = vld [vmem:[#allocation2 + $0x70] sm:$0x3f] }
 0x2c6   : > { %v2190_v3 = vadd.f32 %v2179_v51, %v2139_v6  ;;  %v2230_v18 = vsel %vm1456_vm8, %v2228_v13, %v2229_v63  ;;  %v2180_v46 = vrot.slane %v5217_v22, 5  ;;  %v2231_v29 = vrot.slane %v2215_v4, 6  ;;  %v2530_v6 = vld [vmem:[#allocation2 + $0x58] sm:$0xe0] }
 0x2c7   : > { %v2080_v32 = vsel %vm1300_vm5, %v2078_v2, %v2079_v16  ;;  %v2281_v58 = vsel %vm372_vm1, %v2279_v28, %v2280_v27  ;;  %v2295_v36 = vadd.f32 %v2280_v27, %v2244_v21  ;;  %v2143_v25 = vadd.f32 %v2130_v49, %v2092_v55  ;;  %v5719_v55 = vld [vmem:[#allocation18_spill] sm:$0xff]  ;;  %v5722_v28 = vld [vmem:[#allocation17_spill] sm:$0xff] }
 0x2c8   : > { %v2241_v26 = vadd.f32 %v2230_v18, %v2190_v3  ;;  %v2089_v54 = vadd.f32 %v2080_v32, %v2038_v34  ;;  %v2313_v37 = vmul.f32 %v5712_v20, %v2250_v35  ;;  %v2131_v40 = vsel %vm1352_vm6, %v2129_v57, %v2130_v49 }
 0x2c9   : > { %v2218_v22 = vmul.f32 %v5711_v43, %v2200_v15  ;;  %v2322_v1 = vadd.f32 %v5713_v30, %v2295_v36  ;;  %v2182_v2 = vsel %vm1404_vm7, %v2180_v46, %v2181_v56  ;;  %v2194_v16 = vadd.f32 %v2181_v56, %v2143_v25  ;;  %v5720_v56 = vld [vmem:[#allocation93_spill] sm:$0xff] }
 0x2ca   : > { %v2292_v41 = vadd.f32 %v2281_v58, %v2241_v26  ;;  %v2140_v24 = vadd.f32 %v2131_v40, %v2089_v54  ;;  %v2266_v14 = vmul.f32 %v5714_v47, %v2248_v48  ;;  %v2269_v63 = vmul.f32 %v5714_v47, %v2251_v8  ;;  %v3632_v26 = vld [vmem:[%s5378_s5 + $0x58] sm:$0xff]  ;;  %v2584_v40 = vld [vmem:[#allocation2 + $0x70] sm:$0x7f] }
 0x2cb   : > { %v2232_v53 = vrot.slane %v2218_v22, 6  ;;  %v5716_v35 = vrot.slane %v5715_v62, 1  ;;  %v2730_v45 = vand.u32 2147483647, %v5132_v60  ;;  %v5717_v43 = vrot.slane %v5029_v23, 3 }
 0x2cc   : > { %v2319_v19 = vadd.f32 %v2313_v37, %v2292_v41  ;;  %v2191_v57 = vadd.f32 %v2182_v2, %v2140_v24  ;;  %v5718_v4 = vrot.slane %v5019_v11, 3  ;;  %v2727_v10 = vand.u32 2147483647, %v5138_v50  ;;  %v2581_v37 = vld [vmem:[#allocation2 + $0x58] sm:$0xc0] }
 0x2cd   : > { %v2373_v12 = vadd.f32 %v5716_v35, %v2322_v1  ;;  %v2233_v13 = vsel %vm1456_vm8, %v2231_v29, %v2232_v53  ;;  %v2245_v7 = vadd.f32 %v2232_v53, %v2194_v16  ;;  %v5721_v3 = vrot.slane %v5720_v56, 2  ;;  %v2632_v24 = vld [vmem:[#allocation2 + $0x58] sm:$0x80] }
 0x2ce   : > { %v2464_v49 = vsel %vm1300_vm5, %v5718_v4, %v5717_v43  ;;  %v2370_v51 = vadd.f32 %v5719_v55, %v2319_v19  ;;  %v2242_v15 = vadd.f32 %v2233_v13, %v2191_v57  ;;  %v2282_v18 = vrot.slane %v2266_v14, 7  ;;  %v5727_v14 = vld [vmem:[#allocation21_spill] sm:$0xff]  ;;  %v5731_v43 = vld [vmem:[#allocation11_spill] sm:$0xff]  ;;  %v5733_v55 = vld [vmem:[#allocation20_spill] sm:$0xff] }
 0x2cf   : > { %v2424_v27 = vadd.f32 %v5721_v3, %v2373_v12  ;;  %v2283_v21 = vrot.slane %v2269_v63, 7  ;;  %v2548_v11 = vmul.f32 %v5119_v42, %v2530_v6  ;;  %v2551_v46 = vmul.f32 %v5119_v42, %v2533_v39  ;;  %v5729_v12 = vld [vmem:[#allocation12_spill] sm:$0xff]  ;;  %v5735_v13 = vld [vmem:[#allocation13_spill] sm:$0xff] }
 0x2d0   : > { %v2421_v34 = vadd.f32 %v5722_v28, %v2370_v51  ;;  %v2596_v32 = vrot.slane %v3632_v26, %v4019_v44  ;;  %v5723_v29 = vrot.slane %v4748_v52, 3  ;;  %v2647_v54 = vrot.slane %v3632_v26, %v4031_v0  ;;  %v5734_v51 = vld [vmem:[#allocation16_spill] sm:$0xff] }
 0x2d1   : > { %v2284_v58 = vsel %vm372_vm1, %v2282_v18, %v2283_v21  ;;  %v2296_v36 = vadd.f32 %v2283_v21, %v2245_v7  ;;  %v2736_v41 = vsub.f32 0.0, %v2730_v45  ;;  %v2314_v42 = vmul.f32 %v5639_v5, %v2251_v8 }
 0x2d2   : > { %v2475_v48 = vadd.f32 %v5723_v29, %v2424_v27  ;;  %v2472_v25 = vadd.f32 %v4918_v31, %v2421_v34  ;;  %v2293_v20 = vadd.f32 %v2284_v58, %v2242_v15  ;;  %v5724_v22 = vrot.slane %v4782_v59, 4  ;;  %v5737_v27 = vld [vmem:[#allocation10_spill] sm:$0xff] }
 0x2d3   : > { %v2733_v44 = vsub.f32 0.0, %v2727_v10  ;;  %v2323_v52 = vadd.f32 %v5079_v9, %v2296_v36  ;;  %v2514_v1 = vrot.slane %v5096_v17, 4  ;;  %v2564_v16 = vrot.slane %v2548_v11, 5  ;;  %v5728_v9 = vld [vmem:[#allocation15_spill] sm:$0xff] }
 0x2d4   : > { %v2526_v30 = vadd.f32 %v5724_v22, %v2475_v48  ;;  %v2523_v2 = vadd.f32 %v4937_v38, %v2472_v25  ;;  %v2320_v0 = vadd.f32 %v2314_v42, %v2293_v20  ;;  %v2565_v31 = vrot.slane %v2551_v46, 5  ;;  %v5740_v46 = vld [vmem:[#allocation14_spill] sm:$0xff]  ;;  %v5741_v48 = vld [vmem:[#allocation9_spill] sm:$0xff] }
 0x2d5   : > { %v5725_v19 = vrot.slane %v4921_v61, 5  ;;  %v5726_v5 = vrot.slane %v5006_v33, 1  ;;  %v2599_v47 = vmul.f32 %v2596_v32, %v2581_v37  ;;  %v2602_v59 = vmul.f32 %v2596_v32, %v2584_v40  ;;  %v3633_v61 = vld [vmem:[#allocation2] sm:$0xff]  ;;  %v5742_v20 = vld [vmem:[#allocation22_spill] sm:$0xff] }
 0x2d6   : > { %v2574_v63 = vadd.f32 %v5727_v14, %v2523_v2  ;;  %v2745_v62 = vmul.f32 1.442695, %v2736_v41  ;;  %v2371_v35 = vadd.f32 %v5728_v9, %v2320_v0  ;;  %v2650_v17 = vmul.f32 %v2647_v54, %v2632_v24 }
 0x2d7   : > { %v2577_v53 = vadd.f32 %v5725_v19, %v2526_v30  ;;  %v2374_v8 = vadd.f32 %v5726_v5, %v2323_v52  ;;  %v5730_v45 = vrot.slane %v5729_v12, 6  ;;  %v2739_v57 = vmul.f32 1.442695, %v2733_v44  ;;  %v5743_v52 = vld [vmem:[#allocation5_spill] sm:$0xff] }
 0x2d8   : > { %v5732_v4 = vrot.slane %v5731_v43, 2  ;;  %v2653_v39 = vmul.f32 %v3633_v61, %v2647_v54  ;;  %v2625_v33 = vadd.f32 %v5733_v55, %v2574_v63  ;;  %v2422_v10 = vadd.f32 %v5734_v51, %v2371_v35 }
 0x2d9   : > { %v2628_v38 = vadd.f32 %v5730_v45, %v2577_v53  ;;  %v5736_v7 = vrot.slane %v5735_v13, 4  ;;  %v2566_v3 = vsel %vm1404_vm7, %v2564_v16, %v2565_v31  ;;  %v5738_v15 = vrot.slane %v5737_v27, 7 }
 0x2da   : > { %v2425_v6 = vadd.f32 %v5732_v4, %v2374_v8  ;;  %v5739_v21 = vrot.slane %v5029_v23, 3  ;;  %v2615_v34 = vrot.slane %v2599_v47, 6  ;;  %v2616_v11 = vrot.slane %v2602_v59, 6 }
 0x2db   : > { %v2515_v56 = vsel %vm1352_vm6, %v5736_v7, %v2514_v1  ;;  %v2679_v18 = vadd.f32 %v5738_v15, %v2628_v38  ;;  %v2676_v26 = vadd.f32 %v5740_v46, %v2625_v33  ;;  %3607 = vpow2.f32 %v2745_v62 }
 0x2dc   : > { %v2476_v28 = vadd.f32 %v5739_v21, %v2425_v6  ;;  %v2473_v32 = vadd.f32 %v2464_v49, %v2422_v10  ;;  %v2666_v29 = vrot.slane %v2650_v17, 7  ;;  %3609 = vpow2.f32 %v2739_v57 }
 0x2dd   : > { %v2702_v58 = vmul.f32 %v5741_v48, %v2679_v18  ;;  %v2667_v54 = vrot.slane %v2653_v39, 7  ;;  %v2699_v25 = vmul.f32 %v5741_v48, %v2676_v26  ;;  %v2617_v37 = vsel %vm1456_vm8, %v2615_v34, %v2616_v11 }
 0x2de   : > { %v2527_v36 = vadd.f32 %v2514_v1, %v2476_v28  ;;  %v2524_v41 = vadd.f32 %v2515_v56, %v2473_v32  ;;  %v5744_v1 = vld [vmem:[#allocation23_spill] sm:$0xff] }
 0x2df   : > { %v5333_v42 = vadd.f32 %v5742_v20, %v2702_v58  ;;  %v5337_v40 = vadd.f32 %v5742_v20, %v2699_v25  ;;  %v2668_v44 = vsel %vm372_vm1, %v2666_v29, %v2667_v54  ;;  %v2694_v24 = vrot.slane %v5744_v1, %v5743_v52 }
 0x2e0   : > { %v2578_v23 = vadd.f32 %v2565_v31, %v2527_v36  ;;  %v2575_v22 = vadd.f32 %v2566_v3, %v2524_v41  ;;  %v5745_v31 = vld [vmem:[#allocation19_spill] sm:$0xff]  ;;  %vm2754_vm1 = vcmp.ge.f32.partialorder %v5132_v60, 0.0 }
 0x2e1   : > { %v2731_v49 = vand.u32 2147483647, %v5333_v42  ;;  %v2728_v2 = vand.u32 2147483647, %v5337_v40  ;;  %v2717_v53 = vrot.slane %v5745_v31, %v5743_v52  ;;  %vm2755_vm3 = vcmp.ge.f32.partialorder %v5333_v42, 0.0 }
 0x2e2   : > { %v2629_v30 = vadd.f32 %v2616_v11, %v2578_v23  ;;  %v2626_v0 = vadd.f32 %v2617_v37, %v2575_v22  ;;  %vm2752_vm4 = vcmp.ge.f32.partialorder %v5337_v40, 0.0 }
 0x2e3   : > { %v2737_v16 = vsub.f32 0.0, %v2731_v49  ;;  %v2734_v5 = vsub.f32 0.0, %v2728_v2 }
 0x2e4   : > { %v2680_v19 = vadd.f32 %v2667_v54, %v2629_v30  ;;  %v2677_v8 = vadd.f32 %v2668_v44, %v2626_v0 }
 0x2e5   : > { %v2747_v47 = vmul.f32 1.442695, %v2737_v16  ;;  %v3608_v14 = vpop.eup %3607  ;;  %v2741_v63 = vmul.f32 1.442695, %v2734_v5 }
 0x2e6   : > { %v2703_v59 = vmul.f32 %v2694_v24, %v2680_v19  ;;  %v2700_v62 = vmul.f32 %v2694_v24, %v2677_v8  ;;  %v3610_v9 = vpop.eup %3609  ;;  %v2760_v12 = vadd.f32 1.0, %v3608_v14  ;;  %v5747_v24 = vld [vmem:[#allocation3_spill] sm:$0xff] }
 0x2e7   : > { %3611 = vpow2.f32 %v2747_v47  ;;  %v2757_v38 = vadd.f32 1.0, %v3610_v9 }
 0x2e8   : > { %v2726_v35 = vadd.f32 %v2717_v53, %v2703_v59  ;;  %3613 = vpow2.f32 %v2741_v63  ;;  %v2723_v17 = vadd.f32 %v2717_v53, %v2700_v62 }
 0x2e9   : > { %3615 = vrcp.f32 %v2760_v12 }
 0x2ea   : > { %v2732_v45 = vand.u32 2147483647, %v2726_v35  ;;  %v2729_v57 = vand.u32 2147483647, %v2723_v17  ;;  %3617 = vrcp.f32 %v2757_v38  ;;  %vm2756_vm5 = vcmp.ge.f32.partialorder %v2726_v35, 0.0 }
 0x2eb   : > { %vm2753_vm6 = vcmp.ge.f32.partialorder %v2723_v17, 0.0 }
 0x2ec   : > { %v2738_v43 = vsub.f32 0.0, %v2732_v45  ;;  %v2735_v4 = vsub.f32 0.0, %v2729_v57  ;;  %v3635_v45 = vld [vmem:[%s3719_s18 + $0x8] sm:$0xff] }
 0x2ee   : > { %v2749_v6 = vmul.f32 1.442695, %v2738_v43  ;;  %v2743_v61 = vmul.f32 1.442695, %v2735_v4  ;;  %v3636_v43 = vld [vmem:[%s3719_s18 + $0x10] sm:$0x1] }
 0x2f0   : > { %3619 = vpow2.f32 %v2749_v6  ;;  %v3637_v6 = vld [vmem:[%s3719_s18 + $0x18] sm:$0x1] }
 0x2f1   : > { %3621 = vpow2.f32 %v2743_v61  ;;  %v3612_v39 = vpop.eup %3611 }
 0x2f2   : > { %v3614_v55 = vpop.eup %3613  ;;  %v2761_v33 = vadd.f32 1.0, %v3612_v39 }
 0x2f3   : > { %v2758_v51 = vadd.f32 1.0, %v3614_v55  ;;  %v3616_v10 = vpop.eup %3615 }
 0x2f4   : > { %3623 = vrcp.f32 %v2761_v33  ;;  %v3618_v13 = vpop.eup %3617  ;;  %v2778_v15 = vmul.f32 %v3616_v10, %v3608_v14 }
 0x2f5   : > { %3625 = vrcp.f32 %v2758_v51  ;;  %v2775_v27 = vmul.f32 %v3618_v13, %v3610_v9  ;;  %v3634_v9 = vld [vmem:[%s3719_s18] sm:$0xff] }
 0x2f6   : > { %v2784_v46 = vsel %vm2754_vm1, %v3616_v10, %v2778_v15 }
 0x2f7   : > { %v2781_v11 = vsel %vm2751_vm15, %v3618_v13, %v2775_v27  ;;  %v2790_v36 = vmul.f32 %v2784_v46, %v5132_v60  ;;  %v5746_v60 = vld [vmem:[#allocation4_spill] sm:$0xff] }
 0x2f8   : > { %v2787_v58 = vmul.f32 %v2781_v11, %v5138_v50  ;;  %v2844_v50 = vld [vmem:[%s5382_s9] sm:$0x3] }
 0x2f9   : > { %v2853_v2 = vrot.slane %v2844_v50, %v5747_v24 }
 0x2fa   : > { %v3620_v7 = vpop.eup %3619  ;;  %v2793_v20 = vpack.c.bf16 %v2790_v36, %v2787_v58 }
 0x2fb   : > { %v3622_v56 = vpop.eup %3621  ;;  %v2762_v3 = vadd.f32 1.0, %v3620_v7 }
 0x2fc   : > { %v2759_v18 = vadd.f32 1.0, %v3622_v56 }
 0x2fd   : > { %3627 = vrcp.f32 %v2762_v3 }
 0x2fe   : > { %3629 = vrcp.f32 %v2759_v18  ;;  %v3624_v21 = vpop.eup %3623 }
 0x2ff   : > { %v3626_v28 = vpop.eup %3625  ;;  %v2779_v34 = vmul.f32 %v3624_v21, %v3612_v39 }
 0x300   : > { %v2776_v26 = vmul.f32 %v3626_v28, %v3614_v55 }
 0x301   : > { %v2785_v32 = vsel %vm2755_vm3, %v3624_v21, %v2779_v34 }
 0x302   : > { %v2782_v29 = vsel %vm2752_vm4, %v3626_v28, %v2776_v26  ;;  %v2791_v48 = vmul.f32 %v2785_v32, %v5333_v42 }
 0x303   : > { %v2788_v54 = vmul.f32 %v2782_v29, %v5337_v40  ;;  %v2849_v40 = vrot.slane %v2844_v50, %v5746_v60 }
 0x305   : > { %v2794_v25 = vpack.c.bf16 %v2791_v48, %v2788_v54 }
 0x307   : > { %v3628_v41 = vpop.eup %3627  ;;  %3128 = vmatprep.mubr.bf16.mxu1 %v2794_v25 }
 0x308   : > { %v3630_v23 = vpop.eup %3629  ;;  %v2780_v37 = vmul.f32 %v3628_v41, %v3620_v7  ;;  %3129 = vmatmul.mubr.bf16.vlgmr.msra.gmra.mrb[4].mxu1 %v2793_v20 }
 0x309   : > { %v2777_v22 = vmul.f32 %v3630_v23, %v3622_v56 }
 0x30a   : > { %v2786_v49 = vsel %vm2756_vm5, %v3628_v41, %v2780_v37 }
 0x30b   : > { %v2783_v30 = vsel %vm2753_vm6, %v3630_v23, %v2777_v22  ;;  %v2792_v44 = vmul.f32 %v2786_v49, %v2726_v35 }
 0x30c   : > { %v2789_v42 = vmul.f32 %v2783_v30, %v2723_v17 }
 0x30e   : > { %v2795_v52 = vpack.c.bf16 %v2792_v44, %v2789_v42 }
 0x310   : > { %3172 = vmatmul.mubr.bf16.vlgmr.msra.gmra.mrb[8].mxu0 %v2795_v52 }
 0x3db   : > { %v3130_v1 = vpop.f32.mrb[4].mxu1 }
 0x3dc   : > { %v3132_v0 = vpop.f32.mrb[5].mxu1  ;;  %v3131_v31 = vadd.f32 %v3130_v1, %v2849_v40 }
 0x3dd   : > { %v3134_v16 = vpop.f32.mrb[6].mxu1  ;;  %v3133_v53 = vadd.f32 %v3132_v0, %v2853_v2 }
 0x3de   : > { %v3136_v19 = vpop.f32.mrb[7].mxu1  ;;  %v3135_v5 = vadd.f32 %v3134_v16, %v2849_v40 }
 0x3df   : > { %v3137_v47 = vadd.f32 %v3136_v19, %v2853_v2 }
 0x3e3   : > { %v3173_v8 = vpop.f32.mrb[8].mxu0 }
 0x3e4   : > { %v3174_v59 = vadd.f32 %v3173_v8, %v3131_v31  ;;  %v3175_v14 = vpop.f32.mrb[9].mxu0 }
 0x3e5   : > { %v3176_v63 = vadd.f32 %v3175_v14, %v3133_v53  ;;  %v3177_v62 = vpop.f32.mrb[10].mxu0 }
 0x3e6   : > { %v3182_v35 = vadd.f32 %v3634_v9, %v3174_v59  ;;  %v3178_v17 = vadd.f32 %v3177_v62, %v3135_v5  ;;  %v3179_v12 = vpop.f32.mrb[11].mxu0 }
 0x3e7   : > { %v3183_v38 = vadd.f32 %v3635_v45, %v3176_v63  ;;  %v3180_v57 = vadd.f32 %v3179_v12, %v3137_v47 }
 0x3e8   : > { %3186 = vst [vmem:[%s359_s27] sm:$0xff] %v3182_v35  ;;  %v3184_v4 = vadd.f32 %v3636_v43, %v3178_v17 }
 0x3e9   : > { %3187 = vst.msk [vmem:[%s359_s27 + $0x8] sm:$0xff] %vm367_vm0, %v3183_v38  ;;  %v3185_v61 = vadd.f32 %v3637_v6, %v3180_v57 }
 0x3ea   : > { %3188 = vst [vmem:[%s359_s27 + $0x10] sm:$0x1] %v3184_v4 }
 0x3eb   : > { %3189 = vst.msk [vmem:[%s359_s27 + $0x18] sm:$0x1] %vm374_vm2, %v3185_v61 }
 0x3ec PF: > { %s20_s13 = sadd.s32 1, %s3644_s13  }
 0x3ed   : > { %p17_p4 = scmp.ge.s32.totalorder %s20_s13, 4  }
 0x3ef   :  { %19 = sbr.rel (!%p17_p4) target bundleno = 1 (0x1), region = 90 }

</bundles_post_ra>
